<compile_context>
chip_gen: v5e
topology: v5e:2x2
jax: 0.10.0
libtpu: 0.0.40
codegen_flags: <defaults>
</compile_context>

<pallas_src>
import jax
import jax.numpy as jnp
from jax.experimental import pallas as pl
from jax.experimental.pallas import tpu as pltpu


INPUT_DIMS = 8192
H1, H2, H3, OUT = 512, 128, 64, 8

TK = 4096      # fc1 reduction (K) tile; 8192 / 4096 = 2 grid steps
B_MULT = 16    # pad batch to the bf16 sublane-packing multiple


def _classification_net_kernel(x_ref, w1_ref, b1_ref, w2_ref, b2_ref,
                               w3_ref, b3_ref, w4_ref, b4_ref,
                               out_ref, acc_ref):
    k = pl.program_id(0)

    @pl.when(k == 0)
    def _():
        acc_ref[...] = jnp.zeros_like(acc_ref)

    # x is resident in VMEM (fetched once); slice the current fc1 K chunk.
    k_start = pl.multiple_of(k * TK, TK)
    x_chunk = x_ref[:, pl.ds(k_start, TK)]
    # Stream one K-chunk of W1 (bf16 x bf16, f32 accumulate on the MXU).
    acc_ref[...] += jnp.dot(x_chunk, w1_ref[...],
                            preferred_element_type=jnp.float32)

    @pl.when(k == pl.num_programs(0) - 1)
    def _():
        h1 = jnp.maximum(acc_ref[...] + b1_ref[...], 0.0)              # fc1 + ReLU
        h2 = jnp.maximum(
            jnp.dot(h1.astype(jnp.bfloat16), w2_ref[...],
                    preferred_element_type=jnp.float32) + b2_ref[...],
            0.0)                                                        # fc2 + ReLU
        h3 = jnp.maximum(
            jnp.dot(h2.astype(jnp.bfloat16), w3_ref[...],
                    preferred_element_type=jnp.float32) + b3_ref[...],
            0.0)                                                        # fc3 + ReLU
        out_ref[...] = (jnp.dot(h3.astype(jnp.bfloat16), w4_ref[...],
                                preferred_element_type=jnp.float32)
                        + b4_ref[...]).astype(out_ref.dtype)            # fc4


def prepare_params(params):
    """One-time (outside jit) prep: pad W1's K axis to a multiple of TK and
    cast all weights to bf16 (MXU-native); keep biases f32, shaped (1, N)."""
    w1, b1, w2, b2, w3, b3, w4, b4 = params
    k_in = w1.shape[0]
    k_pad = pl.cdiv(k_in, TK) * TK
    w1_p = (jnp.zeros((k_pad, H1), jnp.bfloat16)
            .at[:k_in, :].set(w1.astype(jnp.bfloat16)))
    bf16 = lambda a: a.astype(jnp.bfloat16)
    f32 = lambda a: a.astype(jnp.float32)
    return (w1_p,
            f32(b1).reshape(1, -1),
            bf16(w2), f32(b2).reshape(1, -1),
            bf16(w3), f32(b3).reshape(1, -1),
            bf16(w4), f32(b4).reshape(1, -1))


@jax.jit
def classification_net_forward(feats, prepared):
    """Pallas implementation of Classification_Net.forward (eval mode)."""
    w1_p, b1, w2, b2, w3, b3, w4, b4 = prepared

    B, K = feats.shape
    k_pad = w1_p.shape[0]
    num_k = k_pad // TK
    b_pad = pl.cdiv(B, B_MULT) * B_MULT

    # Zero-pad batch (bf16 sublane packing) and K (padded W1 rows are zero, so
    # padded x columns contribute nothing); x travels in bf16.
    x_p = (jnp.zeros((b_pad, k_pad), jnp.bfloat16)
           .at[:B, :K].set(feats.astype(jnp.bfloat16)))

    full = lambda shape: pl.BlockSpec(shape, lambda k: (0,) * len(shape))

    flops = 2 * b_pad * (k_pad * H1 + H1 * H2 + H2 * H3 + H3 * OUT)
    bytes_accessed = (w1_p.size * 2 + x_p.size * 2
                      + (H1 * H2 + H2 * H3 + H3 * OUT) * 2
                      + (H1 + H2 + H3 + OUT) * 4
                      + b_pad * OUT * 4)

    out_p = pl.pallas_call(
        _classification_net_kernel,
        out_shape=jax.ShapeDtypeStruct((b_pad, OUT), jnp.float32),
        grid_spec=pltpu.PrefetchScalarGridSpec(
            num_scalar_prefetch=0,
            grid=(num_k,),
            in_specs=[
                full((b_pad, k_pad)),                          # x (resident, bf16)
                pl.BlockSpec((TK, H1), lambda k: (k, 0)),      # W1 chunk (bf16)
                full((1, H1)),                                 # b1
                full((H1, H2)), full((1, H2)),                 # W2 (bf16), b2
                full((H2, H3)), full((1, H3)),                 # W3 (bf16), b3
                full((H3, OUT)), full((1, OUT)),               # W4 (bf16), b4
            ],
            out_specs=pl.BlockSpec((b_pad, OUT), lambda k: (0, 0)),
            scratch_shapes=[pltpu.VMEM((b_pad, H1), jnp.float32)],
        ),
        compiler_params=pltpu.CompilerParams(
            dimension_semantics=("arbitrary",)),
        cost_estimate=pl.CostEstimate(flops=flops, transcendentals=0,
                                      bytes_accessed=bytes_accessed),
    )(x_p, w1_p, b1, w2, b2, w3, b3, w4, b4)

    return out_p[:B]


def init_params(key):
    """Deterministic PyTorch-style Linear init; weights stored as (in, out)."""
    def linear(k, fan_in, fan_out):
        kw, kb = jax.random.split(k)
        bound = 1.0 / jnp.sqrt(fan_in)
        w = jax.random.uniform(kw, (fan_in, fan_out), jnp.float32, -bound, bound)
        b = jax.random.uniform(kb, (fan_out,), jnp.float32, -bound, bound)
        return w, b

    ks = jax.random.split(key, 4)
    w1, b1 = linear(ks[0], INPUT_DIMS, H1)
    w2, b2 = linear(ks[1], H1, H2)
    w3, b3 = linear(ks[2], H2, H3)
    w4, b4 = linear(ks[3], H3, OUT)
    return (w1, b1, w2, b2, w3, b3, w4, b4)


def reference_forward(feats, params, match_kernel):
    """Pure-JAX reference (eval mode). match_kernel=True mirrors the kernel's
    bf16-operand / f32-accumulate matmuls for a tight numerical comparison."""
    w1, b1, w2, b2, w3, b3, w4, b4 = params
    x = feats.astype(jnp.float32)

    def mm(a, w):
        if match_kernel:
            return jnp.dot(a.astype(jnp.bfloat16), w.astype(jnp.bfloat16),
                           preferred_element_type=jnp.float32)
        return a @ w

    h1 = jax.nn.relu(mm(x, w1) + b1)
    h2 = jax.nn.relu(mm(h1, w2) + b2)
    h3 = jax.nn.relu(mm(h2, w3) + b3)
    return mm(h3, w4) + b4


if __name__ == "__main__":
    key = jax.random.PRNGKey(0)
    k_param, k_feat = jax.random.split(key)

    batch = 2
    params = init_params(k_param)
    prepared = prepare_params(params)          # one-time, outside the jitted path
    feats = jax.random.normal(k_feat, (batch, INPUT_DIMS), jnp.float32)

    out = classification_net_forward(feats, prepared)
    jax.block_until_ready(out)

    ref_matched = reference_forward(feats, params, match_kernel=True)
    ref_f32 = reference_forward(feats, params, match_kernel=False)

    assert out.shape == (batch, OUT)
    # Tight check vs. a reference using the same bf16-operand precision.
    assert jnp.allclose(out, ref_matched, atol=2e-3, rtol=2e-3)
    # Loose sanity check vs. the full-f32 reference.
    assert jnp.allclose(out, ref_f32, atol=5e-2, rtol=5e-2)

    print("KERNEL_OK")
</pallas_src>

<mosaic_0001>
module attributes {stable_mosaic.version = 11 : i64} {
  func.func @_classification_net_kernel(%arg0: i32, %arg1: memref<16x8192xbf16, #tpu.memory_space<vmem>>, %arg2: memref<4096x512xbf16, #tpu.memory_space<vmem>>, %arg3: memref<1x512xf32, #tpu.memory_space<vmem>>, %arg4: memref<512x128xbf16, #tpu.memory_space<vmem>>, %arg5: memref<1x128xf32, #tpu.memory_space<vmem>>, %arg6: memref<128x64xbf16, #tpu.memory_space<vmem>>, %arg7: memref<1x64xf32, #tpu.memory_space<vmem>>, %arg8: memref<64x8xbf16, #tpu.memory_space<vmem>>, %arg9: memref<1x8xf32, #tpu.memory_space<vmem>>, %arg10: memref<16x8xf32, #tpu.memory_space<vmem>>, %arg11: memref<16x512xf32, #tpu.memory_space<vmem>>) attributes {dimension_semantics = [#tpu.dimension_semantics<arbitrary>], iteration_bounds = array<i64: 2>, scalar_prefetch = 0 : i64, scratch_operands = 1 : i64, tpu.core_type = #tpu.core_type<tc>, window_params = [{pipeline_mode = #tpu.pipeline_mode<synchronous>, transform_indices = @transform_0, window_bounds = array<i64: 16, 8192>}, {transform_indices = @transform_1, window_bounds = array<i64: 4096, 512>}, {pipeline_mode = #tpu.pipeline_mode<synchronous>, transform_indices = @transform_2, window_bounds = array<i64: 1, 512>}, {pipeline_mode = #tpu.pipeline_mode<synchronous>, transform_indices = @transform_3, window_bounds = array<i64: 512, 128>}, {pipeline_mode = #tpu.pipeline_mode<synchronous>, transform_indices = @transform_4, window_bounds = array<i64: 1, 128>}, {pipeline_mode = #tpu.pipeline_mode<synchronous>, transform_indices = @transform_5, window_bounds = array<i64: 128, 64>}, {pipeline_mode = #tpu.pipeline_mode<synchronous>, transform_indices = @transform_6, window_bounds = array<i64: 1, 64>}, {pipeline_mode = #tpu.pipeline_mode<synchronous>, transform_indices = @transform_7, window_bounds = array<i64: 64, 8>}, {pipeline_mode = #tpu.pipeline_mode<synchronous>, transform_indices = @transform_8, window_bounds = array<i64: 1, 8>}, {pipeline_mode = #tpu.pipeline_mode<synchronous>, transform_indices = @transform_9, window_bounds = array<i64: 16, 8>}]} {
    %c0_i32 = arith.constant 0 : i32
    %0 = arith.cmpi eq, %arg0, %c0_i32 : i32
    %1 = arith.extui %0 : i1 to i32
    %c0_i32_0 = arith.constant 0 : i32
    %2 = arith.cmpi ne, %1, %c0_i32_0 : i32
    scf.if %2 {
      %cst_8 = arith.constant 0.000000e+00 : f32
      %15 = vector.broadcast %cst_8 : f32 to vector<16x512xf32>
      %c0_9 = arith.constant 0 : index
      %c0_10 = arith.constant 0 : index
      %16 = vector.load %arg11[%c0_9, %c0_10] : memref<16x512xf32, #tpu.memory_space<vmem>>, vector<16x512xf32>
      tpu.vector_store %arg11[%c0_9, %c0_10], %15 {strides = array<i32>} : memref<16x512xf32, #tpu.memory_space<vmem>>, vector<16x512xf32>,
    } else {
    }
    %c4096_i32 = arith.constant 4096 : i32
    %3 = arith.muli %arg0, %c4096_i32 : i32
    %4 = tpu.assume_multiple %3, 4096 : i32
    %c0 = arith.constant 0 : index
    %5 = arith.index_cast %4 : i32 to index
    %6 = vector.load %arg1[%c0, %5] : memref<16x8192xbf16, #tpu.memory_space<vmem>>, vector<16x4096xbf16>
    %c0_1 = arith.constant 0 : index
    %c0_2 = arith.constant 0 : index
    %7 = vector.load %arg11[%c0_1, %c0_2] : memref<16x512xf32, #tpu.memory_space<vmem>>, vector<16x512xf32>
    %c0_3 = arith.constant 0 : index
    %c0_4 = arith.constant 0 : index
    %8 = vector.load %arg2[%c0_3, %c0_4] : memref<4096x512xbf16, #tpu.memory_space<vmem>>, vector<4096x512xbf16>
    %cst = arith.constant dense<0.000000e+00> : vector<16x512xf32>
    %9 = tpu.matmul %6, %8, %cst {dimension_numbers = #tpu.dot_dimension_numbers<[1], [0], [0], [1], [0, 0, 1, 1], [], []>} : vector<16x4096xbf16>, vector<4096x512xbf16>, vector<16x512xf32> -> vector<16x512xf32>
    %10 = arith.addf %7, %9 : vector<16x512xf32>
    %c0_5 = arith.constant 0 : index
    %c0_6 = arith.constant 0 : index
    %11 = vector.load %arg11[%c0_5, %c0_6] : memref<16x512xf32, #tpu.memory_space<vmem>>, vector<16x512xf32>
    tpu.vector_store %arg11[%c0_5, %c0_6], %10 {strides = array<i32>} : memref<16x512xf32, #tpu.memory_space<vmem>>, vector<16x512xf32>,
    %c1_i32 = arith.constant 1 : i32
    %12 = arith.cmpi eq, %arg0, %c1_i32 : i32
    %13 = arith.extui %12 : i1 to i32
    %c0_i32_7 = arith.constant 0 : i32
    %14 = arith.cmpi ne, %13, %c0_i32_7 : i32
    scf.if %14 {
      %c0_8 = arith.constant 0 : index
      %c0_9 = arith.constant 0 : index
      %15 = vector.load %arg11[%c0_8, %c0_9] : memref<16x512xf32, #tpu.memory_space<vmem>>, vector<16x512xf32>
      %c0_10 = arith.constant 0 : index
      %c0_11 = arith.constant 0 : index
      %16 = vector.load %arg3[%c0_10, %c0_11] : memref<1x512xf32, #tpu.memory_space<vmem>>, vector<1x512xf32>
      %17 = vector.broadcast %16 : vector<1x512xf32> to vector<16x512xf32>
      %18 = arith.addf %15, %17 : vector<16x512xf32>
      %cst_12 = arith.constant 0.000000e+00 : f32
      %19 = vector.broadcast %cst_12 : f32 to vector<16x512xf32>
      %20 = arith.maximumf %18, %19 : vector<16x512xf32>
      %21 = arith.truncf %20 : vector<16x512xf32> to vector<16x512xbf16>
      %c0_13 = arith.constant 0 : index
      %c0_14 = arith.constant 0 : index
      %22 = vector.load %arg4[%c0_13, %c0_14] : memref<512x128xbf16, #tpu.memory_space<vmem>>, vector<512x128xbf16>
      %cst_15 = arith.constant dense<0.000000e+00> : vector<16x128xf32>
      %23 = tpu.matmul %21, %22, %cst_15 {dimension_numbers = #tpu.dot_dimension_numbers<[1], [0], [0], [1], [0, 0, 1, 1], [], []>} : vector<16x512xbf16>, vector<512x128xbf16>, vector<16x128xf32> -> vector<16x128xf32>
      %c0_16 = arith.constant 0 : index
      %c0_17 = arith.constant 0 : index
      %24 = vector.load %arg5[%c0_16, %c0_17] : memref<1x128xf32, #tpu.memory_space<vmem>>, vector<1x128xf32>
      %25 = vector.broadcast %24 : vector<1x128xf32> to vector<16x128xf32>
      %26 = arith.addf %23, %25 : vector<16x128xf32>
      %cst_18 = arith.constant 0.000000e+00 : f32
      %27 = vector.broadcast %cst_18 : f32 to vector<16x128xf32>
      %28 = arith.maximumf %26, %27 : vector<16x128xf32>
      %29 = arith.truncf %28 : vector<16x128xf32> to vector<16x128xbf16>
      %c0_19 = arith.constant 0 : index
      %c0_20 = arith.constant 0 : index
      %30 = vector.load %arg6[%c0_19, %c0_20] : memref<128x64xbf16, #tpu.memory_space<vmem>>, vector<128x64xbf16>
      %cst_21 = arith.constant dense<0.000000e+00> : vector<16x64xf32>
      %31 = tpu.matmul %29, %30, %cst_21 {dimension_numbers = #tpu.dot_dimension_numbers<[1], [0], [0], [1], [0, 0, 1, 1], [], []>} : vector<16x128xbf16>, vector<128x64xbf16>, vector<16x64xf32> -> vector<16x64xf32>
      %c0_22 = arith.constant 0 : index
      %c0_23 = arith.constant 0 : index
      %32 = vector.load %arg7[%c0_22, %c0_23] : memref<1x64xf32, #tpu.memory_space<vmem>>, vector<1x64xf32>
      %33 = vector.broadcast %32 : vector<1x64xf32> to vector<16x64xf32>
      %34 = arith.addf %31, %33 : vector<16x64xf32>
      %cst_24 = arith.constant 0.000000e+00 : f32
      %35 = vector.broadcast %cst_24 : f32 to vector<16x64xf32>
      %36 = arith.maximumf %34, %35 : vector<16x64xf32>
      %37 = arith.truncf %36 : vector<16x64xf32> to vector<16x64xbf16>
      %c0_25 = arith.constant 0 : index
      %c0_26 = arith.constant 0 : index
      %38 = vector.load %arg8[%c0_25, %c0_26] : memref<64x8xbf16, #tpu.memory_space<vmem>>, vector<64x8xbf16>
      %cst_27 = arith.constant dense<0.000000e+00> : vector<16x8xf32>
      %39 = tpu.matmul %37, %38, %cst_27 {dimension_numbers = #tpu.dot_dimension_numbers<[1], [0], [0], [1], [0, 0, 1, 1], [], []>} : vector<16x64xbf16>, vector<64x8xbf16>, vector<16x8xf32> -> vector<16x8xf32>
      %c0_28 = arith.constant 0 : index
      %c0_29 = arith.constant 0 : index
      %40 = vector.load %arg9[%c0_28, %c0_29] : memref<1x8xf32, #tpu.memory_space<vmem>>, vector<1x8xf32>
      %41 = vector.broadcast %40 : vector<1x8xf32> to vector<16x8xf32>
      %42 = arith.addf %39, %41 : vector<16x8xf32>
      %c0_30 = arith.constant 0 : index
      %c0_31 = arith.constant 0 : index
      %43 = vector.load %arg10[%c0_30, %c0_31] : memref<16x8xf32, #tpu.memory_space<vmem>>, vector<16x8xf32>
      tpu.vector_store %arg10[%c0_30, %c0_31], %42 {strides = array<i32>} : memref<16x8xf32, #tpu.memory_space<vmem>>, vector<16x8xf32>,
    } else {
    }
    return
  }
  func.func @transform_0(%arg0: i32) -> (i32, i32) {
    %c0_i32 = arith.constant 0 : i32
    %c0_i32_0 = arith.constant 0 : i32
    %c0_i32_1 = arith.constant 0 : i32
    return %c0_i32, %c0_i32_0 : i32, i32
  }
  func.func @transform_1(%arg0: i32) -> (i32, i32) {
    %c0_i32 = arith.constant 0 : i32
    %c0_i32_0 = arith.constant 0 : i32
    return %arg0, %c0_i32 : i32, i32
  }
  func.func @transform_2(%arg0: i32) -> (i32, i32) {
    %c0_i32 = arith.constant 0 : i32
    %c0_i32_0 = arith.constant 0 : i32
    %c0_i32_1 = arith.constant 0 : i32
    return %c0_i32, %c0_i32_0 : i32, i32
  }
  func.func @transform_3(%arg0: i32) -> (i32, i32) {
    %c0_i32 = arith.constant 0 : i32
    %c0_i32_0 = arith.constant 0 : i32
    %c0_i32_1 = arith.constant 0 : i32
    return %c0_i32, %c0_i32_0 : i32, i32
  }
  func.func @transform_4(%arg0: i32) -> (i32, i32) {
    %c0_i32 = arith.constant 0 : i32
    %c0_i32_0 = arith.constant 0 : i32
    %c0_i32_1 = arith.constant 0 : i32
    return %c0_i32, %c0_i32_0 : i32, i32
  }
  func.func @transform_5(%arg0: i32) -> (i32, i32) {
    %c0_i32 = arith.constant 0 : i32
    %c0_i32_0 = arith.constant 0 : i32
    %c0_i32_1 = arith.constant 0 : i32
    return %c0_i32, %c0_i32_0 : i32, i32
  }
  func.func @transform_6(%arg0: i32) -> (i32, i32) {
    %c0_i32 = arith.constant 0 : i32
    %c0_i32_0 = arith.constant 0 : i32
    %c0_i32_1 = arith.constant 0 : i32
    return %c0_i32, %c0_i32_0 : i32, i32
  }
  func.func @transform_7(%arg0: i32) -> (i32, i32) {
    %c0_i32 = arith.constant 0 : i32
    %c0_i32_0 = arith.constant 0 : i32
    %c0_i32_1 = arith.constant 0 : i32
    return %c0_i32, %c0_i32_0 : i32, i32
  }
  func.func @transform_8(%arg0: i32) -> (i32, i32) {
    %c0_i32 = arith.constant 0 : i32
    %c0_i32_0 = arith.constant 0 : i32
    %c0_i32_1 = arith.constant 0 : i32
    return %c0_i32, %c0_i32_0 : i32, i32
  }
  func.func @transform_9(%arg0: i32) -> (i32, i32) {
    %c0_i32 = arith.constant 0 : i32
    %c0_i32_0 = arith.constant 0 : i32
    %c0_i32_1 = arith.constant 0 : i32
    return %c0_i32, %c0_i32_0 : i32, i32
  }
}

</mosaic_0001>

<bundles_post_ra>
// kernel: classification_net_forward.1
= control target key start
LH: loop header
LB: loop body
LE: loop exit
PB: predicated region body
PF: predicated region fallthrough
CT: control target
= control target key end

     0   :  { %s18018_s0 = inlined_call_operand.vmem [shape: bf16[16,8192], index: 0, kind: input, shape index: {}]   ;;  %s18019_s1 = inlined_call_operand.hbm [shape: bf16[8192,512], index: 1, kind: input, shape index: {}]   ;;  %s18020_s2 = inlined_call_operand.hbm [shape: f32[1,512], index: 2, kind: input, shape index: {}]   ;;  %s18021_s3 = inlined_call_operand.hbm [shape: bf16[512,128], index: 3, kind: input, shape index: {}]   ;;  %s18022_s4 = inlined_call_operand.hbm [shape: f32[1,128], index: 4, kind: input, shape index: {}]   ;;  %s18023_s5 = inlined_call_operand.vmem [shape: bf16[128,64], index: 5, kind: input, shape index: {}]   ;;  %s18024_s6 = inlined_call_operand.hbm [shape: f32[1,64], index: 6, kind: input, shape index: {}]   ;;  %s18025_s7 = inlined_call_operand.vmem [shape: bf16[64,8], index: 7, kind: input, shape index: {}]   ;;  %s18026_s8 = inlined_call_operand.hbm [shape: f32[1,8], index: 8, kind: input, shape index: {}]   ;;  %s18027_s9 = inlined_call_operand.vmem [shape: f32[16,8], index: 9, kind: output, shape index: {}]  }
   0x1   :  { %18058 = sst [smem:[#allocation32_spill]] %s18020_s2 }
   0x2   :  { %14 = vsyncpa [#allocation4], 0 }
   0x3   :  { %16 = vsyncpa [#allocation4 + $0x1], 0 }
   0x4   :  { %17 = vsyncpa [#allocation6], 0 }
   0x5   :  { %18 = vsyncpa [#allocation9], 0 }
   0x6   :  { %19 = vsyncpa [#allocation12], 0  ;;  %s15093_s30 = smov 0   ;;  %s15095_s10 = smov 0  }
   0x7   :  { %s15097_s11 = smov 0   ;;  %s15099_s12 = smov 0  }
   0x8 LB: > { %s18059_s2 = sld [smem:[#allocation32_spill]]  ;;  %s15117_s16 = sadd.s32 4294967295, %s15031_s12   ;;  %s15031_s12 = sphi %s15099_s12, %s18123_s12   ;;  %s15027_s11 = sphi %s15097_s11, %s18122_s11   ;;  %s15023_s10 = sphi %s15095_s10, %s18121_s10   ;;  %s15019_s30 = sphi %s15093_s30, %s18120_s30  }
   0x9   : > { %p9180_p0 = scmp.ge.s32.totalorder %s15031_s12, 1  ;;  %p67_p1 = scmp.eq.s32.totalorder %s15117_s16, 0 }
   0xa   : > { %p245_p2 = scmp.lt.s32.totalorder %s15031_s12, 3  ;;  %p9181_p3 = scmp.ne.s32.totalorder %s15117_s16, 0 }
   0xb   : > { %s15033_s18 = smov [#allocation5]   ;;  %s286_s22 = sshll.u32 %s18022_s4, 4  ;;  %s287_s22 = int_to_ptr.hbm [resolvable:$true] %s286_s22 }
   0xc   : > { %p15123_p4 = pnand %p9180_p0, %p245_p2  ;;  %s262_s19 = sshll.u32 %s15033_s18, 4  ;;  %s263_s19 = int_to_ptr.vmem [resolvable:$true] %s262_s19 }
   0xd   : > { %s15034_s24 = smov [#allocation8]   ;;  %s271_s28 = sshll.u32 %s18021_s3, 4  ;;  %s272_s28 = int_to_ptr.hbm [resolvable:$true] %s271_s28 }
   0xe   : > { %s260_s15 = sshll.u32 %s18059_s2, 4  ;;  %p14729_p5 = pneg %p15123_p4  ;;  %s261_s15 = int_to_ptr.hbm [resolvable:$true] %s260_s15 }
   0xf   : > { %s288_s25 = sshll.u32 %s15034_s24, 4  ;;  %s15035_s29 = smov [#allocation7]   ;;  %s289_s25 = int_to_ptr.vmem [resolvable:$true] %s288_s25 }
  0x10   : > { %p15134_p6 = pnand %p14729_p5, %p67_p1  ;;  %s273_s13 = sshll.u32 %s15035_s29, 4  ;;  %s274_s13 = int_to_ptr.vmem [resolvable:$true] %s273_s13 }
  0x11   : > { %s301_s20 = sshll.u32 %s18024_s6, 4  ;;  %s15036_s21 = smov 64   ;;  %s302_s20 = int_to_ptr.hbm [resolvable:$true] %s301_s20 }
  0x12   : > { %14732 = dma.hbm_to_vmem [thread:$0]  (!%p15134_p6), %s261_s15, 64, %s263_s19, [#allocation6]  }
  0x13   : > { %14738 = dma.hbm_to_vmem [thread:$0]  (!%p15134_p6), %s287_s22, 16, %s289_s25, [#allocation9]  }
  0x14   : > { %s15037_s24 = smov 4   ;;  %s15038_s15 = smov [#allocation10]  }
  0x15   : > { %14735 = dma.hbm_to_vmem [thread:$0]  (!%p15134_p6), %s272_s28, 4096, %s274_s13, [#allocation6], %s15036_s21, %s15036_s21, %s15037_s24  }
  0x16   : > { %s303_s19 = sshll.u32 %s15038_s15, 4  ;;  %s316_s26 = sshll.u32 %s18026_s8, 4  ;;  %s304_s19 = int_to_ptr.vmem [resolvable:$true] %s303_s19  ;;  %s317_s26 = int_to_ptr.hbm [resolvable:$true] %s316_s26 }
  0x17   : > { %14741 = dma.hbm_to_vmem [thread:$0]  (!%p15134_p6), %s302_s20, 16, %s304_s19, [#allocation9]  }
  0x18   : > { %s15039_s27 = smov [#allocation11]   ;;  %s15158_s29 = sadd.s32 1, %s15031_s12  }
  0x19   : > { %s318_s28 = sshll.u32 %s15039_s27, 4  ;;  %s50_s13 = ssub.s32 %s15031_s12, %s15158_s29  ;;  %s319_s28 = int_to_ptr.vmem [resolvable:$true] %s318_s28 }
  0x1a   : > { %14744 = dma.hbm_to_vmem [thread:$0]  (!%p15134_p6), %s317_s26, 16, %s319_s28, [#allocation12]  }
  0x1b   : > { %s53_s14 = sadd.s32 1, %s15027_s11  ;;  %p51_p7 = scmp.eq.s32.totalorder %s50_s13, 0 }
  0x1c   : > { %p60_p8 = scmp.ne.s32.totalorder %s15027_s11, %s15023_s10  ;;  %p61_p9 = scmp.eq.s32.totalorder %s15031_s12, 0 }
  0x1d   : > { %p66_p10 = scmp.ne.s32.totalorder %s15023_s10, %s15019_s30  ;;  %p14754_p13 = scmp.lt.s32.totalorder %s15031_s12, 2 }
  0x1e   : > { %s15169_s18 = scalar_select %p51_p7, %s15027_s11, %s53_s14  }
  0x1f   : > { %p62_p11 = por %p61_p9, %p60_p8  ;;  %p15173_p12 = por %p67_p1, %p66_p10 }
  0x20   : > { %s329_s23 = sand.u32 1, %s15027_s11   ;;  %s13606_s24 = sshll.u32 %s15031_s12, 13 }
  0x21   : > { %s9187_s21 = sshll.u32 %s329_s23, 13  ;;  %s339_s22 = scalar_lea.hbm %s18019_s1, %s13606_s24 }
  0x22   : > { %s333_s25 = scalar_lea.vmem [#allocation3], %s9187_s21  ;;  %s340_s27 = sshll.u32 %s339_s22, 4  ;;  %s341_s27 = int_to_ptr.hbm [resolvable:$true] %s340_s27 }
  0x23   : > { %s342_s26 = sshll.u32 %s333_s25, 4  ;;  %p15183_p0 = pnand %p14754_p13, %p62_p11  ;;  %s343_s26 = int_to_ptr.vmem [resolvable:$true] %s342_s26 }
  0x24   : > { %s330_s28 = scalar_lea.sflag [#allocation4], %s329_s23  ;;  %s14955_s13 = sshra.s32 %s341_s27, 4  ;;  %s14956_s13 = int_to_ptr.hbm [resolvable:$true] %s14955_s13 }
  0x25   : > { %s14957_s14 = scalar_lea.hbm %s14956_s13, 8192  ;;  %p14959_p5 = pneg %p15183_p0 }
  0x26   : > { %p14958_p2 = scmp.ne.s32.totalorder %s14956_s13, %s14957_s14  ;;  %s14962_s24 = scalar_lea.hbm %s18019_s1, 16384 }
  0x27   : > { %p14963_p8 = scmp.lt.s32.totalorder %s14956_s13, %s18019_s1  ;;  %p14964_p9 = scmp.lt.s32.totalorder %s14962_s24, %s14957_s14 }
  0x28   : > { %p14960_p6 = pnand %p14959_p5, %p14958_p2 }
  0x29   : > { %p14965_p10 = por %p14964_p9, %p14963_p8 }
  0x2a   : > { %p14961_p7 = pneg %p14960_p6 }
  0x2c   : > { %p14966_p11 = pnand %p14965_p10, %p14961_p7 }
  0x2e   : > { %14969 = shalt.err (!%p14966_p11)
}
  0x2f   : > { %s15040_s23 = smov 256   ;;  %s15041_s22 = smov 16  }
  0x30   : > { %14748 = dma.hbm_to_vmem [thread:$0]  (!%p15183_p0), %s341_s27, 131072, %s343_s26, %s330_s28, %s15040_s23, %s15040_s23, %s15041_s22  }
  0x31   : > { %354 = sbr.rel (%p15123_p4) target bundleno = 1720 (0x6b8), region = 56 }
  0x36   : > { %s356_s25 = sand.u32 1, %s15023_s10  }
  0x37   : > { %s9192_s12 = sshll.u32 %s356_s25, 13  ;;  %s357_s21 = scalar_lea.sflag [#allocation4], %s356_s25 }
  0x38   : > { %s15200_s2 = scalar_lea.vmem [#allocation3], %s9192_s12 }
  0x39   : > { %15002 = dma.done.wait (%p15173_p12), %s357_s21, 131072  }
  0x3a   : > { %15004 = vsyncadd (%p15173_p12), %s357_s21, 4294836224 }
  0x3b   : > { %15006 = dma.done.wait (%p67_p1), [#allocation6], 4160  }
  0x3c   : > { %15008 = vsyncadd (%p67_p1), [#allocation6], 4294963136 }
  0x3d   : > { %15010 = dma.done.wait (%p67_p1), [#allocation9], 32  }
  0x3e   : > { %15012 = vsyncadd (%p67_p1), [#allocation9], 4294967264 }
  0x3f   : > { %15014 = dma.done.wait (%p67_p1), [#allocation12], 16  }
  0x40   : > { %15016 = vsyncadd (%p67_p1), [#allocation12], 4294967280  ;;  %421 = sbr.rel (%p9181_p3) target bundleno = 78 (0x4e), region = 84 }
  0x45   : > { %v15042_v0 = vmov 0.0  }
  0x46   : > { %422 = vst [vmem:[#allocation2 + $0x30] sm:$0xff] %v15042_v0 }
  0x47   : > { %423 = vst [vmem:[#allocation2] sm:$0xff] %v15042_v0 }
  0x48   : > { %424 = vst [vmem:[#allocation2 + $0x18] sm:$0xff] %v15042_v0 }
  0x49   : > { %425 = vst [vmem:[#allocation2 + $0x10] sm:$0xff] %v15042_v0 }
  0x4a   : > { %426 = vst [vmem:[#allocation2 + $0x8] sm:$0xff] %v15042_v0 }
  0x4b   : > { %427 = vst [vmem:[#allocation2 + $0x20] sm:$0xff] %v15042_v0 }
  0x4c   : > { %428 = vst [vmem:[#allocation2 + $0x28] sm:$0xff] %v15042_v0 }
  0x4d   : > { %429 = vst [vmem:[#allocation2 + $0x38] sm:$0xff] %v15042_v0 }
  0x4e PF: > { %v9443_v1 = vld [vmem:[%s15200_s2 + $0xe0] sm:$0xf]  ;;  %v13669_v2 = vld [vmem:[%s15200_s2 + $0xec] sm:$0xf0]  ;;  %s9199_s17 = sshll.u32 %s15117_s16, 12  ;;  %p13425_p1 = scmp.ne.s32.totalorder %s15117_s16, 1 }
  0x4f   : > { %v9571_v3 = vld [vmem:[%s15200_s2 + $0x1e0] sm:$0xf]  ;;  %v9444_v4 = vor.u32 %v13669_v2, %v9443_v1  ;;  %v13701_v5 = vld [vmem:[%s15200_s2 + $0x1ec] sm:$0xf0]  ;;  %s431_s20 = sshra.s32 %s9199_s17, 7 }
  0x50   : > { %v9699_v6 = vld [vmem:[%s15200_s2 + $0x2e0] sm:$0xf]  ;;  %v13733_v7 = vld [vmem:[%s15200_s2 + $0x2ec] sm:$0xf0]  ;;  %v9572_v8 = vor.u32 %v13701_v5, %v9571_v3  ;;  %s9200_s26 = sshll.u32 %s431_s20, 2 }
  0x51   : > { %v9700_v9 = vor.u32 %v13733_v7, %v9699_v6  ;;  %v9827_v10 = vld [vmem:[%s15200_s2 + $0x3e0] sm:$0xf]  ;;  %v13765_v11 = vld [vmem:[%s15200_s2 + $0x3ec] sm:$0xf0]  ;;  %6779 = vmatpush.bf16.msra.mxu0 %v9444_v4  ;;  %s15312_s28 = scalar_lea.vmem %s18018_s0, %s9200_s26 }
  0x52   : > { %v9427_v12 = vld [vmem:[%s15200_s2 + $0xc0] sm:$0xf]  ;;  %v9828_v13 = vor.u32 %v13765_v11, %v9827_v10  ;;  %v13665_v14 = vld [vmem:[%s15200_s2 + $0xcc] sm:$0xf0]  ;;  %6793 = vmatpush.bf16.msra.mxu1 %v9572_v8 }
  0x53   : > { %v9555_v15 = vld [vmem:[%s15200_s2 + $0x1c0] sm:$0xf]  ;;  %v13697_v16 = vld [vmem:[%s15200_s2 + $0x1cc] sm:$0xf0]  ;;  %6807 = vmatpush.bf16.msra.mxu2 %v9700_v9  ;;  %v9428_v17 = vor.u32 %v13665_v14, %v9427_v12 }
  0x54   : > { %v9556_v18 = vor.u32 %v13697_v16, %v9555_v15  ;;  %v9683_v19 = vld [vmem:[%s15200_s2 + $0x2c0] sm:$0xf]  ;;  %v13729_v20 = vld [vmem:[%s15200_s2 + $0x2cc] sm:$0xf0]  ;;  %6821 = vmatpush.bf16.msra.mxu3 %v9828_v13 }
  0x55   : > { %v9811_v21 = vld [vmem:[%s15200_s2 + $0x3c0] sm:$0xf]  ;;  %v9684_v22 = vor.u32 %v13729_v20, %v9683_v19  ;;  %v13761_v23 = vld [vmem:[%s15200_s2 + $0x3cc] sm:$0xf0]  ;;  %6780 = vmatpush.bf16.msra.mxu0 %v9428_v17 }
  0x56   : > { %v9411_v24 = vld [vmem:[%s15200_s2 + $0xa0] sm:$0xf]  ;;  %v13661_v25 = vld [vmem:[%s15200_s2 + $0xac] sm:$0xf0]  ;;  %v9812_v26 = vor.u32 %v13761_v23, %v9811_v21  ;;  %6794 = vmatpush.bf16.msra.mxu1 %v9556_v18 }
  0x57   : > { %v9539_v27 = vld [vmem:[%s15200_s2 + $0x1a0] sm:$0xf]  ;;  %v13693_v28 = vld [vmem:[%s15200_s2 + $0x1ac] sm:$0xf0]  ;;  %v9412_v30 = vor.u32 %v13661_v25, %v9411_v24  ;;  %6808 = vmatpush.bf16.msra.mxu2 %v9684_v22 }
  0x58   : > { %v9667_v29 = vld [vmem:[%s15200_s2 + $0x2a0] sm:$0xf]  ;;  %v13725_v31 = vld [vmem:[%s15200_s2 + $0x2ac] sm:$0xf0]  ;;  %v9540_v34 = vor.u32 %v13693_v28, %v9539_v27  ;;  %6822 = vmatpush.bf16.msra.mxu3 %v9812_v26 }
  0x59   : > { %v9795_v32 = vld [vmem:[%s15200_s2 + $0x3a0] sm:$0xf]  ;;  %v13757_v33 = vld [vmem:[%s15200_s2 + $0x3ac] sm:$0xf0]  ;;  %v9668_v35 = vor.u32 %v13725_v31, %v9667_v29  ;;  %6781 = vmatpush.bf16.msra.mxu0 %v9412_v30 }
  0x5a   : > { %v9395_v36 = vld [vmem:[%s15200_s2 + $0x80] sm:$0xf]  ;;  %v13657_v37 = vld [vmem:[%s15200_s2 + $0x8c] sm:$0xf0]  ;;  %v9796_v39 = vor.u32 %v13757_v33, %v9795_v32  ;;  %6795 = vmatpush.bf16.msra.mxu1 %v9540_v34 }
  0x5b   : > { %v9523_v38 = vld [vmem:[%s15200_s2 + $0x180] sm:$0xf]  ;;  %v13689_v40 = vld [vmem:[%s15200_s2 + $0x18c] sm:$0xf0]  ;;  %v9396_v45 = vor.u32 %v13657_v37, %v9395_v36  ;;  %6809 = vmatpush.bf16.msra.mxu2 %v9668_v35 }
  0x5c   : > { %v9651_v41 = vld [vmem:[%s15200_s2 + $0x280] sm:$0xf]  ;;  %v13721_v42 = vld [vmem:[%s15200_s2 + $0x28c] sm:$0xf0]  ;;  %v9524_v46 = vor.u32 %v13689_v40, %v9523_v38  ;;  %6823 = vmatpush.bf16.msra.mxu3 %v9796_v39 }
  0x5d   : > { %v9779_v43 = vld [vmem:[%s15200_s2 + $0x380] sm:$0xf]  ;;  %v13753_v44 = vld [vmem:[%s15200_s2 + $0x38c] sm:$0xf0]  ;;  %v9652_v47 = vor.u32 %v13721_v42, %v9651_v41  ;;  %6782 = vmatpush.bf16.msra.mxu0 %v9396_v45 }
  0x5e   : > { %v9379_v48 = vld [vmem:[%s15200_s2 + $0x60] sm:$0xf]  ;;  %v13653_v49 = vld [vmem:[%s15200_s2 + $0x6c] sm:$0xf0]  ;;  %v9780_v51 = vor.u32 %v13753_v44, %v9779_v43  ;;  %6796 = vmatpush.bf16.msra.mxu1 %v9524_v46 }
  0x5f   : > { %v9507_v50 = vld [vmem:[%s15200_s2 + $0x160] sm:$0xf]  ;;  %v13685_v52 = vld [vmem:[%s15200_s2 + $0x16c] sm:$0xf0]  ;;  %v9380_v57 = vor.u32 %v13653_v49, %v9379_v48  ;;  %6810 = vmatpush.bf16.msra.mxu2 %v9652_v47 }
  0x60   : > { %v9635_v53 = vld [vmem:[%s15200_s2 + $0x260] sm:$0xf]  ;;  %v13717_v54 = vld [vmem:[%s15200_s2 + $0x26c] sm:$0xf0]  ;;  %v9508_v58 = vor.u32 %v13685_v52, %v9507_v50  ;;  %6824 = vmatpush.bf16.msra.mxu3 %v9780_v51 }
  0x61   : > { %v9763_v55 = vld [vmem:[%s15200_s2 + $0x360] sm:$0xf]  ;;  %v13749_v56 = vld [vmem:[%s15200_s2 + $0x36c] sm:$0xf0]  ;;  %v9636_v59 = vor.u32 %v13717_v54, %v9635_v53  ;;  %6783 = vmatpush.bf16.msra.mxu0 %v9380_v57 }
  0x62   : > { %v9363_v60 = vld [vmem:[%s15200_s2 + $0x40] sm:$0xf]  ;;  %v13649_v61 = vld [vmem:[%s15200_s2 + $0x4c] sm:$0xf0]  ;;  %v9764_v63 = vor.u32 %v13749_v56, %v9763_v55  ;;  %6797 = vmatpush.bf16.msra.mxu1 %v9508_v58 }
  0x63   : > { %v9491_v62 = vld [vmem:[%s15200_s2 + $0x140] sm:$0xf]  ;;  %v13681_v0 = vld [vmem:[%s15200_s2 + $0x14c] sm:$0xf0]  ;;  %v9364_v5 = vor.u32 %v13649_v61, %v9363_v60  ;;  %6811 = vmatpush.bf16.msra.mxu2 %v9636_v59 }
  0x64   : > { %v9619_v1 = vld [vmem:[%s15200_s2 + $0x240] sm:$0xf]  ;;  %v13713_v2 = vld [vmem:[%s15200_s2 + $0x24c] sm:$0xf0]  ;;  %v9492_v6 = vor.u32 %v13681_v0, %v9491_v62  ;;  %6825 = vmatpush.bf16.msra.mxu3 %v9764_v63 }
  0x65   : > { %v9747_v3 = vld [vmem:[%s15200_s2 + $0x340] sm:$0xf]  ;;  %v13745_v4 = vld [vmem:[%s15200_s2 + $0x34c] sm:$0xf0]  ;;  %v9620_v7 = vor.u32 %v13713_v2, %v9619_v1  ;;  %6784 = vmatpush.bf16.msra.mxu0 %v9364_v5  ;;  %v9211_v5 = vld [vmem:[%s15312_s28 + $0x8] sm:$0xf] }
  0x66   : > { %v9347_v8 = vld [vmem:[%s15200_s2 + $0x20] sm:$0xf]  ;;  %v13645_v9 = vld [vmem:[%s15200_s2 + $0x2c] sm:$0xf0]  ;;  %v9748_v11 = vor.u32 %v13745_v4, %v9747_v3  ;;  %6798 = vmatpush.bf16.msra.mxu1 %v9492_v6 }
  0x67   : > { %v9475_v10 = vld [vmem:[%s15200_s2 + $0x120] sm:$0xf]  ;;  %v13677_v12 = vld [vmem:[%s15200_s2 + $0x12c] sm:$0xf0]  ;;  %v9348_v17 = vor.u32 %v13645_v9, %v9347_v8  ;;  %6812 = vmatpush.bf16.msra.mxu2 %v9620_v7  ;;  %v13624_v9 = vld [vmem:[%s15312_s28 + $0x104] sm:$0xf0] }
  0x68   : > { %v9603_v13 = vld [vmem:[%s15200_s2 + $0x220] sm:$0xf]  ;;  %v13709_v14 = vld [vmem:[%s15200_s2 + $0x22c] sm:$0xf0]  ;;  %v9476_v20 = vor.u32 %v13677_v12, %v9475_v10  ;;  %6826 = vmatpush.bf16.msra.mxu3 %v9748_v11  ;;  %v13607_v10 = vld [vmem:[%s15312_s28 + $0x4] sm:$0xf] }
  0x69   : > { %v9731_v15 = vld [vmem:[%s15200_s2 + $0x320] sm:$0xf]  ;;  %v13741_v16 = vld [vmem:[%s15200_s2 + $0x32c] sm:$0xf0]  ;;  %v9604_v21 = vor.u32 %v13709_v14, %v9603_v13  ;;  %6785 = vmatpush.bf16.msra.mxu0 %v9348_v17  ;;  %v9205_v11 = vld [vmem:[%s15312_s28 + $0x100] sm:$0xf0]  ;;  %v15325_v14 = vor.u32 %v13624_v9, %v9211_v5 }
  0x6a   : > { %v9331_v18 = vld [vmem:[%s15200_s2] sm:$0xf]  ;;  %v13641_v19 = vld [vmem:[%s15200_s2 + $0xc] sm:$0xf0]  ;;  %v9732_v25 = vor.u32 %v13741_v16, %v9731_v15  ;;  %6799 = vmatpush.bf16.msra.mxu1 %v9476_v20  ;;  %v15327_v15 = vor.u32 %v13607_v10, %v9205_v11  ;;  %v13608_v16 = vld [vmem:[%s15312_s28 + $0xc] sm:$0xf] }
  0x6b   : > { %v9459_v22 = vld [vmem:[%s15200_s2 + $0x100] sm:$0xf]  ;;  %v13673_v23 = vld [vmem:[%s15200_s2 + $0x10c] sm:$0xf0]  ;;  %v9332_v32 = vor.u32 %v13641_v19, %v9331_v18  ;;  %6813 = vmatpush.bf16.msra.mxu2 %v9604_v21  ;;  %18065 = vst [vmem:[#allocation18_spill] sm:$0xff] %v15325_v14 }
  0x6c   : > { %v9587_v24 = vld [vmem:[%s15200_s2 + $0x200] sm:$0xf]  ;;  %v13705_v26 = vld [vmem:[%s15200_s2 + $0x20c] sm:$0xf0]  ;;  %v9460_v36 = vor.u32 %v13673_v23, %v9459_v22  ;;  %6827 = vmatpush.bf16.msra.mxu3 %v9732_v25  ;;  %18066 = vst [vmem:[#allocation19_spill] sm:$0xff] %v15327_v15 }
  0x6d   : > { %v9715_v27 = vld [vmem:[%s15200_s2 + $0x300] sm:$0xf]  ;;  %v13737_v28 = vld [vmem:[%s15200_s2 + $0x30c] sm:$0xf0]  ;;  %v9588_v37 = vor.u32 %v13705_v26, %v9587_v24  ;;  %6786 = vmatpush.bf16.msra.mxu0 %v9332_v32  ;;  %v9213_v17 = vld [vmem:[%s15312_s28 + $0x108] sm:$0xf0] }
  0x6e   : > { %v9955_v29 = vld [vmem:[%s15200_s2 + $0x4e0] sm:$0xf]  ;;  %v13797_v30 = vld [vmem:[%s15200_s2 + $0x4ec] sm:$0xf0]  ;;  %v9716_v40 = vor.u32 %v13737_v28, %v9715_v27  ;;  %6800 = vmatpush.bf16.msra.mxu1 %v9460_v36  ;;  %v15335_v22 = vor.u32 %v13608_v16, %v9213_v17 }
  0x6f   : > { %v10083_v31 = vld [vmem:[%s15200_s2 + $0x5e0] sm:$0xf]  ;;  %v13829_v33 = vld [vmem:[%s15200_s2 + $0x5ec] sm:$0xf0]  ;;  %v9956_v41 = vor.u32 %v13797_v30, %v9955_v29  ;;  %6814 = vmatpush.bf16.msra.mxu2 %v9588_v37 }
  0x70   : > { %v10211_v34 = vld [vmem:[%s15200_s2 + $0x6e0] sm:$0xf]  ;;  %v13861_v35 = vld [vmem:[%s15200_s2 + $0x6ec] sm:$0xf0]  ;;  %v10084_v43 = vor.u32 %v13829_v33, %v10083_v31  ;;  %6828 = vmatpush.bf16.msra.mxu3 %v9716_v40  ;;  %18067 = vst [vmem:[#allocation20_spill] sm:$0xff] %v15335_v22 }
  0x71   : > { %v10339_v38 = vld [vmem:[%s15200_s2 + $0x7e0] sm:$0xf]  ;;  %v13893_v39 = vld [vmem:[%s15200_s2 + $0x7ec] sm:$0xf0]  ;;  %v10212_v44 = vor.u32 %v13861_v35, %v10211_v34  ;;  %6835 = vmatpush.bf16.msrb.mxu0 %v9956_v41  ;;  %6801 = vmatmul.bf16.vlgmr.msra.gmra.mxu1 %v15327_v15 }
  0x72   : > { %v9939_v42 = vld [vmem:[%s15200_s2 + $0x4c0] sm:$0xf]  ;;  %v13793_v45 = vld [vmem:[%s15200_s2 + $0x4cc] sm:$0xf0]  ;;  %v10340_v48 = vor.u32 %v13893_v39, %v10339_v38  ;;  %6849 = vmatpush.bf16.msrb.mxu1 %v10084_v43  ;;  %6815 = vmatmul.bf16.vlgmr.msra.gmra.mxu2 %v15325_v14 }
  0x73   : > { %v10067_v46 = vld [vmem:[%s15200_s2 + $0x5c0] sm:$0xf]  ;;  %v13825_v47 = vld [vmem:[%s15200_s2 + $0x5cc] sm:$0xf0]  ;;  %v9940_v54 = vor.u32 %v13793_v45, %v9939_v42  ;;  %6863 = vmatpush.bf16.msrb.mxu2 %v10212_v44  ;;  %6829 = vmatmul.bf16.vlgmr.msra.gmra.mxu3 %v15335_v22 }
  0x74   : > { %v10195_v49 = vld [vmem:[%s15200_s2 + $0x6c0] sm:$0xf]  ;;  %v13857_v50 = vld [vmem:[%s15200_s2 + $0x6cc] sm:$0xf0]  ;;  %v10068_v57 = vor.u32 %v13825_v47, %v10067_v46  ;;  %6877 = vmatpush.bf16.msrb.mxu3 %v10340_v48 }
  0x75   : > { %v10323_v51 = vld [vmem:[%s15200_s2 + $0x7c0] sm:$0xf]  ;;  %v13889_v52 = vld [vmem:[%s15200_s2 + $0x7cc] sm:$0xf0]  ;;  %v10196_v58 = vor.u32 %v13857_v50, %v10195_v49  ;;  %6836 = vmatpush.bf16.msrb.mxu0 %v9940_v54 }
  0x76   : > { %v9923_v53 = vld [vmem:[%s15200_s2 + $0x4a0] sm:$0xf]  ;;  %v13789_v55 = vld [vmem:[%s15200_s2 + $0x4ac] sm:$0xf0]  ;;  %v10324_v61 = vor.u32 %v13889_v52, %v10323_v51  ;;  %6850 = vmatpush.bf16.msrb.mxu1 %v10068_v57 }
  0x77   : > { %v10051_v56 = vld [vmem:[%s15200_s2 + $0x5a0] sm:$0xf]  ;;  %v13821_v59 = vld [vmem:[%s15200_s2 + $0x5ac] sm:$0xf0]  ;;  %v9924_v6 = vor.u32 %v13789_v55, %v9923_v53  ;;  %6864 = vmatpush.bf16.msrb.mxu2 %v10196_v58 }
  0x78   : > { %v10179_v60 = vld [vmem:[%s15200_s2 + $0x6a0] sm:$0xf]  ;;  %v13853_v62 = vld [vmem:[%s15200_s2 + $0x6ac] sm:$0xf0]  ;;  %v10052_v7 = vor.u32 %v13821_v59, %v10051_v56  ;;  %6878 = vmatpush.bf16.msrb.mxu3 %v10324_v61 }
  0x79   : > { %v10307_v63 = vld [vmem:[%s15200_s2 + $0x7a0] sm:$0xf]  ;;  %v13885_v0 = vld [vmem:[%s15200_s2 + $0x7ac] sm:$0xf0]  ;;  %v10180_v12 = vor.u32 %v13853_v62, %v10179_v60  ;;  %6837 = vmatpush.bf16.msrb.mxu0 %v9924_v6 }
  0x7a   : > { %v9907_v1 = vld [vmem:[%s15200_s2 + $0x480] sm:$0xf]  ;;  %v13785_v2 = vld [vmem:[%s15200_s2 + $0x48c] sm:$0xf0]  ;;  %v10308_v18 = vor.u32 %v13885_v0, %v10307_v63  ;;  %6851 = vmatpush.bf16.msrb.mxu1 %v10052_v7 }
  0x7b   : > { %v9203_v3 = vld [vmem:[%s15312_s28] sm:$0xf]  ;;  %v13817_v19 = vld [vmem:[%s15200_s2 + $0x58c] sm:$0xf0]  ;;  %v9908_v25 = vor.u32 %v13785_v2, %v9907_v1  ;;  %6865 = vmatpush.bf16.msrb.mxu2 %v10180_v12 }
  0x7c   : > { %v13623_v4 = vld [vmem:[%s15312_s28 + $0xfc] sm:$0xf0]  ;;  %v13849_v21 = vld [vmem:[%s15200_s2 + $0x68c] sm:$0xf0]  ;;  %6879 = vmatpush.bf16.msrb.mxu3 %v10308_v18 }
  0x7d   : > { %v15319_v8 = vor.u32 %v13623_v4, %v9203_v3  ;;  %v10035_v13 = vld [vmem:[%s15200_s2 + $0x580] sm:$0xf]  ;;  %v13881_v24 = vld [vmem:[%s15200_s2 + $0x78c] sm:$0xf0]  ;;  %6838 = vmatpush.bf16.msrb.mxu0 %v9908_v25 }
  0x7e   : > { %v10163_v20 = vld [vmem:[%s15200_s2 + $0x680] sm:$0xf]  ;;  %v10036_v26 = vor.u32 %v13817_v19, %v10035_v13  ;;  %v13781_v29 = vld [vmem:[%s15200_s2 + $0x46c] sm:$0xf0] }
  0x7f   : > { %18064 = vst [vmem:[#allocation17_spill] sm:$0xff] %v15319_v8  ;;  %6787 = vmatmul.bf16.vlgmr.msra.gmra.mxu0 %v15319_v8  ;;  %v10291_v23 = vld [vmem:[%s15200_s2 + $0x780] sm:$0xf]  ;;  %v10164_v27 = vor.u32 %v13849_v21, %v10163_v20  ;;  %v13813_v32 = vld [vmem:[%s15200_s2 + $0x56c] sm:$0xf0] }
  0x80   : > { %v9891_v28 = vld [vmem:[%s15200_s2 + $0x460] sm:$0xf]  ;;  %v10292_v31 = vor.u32 %v13881_v24, %v10291_v23  ;;  %v13845_v34 = vld [vmem:[%s15200_s2 + $0x66c] sm:$0xf0]  ;;  %6852 = vmatpush.bf16.msrb.mxu1 %v10036_v26  ;;  %v9227_v26 = vld [vmem:[%s15312_s28 + $0x18] sm:$0xf] }
  0x81   : > { %v10019_v30 = vld [vmem:[%s15200_s2 + $0x560] sm:$0xf]  ;;  %v13877_v36 = vld [vmem:[%s15200_s2 + $0x76c] sm:$0xf0]  ;;  %v9892_v37 = vor.u32 %v13781_v29, %v9891_v28  ;;  %6866 = vmatpush.bf16.msrb.mxu2 %v10164_v27  ;;  %v13626_v27 = vld [vmem:[%s15312_s28 + $0x114] sm:$0xf0] }
  0x82   : > { %v10147_v33 = vld [vmem:[%s15200_s2 + $0x660] sm:$0xf]  ;;  %v10020_v38 = vor.u32 %v13813_v32, %v10019_v30  ;;  %v13777_v41 = vld [vmem:[%s15200_s2 + $0x44c] sm:$0xf0]  ;;  %6880 = vmatpush.bf16.msrb.mxu3 %v10292_v31  ;;  %v13609_v28 = vld [vmem:[%s15312_s28 + $0x14] sm:$0xf] }
  0x83   : > { %v10275_v35 = vld [vmem:[%s15200_s2 + $0x760] sm:$0xf]  ;;  %v10148_v39 = vor.u32 %v13845_v34, %v10147_v33  ;;  %v13809_v44 = vld [vmem:[%s15200_s2 + $0x54c] sm:$0xf0]  ;;  %6839 = vmatpush.bf16.msrb.mxu0 %v9892_v37  ;;  %v9221_v31 = vld [vmem:[%s15312_s28 + $0x110] sm:$0xf0] }
  0x84   : > { %v9875_v40 = vld [vmem:[%s15200_s2 + $0x440] sm:$0xf]  ;;  %v10276_v43 = vor.u32 %v13877_v36, %v10275_v35  ;;  %v13841_v46 = vld [vmem:[%s15200_s2 + $0x64c] sm:$0xf0]  ;;  %6853 = vmatpush.bf16.msrb.mxu1 %v10020_v38  ;;  %v13610_v32 = vld [vmem:[%s15312_s28 + $0x1c] sm:$0xf] }
  0x85   : > { %v10003_v42 = vld [vmem:[%s15200_s2 + $0x540] sm:$0xf]  ;;  %v13873_v48 = vld [vmem:[%s15200_s2 + $0x74c] sm:$0xf0]  ;;  %v9876_v49 = vor.u32 %v13777_v41, %v9875_v40  ;;  %6867 = vmatpush.bf16.msrb.mxu2 %v10148_v39  ;;  %v9229_v33 = vld [vmem:[%s15312_s28 + $0x118] sm:$0xf0] }
  0x86   : > { %v10131_v45 = vld [vmem:[%s15200_s2 + $0x640] sm:$0xf]  ;;  %v10004_v51 = vor.u32 %v13809_v44, %v10003_v42  ;;  %v13773_v53 = vld [vmem:[%s15200_s2 + $0x42c] sm:$0xf0]  ;;  %6881 = vmatpush.bf16.msrb.mxu3 %v10276_v43  ;;  %v15398_v44 = vor.u32 %v13626_v27, %v9227_v26 }
  0x87   : > { %v10259_v47 = vld [vmem:[%s15200_s2 + $0x740] sm:$0xf]  ;;  %v10132_v52 = vor.u32 %v13841_v46, %v10131_v45  ;;  %v13805_v55 = vld [vmem:[%s15200_s2 + $0x52c] sm:$0xf0]  ;;  %6840 = vmatpush.bf16.msrb.mxu0 %v9876_v49  ;;  %v15400_v45 = vor.u32 %v13609_v28, %v9221_v31 }
  0x88   : > { %v9859_v50 = vld [vmem:[%s15200_s2 + $0x420] sm:$0xf]  ;;  %v10260_v56 = vor.u32 %v13873_v48, %v10259_v47  ;;  %v13837_v58 = vld [vmem:[%s15200_s2 + $0x62c] sm:$0xf0]  ;;  %6854 = vmatpush.bf16.msrb.mxu1 %v10004_v51  ;;  %v15404_v48 = vor.u32 %v13610_v32, %v9229_v33 }
  0x89   : > { %v9987_v54 = vld [vmem:[%s15200_s2 + $0x520] sm:$0xf]  ;;  %v13869_v60 = vld [vmem:[%s15200_s2 + $0x72c] sm:$0xf0]  ;;  %v9860_v63 = vor.u32 %v13773_v53, %v9859_v50  ;;  %6868 = vmatpush.bf16.msrb.mxu2 %v10132_v52 }
  0x8a   : > { %v10115_v57 = vld [vmem:[%s15200_s2 + $0x620] sm:$0xf]  ;;  %v13769_v62 = vld [vmem:[%s15200_s2 + $0x40c] sm:$0xf0]  ;;  %v9988_v4 = vor.u32 %v13805_v55, %v9987_v54  ;;  %6882 = vmatpush.bf16.msrb.mxu3 %v10260_v56 }
  0x8b   : > { %v10243_v59 = vld [vmem:[%s15200_s2 + $0x720] sm:$0xf]  ;;  %v13801_v1 = vld [vmem:[%s15200_s2 + $0x50c] sm:$0xf0]  ;;  %v10116_v5 = vor.u32 %v13837_v58, %v10115_v57  ;;  %6841 = vmatpush.bf16.msrb.mxu0 %v9860_v63 }
  0x8c   : > { %v9843_v61 = vld [vmem:[%s15200_s2 + $0x400] sm:$0xf]  ;;  %v13833_v3 = vld [vmem:[%s15200_s2 + $0x60c] sm:$0xf0]  ;;  %v10244_v10 = vor.u32 %v13869_v60, %v10243_v59  ;;  %6855 = vmatpush.bf16.msrb.mxu1 %v9988_v4 }
  0x8d   : > { %v9971_v0 = vld [vmem:[%s15200_s2 + $0x500] sm:$0xf]  ;;  %v13865_v7 = vld [vmem:[%s15200_s2 + $0x70c] sm:$0xf0]  ;;  %v9844_v19 = vor.u32 %v13769_v62, %v9843_v61  ;;  %6869 = vmatpush.bf16.msrb.mxu2 %v10116_v5 }
  0x8e   : > { %v10099_v2 = vld [vmem:[%s15200_s2 + $0x600] sm:$0xf]  ;;  %v13925_v11 = vld [vmem:[%s15200_s2 + $0x8ec] sm:$0xf0]  ;;  %v9972_v24 = vor.u32 %v13801_v1, %v9971_v0  ;;  %6883 = vmatpush.bf16.msrb.mxu3 %v10244_v10 }
  0x8f   : > { %v10227_v6 = vld [vmem:[%s15200_s2 + $0x700] sm:$0xf]  ;;  %v13957_v13 = vld [vmem:[%s15200_s2 + $0x9ec] sm:$0xf0]  ;;  %v10100_v25 = vor.u32 %v13833_v3, %v10099_v2  ;;  %6842 = vmatpush.bf16.msrb.mxu0 %v9844_v19 }
  0x90   : > { %v10467_v9 = vld [vmem:[%s15200_s2 + $0x8e0] sm:$0xf]  ;;  %v13989_v17 = vld [vmem:[%s15200_s2 + $0xaec] sm:$0xf0]  ;;  %v10228_v29 = vor.u32 %v13865_v7, %v10227_v6  ;;  %6856 = vmatpush.bf16.msrb.mxu1 %v9972_v24 }
  0x91   : > { %v10595_v12 = vld [vmem:[%s15200_s2 + $0x9e0] sm:$0xf]  ;;  %v14021_v20 = vld [vmem:[%s15200_s2 + $0xbec] sm:$0xf0]  ;;  %v10468_v30 = vor.u32 %v13925_v11, %v10467_v9  ;;  %6870 = vmatpush.bf16.msrb.mxu2 %v10100_v25 }
  0x92   : > { %v10723_v16 = vld [vmem:[%s15200_s2 + $0xae0] sm:$0xf]  ;;  %v9219_v21 = vld [vmem:[%s15312_s28 + $0x10] sm:$0xf]  ;;  %v10596_v34 = vor.u32 %v13957_v13, %v10595_v12  ;;  %6884 = vmatpush.bf16.msrb.mxu3 %v10228_v29 }
  0x93   : > { %v10851_v18 = vld [vmem:[%s15200_s2 + $0xbe0] sm:$0xf]  ;;  %v13625_v23 = vld [vmem:[%s15312_s28 + $0x10c] sm:$0xf0]  ;;  %v10724_v35 = vor.u32 %v13989_v17, %v10723_v16  ;;  %6891 = vmatpush.bf16.msra.mxu0 %v10468_v30  ;;  %6857 = vmatmul.bf16.vlgmr.msrb.gmra.mxu1 %v15400_v45 }
  0x94   : > { %v10451_v36 = vld [vmem:[%s15200_s2 + $0x8c0] sm:$0xf]  ;;  %v13921_v37 = vld [vmem:[%s15200_s2 + $0x8cc] sm:$0xf0]  ;;  %v10852_v39 = vor.u32 %v14021_v20, %v10851_v18  ;;  %v15393_v40 = vor.u32 %v13625_v23, %v9219_v21  ;;  %6905 = vmatpush.bf16.msra.mxu1 %v10596_v34  ;;  %6871 = vmatmul.bf16.vlgmr.msrb.gmra.mxu2 %v15398_v44 }
  0x95   : > { %v10579_v38 = vld [vmem:[%s15200_s2 + $0x9c0] sm:$0xf]  ;;  %v13953_v41 = vld [vmem:[%s15200_s2 + $0x9cc] sm:$0xf0]  ;;  %v10452_v49 = vor.u32 %v13921_v37, %v10451_v36  ;;  %6919 = vmatpush.bf16.msra.mxu2 %v10724_v35  ;;  %6885 = vmatmul.bf16.vlgmr.msrb.gmra.mxu3 %v15404_v48 }
  0x96   : > { %v10707_v42 = vld [vmem:[%s15200_s2 + $0xac0] sm:$0xf]  ;;  %v13985_v43 = vld [vmem:[%s15200_s2 + $0xacc] sm:$0xf0]  ;;  %v10580_v50 = vor.u32 %v13953_v41, %v10579_v38  ;;  %6933 = vmatpush.bf16.msra.mxu3 %v10852_v39  ;;  %6843 = vmatmul.bf16.vlgmr.msrb.gmra.mxu0 %v15393_v40 }
  0x97   : > { %v10835_v46 = vld [vmem:[%s15200_s2 + $0xbc0] sm:$0xf]  ;;  %v14017_v47 = vld [vmem:[%s15200_s2 + $0xbcc] sm:$0xf0]  ;;  %v10708_v51 = vor.u32 %v13985_v43, %v10707_v42  ;;  %6892 = vmatpush.bf16.msra.mxu0 %v10452_v49 }
  0x98   : > { %v10435_v52 = vld [vmem:[%s15200_s2 + $0x8a0] sm:$0xf]  ;;  %v13917_v53 = vld [vmem:[%s15200_s2 + $0x8ac] sm:$0xf0]  ;;  %v10836_v55 = vor.u32 %v14017_v47, %v10835_v46  ;;  %6906 = vmatpush.bf16.msra.mxu1 %v10580_v50 }
  0x99   : > { %v10563_v54 = vld [vmem:[%s15200_s2 + $0x9a0] sm:$0xf]  ;;  %v13949_v56 = vld [vmem:[%s15200_s2 + $0x9ac] sm:$0xf0]  ;;  %v10436_v61 = vor.u32 %v13917_v53, %v10435_v52  ;;  %6920 = vmatpush.bf16.msra.mxu2 %v10708_v51 }
  0x9a   : > { %v10691_v57 = vld [vmem:[%s15200_s2 + $0xaa0] sm:$0xf]  ;;  %v13981_v58 = vld [vmem:[%s15200_s2 + $0xaac] sm:$0xf0]  ;;  %v10564_v62 = vor.u32 %v13949_v56, %v10563_v54  ;;  %6934 = vmatpush.bf16.msra.mxu3 %v10836_v55 }
  0x9b   : > { %v10819_v59 = vld [vmem:[%s15200_s2 + $0xba0] sm:$0xf]  ;;  %v14013_v60 = vld [vmem:[%s15200_s2 + $0xbac] sm:$0xf0]  ;;  %v10692_v63 = vor.u32 %v13981_v58, %v10691_v57  ;;  %6893 = vmatpush.bf16.msra.mxu0 %v10436_v61 }
  0x9c   : > { %v10419_v0 = vld [vmem:[%s15200_s2 + $0x880] sm:$0xf]  ;;  %v13913_v1 = vld [vmem:[%s15200_s2 + $0x88c] sm:$0xf0]  ;;  %v10820_v3 = vor.u32 %v14013_v60, %v10819_v59  ;;  %6907 = vmatpush.bf16.msra.mxu1 %v10564_v62 }
  0x9d   : > { %v10547_v2 = vld [vmem:[%s15200_s2 + $0x980] sm:$0xf]  ;;  %v13945_v4 = vld [vmem:[%s15200_s2 + $0x98c] sm:$0xf0]  ;;  %v10420_v10 = vor.u32 %v13913_v1, %v10419_v0  ;;  %6921 = vmatpush.bf16.msra.mxu2 %v10692_v63 }
  0x9e   : > { %v10675_v5 = vld [vmem:[%s15200_s2 + $0xa80] sm:$0xf]  ;;  %v13977_v6 = vld [vmem:[%s15200_s2 + $0xa8c] sm:$0xf0]  ;;  %v10548_v11 = vor.u32 %v13945_v4, %v10547_v2  ;;  %6935 = vmatpush.bf16.msra.mxu3 %v10820_v3 }
  0x9f   : > { %v10803_v7 = vld [vmem:[%s15200_s2 + $0xb80] sm:$0xf]  ;;  %v14009_v9 = vld [vmem:[%s15200_s2 + $0xb8c] sm:$0xf0]  ;;  %v10676_v12 = vor.u32 %v13977_v6, %v10675_v5  ;;  %6894 = vmatpush.bf16.msra.mxu0 %v10420_v10 }
  0xa0   : > { %v10403_v13 = vld [vmem:[%s15200_s2 + $0x860] sm:$0xf]  ;;  %v13909_v16 = vld [vmem:[%s15200_s2 + $0x86c] sm:$0xf0]  ;;  %v10804_v18 = vor.u32 %v14009_v9, %v10803_v7  ;;  %6908 = vmatpush.bf16.msra.mxu1 %v10548_v11 }
  0xa1   : > { %v10531_v17 = vld [vmem:[%s15200_s2 + $0x960] sm:$0xf]  ;;  %v13941_v19 = vld [vmem:[%s15200_s2 + $0x96c] sm:$0xf0]  ;;  %v10404_v25 = vor.u32 %v13909_v16, %v10403_v13  ;;  %6922 = vmatpush.bf16.msra.mxu2 %v10676_v12 }
  0xa2   : > { %v10659_v20 = vld [vmem:[%s15200_s2 + $0xa60] sm:$0xf]  ;;  %v13973_v21 = vld [vmem:[%s15200_s2 + $0xa6c] sm:$0xf0]  ;;  %v10532_v26 = vor.u32 %v13941_v19, %v10531_v17  ;;  %6936 = vmatpush.bf16.msra.mxu3 %v10804_v18  ;;  %v9243_v17 = vld [vmem:[%s15312_s28 + $0x28] sm:$0xf] }
  0xa3   : > { %v10787_v23 = vld [vmem:[%s15200_s2 + $0xb60] sm:$0xf]  ;;  %v14005_v24 = vld [vmem:[%s15200_s2 + $0xb6c] sm:$0xf0]  ;;  %v10660_v27 = vor.u32 %v13973_v21, %v10659_v20  ;;  %6895 = vmatpush.bf16.msra.mxu0 %v10404_v25  ;;  %v13628_v18 = vld [vmem:[%s15312_s28 + $0x124] sm:$0xf0] }
  0xa4   : > { %v10387_v28 = vld [vmem:[%s15200_s2 + $0x840] sm:$0xf]  ;;  %v13905_v29 = vld [vmem:[%s15200_s2 + $0x84c] sm:$0xf0]  ;;  %v10788_v31 = vor.u32 %v14005_v24, %v10787_v23  ;;  %6909 = vmatpush.bf16.msra.mxu1 %v10532_v26  ;;  %v13611_v19 = vld [vmem:[%s15312_s28 + $0x24] sm:$0xf] }
  0xa5   : > { %v10515_v30 = vld [vmem:[%s15200_s2 + $0x940] sm:$0xf]  ;;  %v13937_v32 = vld [vmem:[%s15200_s2 + $0x94c] sm:$0xf0]  ;;  %v10388_v37 = vor.u32 %v13905_v29, %v10387_v28  ;;  %6923 = vmatpush.bf16.msra.mxu2 %v10660_v27  ;;  %v9237_v23 = vld [vmem:[%s15312_s28 + $0x120] sm:$0xf0] }
  0xa6   : > { %v10643_v33 = vld [vmem:[%s15200_s2 + $0xa40] sm:$0xf]  ;;  %v13969_v34 = vld [vmem:[%s15200_s2 + $0xa4c] sm:$0xf0]  ;;  %v10516_v39 = vor.u32 %v13937_v32, %v10515_v30  ;;  %6937 = vmatpush.bf16.msra.mxu3 %v10788_v31  ;;  %v13612_v24 = vld [vmem:[%s15312_s28 + $0x2c] sm:$0xf] }
  0xa7   : > { %v10771_v35 = vld [vmem:[%s15200_s2 + $0xb40] sm:$0xf]  ;;  %v14001_v36 = vld [vmem:[%s15200_s2 + $0xb4c] sm:$0xf0]  ;;  %v10644_v41 = vor.u32 %v13969_v34, %v10643_v33  ;;  %6896 = vmatpush.bf16.msra.mxu0 %v10388_v37  ;;  %v9245_v25 = vld [vmem:[%s15312_s28 + $0x128] sm:$0xf0]  ;;  %v15484_v37 = vor.u32 %v13611_v19, %v9237_v23 }
  0xa8   : > { %v10371_v38 = vld [vmem:[%s15200_s2 + $0x820] sm:$0xf]  ;;  %v13901_v42 = vld [vmem:[%s15200_s2 + $0x82c] sm:$0xf0]  ;;  %v10772_v47 = vor.u32 %v14001_v36, %v10771_v35  ;;  %6910 = vmatpush.bf16.msra.mxu1 %v10516_v39  ;;  %v15482_v36 = vor.u32 %v13628_v18, %v9243_v17 }
  0xa9   : > { %v10499_v43 = vld [vmem:[%s15200_s2 + $0x920] sm:$0xf]  ;;  %v13933_v46 = vld [vmem:[%s15200_s2 + $0x92c] sm:$0xf0]  ;;  %v10372_v55 = vor.u32 %v13901_v42, %v10371_v38  ;;  %6924 = vmatpush.bf16.msra.mxu2 %v10644_v41  ;;  %v15488_v41 = vor.u32 %v13612_v24, %v9245_v25 }
  0xaa   : > { %v10627_v49 = vld [vmem:[%s15200_s2 + $0xa20] sm:$0xf]  ;;  %v13965_v50 = vld [vmem:[%s15200_s2 + $0xa2c] sm:$0xf0]  ;;  %v10500_v60 = vor.u32 %v13933_v46, %v10499_v43  ;;  %6938 = vmatpush.bf16.msra.mxu3 %v10772_v47 }
  0xab   : > { %v10755_v51 = vld [vmem:[%s15200_s2 + $0xb20] sm:$0xf]  ;;  %v13997_v52 = vld [vmem:[%s15200_s2 + $0xb2c] sm:$0xf0]  ;;  %v10628_v61 = vor.u32 %v13965_v50, %v10627_v49  ;;  %6897 = vmatpush.bf16.msra.mxu0 %v10372_v55 }
  0xac   : > { %v10355_v53 = vld [vmem:[%s15200_s2 + $0x800] sm:$0xf]  ;;  %v13897_v54 = vld [vmem:[%s15200_s2 + $0x80c] sm:$0xf0]  ;;  %v10756_v1 = vor.u32 %v13997_v52, %v10755_v51  ;;  %6911 = vmatpush.bf16.msra.mxu1 %v10500_v60 }
  0xad   : > { %v10483_v56 = vld [vmem:[%s15200_s2 + $0x900] sm:$0xf]  ;;  %v13929_v57 = vld [vmem:[%s15200_s2 + $0x90c] sm:$0xf0]  ;;  %v10356_v9 = vor.u32 %v13897_v54, %v10355_v53  ;;  %6925 = vmatpush.bf16.msra.mxu2 %v10628_v61 }
  0xae   : > { %v10611_v58 = vld [vmem:[%s15200_s2 + $0xa00] sm:$0xf]  ;;  %v13961_v59 = vld [vmem:[%s15200_s2 + $0xa0c] sm:$0xf0]  ;;  %v10484_v13 = vor.u32 %v13929_v57, %v10483_v56  ;;  %6939 = vmatpush.bf16.msra.mxu3 %v10756_v1 }
  0xaf   : > { %v10739_v62 = vld [vmem:[%s15200_s2 + $0xb00] sm:$0xf]  ;;  %v13993_v63 = vld [vmem:[%s15200_s2 + $0xb0c] sm:$0xf0]  ;;  %v10612_v16 = vor.u32 %v13961_v59, %v10611_v58  ;;  %6898 = vmatpush.bf16.msra.mxu0 %v10356_v9 }
  0xb0   : > { %v10979_v0 = vld [vmem:[%s15200_s2 + $0xce0] sm:$0xf]  ;;  %v14053_v2 = vld [vmem:[%s15200_s2 + $0xcec] sm:$0xf0]  ;;  %v10740_v20 = vor.u32 %v13993_v63, %v10739_v62  ;;  %6912 = vmatpush.bf16.msra.mxu1 %v10484_v13 }
  0xb1   : > { %v11107_v3 = vld [vmem:[%s15200_s2 + $0xde0] sm:$0xf]  ;;  %v14085_v4 = vld [vmem:[%s15200_s2 + $0xdec] sm:$0xf0]  ;;  %v10980_v21 = vor.u32 %v14053_v2, %v10979_v0  ;;  %6926 = vmatpush.bf16.msra.mxu2 %v10612_v16 }
  0xb2   : > { %v11235_v5 = vld [vmem:[%s15200_s2 + $0xee0] sm:$0xf]  ;;  %v14117_v6 = vld [vmem:[%s15200_s2 + $0xeec] sm:$0xf0]  ;;  %v11108_v26 = vor.u32 %v14085_v4, %v11107_v3  ;;  %6940 = vmatpush.bf16.msra.mxu3 %v10740_v20 }
  0xb3   : > { %v11363_v7 = vld [vmem:[%s15200_s2 + $0xfe0] sm:$0xf]  ;;  %v14149_v10 = vld [vmem:[%s15200_s2 + $0xfec] sm:$0xf0]  ;;  %v11236_v27 = vor.u32 %v14117_v6, %v11235_v5  ;;  %6947 = vmatpush.bf16.msrb.mxu0 %v10980_v21  ;;  %6913 = vmatmul.bf16.vlgmr.msra.gmra.mxu1 %v15484_v37 }
  0xb4   : > { %v9235_v11 = vld [vmem:[%s15312_s28 + $0x20] sm:$0xf]  ;;  %v14049_v29 = vld [vmem:[%s15200_s2 + $0xccc] sm:$0xf0]  ;;  %v11364_v31 = vor.u32 %v14149_v10, %v11363_v7  ;;  %6961 = vmatpush.bf16.msrb.mxu1 %v11108_v26  ;;  %6927 = vmatmul.bf16.vlgmr.msra.gmra.mxu2 %v15482_v36 }
  0xb5   : > { %v13627_v12 = vld [vmem:[%s15312_s28 + $0x11c] sm:$0xf0]  ;;  %v14081_v33 = vld [vmem:[%s15200_s2 + $0xdcc] sm:$0xf0]  ;;  %6975 = vmatpush.bf16.msrb.mxu2 %v11236_v27  ;;  %6941 = vmatmul.bf16.vlgmr.msra.gmra.mxu3 %v15488_v41 }
  0xb6   : > { %v10963_v28 = vld [vmem:[%s15200_s2 + $0xcc0] sm:$0xf]  ;;  %v15477_v32 = vor.u32 %v13627_v12, %v9235_v11  ;;  %v14113_v35 = vld [vmem:[%s15200_s2 + $0xecc] sm:$0xf0]  ;;  %6989 = vmatpush.bf16.msrb.mxu3 %v11364_v31 }
  0xb7   : > { %v11091_v30 = vld [vmem:[%s15200_s2 + $0xdc0] sm:$0xf]  ;;  %v14145_v39 = vld [vmem:[%s15200_s2 + $0xfcc] sm:$0xf0]  ;;  %v10964_v42 = vor.u32 %v14049_v29, %v10963_v28 }
  0xb8   : > { %v11219_v34 = vld [vmem:[%s15200_s2 + $0xec0] sm:$0xf]  ;;  %v11092_v43 = vor.u32 %v14081_v33, %v11091_v30  ;;  %v14045_v49 = vld [vmem:[%s15200_s2 + $0xcac] sm:$0xf0]  ;;  %6899 = vmatmul.bf16.vlgmr.msra.gmra.mxu0 %v15477_v32 }
  0xb9   : > { %v11347_v38 = vld [vmem:[%s15200_s2 + $0xfc0] sm:$0xf]  ;;  %v11220_v46 = vor.u32 %v14113_v35, %v11219_v34  ;;  %v14077_v52 = vld [vmem:[%s15200_s2 + $0xdac] sm:$0xf0]  ;;  %6948 = vmatpush.bf16.msrb.mxu0 %v10964_v42 }
  0xba   : > { %v10947_v47 = vld [vmem:[%s15200_s2 + $0xca0] sm:$0xf]  ;;  %v11348_v51 = vor.u32 %v14145_v39, %v11347_v38  ;;  %v14109_v54 = vld [vmem:[%s15200_s2 + $0xeac] sm:$0xf0]  ;;  %6962 = vmatpush.bf16.msrb.mxu1 %v11092_v43 }
  0xbb   : > { %v11075_v50 = vld [vmem:[%s15200_s2 + $0xda0] sm:$0xf]  ;;  %v14141_v56 = vld [vmem:[%s15200_s2 + $0xfac] sm:$0xf0]  ;;  %v10948_v57 = vor.u32 %v14045_v49, %v10947_v47  ;;  %6976 = vmatpush.bf16.msrb.mxu2 %v11220_v46 }
  0xbc   : > { %v11203_v53 = vld [vmem:[%s15200_s2 + $0xea0] sm:$0xf]  ;;  %v11076_v58 = vor.u32 %v14077_v52, %v11075_v50  ;;  %v14041_v61 = vld [vmem:[%s15200_s2 + $0xc8c] sm:$0xf0]  ;;  %6990 = vmatpush.bf16.msrb.mxu3 %v11348_v51 }
  0xbd   : > { %v11331_v55 = vld [vmem:[%s15200_s2 + $0xfa0] sm:$0xf]  ;;  %v11204_v59 = vor.u32 %v14109_v54, %v11203_v53  ;;  %v14073_v0 = vld [vmem:[%s15200_s2 + $0xd8c] sm:$0xf0]  ;;  %6949 = vmatpush.bf16.msrb.mxu0 %v10948_v57 }
  0xbe   : > { %v10931_v60 = vld [vmem:[%s15200_s2 + $0xc80] sm:$0xf]  ;;  %v11332_v63 = vor.u32 %v14141_v56, %v11331_v55  ;;  %v14105_v2 = vld [vmem:[%s15200_s2 + $0xe8c] sm:$0xf0]  ;;  %6963 = vmatpush.bf16.msrb.mxu1 %v11076_v58 }
  0xbf   : > { %v11059_v62 = vld [vmem:[%s15200_s2 + $0xd80] sm:$0xf]  ;;  %v14137_v4 = vld [vmem:[%s15200_s2 + $0xf8c] sm:$0xf0]  ;;  %v10932_v5 = vor.u32 %v14041_v61, %v10931_v60  ;;  %6977 = vmatpush.bf16.msrb.mxu2 %v11204_v59 }
  0xc0   : > { %v11187_v1 = vld [vmem:[%s15200_s2 + $0xe80] sm:$0xf]  ;;  %v11060_v6 = vor.u32 %v14073_v0, %v11059_v62  ;;  %v14037_v10 = vld [vmem:[%s15200_s2 + $0xc6c] sm:$0xf0]  ;;  %6991 = vmatpush.bf16.msrb.mxu3 %v11332_v63 }
  0xc1   : > { %v11315_v3 = vld [vmem:[%s15200_s2 + $0xf80] sm:$0xf]  ;;  %v11188_v7 = vor.u32 %v14105_v2, %v11187_v1  ;;  %v14069_v13 = vld [vmem:[%s15200_s2 + $0xd6c] sm:$0xf0]  ;;  %6950 = vmatpush.bf16.msrb.mxu0 %v10932_v5 }
  0xc2   : > { %v10915_v9 = vld [vmem:[%s15200_s2 + $0xc60] sm:$0xf]  ;;  %v11316_v12 = vor.u32 %v14137_v4, %v11315_v3  ;;  %v14101_v17 = vld [vmem:[%s15200_s2 + $0xe6c] sm:$0xf0]  ;;  %6964 = vmatpush.bf16.msrb.mxu1 %v11060_v6 }
  0xc3   : > { %v11043_v11 = vld [vmem:[%s15200_s2 + $0xd60] sm:$0xf]  ;;  %v14133_v19 = vld [vmem:[%s15200_s2 + $0xf6c] sm:$0xf0]  ;;  %v10916_v20 = vor.u32 %v14037_v10, %v10915_v9  ;;  %6978 = vmatpush.bf16.msrb.mxu2 %v11188_v7 }
  0xc4   : > { %v11171_v16 = vld [vmem:[%s15200_s2 + $0xe60] sm:$0xf]  ;;  %v11044_v21 = vor.u32 %v14069_v13, %v11043_v11  ;;  %v14033_v25 = vld [vmem:[%s15200_s2 + $0xc4c] sm:$0xf0]  ;;  %6992 = vmatpush.bf16.msrb.mxu3 %v11316_v12 }
  0xc5   : > { %v11299_v18 = vld [vmem:[%s15200_s2 + $0xf60] sm:$0xf]  ;;  %v11172_v23 = vor.u32 %v14101_v17, %v11171_v16  ;;  %v14065_v28 = vld [vmem:[%s15200_s2 + $0xd4c] sm:$0xf0]  ;;  %6951 = vmatpush.bf16.msrb.mxu0 %v10916_v20  ;;  %v9259_v17 = vld [vmem:[%s15312_s28 + $0x38] sm:$0xf] }
  0xc6   : > { %v10899_v24 = vld [vmem:[%s15200_s2 + $0xc40] sm:$0xf]  ;;  %v11300_v27 = vor.u32 %v14133_v19, %v11299_v18  ;;  %v14097_v30 = vld [vmem:[%s15200_s2 + $0xe4c] sm:$0xf0]  ;;  %6965 = vmatpush.bf16.msrb.mxu1 %v11044_v21  ;;  %v13630_v18 = vld [vmem:[%s15312_s28 + $0x134] sm:$0xf0] }
  0xc7   : > { %v11027_v26 = vld [vmem:[%s15200_s2 + $0xd40] sm:$0xf]  ;;  %v14129_v33 = vld [vmem:[%s15200_s2 + $0xf4c] sm:$0xf0]  ;;  %v10900_v34 = vor.u32 %v14033_v25, %v10899_v24  ;;  %6979 = vmatpush.bf16.msrb.mxu2 %v11172_v23  ;;  %v13613_v19 = vld [vmem:[%s15312_s28 + $0x34] sm:$0xf] }
  0xc8   : > { %v11155_v29 = vld [vmem:[%s15200_s2 + $0xe40] sm:$0xf]  ;;  %v11028_v38 = vor.u32 %v14065_v28, %v11027_v26  ;;  %v14029_v42 = vld [vmem:[%s15200_s2 + $0xc2c] sm:$0xf0]  ;;  %6993 = vmatpush.bf16.msrb.mxu3 %v11300_v27  ;;  %v9253_v23 = vld [vmem:[%s15312_s28 + $0x130] sm:$0xf0] }
  0xc9   : > { %v11283_v31 = vld [vmem:[%s15200_s2 + $0xf40] sm:$0xf]  ;;  %v11156_v39 = vor.u32 %v14097_v30, %v11155_v29  ;;  %v14061_v46 = vld [vmem:[%s15200_s2 + $0xd2c] sm:$0xf0]  ;;  %6952 = vmatpush.bf16.msrb.mxu0 %v10900_v34  ;;  %v13614_v24 = vld [vmem:[%s15312_s28 + $0x3c] sm:$0xf] }
  0xca   : > { %v10883_v35 = vld [vmem:[%s15200_s2 + $0xc20] sm:$0xf]  ;;  %v11284_v47 = vor.u32 %v14129_v33, %v11283_v31  ;;  %v14093_v50 = vld [vmem:[%s15200_s2 + $0xe2c] sm:$0xf0]  ;;  %6966 = vmatpush.bf16.msrb.mxu1 %v11028_v38  ;;  %v9261_v25 = vld [vmem:[%s15312_s28 + $0x138] sm:$0xf0] }
  0xcb   : > { %v11011_v43 = vld [vmem:[%s15200_s2 + $0xd20] sm:$0xf]  ;;  %v14125_v52 = vld [vmem:[%s15200_s2 + $0xf2c] sm:$0xf0]  ;;  %v10884_v55 = vor.u32 %v14029_v42, %v10883_v35  ;;  %6980 = vmatpush.bf16.msrb.mxu2 %v11156_v39  ;;  %v15566_v39 = vor.u32 %v13630_v18, %v9259_v17  ;;  %v15568_v42 = vor.u32 %v13613_v19, %v9253_v23 }
  0xcc   : > { %v11139_v49 = vld [vmem:[%s15200_s2 + $0xe20] sm:$0xf]  ;;  %v14025_v54 = vld [vmem:[%s15200_s2 + $0xc0c] sm:$0xf0]  ;;  %v11012_v60 = vor.u32 %v14061_v46, %v11011_v43  ;;  %6994 = vmatpush.bf16.msrb.mxu3 %v11284_v47  ;;  %v15572_v47 = vor.u32 %v13614_v24, %v9261_v25 }
  0xcd   : > { %v11267_v51 = vld [vmem:[%s15200_s2 + $0xf20] sm:$0xf]  ;;  %v14057_v57 = vld [vmem:[%s15200_s2 + $0xd0c] sm:$0xf0]  ;;  %v11140_v61 = vor.u32 %v14093_v50, %v11139_v49  ;;  %6953 = vmatpush.bf16.msrb.mxu0 %v10884_v55 }
  0xce   : > { %v10867_v53 = vld [vmem:[%s15200_s2 + $0xc00] sm:$0xf]  ;;  %v14089_v59 = vld [vmem:[%s15200_s2 + $0xe0c] sm:$0xf0]  ;;  %v11268_v1 = vor.u32 %v14125_v52, %v11267_v51  ;;  %6967 = vmatpush.bf16.msrb.mxu1 %v11012_v60 }
  0xcf   : > { %v10995_v56 = vld [vmem:[%s15200_s2 + $0xd00] sm:$0xf]  ;;  %v14121_v63 = vld [vmem:[%s15200_s2 + $0xf0c] sm:$0xf0]  ;;  %v10868_v9 = vor.u32 %v14025_v54, %v10867_v53  ;;  %6981 = vmatpush.bf16.msrb.mxu2 %v11140_v61 }
  0xd0   : > { %v11123_v58 = vld [vmem:[%s15200_s2 + $0xe00] sm:$0xf]  ;;  %v14181_v2 = vld [vmem:[%s15200_s2 + $0x10ec] sm:$0xf0]  ;;  %v10996_v13 = vor.u32 %v14057_v57, %v10995_v56  ;;  %6995 = vmatpush.bf16.msrb.mxu3 %v11268_v1 }
  0xd1   : > { %v11251_v62 = vld [vmem:[%s15200_s2 + $0xf00] sm:$0xf]  ;;  %v14213_v4 = vld [vmem:[%s15200_s2 + $0x11ec] sm:$0xf0]  ;;  %v11124_v16 = vor.u32 %v14089_v59, %v11123_v58  ;;  %6954 = vmatpush.bf16.msrb.mxu0 %v10868_v9 }
  0xd2   : > { %v11491_v0 = vld [vmem:[%s15200_s2 + $0x10e0] sm:$0xf]  ;;  %v14245_v6 = vld [vmem:[%s15200_s2 + $0x12ec] sm:$0xf0]  ;;  %v11252_v20 = vor.u32 %v14121_v63, %v11251_v62  ;;  %6968 = vmatpush.bf16.msrb.mxu1 %v10996_v13 }
  0xd3   : > { %v11619_v3 = vld [vmem:[%s15200_s2 + $0x11e0] sm:$0xf]  ;;  %v14277_v10 = vld [vmem:[%s15200_s2 + $0x13ec] sm:$0xf0]  ;;  %v11492_v21 = vor.u32 %v14181_v2, %v11491_v0  ;;  %6982 = vmatpush.bf16.msrb.mxu2 %v11124_v16 }
  0xd4   : > { %v11747_v5 = vld [vmem:[%s15200_s2 + $0x12e0] sm:$0xf]  ;;  %v9251_v11 = vld [vmem:[%s15312_s28 + $0x30] sm:$0xf]  ;;  %v11620_v26 = vor.u32 %v14213_v4, %v11619_v3  ;;  %6996 = vmatpush.bf16.msrb.mxu3 %v11252_v20 }
  0xd5   : > { %v11875_v7 = vld [vmem:[%s15200_s2 + $0x13e0] sm:$0xf]  ;;  %v13629_v12 = vld [vmem:[%s15312_s28 + $0x12c] sm:$0xf0]  ;;  %v11748_v27 = vor.u32 %v14245_v6, %v11747_v5  ;;  %7003 = vmatpush.bf16.msra.mxu0 %v11492_v21  ;;  %6969 = vmatmul.bf16.vlgmr.msrb.gmra.mxu1 %v15568_v42 }
  0xd6   : > { %v11475_v28 = vld [vmem:[%s15200_s2 + $0x10c0] sm:$0xf]  ;;  %v14177_v29 = vld [vmem:[%s15200_s2 + $0x10cc] sm:$0xf0]  ;;  %v11876_v31 = vor.u32 %v14277_v10, %v11875_v7  ;;  %v15561_v33 = vor.u32 %v13629_v12, %v9251_v11  ;;  %7017 = vmatpush.bf16.msra.mxu1 %v11620_v26  ;;  %6983 = vmatmul.bf16.vlgmr.msrb.gmra.mxu2 %v15566_v39 }
  0xd7   : > { %v11603_v30 = vld [vmem:[%s15200_s2 + $0x11c0] sm:$0xf]  ;;  %v14209_v34 = vld [vmem:[%s15200_s2 + $0x11cc] sm:$0xf0]  ;;  %v11476_v49 = vor.u32 %v14177_v29, %v11475_v28  ;;  %7031 = vmatpush.bf16.msra.mxu2 %v11748_v27  ;;  %6997 = vmatmul.bf16.vlgmr.msrb.gmra.mxu3 %v15572_v47 }
  0xd8   : > { %v11731_v35 = vld [vmem:[%s15200_s2 + $0x12c0] sm:$0xf]  ;;  %v14241_v38 = vld [vmem:[%s15200_s2 + $0x12cc] sm:$0xf0]  ;;  %v11604_v50 = vor.u32 %v14209_v34, %v11603_v30  ;;  %7045 = vmatpush.bf16.msra.mxu3 %v11876_v31  ;;  %6955 = vmatmul.bf16.vlgmr.msrb.gmra.mxu0 %v15561_v33 }
  0xd9   : > { %v11859_v43 = vld [vmem:[%s15200_s2 + $0x13c0] sm:$0xf]  ;;  %v14273_v46 = vld [vmem:[%s15200_s2 + $0x13cc] sm:$0xf0]  ;;  %v11732_v51 = vor.u32 %v14241_v38, %v11731_v35  ;;  %7004 = vmatpush.bf16.msra.mxu0 %v11476_v49 }
  0xda   : > { %v11459_v52 = vld [vmem:[%s15200_s2 + $0x10a0] sm:$0xf]  ;;  %v14173_v53 = vld [vmem:[%s15200_s2 + $0x10ac] sm:$0xf0]  ;;  %v11860_v55 = vor.u32 %v14273_v46, %v11859_v43  ;;  %7018 = vmatpush.bf16.msra.mxu1 %v11604_v50 }
  0xdb   : > { %v11587_v54 = vld [vmem:[%s15200_s2 + $0x11a0] sm:$0xf]  ;;  %v14205_v56 = vld [vmem:[%s15200_s2 + $0x11ac] sm:$0xf0]  ;;  %v11460_v61 = vor.u32 %v14173_v53, %v11459_v52  ;;  %7032 = vmatpush.bf16.msra.mxu2 %v11732_v51 }
  0xdc   : > { %v11715_v57 = vld [vmem:[%s15200_s2 + $0x12a0] sm:$0xf]  ;;  %v14237_v58 = vld [vmem:[%s15200_s2 + $0x12ac] sm:$0xf0]  ;;  %v11588_v62 = vor.u32 %v14205_v56, %v11587_v54  ;;  %7046 = vmatpush.bf16.msra.mxu3 %v11860_v55 }
  0xdd   : > { %v11843_v59 = vld [vmem:[%s15200_s2 + $0x13a0] sm:$0xf]  ;;  %v14269_v60 = vld [vmem:[%s15200_s2 + $0x13ac] sm:$0xf0]  ;;  %v11716_v63 = vor.u32 %v14237_v58, %v11715_v57  ;;  %7005 = vmatpush.bf16.msra.mxu0 %v11460_v61 }
  0xde   : > { %v11443_v0 = vld [vmem:[%s15200_s2 + $0x1080] sm:$0xf]  ;;  %v14169_v1 = vld [vmem:[%s15200_s2 + $0x108c] sm:$0xf0]  ;;  %v11844_v3 = vor.u32 %v14269_v60, %v11843_v59  ;;  %7019 = vmatpush.bf16.msra.mxu1 %v11588_v62 }
  0xdf   : > { %v11571_v2 = vld [vmem:[%s15200_s2 + $0x1180] sm:$0xf]  ;;  %v14201_v4 = vld [vmem:[%s15200_s2 + $0x118c] sm:$0xf0]  ;;  %v11444_v10 = vor.u32 %v14169_v1, %v11443_v0  ;;  %7033 = vmatpush.bf16.msra.mxu2 %v11716_v63 }
  0xe0   : > { %v11699_v5 = vld [vmem:[%s15200_s2 + $0x1280] sm:$0xf]  ;;  %v14233_v6 = vld [vmem:[%s15200_s2 + $0x128c] sm:$0xf0]  ;;  %v11572_v11 = vor.u32 %v14201_v4, %v11571_v2  ;;  %7047 = vmatpush.bf16.msra.mxu3 %v11844_v3 }
  0xe1   : > { %v11827_v7 = vld [vmem:[%s15200_s2 + $0x1380] sm:$0xf]  ;;  %v14265_v9 = vld [vmem:[%s15200_s2 + $0x138c] sm:$0xf0]  ;;  %v11700_v12 = vor.u32 %v14233_v6, %v11699_v5  ;;  %7006 = vmatpush.bf16.msra.mxu0 %v11444_v10 }
  0xe2   : > { %v11427_v13 = vld [vmem:[%s15200_s2 + $0x1060] sm:$0xf]  ;;  %v14165_v16 = vld [vmem:[%s15200_s2 + $0x106c] sm:$0xf0]  ;;  %v11828_v18 = vor.u32 %v14265_v9, %v11827_v7  ;;  %7020 = vmatpush.bf16.msra.mxu1 %v11572_v11 }
  0xe3   : > { %v11555_v17 = vld [vmem:[%s15200_s2 + $0x1160] sm:$0xf]  ;;  %v14197_v19 = vld [vmem:[%s15200_s2 + $0x116c] sm:$0xf0]  ;;  %v11428_v25 = vor.u32 %v14165_v16, %v11427_v13  ;;  %7034 = vmatpush.bf16.msra.mxu2 %v11700_v12 }
  0xe4   : > { %v11683_v20 = vld [vmem:[%s15200_s2 + $0x1260] sm:$0xf]  ;;  %v14229_v21 = vld [vmem:[%s15200_s2 + $0x126c] sm:$0xf0]  ;;  %v11556_v26 = vor.u32 %v14197_v19, %v11555_v17  ;;  %7048 = vmatpush.bf16.msra.mxu3 %v11828_v18 }
  0xe5   : > { %v11811_v23 = vld [vmem:[%s15200_s2 + $0x1360] sm:$0xf]  ;;  %v14261_v24 = vld [vmem:[%s15200_s2 + $0x136c] sm:$0xf0]  ;;  %v11684_v27 = vor.u32 %v14229_v21, %v11683_v20  ;;  %7007 = vmatpush.bf16.msra.mxu0 %v11428_v25 }
  0xe6   : > { %v11411_v28 = vld [vmem:[%s15200_s2 + $0x1040] sm:$0xf]  ;;  %v14161_v29 = vld [vmem:[%s15200_s2 + $0x104c] sm:$0xf0]  ;;  %v11812_v31 = vor.u32 %v14261_v24, %v11811_v23  ;;  %7021 = vmatpush.bf16.msra.mxu1 %v11556_v26  ;;  %v9275_v26 = vld [vmem:[%s15312_s28 + $0x48] sm:$0xf] }
  0xe7   : > { %v11539_v30 = vld [vmem:[%s15200_s2 + $0x1140] sm:$0xf]  ;;  %v14193_v34 = vld [vmem:[%s15200_s2 + $0x114c] sm:$0xf0]  ;;  %v11412_v49 = vor.u32 %v14161_v29, %v11411_v28  ;;  %7035 = vmatpush.bf16.msra.mxu2 %v11684_v27  ;;  %v13632_v27 = vld [vmem:[%s15312_s28 + $0x144] sm:$0xf0] }
  0xe8   : > { %v11667_v35 = vld [vmem:[%s15200_s2 + $0x1240] sm:$0xf]  ;;  %v14225_v38 = vld [vmem:[%s15200_s2 + $0x124c] sm:$0xf0]  ;;  %v11540_v51 = vor.u32 %v14193_v34, %v11539_v30  ;;  %7049 = vmatpush.bf16.msra.mxu3 %v11812_v31  ;;  %v13615_v28 = vld [vmem:[%s15312_s28 + $0x44] sm:$0xf] }
  0xe9   : > { %v11795_v43 = vld [vmem:[%s15200_s2 + $0x1340] sm:$0xf]  ;;  %v14257_v46 = vld [vmem:[%s15200_s2 + $0x134c] sm:$0xf0]  ;;  %v11668_v52 = vor.u32 %v14225_v38, %v11667_v35  ;;  %7008 = vmatpush.bf16.msra.mxu0 %v11412_v49  ;;  %v9269_v31 = vld [vmem:[%s15312_s28 + $0x140] sm:$0xf0] }
  0xea   : > { %v11395_v50 = vld [vmem:[%s15200_s2 + $0x1020] sm:$0xf]  ;;  %v14157_v53 = vld [vmem:[%s15200_s2 + $0x102c] sm:$0xf0]  ;;  %v11796_v56 = vor.u32 %v14257_v46, %v11795_v43  ;;  %7022 = vmatpush.bf16.msra.mxu1 %v11540_v51  ;;  %v13616_v34 = vld [vmem:[%s15312_s28 + $0x4c] sm:$0xf] }
  0xeb   : > { %v11523_v54 = vld [vmem:[%s15200_s2 + $0x1120] sm:$0xf]  ;;  %v14189_v55 = vld [vmem:[%s15200_s2 + $0x112c] sm:$0xf0]  ;;  %v11396_v63 = vor.u32 %v14157_v53, %v11395_v50  ;;  %7036 = vmatpush.bf16.msra.mxu2 %v11668_v52  ;;  %v9277_v35 = vld [vmem:[%s15312_s28 + $0x148] sm:$0xf0] }
  0xec   : > { %v11651_v57 = vld [vmem:[%s15200_s2 + $0x1220] sm:$0xf]  ;;  %v14221_v58 = vld [vmem:[%s15200_s2 + $0x122c] sm:$0xf0]  ;;  %v11524_v4 = vor.u32 %v14189_v55, %v11523_v54  ;;  %7050 = vmatpush.bf16.msra.mxu3 %v11796_v56  ;;  %v15650_v56 = vor.u32 %v13632_v27, %v9275_v26 }
  0xed   : > { %v11779_v59 = vld [vmem:[%s15200_s2 + $0x1320] sm:$0xf]  ;;  %v14253_v60 = vld [vmem:[%s15200_s2 + $0x132c] sm:$0xf0]  ;;  %v11652_v5 = vor.u32 %v14221_v58, %v11651_v57  ;;  %7009 = vmatpush.bf16.msra.mxu0 %v11396_v63  ;;  %v15652_v57 = vor.u32 %v13615_v28, %v9269_v31 }
  0xee   : > { %v11379_v61 = vld [vmem:[%s15200_s2 + $0x1000] sm:$0xf]  ;;  %v14153_v62 = vld [vmem:[%s15200_s2 + $0x100c] sm:$0xf0]  ;;  %v11780_v10 = vor.u32 %v14253_v60, %v11779_v59  ;;  %7023 = vmatpush.bf16.msra.mxu1 %v11524_v4  ;;  %v15656_v60 = vor.u32 %v13616_v34, %v9277_v35 }
  0xef   : > { %v11507_v0 = vld [vmem:[%s15200_s2 + $0x1100] sm:$0xf]  ;;  %v14185_v1 = vld [vmem:[%s15200_s2 + $0x110c] sm:$0xf0]  ;;  %v11380_v19 = vor.u32 %v14153_v62, %v11379_v61  ;;  %7037 = vmatpush.bf16.msra.mxu2 %v11652_v5 }
  0xf0   : > { %v11635_v2 = vld [vmem:[%s15200_s2 + $0x1200] sm:$0xf]  ;;  %v14217_v3 = vld [vmem:[%s15200_s2 + $0x120c] sm:$0xf0]  ;;  %v11508_v24 = vor.u32 %v14185_v1, %v11507_v0  ;;  %7051 = vmatpush.bf16.msra.mxu3 %v11780_v10 }
  0xf1   : > { %v11763_v6 = vld [vmem:[%s15200_s2 + $0x1300] sm:$0xf]  ;;  %v14249_v7 = vld [vmem:[%s15200_s2 + $0x130c] sm:$0xf0]  ;;  %v11636_v25 = vor.u32 %v14217_v3, %v11635_v2  ;;  %7010 = vmatpush.bf16.msra.mxu0 %v11380_v19 }
  0xf2   : > { %v12003_v9 = vld [vmem:[%s15200_s2 + $0x14e0] sm:$0xf]  ;;  %v14309_v11 = vld [vmem:[%s15200_s2 + $0x14ec] sm:$0xf0]  ;;  %v11764_v29 = vor.u32 %v14249_v7, %v11763_v6  ;;  %7024 = vmatpush.bf16.msra.mxu1 %v11508_v24 }
  0xf3   : > { %v12131_v12 = vld [vmem:[%s15200_s2 + $0x15e0] sm:$0xf]  ;;  %v14341_v13 = vld [vmem:[%s15200_s2 + $0x15ec] sm:$0xf0]  ;;  %v12004_v30 = vor.u32 %v14309_v11, %v12003_v9  ;;  %7038 = vmatpush.bf16.msra.mxu2 %v11636_v25 }
  0xf4   : > { %v12259_v16 = vld [vmem:[%s15200_s2 + $0x16e0] sm:$0xf]  ;;  %v14373_v17 = vld [vmem:[%s15200_s2 + $0x16ec] sm:$0xf0]  ;;  %v12132_v38 = vor.u32 %v14341_v13, %v12131_v12  ;;  %7052 = vmatpush.bf16.msra.mxu3 %v11764_v29 }
  0xf5   : > { %v12387_v18 = vld [vmem:[%s15200_s2 + $0x17e0] sm:$0xf]  ;;  %v14405_v20 = vld [vmem:[%s15200_s2 + $0x17ec] sm:$0xf0]  ;;  %v12260_v43 = vor.u32 %v14373_v17, %v12259_v16  ;;  %7059 = vmatpush.bf16.msrb.mxu0 %v12004_v30  ;;  %7025 = vmatmul.bf16.vlgmr.msra.gmra.mxu1 %v15652_v57 }
  0xf6   : > { %v9267_v21 = vld [vmem:[%s15312_s28 + $0x40] sm:$0xf]  ;;  %v14305_v49 = vld [vmem:[%s15200_s2 + $0x14cc] sm:$0xf0]  ;;  %v12388_v51 = vor.u32 %v14405_v20, %v12387_v18  ;;  %7073 = vmatpush.bf16.msrb.mxu1 %v12132_v38  ;;  %7039 = vmatmul.bf16.vlgmr.msra.gmra.mxu2 %v15650_v56 }
  0xf7   : > { %v13631_v23 = vld [vmem:[%s15312_s28 + $0x13c] sm:$0xf0]  ;;  %v14337_v53 = vld [vmem:[%s15200_s2 + $0x15cc] sm:$0xf0]  ;;  %7087 = vmatpush.bf16.msrb.mxu2 %v12260_v43  ;;  %7053 = vmatmul.bf16.vlgmr.msra.gmra.mxu3 %v15656_v60 }
  0xf8   : > { %v11987_v46 = vld [vmem:[%s15200_s2 + $0x14c0] sm:$0xf]  ;;  %v15645_v52 = vor.u32 %v13631_v23, %v9267_v21  ;;  %v14369_v55 = vld [vmem:[%s15200_s2 + $0x16cc] sm:$0xf0]  ;;  %7101 = vmatpush.bf16.msrb.mxu3 %v12388_v51 }
  0xf9   : > { %v12115_v50 = vld [vmem:[%s15200_s2 + $0x15c0] sm:$0xf]  ;;  %v14401_v59 = vld [vmem:[%s15200_s2 + $0x17cc] sm:$0xf0]  ;;  %v11988_v61 = vor.u32 %v14305_v49, %v11987_v46 }
  0xfa   : > { %v12243_v54 = vld [vmem:[%s15200_s2 + $0x16c0] sm:$0xf]  ;;  %v12116_v62 = vor.u32 %v14337_v53, %v12115_v50  ;;  %v14301_v1 = vld [vmem:[%s15200_s2 + $0x14ac] sm:$0xf0]  ;;  %7011 = vmatmul.bf16.vlgmr.msra.gmra.mxu0 %v15645_v52 }
  0xfb   : > { %v12371_v58 = vld [vmem:[%s15200_s2 + $0x17c0] sm:$0xf]  ;;  %v12244_v63 = vor.u32 %v14369_v55, %v12243_v54  ;;  %v14333_v4 = vld [vmem:[%s15200_s2 + $0x15ac] sm:$0xf0]  ;;  %7060 = vmatpush.bf16.msrb.mxu0 %v11988_v61 }
  0xfc   : > { %v11971_v0 = vld [vmem:[%s15200_s2 + $0x14a0] sm:$0xf]  ;;  %v12372_v3 = vor.u32 %v14401_v59, %v12371_v58  ;;  %v14365_v6 = vld [vmem:[%s15200_s2 + $0x16ac] sm:$0xf0]  ;;  %7074 = vmatpush.bf16.msrb.mxu1 %v12116_v62 }
  0xfd   : > { %v12099_v2 = vld [vmem:[%s15200_s2 + $0x15a0] sm:$0xf]  ;;  %v14397_v9 = vld [vmem:[%s15200_s2 + $0x17ac] sm:$0xf0]  ;;  %v11972_v10 = vor.u32 %v14301_v1, %v11971_v0  ;;  %7088 = vmatpush.bf16.msrb.mxu2 %v12244_v63 }
  0xfe   : > { %v12227_v5 = vld [vmem:[%s15200_s2 + $0x16a0] sm:$0xf]  ;;  %v12100_v11 = vor.u32 %v14333_v4, %v12099_v2  ;;  %v14297_v16 = vld [vmem:[%s15200_s2 + $0x148c] sm:$0xf0]  ;;  %7102 = vmatpush.bf16.msrb.mxu3 %v12372_v3 }
  0xff   : > { %v12355_v7 = vld [vmem:[%s15200_s2 + $0x17a0] sm:$0xf]  ;;  %v12228_v12 = vor.u32 %v14365_v6, %v12227_v5  ;;  %v14329_v19 = vld [vmem:[%s15200_s2 + $0x158c] sm:$0xf0]  ;;  %7061 = vmatpush.bf16.msrb.mxu0 %v11972_v10 }
 0x100   : > { %v11955_v13 = vld [vmem:[%s15200_s2 + $0x1480] sm:$0xf]  ;;  %v12356_v18 = vor.u32 %v14397_v9, %v12355_v7  ;;  %v14361_v21 = vld [vmem:[%s15200_s2 + $0x168c] sm:$0xf0]  ;;  %7075 = vmatpush.bf16.msrb.mxu1 %v12100_v11 }
 0x101   : > { %v12083_v17 = vld [vmem:[%s15200_s2 + $0x1580] sm:$0xf]  ;;  %v14393_v24 = vld [vmem:[%s15200_s2 + $0x178c] sm:$0xf0]  ;;  %v11956_v25 = vor.u32 %v14297_v16, %v11955_v13  ;;  %7089 = vmatpush.bf16.msrb.mxu2 %v12228_v12 }
 0x102   : > { %v12211_v20 = vld [vmem:[%s15200_s2 + $0x1680] sm:$0xf]  ;;  %v12084_v26 = vor.u32 %v14329_v19, %v12083_v17  ;;  %v14293_v29 = vld [vmem:[%s15200_s2 + $0x146c] sm:$0xf0]  ;;  %7103 = vmatpush.bf16.msrb.mxu3 %v12356_v18 }
 0x103   : > { %v12339_v23 = vld [vmem:[%s15200_s2 + $0x1780] sm:$0xf]  ;;  %v12212_v27 = vor.u32 %v14361_v21, %v12211_v20  ;;  %v14325_v34 = vld [vmem:[%s15200_s2 + $0x156c] sm:$0xf0]  ;;  %7062 = vmatpush.bf16.msrb.mxu0 %v11956_v25 }
 0x104   : > { %v11939_v28 = vld [vmem:[%s15200_s2 + $0x1460] sm:$0xf]  ;;  %v12340_v31 = vor.u32 %v14393_v24, %v12339_v23  ;;  %v14357_v38 = vld [vmem:[%s15200_s2 + $0x166c] sm:$0xf0]  ;;  %7076 = vmatpush.bf16.msrb.mxu1 %v12084_v26 }
 0x105   : > { %v12067_v30 = vld [vmem:[%s15200_s2 + $0x1560] sm:$0xf]  ;;  %v14389_v46 = vld [vmem:[%s15200_s2 + $0x176c] sm:$0xf0]  ;;  %v11940_v49 = vor.u32 %v14293_v29, %v11939_v28  ;;  %7090 = vmatpush.bf16.msrb.mxu2 %v12212_v27 }
 0x106   : > { %v12195_v35 = vld [vmem:[%s15200_s2 + $0x1660] sm:$0xf]  ;;  %v12068_v50 = vor.u32 %v14325_v34, %v12067_v30  ;;  %v14289_v54 = vld [vmem:[%s15200_s2 + $0x144c] sm:$0xf0]  ;;  %7104 = vmatpush.bf16.msrb.mxu3 %v12340_v31 }
 0x107   : > { %v12323_v43 = vld [vmem:[%s15200_s2 + $0x1760] sm:$0xf]  ;;  %v12196_v51 = vor.u32 %v14357_v38, %v12195_v35  ;;  %v14321_v59 = vld [vmem:[%s15200_s2 + $0x154c] sm:$0xf0]  ;;  %7063 = vmatpush.bf16.msrb.mxu0 %v11940_v49 }
 0x108   : > { %v11923_v53 = vld [vmem:[%s15200_s2 + $0x1440] sm:$0xf]  ;;  %v12324_v58 = vor.u32 %v14389_v46, %v12323_v43  ;;  %v14353_v62 = vld [vmem:[%s15200_s2 + $0x164c] sm:$0xf0]  ;;  %7077 = vmatpush.bf16.msrb.mxu1 %v12068_v50 }
 0x109   : > { %v12051_v55 = vld [vmem:[%s15200_s2 + $0x1540] sm:$0xf]  ;;  %v14385_v0 = vld [vmem:[%s15200_s2 + $0x174c] sm:$0xf0]  ;;  %v11924_v1 = vor.u32 %v14289_v54, %v11923_v53  ;;  %7091 = vmatpush.bf16.msrb.mxu2 %v12196_v51 }
 0x10a   : > { %v12179_v61 = vld [vmem:[%s15200_s2 + $0x1640] sm:$0xf]  ;;  %v12052_v3 = vor.u32 %v14321_v59, %v12051_v55  ;;  %v14285_v5 = vld [vmem:[%s15200_s2 + $0x142c] sm:$0xf0]  ;;  %7105 = vmatpush.bf16.msrb.mxu3 %v12324_v58  ;;  %v9291_v55 = vld [vmem:[%s15312_s28 + $0x58] sm:$0xf] }
 0x10b   : > { %v12307_v63 = vld [vmem:[%s15200_s2 + $0x1740] sm:$0xf]  ;;  %v12180_v4 = vor.u32 %v14353_v62, %v12179_v61  ;;  %v14317_v7 = vld [vmem:[%s15200_s2 + $0x152c] sm:$0xf0]  ;;  %7064 = vmatpush.bf16.msrb.mxu0 %v11924_v1  ;;  %v13634_v58 = vld [vmem:[%s15312_s28 + $0x154] sm:$0xf0] }
 0x10c   : > { %v11907_v2 = vld [vmem:[%s15200_s2 + $0x1420] sm:$0xf]  ;;  %v12308_v9 = vor.u32 %v14385_v0, %v12307_v63  ;;  %v14349_v11 = vld [vmem:[%s15200_s2 + $0x162c] sm:$0xf0]  ;;  %7078 = vmatpush.bf16.msrb.mxu1 %v12052_v3  ;;  %v13617_v59 = vld [vmem:[%s15312_s28 + $0x54] sm:$0xf] }
 0x10d   : > { %v12035_v6 = vld [vmem:[%s15200_s2 + $0x1520] sm:$0xf]  ;;  %v14381_v13 = vld [vmem:[%s15200_s2 + $0x172c] sm:$0xf0]  ;;  %v11908_v18 = vor.u32 %v14285_v5, %v11907_v2  ;;  %7092 = vmatpush.bf16.msrb.mxu2 %v12180_v4  ;;  %v9285_v63 = vld [vmem:[%s15312_s28 + $0x150] sm:$0xf0] }
 0x10e   : > { %v12163_v10 = vld [vmem:[%s15200_s2 + $0x1620] sm:$0xf]  ;;  %v14281_v17 = vld [vmem:[%s15200_s2 + $0x140c] sm:$0xf0]  ;;  %v12036_v24 = vor.u32 %v14317_v7, %v12035_v6  ;;  %7106 = vmatpush.bf16.msrb.mxu3 %v12308_v9  ;;  %v13618_v0 = vld [vmem:[%s15312_s28 + $0x5c] sm:$0xf] }
 0x10f   : > { %v12291_v12 = vld [vmem:[%s15200_s2 + $0x1720] sm:$0xf]  ;;  %v14313_v20 = vld [vmem:[%s15200_s2 + $0x150c] sm:$0xf0]  ;;  %v12164_v25 = vor.u32 %v14349_v11, %v12163_v10  ;;  %7065 = vmatpush.bf16.msrb.mxu0 %v11908_v18  ;;  %v9293_v1 = vld [vmem:[%s15312_s28 + $0x158] sm:$0xf0] }
 0x110   : > { %v11891_v16 = vld [vmem:[%s15200_s2 + $0x1400] sm:$0xf]  ;;  %v14345_v23 = vld [vmem:[%s15200_s2 + $0x160c] sm:$0xf0]  ;;  %v12292_v29 = vor.u32 %v14381_v13, %v12291_v12  ;;  %7079 = vmatpush.bf16.msrb.mxu1 %v12036_v24  ;;  %v15734_v13 = vor.u32 %v13634_v58, %v9291_v55 }
 0x111   : > { %v12019_v19 = vld [vmem:[%s15200_s2 + $0x1500] sm:$0xf]  ;;  %v14377_v27 = vld [vmem:[%s15200_s2 + $0x170c] sm:$0xf0]  ;;  %v11892_v46 = vor.u32 %v14281_v17, %v11891_v16  ;;  %7093 = vmatpush.bf16.msrb.mxu2 %v12164_v25  ;;  %v15736_v16 = vor.u32 %v13617_v59, %v9285_v63 }
 0x112   : > { %v12147_v21 = vld [vmem:[%s15200_s2 + $0x1600] sm:$0xf]  ;;  %v14437_v30 = vld [vmem:[%s15200_s2 + $0x18ec] sm:$0xf0]  ;;  %v12020_v53 = vor.u32 %v14313_v20, %v12019_v19  ;;  %7107 = vmatpush.bf16.msrb.mxu3 %v12292_v29  ;;  %18068 = vst [vmem:[#allocation21_spill] sm:$0xff] %v15734_v13  ;;  %v15740_v19 = vor.u32 %v13618_v0, %v9293_v1 }
 0x113   : > { %v12275_v26 = vld [vmem:[%s15200_s2 + $0x1700] sm:$0xf]  ;;  %v14469_v34 = vld [vmem:[%s15200_s2 + $0x19ec] sm:$0xf0]  ;;  %v12148_v54 = vor.u32 %v14345_v23, %v12147_v21  ;;  %7066 = vmatpush.bf16.msrb.mxu0 %v11892_v46  ;;  %18069 = vst [vmem:[#allocation22_spill] sm:$0xff] %v15736_v16 }
 0x114   : > { %v12515_v28 = vld [vmem:[%s15200_s2 + $0x18e0] sm:$0xf]  ;;  %v14501_v38 = vld [vmem:[%s15200_s2 + $0x1aec] sm:$0xf0]  ;;  %v12276_v61 = vor.u32 %v14377_v27, %v12275_v26  ;;  %7080 = vmatpush.bf16.msrb.mxu1 %v12020_v53  ;;  %18070 = vst [vmem:[#allocation23_spill] sm:$0xff] %v15740_v19 }
 0x115   : > { %v12643_v31 = vld [vmem:[%s15200_s2 + $0x19e0] sm:$0xf]  ;;  %v14533_v49 = vld [vmem:[%s15200_s2 + $0x1bec] sm:$0xf0]  ;;  %v12516_v62 = vor.u32 %v14437_v30, %v12515_v28  ;;  %7094 = vmatpush.bf16.msrb.mxu2 %v12148_v54 }
 0x116   : > { %v12771_v35 = vld [vmem:[%s15200_s2 + $0x1ae0] sm:$0xf]  ;;  %v9283_v50 = vld [vmem:[%s15312_s28 + $0x50] sm:$0xf]  ;;  %v12644_v2 = vor.u32 %v14469_v34, %v12643_v31  ;;  %7108 = vmatpush.bf16.msrb.mxu3 %v12276_v61 }
 0x117   : > { %v12899_v43 = vld [vmem:[%s15200_s2 + $0x1be0] sm:$0xf]  ;;  %v13633_v51 = vld [vmem:[%s15312_s28 + $0x14c] sm:$0xf0]  ;;  %v12772_v3 = vor.u32 %v14501_v38, %v12771_v35  ;;  %7115 = vmatpush.bf16.msra.mxu0 %v12516_v62  ;;  %7081 = vmatmul.bf16.vlgmr.msrb.gmra.mxu1 %v15736_v16  ;;  %v13919_v16 = vld [vmem:[%s15200_s2 + $0x8c4] sm:$0xf] }
 0x118   : > { %v12499_v4 = vld [vmem:[%s15200_s2 + $0x18c0] sm:$0xf]  ;;  %v14433_v5 = vld [vmem:[%s15200_s2 + $0x18cc] sm:$0xf0]  ;;  %v12900_v7 = vor.u32 %v14533_v49, %v12899_v43  ;;  %v15729_v9 = vor.u32 %v13633_v51, %v9283_v50  ;;  %7129 = vmatpush.bf16.msra.mxu1 %v12644_v2  ;;  %7095 = vmatmul.bf16.vlgmr.msrb.gmra.mxu2 %v15734_v13  ;;  %v10453_v13 = vld [vmem:[%s15200_s2 + $0x8d0] sm:$0xf0] }
 0x119   : > { %v12627_v6 = vld [vmem:[%s15200_s2 + $0x19c0] sm:$0xf]  ;;  %v14465_v10 = vld [vmem:[%s15200_s2 + $0x19cc] sm:$0xf0]  ;;  %v12500_v20 = vor.u32 %v14433_v5, %v12499_v4  ;;  %7143 = vmatpush.bf16.msra.mxu2 %v12772_v3  ;;  %7109 = vmatmul.bf16.vlgmr.msrb.gmra.mxu3 %v15740_v19  ;;  %v13955_v19 = vld [vmem:[%s15200_s2 + $0x9e4] sm:$0xf] }
 0x11a   : > { %v12755_v11 = vld [vmem:[%s15200_s2 + $0x1ac0] sm:$0xf]  ;;  %v14497_v12 = vld [vmem:[%s15200_s2 + $0x1acc] sm:$0xf0]  ;;  %v12628_v21 = vor.u32 %v14465_v10, %v12627_v6  ;;  %7157 = vmatpush.bf16.msra.mxu3 %v12900_v7  ;;  %7067 = vmatmul.bf16.vlgmr.msrb.gmra.mxu0 %v15729_v9 }
 0x11b   : > { %v12883_v17 = vld [vmem:[%s15200_s2 + $0x1bc0] sm:$0xf]  ;;  %v14529_v18 = vld [vmem:[%s15200_s2 + $0x1bcc] sm:$0xf0]  ;;  %v12756_v23 = vor.u32 %v14497_v12, %v12755_v11  ;;  %7116 = vmatpush.bf16.msra.mxu0 %v12500_v20 }
 0x11c   : > { %v12483_v24 = vld [vmem:[%s15200_s2 + $0x18a0] sm:$0xf]  ;;  %v14429_v25 = vld [vmem:[%s15200_s2 + $0x18ac] sm:$0xf0]  ;;  %v12884_v27 = vor.u32 %v14529_v18, %v12883_v17  ;;  %7130 = vmatpush.bf16.msra.mxu1 %v12628_v21 }
 0x11d   : > { %v12611_v26 = vld [vmem:[%s15200_s2 + $0x19a0] sm:$0xf]  ;;  %v14461_v28 = vld [vmem:[%s15200_s2 + $0x19ac] sm:$0xf0]  ;;  %v12484_v35 = vor.u32 %v14429_v25, %v12483_v24  ;;  %7144 = vmatpush.bf16.msra.mxu2 %v12756_v23 }
 0x11e   : > { %v12739_v29 = vld [vmem:[%s15200_s2 + $0x1aa0] sm:$0xf]  ;;  %v14493_v30 = vld [vmem:[%s15200_s2 + $0x1aac] sm:$0xf0]  ;;  %v12612_v38 = vor.u32 %v14461_v28, %v12611_v26  ;;  %7158 = vmatpush.bf16.msra.mxu3 %v12884_v27 }
 0x11f   : > { %v12867_v31 = vld [vmem:[%s15200_s2 + $0x1ba0] sm:$0xf]  ;;  %v14525_v34 = vld [vmem:[%s15200_s2 + $0x1bac] sm:$0xf0]  ;;  %v12740_v43 = vor.u32 %v14493_v30, %v12739_v29  ;;  %7117 = vmatpush.bf16.msra.mxu0 %v12484_v35 }
 0x120   : > { %v12467_v46 = vld [vmem:[%s15200_s2 + $0x1880] sm:$0xf]  ;;  %v14425_v49 = vld [vmem:[%s15200_s2 + $0x188c] sm:$0xf0]  ;;  %v12868_v51 = vor.u32 %v14525_v34, %v12867_v31  ;;  %7131 = vmatpush.bf16.msra.mxu1 %v12612_v38 }
 0x121   : > { %v12595_v50 = vld [vmem:[%s15200_s2 + $0x1980] sm:$0xf]  ;;  %v14457_v53 = vld [vmem:[%s15200_s2 + $0x198c] sm:$0xf0]  ;;  %v12468_v61 = vor.u32 %v14425_v49, %v12467_v46  ;;  %7145 = vmatpush.bf16.msra.mxu2 %v12740_v43 }
 0x122   : > { %v12723_v54 = vld [vmem:[%s15200_s2 + $0x1a80] sm:$0xf]  ;;  %v14489_v55 = vld [vmem:[%s15200_s2 + $0x1a8c] sm:$0xf0]  ;;  %v12596_v62 = vor.u32 %v14457_v53, %v12595_v50  ;;  %7159 = vmatpush.bf16.msra.mxu3 %v12868_v51 }
 0x123   : > { %v12851_v58 = vld [vmem:[%s15200_s2 + $0x1b80] sm:$0xf]  ;;  %v14521_v59 = vld [vmem:[%s15200_s2 + $0x1b8c] sm:$0xf0]  ;;  %v12724_v63 = vor.u32 %v14489_v55, %v12723_v54  ;;  %7118 = vmatpush.bf16.msra.mxu0 %v12468_v61 }
 0x124   : > { %v12451_v0 = vld [vmem:[%s15200_s2 + $0x1860] sm:$0xf]  ;;  %v14421_v1 = vld [vmem:[%s15200_s2 + $0x186c] sm:$0xf0]  ;;  %v12852_v3 = vor.u32 %v14521_v59, %v12851_v58  ;;  %7132 = vmatpush.bf16.msra.mxu1 %v12596_v62 }
 0x125   : > { %v12579_v2 = vld [vmem:[%s15200_s2 + $0x1960] sm:$0xf]  ;;  %v14453_v4 = vld [vmem:[%s15200_s2 + $0x196c] sm:$0xf0]  ;;  %v12452_v11 = vor.u32 %v14421_v1, %v12451_v0  ;;  %7146 = vmatpush.bf16.msra.mxu2 %v12724_v63 }
 0x126   : > { %v12707_v5 = vld [vmem:[%s15200_s2 + $0x1a60] sm:$0xf]  ;;  %v14485_v6 = vld [vmem:[%s15200_s2 + $0x1a6c] sm:$0xf0]  ;;  %v12580_v12 = vor.u32 %v14453_v4, %v12579_v2  ;;  %7160 = vmatpush.bf16.msra.mxu3 %v12852_v3 }
 0x127   : > { %v12835_v7 = vld [vmem:[%s15200_s2 + $0x1b60] sm:$0xf]  ;;  %v14517_v10 = vld [vmem:[%s15200_s2 + $0x1b6c] sm:$0xf0]  ;;  %v12708_v17 = vor.u32 %v14485_v6, %v12707_v5  ;;  %7119 = vmatpush.bf16.msra.mxu0 %v12452_v11 }
 0x128   : > { %v12435_v18 = vld [vmem:[%s15200_s2 + $0x1840] sm:$0xf]  ;;  %v14417_v20 = vld [vmem:[%s15200_s2 + $0x184c] sm:$0xf0]  ;;  %v12836_v23 = vor.u32 %v14517_v10, %v12835_v7  ;;  %7133 = vmatpush.bf16.msra.mxu1 %v12580_v12 }
 0x129   : > { %v12563_v21 = vld [vmem:[%s15200_s2 + $0x1940] sm:$0xf]  ;;  %v14449_v24 = vld [vmem:[%s15200_s2 + $0x194c] sm:$0xf0]  ;;  %v12436_v29 = vor.u32 %v14417_v20, %v12435_v18  ;;  %7147 = vmatpush.bf16.msra.mxu2 %v12708_v17 }
 0x12a   : > { %v12691_v25 = vld [vmem:[%s15200_s2 + $0x1a40] sm:$0xf]  ;;  %v14481_v26 = vld [vmem:[%s15200_s2 + $0x1a4c] sm:$0xf0]  ;;  %v12564_v31 = vor.u32 %v14449_v24, %v12563_v21  ;;  %7161 = vmatpush.bf16.msra.mxu3 %v12836_v23 }
 0x12b   : > { %v12819_v27 = vld [vmem:[%s15200_s2 + $0x1b40] sm:$0xf]  ;;  %v14513_v28 = vld [vmem:[%s15200_s2 + $0x1b4c] sm:$0xf0]  ;;  %v12692_v34 = vor.u32 %v14481_v26, %v12691_v25  ;;  %7120 = vmatpush.bf16.msra.mxu0 %v12436_v29  ;;  %v9307_v26 = vld [vmem:[%s15312_s28 + $0x68] sm:$0xf] }
 0x12c   : > { %v12419_v30 = vld [vmem:[%s15200_s2 + $0x1820] sm:$0xf]  ;;  %v14413_v35 = vld [vmem:[%s15200_s2 + $0x182c] sm:$0xf0]  ;;  %v12820_v46 = vor.u32 %v14513_v28, %v12819_v27  ;;  %7134 = vmatpush.bf16.msra.mxu1 %v12564_v31  ;;  %v13636_v27 = vld [vmem:[%s15312_s28 + $0x164] sm:$0xf0] }
 0x12d   : > { %v12547_v38 = vld [vmem:[%s15200_s2 + $0x1920] sm:$0xf]  ;;  %v14445_v43 = vld [vmem:[%s15200_s2 + $0x192c] sm:$0xf0]  ;;  %v12420_v58 = vor.u32 %v14413_v35, %v12419_v30  ;;  %7148 = vmatpush.bf16.msra.mxu2 %v12692_v34  ;;  %v13619_v28 = vld [vmem:[%s15312_s28 + $0x64] sm:$0xf] }
 0x12e   : > { %v12675_v49 = vld [vmem:[%s15200_s2 + $0x1a20] sm:$0xf]  ;;  %v14477_v50 = vld [vmem:[%s15200_s2 + $0x1a2c] sm:$0xf0]  ;;  %v12548_v0 = vor.u32 %v14445_v43, %v12547_v38  ;;  %7162 = vmatpush.bf16.msra.mxu3 %v12820_v46  ;;  %v9301_v31 = vld [vmem:[%s15312_s28 + $0x160] sm:$0xf0] }
 0x12f   : > { %v12803_v51 = vld [vmem:[%s15200_s2 + $0x1b20] sm:$0xf]  ;;  %v14509_v53 = vld [vmem:[%s15200_s2 + $0x1b2c] sm:$0xf0]  ;;  %v12676_v1 = vor.u32 %v14477_v50, %v12675_v49  ;;  %7121 = vmatpush.bf16.msra.mxu0 %v12420_v58  ;;  %v13620_v34 = vld [vmem:[%s15312_s28 + $0x6c] sm:$0xf] }
 0x130   : > { %v12403_v54 = vld [vmem:[%s15200_s2 + $0x1800] sm:$0xf]  ;;  %v14409_v55 = vld [vmem:[%s15200_s2 + $0x180c] sm:$0xf0]  ;;  %v12804_v5 = vor.u32 %v14509_v53, %v12803_v51  ;;  %7135 = vmatpush.bf16.msra.mxu1 %v12548_v0  ;;  %v9309_v35 = vld [vmem:[%s15312_s28 + $0x168] sm:$0xf0] }
 0x131   : > { %v12531_v59 = vld [vmem:[%s15200_s2 + $0x1900] sm:$0xf]  ;;  %v14441_v61 = vld [vmem:[%s15200_s2 + $0x190c] sm:$0xf0]  ;;  %v12404_v18 = vor.u32 %v14409_v55, %v12403_v54  ;;  %7149 = vmatpush.bf16.msra.mxu2 %v12676_v1  ;;  %v15824_v0 = vor.u32 %v13620_v34, %v9309_v35 }
 0x132   : > { %v12659_v62 = vld [vmem:[%s15200_s2 + $0x1a00] sm:$0xf]  ;;  %v14473_v63 = vld [vmem:[%s15200_s2 + $0x1a0c] sm:$0xf0]  ;;  %v12532_v24 = vor.u32 %v14441_v61, %v12531_v59  ;;  %7163 = vmatpush.bf16.msra.mxu3 %v12804_v5  ;;  %v15818_v59 = vor.u32 %v13636_v27, %v9307_v26  ;;  %v15820_v61 = vor.u32 %v13619_v28, %v9301_v31 }
 0x133   : > { %v12787_v2 = vld [vmem:[%s15200_s2 + $0x1b00] sm:$0xf]  ;;  %v14505_v3 = vld [vmem:[%s15200_s2 + $0x1b0c] sm:$0xf0]  ;;  %v12660_v25 = vor.u32 %v14473_v63, %v12659_v62  ;;  %7122 = vmatpush.bf16.msra.mxu0 %v12404_v18  ;;  %18074 = vst [vmem:[#allocation27_spill] sm:$0xff] %v15824_v0 }
 0x134   : > { %v13027_v4 = vld [vmem:[%s15200_s2 + $0x1ce0] sm:$0xf]  ;;  %v14565_v6 = vld [vmem:[%s15200_s2 + $0x1cec] sm:$0xf0]  ;;  %v12788_v29 = vor.u32 %v14505_v3, %v12787_v2  ;;  %7136 = vmatpush.bf16.msra.mxu1 %v12532_v24  ;;  %18072 = vst [vmem:[#allocation25_spill] sm:$0xff] %v15818_v59 }
 0x135   : > { %v13155_v7 = vld [vmem:[%s15200_s2 + $0x1de0] sm:$0xf]  ;;  %v14597_v10 = vld [vmem:[%s15200_s2 + $0x1dec] sm:$0xf0]  ;;  %v13028_v30 = vor.u32 %v14565_v6, %v13027_v4  ;;  %7150 = vmatpush.bf16.msra.mxu2 %v12660_v25  ;;  %18073 = vst [vmem:[#allocation26_spill] sm:$0xff] %v15820_v61 }
 0x136   : > { %v13283_v11 = vld [vmem:[%s15200_s2 + $0x1ee0] sm:$0xf]  ;;  %v14629_v12 = vld [vmem:[%s15200_s2 + $0x1eec] sm:$0xf0]  ;;  %v13156_v38 = vor.u32 %v14597_v10, %v13155_v7  ;;  %7164 = vmatpush.bf16.msra.mxu3 %v12788_v29 }
 0x137   : > { %v13411_v17 = vld [vmem:[%s15200_s2 + $0x1fe0] sm:$0xf]  ;;  %v14661_v20 = vld [vmem:[%s15200_s2 + $0x1fec] sm:$0xf0]  ;;  %v13284_v43 = vor.u32 %v14629_v12, %v13283_v11  ;;  %7171 = vmatpush.bf16.msrb.mxu0 %v13028_v30  ;;  %7137 = vmatmul.bf16.vlgmr.msra.gmra.mxu1 %v15820_v61  ;;  %v10229_v61 = vld [vmem:[%s15200_s2 + $0x710] sm:$0xf0] }
 0x138   : > { %v9299_v21 = vld [vmem:[%s15312_s28 + $0x60] sm:$0xf]  ;;  %v14561_v49 = vld [vmem:[%s15200_s2 + $0x1ccc] sm:$0xf0]  ;;  %v13412_v51 = vor.u32 %v14661_v20, %v13411_v17  ;;  %7185 = vmatpush.bf16.msrb.mxu1 %v13156_v38  ;;  %7151 = vmatmul.bf16.vlgmr.msra.gmra.mxu2 %v15818_v59  ;;  %v13923_v59 = vld [vmem:[%s15200_s2 + $0x8e4] sm:$0xf] }
 0x139   : > { %v13635_v23 = vld [vmem:[%s15312_s28 + $0x15c] sm:$0xf0]  ;;  %v14593_v54 = vld [vmem:[%s15200_s2 + $0x1dcc] sm:$0xf0]  ;;  %7199 = vmatpush.bf16.msrb.mxu2 %v13284_v43  ;;  %7165 = vmatmul.bf16.vlgmr.msra.gmra.mxu3 %v15824_v0  ;;  %v10197_v0 = vld [vmem:[%s15200_s2 + $0x6d0] sm:$0xf0] }
 0x13a   : > { %v13011_v46 = vld [vmem:[%s15200_s2 + $0x1cc0] sm:$0xf]  ;;  %v15813_v53 = vor.u32 %v13635_v23, %v9299_v21  ;;  %v14625_v58 = vld [vmem:[%s15200_s2 + $0x1ecc] sm:$0xf0]  ;;  %7213 = vmatpush.bf16.msrb.mxu3 %v13412_v51 }
 0x13b   : > { %v13139_v50 = vld [vmem:[%s15200_s2 + $0x1dc0] sm:$0xf]  ;;  %v14657_v63 = vld [vmem:[%s15200_s2 + $0x1fcc] sm:$0xf0]  ;;  %v13012_v1 = vor.u32 %v14561_v49, %v13011_v46 }
 0x13c   : > { %18071 = vst [vmem:[#allocation24_spill] sm:$0xff] %v15813_v53  ;;  %v13267_v55 = vld [vmem:[%s15200_s2 + $0x1ec0] sm:$0xf]  ;;  %v13140_v2 = vor.u32 %v14593_v54, %v13139_v50  ;;  %v14557_v5 = vld [vmem:[%s15200_s2 + $0x1cac] sm:$0xf0]  ;;  %7123 = vmatmul.bf16.vlgmr.msra.gmra.mxu0 %v15813_v53 }
 0x13d   : > { %v13395_v62 = vld [vmem:[%s15200_s2 + $0x1fc0] sm:$0xf]  ;;  %v13268_v3 = vor.u32 %v14625_v58, %v13267_v55  ;;  %v14589_v10 = vld [vmem:[%s15200_s2 + $0x1dac] sm:$0xf0]  ;;  %7172 = vmatpush.bf16.msrb.mxu0 %v13012_v1  ;;  %v10469_v53 = vld [vmem:[%s15200_s2 + $0x8f0] sm:$0xf0] }
 0x13e   : > { %v12995_v4 = vld [vmem:[%s15200_s2 + $0x1ca0] sm:$0xf]  ;;  %v13396_v7 = vor.u32 %v14657_v63, %v13395_v62  ;;  %v14621_v12 = vld [vmem:[%s15200_s2 + $0x1eac] sm:$0xf0]  ;;  %7186 = vmatpush.bf16.msrb.mxu1 %v13140_v2 }
 0x13f   : > { %v13123_v6 = vld [vmem:[%s15200_s2 + $0x1da0] sm:$0xf]  ;;  %v14653_v18 = vld [vmem:[%s15200_s2 + $0x1fac] sm:$0xf0]  ;;  %v12996_v20 = vor.u32 %v14557_v5, %v12995_v4  ;;  %7200 = vmatpush.bf16.msrb.mxu2 %v13268_v3 }
 0x140   : > { %v13251_v11 = vld [vmem:[%s15200_s2 + $0x1ea0] sm:$0xf]  ;;  %v13124_v21 = vor.u32 %v14589_v10, %v13123_v6  ;;  %v14553_v25 = vld [vmem:[%s15200_s2 + $0x1c8c] sm:$0xf0]  ;;  %7214 = vmatpush.bf16.msrb.mxu3 %v13396_v7 }
 0x141   : > { %v13379_v17 = vld [vmem:[%s15200_s2 + $0x1fa0] sm:$0xf]  ;;  %v13252_v23 = vor.u32 %v14621_v12, %v13251_v11  ;;  %v14585_v28 = vld [vmem:[%s15200_s2 + $0x1d8c] sm:$0xf0]  ;;  %7173 = vmatpush.bf16.msrb.mxu0 %v12996_v20 }
 0x142   : > { %v12979_v24 = vld [vmem:[%s15200_s2 + $0x1c80] sm:$0xf]  ;;  %v13380_v27 = vor.u32 %v14653_v18, %v13379_v17  ;;  %v14617_v30 = vld [vmem:[%s15200_s2 + $0x1e8c] sm:$0xf0]  ;;  %7187 = vmatpush.bf16.msrb.mxu1 %v13124_v21 }
 0x143   : > { %v13107_v26 = vld [vmem:[%s15200_s2 + $0x1d80] sm:$0xf]  ;;  %v14649_v34 = vld [vmem:[%s15200_s2 + $0x1f8c] sm:$0xf0]  ;;  %v12980_v35 = vor.u32 %v14553_v25, %v12979_v24  ;;  %7201 = vmatpush.bf16.msrb.mxu2 %v13252_v23 }
 0x144   : > { %v13235_v29 = vld [vmem:[%s15200_s2 + $0x1e80] sm:$0xf]  ;;  %v13108_v38 = vor.u32 %v14585_v28, %v13107_v26  ;;  %v14549_v49 = vld [vmem:[%s15200_s2 + $0x1c6c] sm:$0xf0]  ;;  %7215 = vmatpush.bf16.msrb.mxu3 %v13380_v27 }
 0x145   : > { %v13363_v31 = vld [vmem:[%s15200_s2 + $0x1f80] sm:$0xf]  ;;  %v13236_v43 = vor.u32 %v14617_v30, %v13235_v29  ;;  %v14581_v54 = vld [vmem:[%s15200_s2 + $0x1d6c] sm:$0xf0]  ;;  %7174 = vmatpush.bf16.msrb.mxu0 %v12980_v35 }
 0x146   : > { %v12963_v46 = vld [vmem:[%s15200_s2 + $0x1c60] sm:$0xf]  ;;  %v13364_v51 = vor.u32 %v14649_v34, %v13363_v31  ;;  %v14613_v58 = vld [vmem:[%s15200_s2 + $0x1e6c] sm:$0xf0]  ;;  %7188 = vmatpush.bf16.msrb.mxu1 %v13108_v38 }
 0x147   : > { %v13091_v50 = vld [vmem:[%s15200_s2 + $0x1d60] sm:$0xf]  ;;  %v14645_v63 = vld [vmem:[%s15200_s2 + $0x1f6c] sm:$0xf0]  ;;  %v12964_v1 = vor.u32 %v14549_v49, %v12963_v46  ;;  %7202 = vmatpush.bf16.msrb.mxu2 %v13236_v43 }
 0x148   : > { %v13219_v55 = vld [vmem:[%s15200_s2 + $0x1e60] sm:$0xf]  ;;  %v13092_v2 = vor.u32 %v14581_v54, %v13091_v50  ;;  %v14545_v5 = vld [vmem:[%s15200_s2 + $0x1c4c] sm:$0xf0]  ;;  %7216 = vmatpush.bf16.msrb.mxu3 %v13364_v51 }
 0x149   : > { %v13347_v62 = vld [vmem:[%s15200_s2 + $0x1f60] sm:$0xf]  ;;  %v13220_v3 = vor.u32 %v14613_v58, %v13219_v55  ;;  %v14577_v10 = vld [vmem:[%s15200_s2 + $0x1d4c] sm:$0xf0]  ;;  %7175 = vmatpush.bf16.msrb.mxu0 %v12964_v1 }
 0x14a   : > { %v12947_v4 = vld [vmem:[%s15200_s2 + $0x1c40] sm:$0xf]  ;;  %v13348_v7 = vor.u32 %v14645_v63, %v13347_v62  ;;  %v14609_v12 = vld [vmem:[%s15200_s2 + $0x1e4c] sm:$0xf0]  ;;  %7189 = vmatpush.bf16.msrb.mxu1 %v13092_v2  ;;  %v13667_v63 = vld [vmem:[%s15200_s2 + $0xe4] sm:$0xf] }
 0x14b   : > { %v13075_v6 = vld [vmem:[%s15200_s2 + $0x1d40] sm:$0xf]  ;;  %v14641_v18 = vld [vmem:[%s15200_s2 + $0x1f4c] sm:$0xf0]  ;;  %v12948_v20 = vor.u32 %v14545_v5, %v12947_v4  ;;  %7203 = vmatpush.bf16.msrb.mxu2 %v13220_v3  ;;  %v9445_v2 = vld [vmem:[%s15200_s2 + $0xf0] sm:$0xf0] }
 0x14c   : > { %v13203_v11 = vld [vmem:[%s15200_s2 + $0x1e40] sm:$0xf]  ;;  %v13076_v23 = vor.u32 %v14577_v10, %v13075_v6  ;;  %v14541_v25 = vld [vmem:[%s15200_s2 + $0x1c2c] sm:$0xf0]  ;;  %7217 = vmatpush.bf16.msrb.mxu3 %v13348_v7  ;;  %v13699_v3 = vld [vmem:[%s15200_s2 + $0x1e4] sm:$0xf] }
 0x14d   : > { %v13331_v17 = vld [vmem:[%s15200_s2 + $0x1f40] sm:$0xf]  ;;  %v13204_v24 = vor.u32 %v14609_v12, %v13203_v11  ;;  %v14573_v27 = vld [vmem:[%s15200_s2 + $0x1d2c] sm:$0xf0]  ;;  %7176 = vmatpush.bf16.msrb.mxu0 %v12948_v20  ;;  %v9573_v4 = vld [vmem:[%s15200_s2 + $0x1f0] sm:$0xf0] }
 0x14e   : > { %v12931_v21 = vld [vmem:[%s15200_s2 + $0x1c20] sm:$0xf]  ;;  %v13332_v28 = vor.u32 %v14641_v18, %v13331_v17  ;;  %v14605_v30 = vld [vmem:[%s15200_s2 + $0x1e2c] sm:$0xf0]  ;;  %7190 = vmatpush.bf16.msrb.mxu1 %v13076_v23  ;;  %v13731_v5 = vld [vmem:[%s15200_s2 + $0x2e4] sm:$0xf] }
 0x14f   : > { %v13059_v26 = vld [vmem:[%s15200_s2 + $0x1d20] sm:$0xf]  ;;  %v14637_v34 = vld [vmem:[%s15200_s2 + $0x1f2c] sm:$0xf0]  ;;  %v12932_v43 = vor.u32 %v14541_v25, %v12931_v21  ;;  %7204 = vmatpush.bf16.msrb.mxu2 %v13204_v24  ;;  %v9701_v6 = vld [vmem:[%s15200_s2 + $0x2f0] sm:$0xf0] }
 0x150   : > { %v13187_v29 = vld [vmem:[%s15200_s2 + $0x1e20] sm:$0xf]  ;;  %v14537_v38 = vld [vmem:[%s15200_s2 + $0x1c0c] sm:$0xf0]  ;;  %v13060_v54 = vor.u32 %v14573_v27, %v13059_v26  ;;  %7218 = vmatpush.bf16.msrb.mxu3 %v13332_v28  ;;  %v13763_v7 = vld [vmem:[%s15200_s2 + $0x3e4] sm:$0xf]  ;;  %v9448_v26 = vor.u32 %v13667_v63, %v9445_v2 }
 0x151   : > { %v13315_v31 = vld [vmem:[%s15200_s2 + $0x1f20] sm:$0xf]  ;;  %v14569_v49 = vld [vmem:[%s15200_s2 + $0x1d0c] sm:$0xf0]  ;;  %v13188_v55 = vor.u32 %v14605_v30, %v13187_v29  ;;  %7177 = vmatpush.bf16.msrb.mxu0 %v12932_v43  ;;  %v9829_v11 = vld [vmem:[%s15200_s2 + $0x3f0] sm:$0xf0]  ;;  %v9576_v30 = vor.u32 %v13699_v3, %v9573_v4 }
 0x152   : > { %v12915_v35 = vld [vmem:[%s15200_s2 + $0x1c00] sm:$0xf]  ;;  %v14601_v51 = vld [vmem:[%s15200_s2 + $0x1e0c] sm:$0xf0]  ;;  %v13316_v1 = vor.u32 %v14637_v34, %v13315_v31  ;;  %7191 = vmatpush.bf16.msrb.mxu1 %v13060_v54  ;;  %v9323_v21 = vld [vmem:[%s15312_s28 + $0x78] sm:$0xf]  ;;  %v9704_v31 = vor.u32 %v13731_v5, %v9701_v6  ;;  %v9832_v43 = vor.u32 %v13763_v7, %v9829_v11  ;;  %v15902_v54 = vpop.f32.mrf.mxu0 }
 0x153   : > { %v13043_v46 = vld [vmem:[%s15200_s2 + $0x1d00] sm:$0xf]  ;;  %v14633_v62 = vld [vmem:[%s15200_s2 + $0x1f0c] sm:$0xf0]  ;;  %v12916_v10 = vor.u32 %v14537_v38, %v12915_v35  ;;  %7205 = vmatpush.bf16.msrb.mxu2 %v13188_v55  ;;  %v13638_v23 = vld [vmem:[%s15312_s28 + $0x174] sm:$0xf0] }
 0x154   : > { %v13171_v50 = vld [vmem:[%s15200_s2 + $0x1e00] sm:$0xf]  ;;  %v9315_v12 = vld [vmem:[%s15312_s28 + $0x70] sm:$0xf]  ;;  %v13044_v18 = vor.u32 %v14569_v49, %v13043_v46  ;;  %v13621_v24 = vld [vmem:[%s15312_s28 + $0x74] sm:$0xf]  ;;  %7219 = vmatpush.bf16.msrb.mxu3 %v13316_v1  ;;  %v15904_v55 = vor.u32 %v13638_v23, %v9323_v21  ;;  %v15910_v1 = vpop.f32.mrf.mxu1 }
 0x155   : > { %v13299_v58 = vld [vmem:[%s15200_s2 + $0x1f00] sm:$0xf]  ;;  %v13637_v17 = vld [vmem:[%s15312_s28 + $0x16c] sm:$0xf0]  ;;  %v13172_v20 = vor.u32 %v14601_v51, %v13171_v50  ;;  %v9317_v27 = vld [vmem:[%s15312_s28 + $0x170] sm:$0xf0]  ;;  %7178 = vmatpush.bf16.msrb.mxu0 %v12916_v10 }
 0x156   : > { %v13300_v25 = vor.u32 %v14633_v62, %v13299_v58  ;;  %v13622_v28 = vld [vmem:[%s15312_s28 + $0x7c] sm:$0xf]  ;;  %v13663_v34 = vld [vmem:[%s15200_s2 + $0xc4] sm:$0xf]  ;;  %v9429_v35 = vld [vmem:[%s15200_s2 + $0xd0] sm:$0xf0]  ;;  %v15897_v46 = vor.u32 %v13637_v17, %v9315_v12  ;;  %7192 = vmatpush.bf16.msrb.mxu1 %v13044_v18  ;;  %v15906_v58 = vor.u32 %v13621_v24, %v9317_v27 }
 0x157   : > { %v9325_v29 = vld [vmem:[%s15312_s28 + $0x178] sm:$0xf0]  ;;  %v13695_v38 = vld [vmem:[%s15200_s2 + $0x1c4] sm:$0xf]  ;;  %v9557_v49 = vld [vmem:[%s15200_s2 + $0x1d0] sm:$0xf0]  ;;  %7206 = vmatpush.bf16.msrb.mxu2 %v13172_v20  ;;  %v9432_v3 = vor.u32 %v13663_v34, %v9429_v35 }
 0x158   : > { %18075 = vst [vmem:[#allocation28_spill] sm:$0xff] %v15897_v46  ;;  %v13727_v50 = vld [vmem:[%s15200_s2 + $0x2c4] sm:$0xf]  ;;  %v9685_v51 = vld [vmem:[%s15200_s2 + $0x2d0] sm:$0xf0]  ;;  %7220 = vmatpush.bf16.msrb.mxu3 %v13300_v25  ;;  %v15912_v2 = vor.u32 %v13622_v28, %v9325_v29  ;;  %v9560_v4 = vor.u32 %v13695_v38, %v9557_v49  ;;  %7179 = vmatmul.bf16.vlgmr.msrb.gmra.mxu0 %v15897_v46  ;;  %v15929_v29 = vpop.f32.mrf.mxu2  ;;  %v15934_v38 = vpop.f32.mrf.mxu3 }
 0x159   : > { %18076 = vst [vmem:[#allocation29_spill] sm:$0xff] %v15904_v55  ;;  %v13759_v62 = vld [vmem:[%s15200_s2 + $0x3c4] sm:$0xf]  ;;  %v9813_v63 = vld [vmem:[%s15200_s2 + $0x3d0] sm:$0xf0]  ;;  %7227 = vmatpush.bf16.msra.mxu0 %v9448_v26  ;;  %v9688_v5 = vor.u32 %v13727_v50, %v9685_v51  ;;  %7193 = vmatmul.bf16.vlgmr.msrb.gmra.mxu1 %v15906_v58 }
 0x15a   : > { %18077 = vst [vmem:[#allocation30_spill] sm:$0xff] %v15906_v58  ;;  %7241 = vmatpush.bf16.msra.mxu1 %v9576_v30  ;;  %v13659_v6 = vld [vmem:[%s15200_s2 + $0xa4] sm:$0xf]  ;;  %v9413_v7 = vld [vmem:[%s15200_s2 + $0xb0] sm:$0xf0]  ;;  %v9816_v11 = vor.u32 %v13759_v62, %v9813_v63  ;;  %7207 = vmatmul.bf16.vlgmr.msrb.gmra.mxu2 %v15904_v55  ;;  %v15938_v51 = vpop.f32.mrf.mxu0 }
 0x15b   : > { %18078 = vst [vmem:[#allocation31_spill] sm:$0xff] %v15912_v2  ;;  %7255 = vmatpush.bf16.msra.mxu2 %v9704_v31  ;;  %v13691_v10 = vld [vmem:[%s15200_s2 + $0x1a4] sm:$0xf]  ;;  %v9541_v12 = vld [vmem:[%s15200_s2 + $0x1b0] sm:$0xf0]  ;;  %7221 = vmatmul.bf16.vlgmr.msrb.gmra.mxu3 %v15912_v2  ;;  %v9416_v23 = vor.u32 %v13659_v6, %v9413_v7 }
 0x15c   : > { %7269 = vmatpush.bf16.msra.mxu3 %v9832_v43  ;;  %v13723_v17 = vld [vmem:[%s15200_s2 + $0x2a4] sm:$0xf]  ;;  %v9669_v18 = vld [vmem:[%s15200_s2 + $0x2b0] sm:$0xf0]  ;;  %v9544_v24 = vor.u32 %v13691_v10, %v9541_v12  ;;  %v15943_v6 = vpop.f32.mrf.mxu1 }
 0x15d   : > { %v13755_v20 = vld [vmem:[%s15200_s2 + $0x3a4] sm:$0xf]  ;;  %v9797_v21 = vld [vmem:[%s15200_s2 + $0x3b0] sm:$0xf0]  ;;  %7228 = vmatpush.bf16.msra.mxu0 %v9432_v3  ;;  %v9672_v25 = vor.u32 %v13723_v17, %v9669_v18 }
 0x15e   : > { %7242 = vmatpush.bf16.msra.mxu1 %v9560_v4  ;;  %v13655_v26 = vld [vmem:[%s15200_s2 + $0x84] sm:$0xf]  ;;  %v9397_v27 = vld [vmem:[%s15200_s2 + $0x90] sm:$0xf0]  ;;  %v9800_v30 = vor.u32 %v13755_v20, %v9797_v21 }
 0x15f   : > { %7256 = vmatpush.bf16.msra.mxu2 %v9688_v5  ;;  %v13687_v28 = vld [vmem:[%s15200_s2 + $0x184] sm:$0xf]  ;;  %v9525_v31 = vld [vmem:[%s15200_s2 + $0x190] sm:$0xf0]  ;;  %v9400_v50 = vor.u32 %v13655_v26, %v9397_v27 }
 0x160   : > { %7270 = vmatpush.bf16.msra.mxu3 %v9816_v11  ;;  %v13719_v34 = vld [vmem:[%s15200_s2 + $0x284] sm:$0xf]  ;;  %v9653_v35 = vld [vmem:[%s15200_s2 + $0x290] sm:$0xf0]  ;;  %v9528_v62 = vor.u32 %v13687_v28, %v9525_v31 }
 0x161   : > { %v13751_v43 = vld [vmem:[%s15200_s2 + $0x384] sm:$0xf]  ;;  %v9781_v49 = vld [vmem:[%s15200_s2 + $0x390] sm:$0xf0]  ;;  %7229 = vmatpush.bf16.msra.mxu0 %v9416_v23  ;;  %v9656_v63 = vor.u32 %v13719_v34, %v9653_v35 }
 0x162   : > { %7243 = vmatpush.bf16.msra.mxu1 %v9544_v24  ;;  %v13651_v3 = vld [vmem:[%s15200_s2 + $0x64] sm:$0xf]  ;;  %v9381_v4 = vld [vmem:[%s15200_s2 + $0x70] sm:$0xf0]  ;;  %v9784_v7 = vor.u32 %v13751_v43, %v9781_v49  ;;  %v15958_v43 = vpop.f32.mrf.mxu2 }
 0x163   : > { %7257 = vmatpush.bf16.msra.mxu2 %v9672_v25  ;;  %v13683_v5 = vld [vmem:[%s15200_s2 + $0x164] sm:$0xf]  ;;  %v9509_v10 = vld [vmem:[%s15200_s2 + $0x170] sm:$0xf0]  ;;  %v9384_v20 = vor.u32 %v13651_v3, %v9381_v4 }
 0x164   : > { %7271 = vmatpush.bf16.msra.mxu3 %v9800_v30  ;;  %v13715_v11 = vld [vmem:[%s15200_s2 + $0x264] sm:$0xf]  ;;  %v9637_v12 = vld [vmem:[%s15200_s2 + $0x270] sm:$0xf0]  ;;  %v9512_v21 = vor.u32 %v13683_v5, %v9509_v10 }
 0x165   : > { %v13747_v17 = vld [vmem:[%s15200_s2 + $0x364] sm:$0xf]  ;;  %v9765_v18 = vld [vmem:[%s15200_s2 + $0x370] sm:$0xf0]  ;;  %7230 = vmatpush.bf16.msra.mxu0 %v9400_v50  ;;  %v9640_v23 = vor.u32 %v13715_v11, %v9637_v12  ;;  %v15960_v50 = vpop.f32.mrf.mxu3 }
 0x166   : > { %7244 = vmatpush.bf16.msra.mxu1 %v9528_v62  ;;  %v13647_v24 = vld [vmem:[%s15200_s2 + $0x44] sm:$0xf]  ;;  %v9365_v25 = vld [vmem:[%s15200_s2 + $0x50] sm:$0xf0]  ;;  %v9768_v27 = vor.u32 %v13747_v17, %v9765_v18  ;;  %v15968_v17 = vpop.f32.mrf.mxu0 }
 0x167   : > { %7258 = vmatpush.bf16.msra.mxu2 %v9656_v63  ;;  %v13679_v26 = vld [vmem:[%s15200_s2 + $0x144] sm:$0xf]  ;;  %v9493_v28 = vld [vmem:[%s15200_s2 + $0x150] sm:$0xf0]  ;;  %v9368_v49 = vor.u32 %v13647_v24, %v9365_v25 }
 0x168   : > { %7272 = vmatpush.bf16.msra.mxu3 %v9784_v7  ;;  %v13711_v30 = vld [vmem:[%s15200_s2 + $0x244] sm:$0xf]  ;;  %v9621_v31 = vld [vmem:[%s15200_s2 + $0x250] sm:$0xf0]  ;;  %v9496_v62 = vor.u32 %v13679_v26, %v9493_v28 }
 0x169   : > { %v13743_v34 = vld [vmem:[%s15200_s2 + $0x344] sm:$0xf]  ;;  %v9749_v35 = vld [vmem:[%s15200_s2 + $0x350] sm:$0xf0]  ;;  %7231 = vmatpush.bf16.msra.mxu0 %v9384_v20  ;;  %v9624_v63 = vor.u32 %v13711_v30, %v9621_v31 }
 0x16a   : > { %7245 = vmatpush.bf16.msra.mxu1 %v9512_v21  ;;  %v13643_v3 = vld [vmem:[%s15200_s2 + $0x24] sm:$0xf]  ;;  %v9349_v4 = vld [vmem:[%s15200_s2 + $0x30] sm:$0xf0]  ;;  %v9752_v7 = vor.u32 %v13743_v34, %v9749_v35  ;;  %v15972_v21 = vpop.f32.mrf.mxu1 }
 0x16b   : > { %7259 = vmatpush.bf16.msra.mxu2 %v9640_v23  ;;  %v13675_v5 = vld [vmem:[%s15200_s2 + $0x124] sm:$0xf]  ;;  %v9477_v10 = vld [vmem:[%s15200_s2 + $0x130] sm:$0xf0]  ;;  %v9352_v23 = vor.u32 %v13643_v3, %v9349_v4 }
 0x16c   : > { %7273 = vmatpush.bf16.msra.mxu3 %v9768_v27  ;;  %v13707_v11 = vld [vmem:[%s15200_s2 + $0x224] sm:$0xf]  ;;  %v9605_v12 = vld [vmem:[%s15200_s2 + $0x230] sm:$0xf0]  ;;  %v9480_v26 = vor.u32 %v13675_v5, %v9477_v10 }
 0x16d   : > { %v13739_v18 = vld [vmem:[%s15200_s2 + $0x324] sm:$0xf]  ;;  %v9733_v20 = vld [vmem:[%s15200_s2 + $0x330] sm:$0xf0]  ;;  %7232 = vmatpush.bf16.msra.mxu0 %v9368_v49  ;;  %v9608_v27 = vor.u32 %v13707_v11, %v9605_v12 }
 0x16e   : > { %v13639_v24 = vld [vmem:[%s15200_s2 + $0x4] sm:$0xf]  ;;  %v9333_v25 = vld [vmem:[%s15200_s2 + $0x10] sm:$0xf0]  ;;  %7246 = vmatpush.bf16.msra.mxu1 %v9496_v62  ;;  %v9736_v34 = vor.u32 %v13739_v18, %v9733_v20  ;;  %v15990_v20 = vpop.f32.mrf.mxu2 }
 0x16f   : > { %7260 = vmatpush.bf16.msra.mxu2 %v9624_v63  ;;  %v13671_v28 = vld [vmem:[%s15200_s2 + $0x104] sm:$0xf]  ;;  %v9461_v30 = vld [vmem:[%s15200_s2 + $0x110] sm:$0xf0]  ;;  %v9336_v62 = vor.u32 %v13639_v24, %v9333_v25  ;;  %v15992_v25 = vpop.f32.mrf.mxu3 }
 0x170   : > { %v13703_v31 = vld [vmem:[%s15200_s2 + $0x204] sm:$0xf]  ;;  %7274 = vmatpush.bf16.msra.mxu3 %v9752_v7  ;;  %v9589_v35 = vld [vmem:[%s15200_s2 + $0x210] sm:$0xf0]  ;;  %v9464_v7 = vor.u32 %v13671_v28, %v9461_v30 }
 0x171   : > { %v13735_v49 = vld [vmem:[%s15200_s2 + $0x304] sm:$0xf]  ;;  %v9717_v3 = vld [vmem:[%s15200_s2 + $0x310] sm:$0xf0]  ;;  %7233 = vmatpush.bf16.msra.mxu0 %v9352_v23  ;;  %v9592_v11 = vor.u32 %v13703_v31, %v9589_v35 }
 0x172   : > { %v13795_v4 = vld [vmem:[%s15200_s2 + $0x4e4] sm:$0xf]  ;;  %v9957_v2 = vld [vmem:[%s15200_s2 + $0x4f0] sm:$0xf0]  ;;  %7247 = vmatpush.bf16.msra.mxu1 %v9480_v26  ;;  %v9720_v23 = vor.u32 %v13735_v49, %v9717_v3  ;;  %v16004_v49 = vpop.f32.mrf.mxu1 }
 0x173   : > { %v13827_v58 = vld [vmem:[%s15200_s2 + $0x5e4] sm:$0xf]  ;;  %v10085_v63 = vld [vmem:[%s15200_s2 + $0x5f0] sm:$0xf0]  ;;  %7261 = vmatpush.bf16.msra.mxu2 %v9608_v27  ;;  %v9960_v24 = vor.u32 %v13795_v4, %v9957_v2 }
 0x174   : > { %v13859_v5 = vld [vmem:[%s15200_s2 + $0x6e4] sm:$0xf]  ;;  %v10213_v10 = vld [vmem:[%s15200_s2 + $0x6f0] sm:$0xf0]  ;;  %7275 = vmatpush.bf16.msra.mxu3 %v9736_v34  ;;  %v10088_v55 = vor.u32 %v13827_v58, %v10085_v63  ;;  %v16000_v34 = vpop.f32.mrf.mxu0 }
 0x175   : > { %v13891_v12 = vld [vmem:[%s15200_s2 + $0x7e4] sm:$0xf]  ;;  %v10341_v18 = vld [vmem:[%s15200_s2 + $0x7f0] sm:$0xf0]  ;;  %v10216_v46 = vor.u32 %v13859_v5, %v10213_v10  ;;  %7234 = vmatpush.bf16.msra.mxu0 %v9336_v62 }
 0x176   : > { %v13791_v26 = vld [vmem:[%s15200_s2 + $0x4c4] sm:$0xf]  ;;  %v9941_v27 = vld [vmem:[%s15200_s2 + $0x4d0] sm:$0xf0]  ;;  %v10344_v30 = vor.u32 %v13891_v12, %v10341_v18  ;;  %7248 = vmatpush.bf16.msra.mxu1 %v9464_v7 }
 0x177   : > { %v13823_v28 = vld [vmem:[%s15200_s2 + $0x5c4] sm:$0xf]  ;;  %v10069_v31 = vld [vmem:[%s15200_s2 + $0x5d0] sm:$0xf0]  ;;  %7262 = vmatpush.bf16.msra.mxu2 %v9592_v11  ;;  %v9944_v3 = vor.u32 %v13791_v26, %v9941_v27 }
 0x178   : > { %v13855_v35 = vld [vmem:[%s15200_s2 + $0x6c4] sm:$0xf]  ;;  %v10325_v58 = vld [vmem:[%s15200_s2 + $0x7d0] sm:$0xf0]  ;;  %7276 = vmatpush.bf16.msra.mxu3 %v9720_v23  ;;  %v10072_v4 = vor.u32 %v13823_v28, %v10069_v31  ;;  %7235 = vmatmul.bf16.vlgmr.msra.gmra.mxu0 %v15319_v8 }
 0x179   : > { %v13887_v2 = vld [vmem:[%s15200_s2 + $0x7c4] sm:$0xf]  ;;  %7283 = vmatpush.bf16.msrb.mxu0 %v9960_v24  ;;  %v10200_v62 = vor.u32 %v13855_v35, %v10197_v0  ;;  %v9925_v5 = vld [vmem:[%s15200_s2 + $0x4b0] sm:$0xf0]  ;;  %7249 = vmatmul.bf16.vlgmr.msra.gmra.mxu1 %v15327_v15 }
 0x17a   : > { %7297 = vmatpush.bf16.msrb.mxu1 %v10088_v55  ;;  %v13787_v63 = vld [vmem:[%s15200_s2 + $0x4a4] sm:$0xf]  ;;  %v10328_v7 = vor.u32 %v13887_v2, %v10325_v58  ;;  %v10053_v11 = vld [vmem:[%s15200_s2 + $0x5b0] sm:$0xf0]  ;;  %7263 = vmatmul.bf16.vlgmr.msra.gmra.mxu2 %v15325_v14 }
 0x17b   : > { %7311 = vmatpush.bf16.msrb.mxu2 %v10216_v46  ;;  %v13819_v10 = vld [vmem:[%s15200_s2 + $0x5a4] sm:$0xf]  ;;  %v10181_v18 = vld [vmem:[%s15200_s2 + $0x6b0] sm:$0xf0]  ;;  %v9928_v0 = vor.u32 %v13787_v63, %v9925_v5  ;;  %7277 = vmatmul.bf16.vlgmr.msra.gmra.mxu3 %v15335_v22  ;;  %v16032_v5 = vpop.f32.mrf.mxu1 }
 0x17c   : > { %7325 = vmatpush.bf16.msrb.mxu3 %v10344_v30  ;;  %v13851_v12 = vld [vmem:[%s15200_s2 + $0x6a4] sm:$0xf]  ;;  %v10309_v24 = vld [vmem:[%s15200_s2 + $0x7b0] sm:$0xf0]  ;;  %v10056_v46 = vor.u32 %v13819_v10, %v10053_v11  ;;  %v16021_v30 = vpop.f32.mrf.mxu2 }
 0x17d   : > { %v13883_v23 = vld [vmem:[%s15200_s2 + $0x7a4] sm:$0xf]  ;;  %7284 = vmatpush.bf16.msrb.mxu0 %v9944_v3  ;;  %v10184_v55 = vor.u32 %v13851_v12, %v10181_v18  ;;  %v9909_v27 = vld [vmem:[%s15200_s2 + $0x490] sm:$0xf0]  ;;  %v16026_v3 = vpop.f32.mrf.mxu3 }
 0x17e   : > { %7298 = vmatpush.bf16.msrb.mxu1 %v10072_v4  ;;  %v13783_v26 = vld [vmem:[%s15200_s2 + $0x484] sm:$0xf]  ;;  %v10312_v31 = vor.u32 %v13883_v23, %v10309_v24  ;;  %v10037_v35 = vld [vmem:[%s15200_s2 + $0x590] sm:$0xf0]  ;;  %v16028_v4 = vpop.f32.mrf.mxu0 }
 0x17f   : > { %7312 = vmatpush.bf16.msrb.mxu2 %v10200_v62  ;;  %v13815_v28 = vld [vmem:[%s15200_s2 + $0x584] sm:$0xf]  ;;  %v10165_v58 = vld [vmem:[%s15200_s2 + $0x690] sm:$0xf0]  ;;  %v9912_v10 = vor.u32 %v13783_v26, %v9909_v27 }
 0x180   : > { %7326 = vmatpush.bf16.msrb.mxu3 %v10328_v7  ;;  %v13847_v2 = vld [vmem:[%s15200_s2 + $0x684] sm:$0xf]  ;;  %v10293_v63 = vld [vmem:[%s15200_s2 + $0x790] sm:$0xf0]  ;;  %v10040_v7 = vor.u32 %v13815_v28, %v10037_v35 }
 0x181   : > { %v13879_v62 = vld [vmem:[%s15200_s2 + $0x784] sm:$0xf]  ;;  %7285 = vmatpush.bf16.msrb.mxu0 %v9928_v0  ;;  %v10168_v11 = vor.u32 %v13847_v2, %v10165_v58  ;;  %v9893_v18 = vld [vmem:[%s15200_s2 + $0x470] sm:$0xf0] }
 0x182   : > { %7299 = vmatpush.bf16.msrb.mxu1 %v10056_v46  ;;  %v13779_v12 = vld [vmem:[%s15200_s2 + $0x464] sm:$0xf]  ;;  %v10296_v24 = vor.u32 %v13879_v62, %v10293_v63  ;;  %v10021_v22 = vld [vmem:[%s15200_s2 + $0x570] sm:$0xf0] }
 0x183   : > { %7313 = vmatpush.bf16.msrb.mxu2 %v10184_v55  ;;  %v13811_v23 = vld [vmem:[%s15200_s2 + $0x564] sm:$0xf]  ;;  %v10149_v14 = vld [vmem:[%s15200_s2 + $0x670] sm:$0xf0]  ;;  %v9896_v46 = vor.u32 %v13779_v12, %v9893_v18  ;;  %v6803_v55 = vadd.f32 %v15910_v1, %v15902_v54 }
 0x184   : > { %7327 = vmatpush.bf16.msrb.mxu3 %v10312_v31  ;;  %v13843_v15 = vld [vmem:[%s15200_s2 + $0x664] sm:$0xf]  ;;  %v10277_v0 = vld [vmem:[%s15200_s2 + $0x770] sm:$0xf0]  ;;  %v10024_v26 = vor.u32 %v13811_v23, %v10021_v22  ;;  %v16047_v2 = vpop.f32.mrf.mxu2 }
 0x185   : > { %v13875_v8 = vld [vmem:[%s15200_s2 + $0x764] sm:$0xf]  ;;  %7286 = vmatpush.bf16.msrb.mxu0 %v9912_v10  ;;  %v10152_v27 = vor.u32 %v13843_v15, %v10149_v14  ;;  %v9877_v31 = vld [vmem:[%s15200_s2 + $0x450] sm:$0xf0]  ;;  %v16052_v12 = vpop.f32.mrf.mxu3  ;;  %v6817_v15 = vadd.f32 %v15929_v29, %v6803_v55 }
 0x186   : > { %7300 = vmatpush.bf16.msrb.mxu1 %v10040_v7  ;;  %v13775_v28 = vld [vmem:[%s15200_s2 + $0x444] sm:$0xf]  ;;  %v10280_v58 = vor.u32 %v13875_v8, %v10277_v0  ;;  %v10005_v62 = vld [vmem:[%s15200_s2 + $0x550] sm:$0xf0]  ;;  %v16057_v22 = vpop.f32.mrf.mxu0 }
 0x187   : > { %7314 = vmatpush.bf16.msrb.mxu2 %v10168_v11  ;;  %v13807_v35 = vld [vmem:[%s15200_s2 + $0x544] sm:$0xf]  ;;  %v10133_v10 = vld [vmem:[%s15200_s2 + $0x650] sm:$0xf0]  ;;  %v9880_v14 = vor.u32 %v13775_v28, %v9877_v31 }
 0x188   : > { %7328 = vmatpush.bf16.msrb.mxu3 %v10296_v24  ;;  %v13839_v63 = vld [vmem:[%s15200_s2 + $0x644] sm:$0xf]  ;;  %v10261_v1 = vld [vmem:[%s15200_s2 + $0x750] sm:$0xf0]  ;;  %v10008_v8 = vor.u32 %v13807_v35, %v10005_v62  ;;  %v16062_v24 = vpop.f32.mrf.mxu1 }
 0x189   : > { %v13871_v54 = vld [vmem:[%s15200_s2 + $0x744] sm:$0xf]  ;;  %7287 = vmatpush.bf16.msrb.mxu0 %v9896_v46  ;;  %v10136_v7 = vor.u32 %v13839_v63, %v10133_v10  ;;  %v9861_v18 = vld [vmem:[%s15200_s2 + $0x430] sm:$0xf0] }
 0x18a   : > { %7301 = vmatpush.bf16.msrb.mxu1 %v10024_v26  ;;  %v13771_v11 = vld [vmem:[%s15200_s2 + $0x424] sm:$0xf]  ;;  %v10264_v0 = vor.u32 %v13871_v54, %v10261_v1  ;;  %v9989_v46 = vld [vmem:[%s15200_s2 + $0x530] sm:$0xf0] }
 0x18b   : > { %7315 = vmatpush.bf16.msrb.mxu2 %v10152_v27  ;;  %v13803_v23 = vld [vmem:[%s15200_s2 + $0x524] sm:$0xf]  ;;  %v10117_v55 = vld [vmem:[%s15200_s2 + $0x630] sm:$0xf0]  ;;  %v9864_v27 = vor.u32 %v13771_v11, %v9861_v18 }
 0x18c   : > { %7329 = vmatpush.bf16.msrb.mxu3 %v10280_v58  ;;  %v13835_v29 = vld [vmem:[%s15200_s2 + $0x624] sm:$0xf]  ;;  %v10245_v26 = vld [vmem:[%s15200_s2 + $0x730] sm:$0xf0]  ;;  %v6831_v58 = vadd.f32 %v15934_v38, %v6817_v15  ;;  %v9992_v62 = vor.u32 %v13803_v23, %v9989_v46  ;;  %v6805_v38 = vadd.f32 %v15943_v6, %v15938_v51  ;;  %v16083_v15 = vpop.f32.mrf.mxu2 }
 0x18d   : > { %v13867_v28 = vld [vmem:[%s15200_s2 + $0x724] sm:$0xf]  ;;  %7288 = vmatpush.bf16.msrb.mxu0 %v9880_v14  ;;  %v9845_v35 = vld [vmem:[%s15200_s2 + $0x410] sm:$0xf0]  ;;  %v10120_v63 = vor.u32 %v13835_v29, %v10117_v55  ;;  %v16089_v29 = vpop.f32.mrf.mxu3 }
 0x18e   : > { %v13767_v31 = vld [vmem:[%s15200_s2 + $0x404] sm:$0xf]  ;;  %7302 = vmatpush.bf16.msrb.mxu1 %v10008_v8  ;;  %v9973_v54 = vld [vmem:[%s15200_s2 + $0x510] sm:$0xf0]  ;;  %v10248_v14 = vor.u32 %v13867_v28, %v10245_v26  ;;  %v16091_v55 = vpop.f32.mrf.mxu0 }
 0x18f   : > { %7316 = vmatpush.bf16.msrb.mxu2 %v10136_v7  ;;  %v13799_v10 = vld [vmem:[%s15200_s2 + $0x504] sm:$0xf]  ;;  %v10101_v11 = vld [vmem:[%s15200_s2 + $0x610] sm:$0xf0]  ;;  %v9848_v8 = vor.u32 %v13767_v31, %v9845_v35 }
 0x190   : > { %v13831_v1 = vld [vmem:[%s15200_s2 + $0x604] sm:$0xf]  ;;  %7330 = vmatpush.bf16.msrb.mxu3 %v10264_v0  ;;  %v10597_v7 = vld [vmem:[%s15200_s2 + $0x9f0] sm:$0xf0]  ;;  %v6845_v0 = vadd.f32 %v15968_v17, %v6831_v58  ;;  %v9976_v28 = vor.u32 %v13799_v10, %v9973_v54  ;;  %v10472_v17 = vor.u32 %v13923_v59, %v10469_v53  ;;  %v10456_v59 = vor.u32 %v13919_v16, %v10453_v13 }
 0x191   : > { %v13863_v18 = vld [vmem:[%s15200_s2 + $0x704] sm:$0xf]  ;;  %7289 = vmatpush.bf16.msrb.mxu0 %v9864_v27  ;;  %v10725_v46 = vld [vmem:[%s15200_s2 + $0xaf0] sm:$0xf0]  ;;  %v10104_v51 = vor.u32 %v13831_v1, %v10101_v11  ;;  %v16095_v27 = vpop.f32.mrf.mxu1  ;;  %v10600_v35 = vor.u32 %v13955_v19, %v10597_v7 }
 0x192   : > { %v13987_v23 = vld [vmem:[%s15200_s2 + $0xae4] sm:$0xf]  ;;  %7303 = vmatpush.bf16.msrb.mxu1 %v9992_v62  ;;  %v10853_v26 = vld [vmem:[%s15200_s2 + $0xbf0] sm:$0xf0]  ;;  %v10232_v31 = vor.u32 %v13863_v18, %v10229_v61  ;;  %v6859_v61 = vadd.f32 %v15972_v21, %v6845_v0 }
 0x193   : > { %7317 = vmatpush.bf16.msrb.mxu2 %v10120_v63  ;;  %v14019_v6 = vld [vmem:[%s15200_s2 + $0xbe4] sm:$0xf]  ;;  %v10728_v58 = vor.u32 %v13987_v23, %v10725_v46  ;;  %v6819_v63 = vadd.f32 %v15958_v43, %v6805_v38  ;;  %v10581_v54 = vld [vmem:[%s15200_s2 + $0x9d0] sm:$0xf0] }
 0x194   : > { %7331 = vmatpush.bf16.msrb.mxu3 %v10248_v14  ;;  %v13951_v62 = vld [vmem:[%s15200_s2 + $0x9c4] sm:$0xf]  ;;  %v10856_v10 = vor.u32 %v14019_v6, %v10853_v26  ;;  %v10709_v11 = vld [vmem:[%s15200_s2 + $0xad0] sm:$0xf0]  ;;  %v16111_v7 = vpop.f32.mrf.mxu2  ;;  %v6873_v16 = vadd.f32 %v15990_v20, %v6859_v61 }
 0x195   : > { %7290 = vmatpush.bf16.msrb.mxu0 %v9848_v8  ;;  %v13983_v1 = vld [vmem:[%s15200_s2 + $0xac4] sm:$0xf]  ;;  %v10837_v19 = vld [vmem:[%s15200_s2 + $0xbd0] sm:$0xf0]  ;;  %v10584_v43 = vor.u32 %v13951_v62, %v10581_v54  ;;  %v6833_v21 = vadd.f32 %v15960_v50, %v6819_v63 }
 0x196   : > { %7304 = vmatpush.bf16.msrb.mxu1 %v9976_v28  ;;  %v14015_v53 = vld [vmem:[%s15200_s2 + $0xbc4] sm:$0xf]  ;;  %v10712_v14 = vor.u32 %v13983_v1, %v10709_v11  ;;  %v10437_v38 = vld [vmem:[%s15200_s2 + $0x8b0] sm:$0xf0]  ;;  %v16118_v28 = vpop.f32.mrf.mxu3  ;;  %v16126_v20 = vpop.f32.mrf.mxu0  ;;  %v6887_v11 = vadd.f32 %v15992_v25, %v6873_v16 }
 0x197   : > { %7318 = vmatpush.bf16.msrb.mxu2 %v10104_v51  ;;  %v13915_v18 = vld [vmem:[%s15200_s2 + $0x8a4] sm:$0xf]  ;;  %v10840_v23 = vor.u32 %v14015_v53, %v10837_v19  ;;  %v10565_v46 = vld [vmem:[%s15200_s2 + $0x9b0] sm:$0xf0]  ;;  %v6847_v6 = vadd.f32 %v16000_v34, %v6833_v21 }
 0x198   : > { %7332 = vmatpush.bf16.msrb.mxu3 %v10232_v31  ;;  %v13947_v8 = vld [vmem:[%s15200_s2 + $0x9a4] sm:$0xf]  ;;  %7291 = vmatmul.bf16.vlgmr.msrb.gmra.mxu0 %v15393_v40  ;;  %v10693_v13 = vld [vmem:[%s15200_s2 + $0xab0] sm:$0xf0]  ;;  %v10440_v26 = vor.u32 %v13915_v18, %v10437_v38 }
 0x199   : > { %7339 = vmatpush.bf16.msra.mxu0 %v10472_v17  ;;  %v13979_v0 = vld [vmem:[%s15200_s2 + $0xaa4] sm:$0xf]  ;;  %7305 = vmatmul.bf16.vlgmr.msrb.gmra.mxu1 %v15400_v45  ;;  %v10821_v51 = vld [vmem:[%s15200_s2 + $0xbb0] sm:$0xf0]  ;;  %v10568_v31 = vor.u32 %v13947_v8, %v10565_v46  ;;  %v16131_v63 = vpop.f32.mrf.mxu1  ;;  %v6861_v19 = vadd.f32 %v16004_v49, %v6847_v6 }
 0x19a   : > { %7353 = vmatpush.bf16.msra.mxu1 %v10600_v35  ;;  %7319 = vmatmul.bf16.vlgmr.msrb.gmra.mxu2 %v15398_v44  ;;  %v14011_v50 = vld [vmem:[%s15200_s2 + $0xba4] sm:$0xf]  ;;  %v10696_v17 = vor.u32 %v13979_v0, %v10693_v13  ;;  %v10677_v1 = vld [vmem:[%s15200_s2 + $0xa90] sm:$0xf0] }
 0x19b   : > { %7367 = vmatpush.bf16.msra.mxu2 %v10728_v58  ;;  %7333 = vmatmul.bf16.vlgmr.msrb.gmra.mxu3 %v15404_v48  ;;  %v13911_v35 = vld [vmem:[%s15200_s2 + $0x884] sm:$0xf]  ;;  %v10421_v58 = vld [vmem:[%s15200_s2 + $0x890] sm:$0xf0]  ;;  %v10824_v34 = vor.u32 %v14011_v50, %v10821_v51  ;;  %v6875_v21 = vadd.f32 %v16021_v30, %v6861_v19 }
 0x19c   : > { %7381 = vmatpush.bf16.msra.mxu3 %v10856_v10  ;;  %v13943_v62 = vld [vmem:[%s15200_s2 + $0x984] sm:$0xf]  ;;  %v10549_v10 = vld [vmem:[%s15200_s2 + $0x990] sm:$0xf0] }
 0x19d   : > { %7340 = vmatpush.bf16.msra.mxu0 %v10456_v59  ;;  %v13975_v54 = vld [vmem:[%s15200_s2 + $0xa84] sm:$0xf]  ;;  %v10805_v53 = vld [vmem:[%s15200_s2 + $0xb90] sm:$0xf0]  ;;  %v10424_v59 = vor.u32 %v13911_v35, %v10421_v58 }
 0x19e   : > { %7354 = vmatpush.bf16.msra.mxu1 %v10584_v43  ;;  %v14007_v61 = vld [vmem:[%s15200_s2 + $0xb84] sm:$0xf]  ;;  %v6901_v43 = vadd.f32 %v16028_v4, %v6887_v11  ;;  %v10680_v18 = vor.u32 %v13975_v54, %v10677_v1  ;;  %v10405_v8 = vld [vmem:[%s15200_s2 + $0x870] sm:$0xf0]  ;;  %v16150_v4 = vpop.f32.mrf.mxu2  ;;  %v16153_v30 = vpop.f32.mrf.mxu3 }
 0x19f   : > { %7368 = vmatpush.bf16.msra.mxu2 %v10712_v14  ;;  %v10552_v14 = vor.u32 %v13943_v62, %v10549_v10  ;;  %v13907_v38 = vld [vmem:[%s15200_s2 + $0x864] sm:$0xf]  ;;  %v10533_v49 = vld [vmem:[%s15200_s2 + $0x970] sm:$0xf0]  ;;  %v16155_v6 = vpop.f32.mrf.mxu0  ;;  %v6889_v62 = vadd.f32 %v16026_v3, %v6875_v21 }
 0x1a0   : > { %7382 = vmatpush.bf16.msra.mxu3 %v10840_v23  ;;  %v13939_v25 = vld [vmem:[%s15200_s2 + $0x964] sm:$0xf]  ;;  %v10808_v23 = vor.u32 %v14007_v61, %v10805_v53  ;;  %v10661_v0 = vld [vmem:[%s15200_s2 + $0xa70] sm:$0xf0]  ;;  %v10408_v50 = vor.u32 %v13907_v38, %v10405_v8  ;;  %v6915_v51 = vadd.f32 %v16032_v5, %v6901_v43 }
 0x1a1   : > { %7341 = vmatpush.bf16.msra.mxu0 %v10440_v26  ;;  %v13971_v46 = vld [vmem:[%s15200_s2 + $0xa64] sm:$0xf]  ;;  %v10789_v16 = vld [vmem:[%s15200_s2 + $0xb70] sm:$0xf0]  ;;  %v10536_v26 = vor.u32 %v13939_v25, %v10533_v49  ;;  %v6903_v19 = vadd.f32 %v16057_v22, %v6889_v62 }
 0x1a2   : > { %7355 = vmatpush.bf16.msra.mxu1 %v10568_v31  ;;  %v14003_v13 = vld [vmem:[%s15200_s2 + $0xb64] sm:$0xf]  ;;  %v10664_v31 = vor.u32 %v13971_v46, %v10661_v0  ;;  %v10389_v35 = vld [vmem:[%s15200_s2 + $0x850] sm:$0xf0]  ;;  %v6929_v11 = vadd.f32 %v16047_v2, %v6915_v51 }
 0x1a3   : > { %7369 = vmatpush.bf16.msra.mxu2 %v10696_v17  ;;  %v13903_v17 = vld [vmem:[%s15200_s2 + $0x844] sm:$0xf]  ;;  %v10792_v5 = vor.u32 %v14003_v13, %v10789_v16  ;;  %v10517_v10 = vld [vmem:[%s15200_s2 + $0x950] sm:$0xf0]  ;;  %v6917_v46 = vadd.f32 %v16062_v24, %v6903_v19 }
 0x1a4   : > { %7383 = vmatpush.bf16.msra.mxu3 %v10824_v34  ;;  %v13935_v58 = vld [vmem:[%s15200_s2 + $0x944] sm:$0xf]  ;;  %v16161_v34 = vpop.f32.mrf.mxu1  ;;  %v10645_v1 = vld [vmem:[%s15200_s2 + $0xa50] sm:$0xf0]  ;;  %v10392_v3 = vor.u32 %v13903_v17, %v10389_v35  ;;  %v6943_v22 = vadd.f32 %v16052_v12, %v6929_v11 }
 0x1a5   : > { %7342 = vmatpush.bf16.msra.mxu0 %v10424_v59  ;;  %v13967_v54 = vld [vmem:[%s15200_s2 + $0xa44] sm:$0xf]  ;;  %v10773_v53 = vld [vmem:[%s15200_s2 + $0xb50] sm:$0xf0]  ;;  %v10520_v59 = vor.u32 %v13935_v58, %v10517_v10  ;;  %v6931_v58 = vadd.f32 %v16083_v15, %v6917_v46 }
 0x1a6   : > { %7356 = vmatpush.bf16.msra.mxu1 %v10552_v14  ;;  %v13999_v61 = vld [vmem:[%s15200_s2 + $0xb44] sm:$0xf]  ;;  %v10648_v43 = vor.u32 %v13967_v54, %v10645_v1  ;;  %v10501_v8 = vld [vmem:[%s15200_s2 + $0x930] sm:$0xf0]  ;;  %v16180_v0 = vpop.f32.mrf.mxu2  ;;  %v6957_v51 = vadd.f32 %v16091_v55, %v6943_v22 }
 0x1a7   : > { %7370 = vmatpush.bf16.msra.mxu2 %v10680_v18  ;;  %v13899_v14 = vld [vmem:[%s15200_s2 + $0x824] sm:$0xf]  ;;  %v10373_v18 = vld [vmem:[%s15200_s2 + $0x830] sm:$0xf0]  ;;  %v10776_v2 = vor.u32 %v13999_v61, %v10773_v53  ;;  %v16194_v54 = vpop.f32.mrf.mxu0 }
 0x1a8   : > { %7384 = vmatpush.bf16.msra.mxu3 %v10808_v23  ;;  %v13931_v38 = vld [vmem:[%s15200_s2 + $0x924] sm:$0xf]  ;;  %v10629_v21 = vld [vmem:[%s15200_s2 + $0xa30] sm:$0xf0]  ;;  %v10376_v13 = vor.u32 %v13899_v14, %v10373_v18 }
 0x1a9   : > { %7343 = vmatpush.bf16.msra.mxu0 %v10408_v50  ;;  %v13963_v25 = vld [vmem:[%s15200_s2 + $0xa24] sm:$0xf]  ;;  %v10757_v49 = vld [vmem:[%s15200_s2 + $0xb30] sm:$0xf0]  ;;  %v10504_v12 = vor.u32 %v13931_v38, %v10501_v8  ;;  %v6945_v8 = vadd.f32 %v16089_v29, %v6931_v58 }
 0x1aa   : > { %7357 = vmatpush.bf16.msra.mxu1 %v10536_v26  ;;  %v13995_v23 = vld [vmem:[%s15200_s2 + $0xb24] sm:$0xf]  ;;  %v10357_v50 = vld [vmem:[%s15200_s2 + $0x810] sm:$0xf0]  ;;  %v16185_v26 = vpop.f32.mrf.mxu3  ;;  %v10632_v24 = vor.u32 %v13963_v25, %v10629_v21 }
 0x1ab   : > { %7371 = vmatpush.bf16.msra.mxu2 %v10664_v31  ;;  %v13895_v16 = vld [vmem:[%s15200_s2 + $0x804] sm:$0xf]  ;;  %v10485_v17 = vld [vmem:[%s15200_s2 + $0x910] sm:$0xf0]  ;;  %v10760_v62 = vor.u32 %v13995_v23, %v10757_v49 }
 0x1ac   : > { %7385 = vmatpush.bf16.msra.mxu3 %v10792_v5  ;;  %v13927_v31 = vld [vmem:[%s15200_s2 + $0x904] sm:$0xf]  ;;  %v10613_v55 = vld [vmem:[%s15200_s2 + $0xa10] sm:$0xf0]  ;;  %v16199_v53 = vpop.f32.mrf.mxu1  ;;  %v10360_v19 = vor.u32 %v13895_v16, %v10357_v50  ;;  %v6959_v16 = vadd.f32 %v16126_v20, %v6945_v8 }
 0x1ad   : > { %7344 = vmatpush.bf16.msra.mxu0 %v10392_v3  ;;  %v13959_v35 = vld [vmem:[%s15200_s2 + $0xa04] sm:$0xf]  ;;  %v10741_v10 = vld [vmem:[%s15200_s2 + $0xb10] sm:$0xf0]  ;;  %v10488_v14 = vor.u32 %v13927_v31, %v10485_v17 }
 0x1ae   : > { %7358 = vmatpush.bf16.msra.mxu1 %v10520_v59  ;;  %v13991_v5 = vld [vmem:[%s15200_s2 + $0xb04] sm:$0xf]  ;;  %v10981_v11 = vld [vmem:[%s15200_s2 + $0xcf0] sm:$0xf0]  ;;  %v10616_v18 = vor.u32 %v13959_v35, %v10613_v55 }
 0x1af   : > { %7372 = vmatpush.bf16.msra.mxu2 %v10648_v43  ;;  %v14051_v1 = vld [vmem:[%s15200_s2 + $0xce4] sm:$0xf]  ;;  %v11109_v3 = vld [vmem:[%s15200_s2 + $0xdf0] sm:$0xf0]  ;;  %v6971_v43 = vadd.f32 %v16095_v27, %v6957_v51  ;;  %v10744_v25 = vor.u32 %v13991_v5, %v10741_v10  ;;  %v16223_v58 = vpop.f32.mrf.mxu0 }
 0x1b0   : > { %7386 = vmatpush.bf16.msra.mxu3 %v10776_v2  ;;  %v14083_v61 = vld [vmem:[%s15200_s2 + $0xde4] sm:$0xf]  ;;  %v11237_v15 = vld [vmem:[%s15200_s2 + $0xef0] sm:$0xf0]  ;;  %v10984_v21 = vor.u32 %v14051_v1, %v10981_v11  ;;  %v6973_v11 = vadd.f32 %v16131_v63, %v6959_v16 }
 0x1b1   : > { %7345 = vmatpush.bf16.msra.mxu0 %v10376_v13  ;;  %v14115_v59 = vld [vmem:[%s15200_s2 + $0xee4] sm:$0xf]  ;;  %v11365_v2 = vld [vmem:[%s15200_s2 + $0xff0] sm:$0xf0]  ;;  %v6985_v22 = vadd.f32 %v16111_v7, %v6971_v43  ;;  %v11112_v27 = vor.u32 %v14083_v61, %v11109_v3  ;;  %v16218_v7 = vpop.f32.mrf.mxu2 }
 0x1b2   : > { %7359 = vmatpush.bf16.msra.mxu1 %v10504_v12  ;;  %v14147_v38 = vld [vmem:[%s15200_s2 + $0xfe4] sm:$0xf]  ;;  %v11240_v23 = vor.u32 %v14115_v59, %v11237_v15  ;;  %v10965_v46 = vld [vmem:[%s15200_s2 + $0xcd0] sm:$0xf0]  ;;  %v16221_v35 = vpop.f32.mrf.mxu3 }
 0x1b3   : > { %7373 = vmatpush.bf16.msra.mxu2 %v10632_v24  ;;  %v14047_v49 = vld [vmem:[%s15200_s2 + $0xcc4] sm:$0xf]  ;;  %v11368_v50 = vor.u32 %v14147_v38, %v11365_v2  ;;  %v11093_v51 = vld [vmem:[%s15200_s2 + $0xdd0] sm:$0xf0]  ;;  %v6999_v20 = vadd.f32 %v16118_v28, %v6985_v22 }
 0x1b4   : > { %7387 = vmatpush.bf16.msra.mxu3 %v10760_v62  ;;  %v14079_v13 = vld [vmem:[%s15200_s2 + $0xdc4] sm:$0xf]  ;;  %v11221_v24 = vld [vmem:[%s15200_s2 + $0xed0] sm:$0xf0]  ;;  %v10968_v17 = vor.u32 %v14047_v49, %v10965_v46  ;;  %v16229_v61 = vpop.f32.mrf.mxu1 }
 0x1b5   : > { %7346 = vmatpush.bf16.msra.mxu0 %v10360_v19  ;;  %v14111_v12 = vld [vmem:[%s15200_s2 + $0xec4] sm:$0xf]  ;;  %v11349_v31 = vld [vmem:[%s15200_s2 + $0xfd0] sm:$0xf0]  ;;  %v11096_v62 = vor.u32 %v14079_v13, %v11093_v51  ;;  %v7013_v15 = vadd.f32 %v16155_v6, %v6999_v20 }
 0x1b6   : > { %7360 = vmatpush.bf16.msra.mxu1 %v10488_v14  ;;  %v14143_v29 = vld [vmem:[%s15200_s2 + $0xfc4] sm:$0xf]  ;;  %v11224_v55 = vor.u32 %v14111_v12, %v11221_v24  ;;  %v10949_v10 = vld [vmem:[%s15200_s2 + $0xcb0] sm:$0xf0]  ;;  %v6987_v14 = vadd.f32 %v16150_v4, %v6973_v11 }
 0x1b7   : > { %7374 = vmatpush.bf16.msra.mxu2 %v10616_v18  ;;  %v14043_v5 = vld [vmem:[%s15200_s2 + $0xca4] sm:$0xf]  ;;  %v11352_v28 = vor.u32 %v14143_v29, %v11349_v31  ;;  %v11077_v19 = vld [vmem:[%s15200_s2 + $0xdb0] sm:$0xf0] }
 0x1b8   : > { %7388 = vmatpush.bf16.msra.mxu3 %v10744_v25  ;;  %v14075_v1 = vld [vmem:[%s15200_s2 + $0xda4] sm:$0xf]  ;;  %7347 = vmatmul.bf16.vlgmr.msra.gmra.mxu0 %v15477_v32  ;;  %v11205_v59 = vld [vmem:[%s15200_s2 + $0xeb0] sm:$0xf0]  ;;  %v10952_v18 = vor.u32 %v14043_v5, %v10949_v10  ;;  %v7001_v13 = vadd.f32 %v16153_v30, %v6987_v14  ;;  %v16264_v5 = vpop.f32.mrf.mxu0 }
 0x1b9   : > { %7395 = vmatpush.bf16.msrb.mxu0 %v10984_v21  ;;  %v14107_v3 = vld [vmem:[%s15200_s2 + $0xea4] sm:$0xf]  ;;  %7361 = vmatmul.bf16.vlgmr.msra.gmra.mxu1 %v15484_v37  ;;  %v11333_v43 = vld [vmem:[%s15200_s2 + $0xfb0] sm:$0xf0]  ;;  %v11080_v6 = vor.u32 %v14075_v1, %v11077_v19  ;;  %v16252_v16 = vpop.f32.mrf.mxu2 }
 0x1ba   : > { %7409 = vmatpush.bf16.msrb.mxu1 %v11112_v27  ;;  %7375 = vmatmul.bf16.vlgmr.msra.gmra.mxu2 %v15482_v36  ;;  %v14139_v63 = vld [vmem:[%s15200_s2 + $0xfa4] sm:$0xf]  ;;  %v11208_v38 = vor.u32 %v14107_v3, %v11205_v59  ;;  %v10933_v8 = vld [vmem:[%s15200_s2 + $0xc90] sm:$0xf0]  ;;  %v16255_v12 = vpop.f32.mrf.mxu3 }
 0x1bb   : > { %7423 = vmatpush.bf16.msrb.mxu2 %v11240_v23  ;;  %7389 = vmatmul.bf16.vlgmr.msra.gmra.mxu3 %v15488_v41  ;;  %v14039_v2 = vld [vmem:[%s15200_s2 + $0xc84] sm:$0xf]  ;;  %v11336_v21 = vor.u32 %v14139_v63, %v11333_v43  ;;  %v11061_v22 = vld [vmem:[%s15200_s2 + $0xd90] sm:$0xf0]  ;;  %v7027_v23 = vadd.f32 %v16161_v34, %v7013_v15 }
 0x1bc   : > { %7437 = vmatpush.bf16.msrb.mxu3 %v11368_v50  ;;  %v14071_v25 = vld [vmem:[%s15200_s2 + $0xd84] sm:$0xf]  ;;  %v11189_v4 = vld [vmem:[%s15200_s2 + $0xe90] sm:$0xf0]  ;;  %v10936_v50 = vor.u32 %v14039_v2, %v10933_v8  ;;  %v16268_v11 = vpop.f32.mrf.mxu1 }
 0x1bd   : > { %7396 = vmatpush.bf16.msrb.mxu0 %v10968_v17  ;;  %v14103_v27 = vld [vmem:[%s15200_s2 + $0xe84] sm:$0xf]  ;;  %v11317_v46 = vld [vmem:[%s15200_s2 + $0xf90] sm:$0xf0]  ;;  %v7041_v51 = vadd.f32 %v16180_v0, %v7027_v23  ;;  %v11064_v34 = vor.u32 %v14071_v25, %v11061_v22  ;;  %v7015_v17 = vadd.f32 %v16194_v54, %v7001_v13 }
 0x1be   : > { %7410 = vmatpush.bf16.msrb.mxu1 %v11096_v62  ;;  %v14135_v49 = vld [vmem:[%s15200_s2 + $0xf84] sm:$0xf]  ;;  %v11192_v24 = vor.u32 %v14103_v27, %v11189_v4  ;;  %v10917_v31 = vld [vmem:[%s15200_s2 + $0xc70] sm:$0xf0] }
 0x1bf   : > { %7424 = vmatpush.bf16.msrb.mxu2 %v11224_v55  ;;  %v14035_v29 = vld [vmem:[%s15200_s2 + $0xc64] sm:$0xf]  ;;  %v11320_v20 = vor.u32 %v14135_v49, %v11317_v46  ;;  %v11045_v62 = vld [vmem:[%s15200_s2 + $0xd70] sm:$0xf0]  ;;  %v7055_v54 = vadd.f32 %v16185_v26, %v7041_v51  ;;  %v7029_v43 = vadd.f32 %v16199_v53, %v7015_v17 }
 0x1c0   : > { %7438 = vmatpush.bf16.msrb.mxu3 %v11352_v28  ;;  %v14067_v30 = vld [vmem:[%s15200_s2 + $0xd64] sm:$0xf]  ;;  %v11173_v55 = vld [vmem:[%s15200_s2 + $0xe70] sm:$0xf0]  ;;  %v10920_v28 = vor.u32 %v14035_v29, %v10917_v31 }
 0x1c1   : > { %7397 = vmatpush.bf16.msrb.mxu0 %v10952_v18  ;;  %v14099_v0 = vld [vmem:[%s15200_s2 + $0xe64] sm:$0xf]  ;;  %v11301_v1 = vld [vmem:[%s15200_s2 + $0xf70] sm:$0xf0]  ;;  %v11048_v19 = vor.u32 %v14067_v30, %v11045_v62  ;;  %v7069_v26 = vadd.f32 %v16223_v58, %v7055_v54  ;;  %v7043_v25 = vadd.f32 %v16218_v7, %v7029_v43  ;;  %v16285_v58 = vpop.f32.mrf.mxu2 }
 0x1c2   : > { %7411 = vmatpush.bf16.msrb.mxu1 %v11080_v6  ;;  %v14131_v10 = vld [vmem:[%s15200_s2 + $0xf64] sm:$0xf]  ;;  %v11176_v3 = vor.u32 %v14099_v0, %v11173_v55  ;;  %v10901_v15 = vld [vmem:[%s15200_s2 + $0xc50] sm:$0xf0]  ;;  %v16291_v51 = vpop.f32.mrf.mxu3 }
 0x1c3   : > { %7425 = vmatpush.bf16.msrb.mxu2 %v11208_v38  ;;  %v14031_v59 = vld [vmem:[%s15200_s2 + $0xc44] sm:$0xf]  ;;  %v11304_v14 = vor.u32 %v14131_v10, %v11301_v1  ;;  %v11029_v18 = vld [vmem:[%s15200_s2 + $0xd50] sm:$0xf0]  ;;  %v7057_v31 = vadd.f32 %v16221_v35, %v7043_v25 }
 0x1c4   : > { %7439 = vmatpush.bf16.msrb.mxu3 %v11336_v21  ;;  %v14063_v63 = vld [vmem:[%s15200_s2 + $0xd44] sm:$0xf]  ;;  %v11157_v38 = vld [vmem:[%s15200_s2 + $0xe50] sm:$0xf0]  ;;  %v10904_v21 = vor.u32 %v14031_v59, %v10901_v15  ;;  %v7138_v30 = vpop.f32.mrf.mxu1 }
 0x1c5   : > { %7398 = vmatpush.bf16.msrb.mxu0 %v10936_v50  ;;  %v14095_v6 = vld [vmem:[%s15200_s2 + $0xe44] sm:$0xf]  ;;  %v11285_v8 = vld [vmem:[%s15200_s2 + $0xf50] sm:$0xf0]  ;;  %v11032_v53 = vor.u32 %v14063_v63, %v11029_v18  ;;  %v7083_v50 = vadd.f32 %v16229_v61, %v7069_v26 }
 0x1c6   : > { %7412 = vmatpush.bf16.msrb.mxu1 %v11064_v34  ;;  %v14127_v2 = vld [vmem:[%s15200_s2 + $0xf44] sm:$0xf]  ;;  %v11160_v22 = vor.u32 %v14095_v6, %v11157_v38  ;;  %v10885_v4 = vld [vmem:[%s15200_s2 + $0xc30] sm:$0xf0]  ;;  %v7124_v34 = vpop.f32.mrf.mxu0 }
 0x1c7   : > { %7426 = vmatpush.bf16.msrb.mxu2 %v11192_v24  ;;  %v14027_v27 = vld [vmem:[%s15200_s2 + $0xc24] sm:$0xf]  ;;  %v11288_v49 = vor.u32 %v14127_v2, %v11285_v8  ;;  %v11013_v46 = vld [vmem:[%s15200_s2 + $0xd30] sm:$0xf0]  ;;  %v7097_v61 = vadd.f32 %v16252_v16, %v7083_v50  ;;  %v7071_v16 = vadd.f32 %v16264_v5, %v7057_v31 }
 0x1c8   : > { %7440 = vmatpush.bf16.msrb.mxu3 %v11320_v20  ;;  %v14059_v23 = vld [vmem:[%s15200_s2 + $0xd24] sm:$0xf]  ;;  %v11141_v7 = vld [vmem:[%s15200_s2 + $0xe30] sm:$0xf0]  ;;  %v10888_v17 = vor.u32 %v14027_v27, %v10885_v4 }
 0x1c9   : > { %7399 = vmatpush.bf16.msrb.mxu0 %v10920_v28  ;;  %v14091_v13 = vld [vmem:[%s15200_s2 + $0xe24] sm:$0xf]  ;;  %v11269_v29 = vld [vmem:[%s15200_s2 + $0xf30] sm:$0xf0]  ;;  %v11016_v0 = vor.u32 %v14059_v23, %v11013_v46  ;;  %v7111_v38 = vadd.f32 %v16255_v12, %v7097_v61  ;;  %v7152_v25 = vpop.f32.mrf.mxu2 }
 0x1ca   : > { %7413 = vmatpush.bf16.msrb.mxu1 %v11048_v19  ;;  %v14123_v24 = vld [vmem:[%s15200_s2 + $0xf24] sm:$0xf]  ;;  %v10869_v62 = vld [vmem:[%s15200_s2 + $0xc10] sm:$0xf0]  ;;  %v11144_v55 = vor.u32 %v14091_v13, %v11141_v7  ;;  %v7166_v12 = vpop.f32.mrf.mxu3 }
 0x1cb   : > { %7427 = vmatpush.bf16.msrb.mxu2 %v11176_v3  ;;  %v14023_v20 = vld [vmem:[%s15200_s2 + $0xc04] sm:$0xf]  ;;  %v10997_v10 = vld [vmem:[%s15200_s2 + $0xd10] sm:$0xf0]  ;;  %v11272_v28 = vor.u32 %v14123_v24, %v11269_v29  ;;  %v7125_v27 = vadd.f32 %v7124_v34, %v7111_v38 }
 0x1cc   : > { %7441 = vmatpush.bf16.msrb.mxu3 %v11304_v14  ;;  %v14055_v35 = vld [vmem:[%s15200_s2 + $0xd04] sm:$0xf]  ;;  %v11125_v54 = vld [vmem:[%s15200_s2 + $0xe10] sm:$0xf0]  ;;  %v10872_v43 = vor.u32 %v14023_v20, %v10869_v62  ;;  %v7140_v20 = vpop.f32.mrf.mxu1 }
 0x1cd   : > { %7400 = vmatpush.bf16.msrb.mxu0 %v10904_v21  ;;  %v14087_v1 = vld [vmem:[%s15200_s2 + $0xe04] sm:$0xf]  ;;  %v11253_v3 = vld [vmem:[%s15200_s2 + $0xf10] sm:$0xf0]  ;;  %v11000_v26 = vor.u32 %v14055_v35, %v10997_v10  ;;  %v7139_v61 = vadd.f32 %v7138_v30, %v7125_v27 }
 0x1ce   : > { %7414 = vmatpush.bf16.msrb.mxu1 %v11032_v53  ;;  %v14119_v19 = vld [vmem:[%s15200_s2 + $0xf04] sm:$0xf]  ;;  %v11493_v15 = vld [vmem:[%s15200_s2 + $0x10f0] sm:$0xf0]  ;;  %v11128_v2 = vor.u32 %v14087_v1, %v11125_v54 }
 0x1cf   : > { %7428 = vmatpush.bf16.msrb.mxu2 %v11160_v22  ;;  %v14179_v59 = vld [vmem:[%s15200_s2 + $0x10e4] sm:$0xf]  ;;  %v11621_v14 = vld [vmem:[%s15200_s2 + $0x11f0] sm:$0xf0]  ;;  %v11256_v21 = vor.u32 %v14119_v19, %v11253_v3  ;;  %v7085_v22 = vadd.f32 %v16268_v11, %v7071_v16  ;;  %v7153_v3 = vadd.f32 %v7152_v25, %v7139_v61 }
 0x1d0   : > { %7442 = vmatpush.bf16.msrb.mxu3 %v11288_v49  ;;  %v14211_v63 = vld [vmem:[%s15200_s2 + $0x11e4] sm:$0xf]  ;;  %v11749_v6 = vld [vmem:[%s15200_s2 + $0x12f0] sm:$0xf0]  ;;  %v11496_v53 = vor.u32 %v14179_v59, %v11493_v15 }
 0x1d1   : > { %7401 = vmatpush.bf16.msrb.mxu0 %v10888_v17  ;;  %v14243_v18 = vld [vmem:[%s15200_s2 + $0x12e4] sm:$0xf]  ;;  %v11877_v5 = vld [vmem:[%s15200_s2 + $0x13f0] sm:$0xf0]  ;;  %v11624_v4 = vor.u32 %v14211_v63, %v11621_v14  ;;  %v7099_v31 = vadd.f32 %v16285_v58, %v7085_v22  ;;  %v7126_v17 = vpop.f32.mrf.mxu0  ;;  %v7167_v25 = vadd.f32 %v7166_v12, %v7153_v3 }
 0x1d2   : > { %7415 = vmatpush.bf16.msrb.mxu1 %v11016_v0  ;;  %v14275_v8 = vld [vmem:[%s15200_s2 + $0x13e4] sm:$0xf]  ;;  %v11752_v23 = vor.u32 %v14243_v18, %v11749_v6  ;;  %v11477_v46 = vld [vmem:[%s15200_s2 + $0x10d0] sm:$0xf0] }
 0x1d3   : > { %7429 = vmatpush.bf16.msrb.mxu2 %v11144_v55  ;;  %v14175_v49 = vld [vmem:[%s15200_s2 + $0x10c4] sm:$0xf]  ;;  %v11880_v7 = vor.u32 %v14275_v8, %v11877_v5  ;;  %v11605_v50 = vld [vmem:[%s15200_s2 + $0x11d0] sm:$0xf0]  ;;  %v7113_v30 = vadd.f32 %v16291_v51, %v7099_v31 }
 0x1d4   : > { %7443 = vmatpush.bf16.msrb.mxu3 %v11272_v28  ;;  %v14207_v13 = vld [vmem:[%s15200_s2 + $0x11c4] sm:$0xf]  ;;  %v11733_v29 = vld [vmem:[%s15200_s2 + $0x12d0] sm:$0xf0]  ;;  %v11480_v62 = vor.u32 %v14175_v49, %v11477_v46 }
 0x1d5   : > { %7402 = vmatpush.bf16.msrb.mxu0 %v10872_v43  ;;  %v14239_v24 = vld [vmem:[%s15200_s2 + $0x12c4] sm:$0xf]  ;;  %v11861_v34 = vld [vmem:[%s15200_s2 + $0x13d0] sm:$0xf0]  ;;  %v11608_v0 = vor.u32 %v14207_v13, %v11605_v50  ;;  %v7127_v43 = vadd.f32 %v7126_v17, %v7113_v30 }
 0x1d6   : > { %7416 = vmatpush.bf16.msrb.mxu1 %v11000_v26  ;;  %v14271_v11 = vld [vmem:[%s15200_s2 + $0x13c4] sm:$0xf]  ;;  %v11736_v58 = vor.u32 %v14239_v24, %v11733_v29  ;;  %v11461_v35 = vld [vmem:[%s15200_s2 + $0x10b0] sm:$0xf0]  ;;  %v7154_v26 = vpop.f32.mrf.mxu2  ;;  %v7194_v49 = vpop.f32.mrf.mxu1 }
 0x1d7   : > { %7430 = vmatpush.bf16.msrb.mxu2 %v11128_v2  ;;  %v14171_v55 = vld [vmem:[%s15200_s2 + $0x10a4] sm:$0xf]  ;;  %v11864_v1 = vor.u32 %v14271_v11, %v11861_v34  ;;  %v11589_v28 = vld [vmem:[%s15200_s2 + $0x11b0] sm:$0xf0]  ;;  %v7141_v46 = vadd.f32 %v7140_v20, %v7127_v43 }
 0x1d8   : > { %7444 = vmatpush.bf16.msrb.mxu3 %v11256_v21  ;;  %v14203_v10 = vld [vmem:[%s15200_s2 + $0x11a4] sm:$0xf]  ;;  %7403 = vmatmul.bf16.vlgmr.msrb.gmra.mxu0 %v15561_v33  ;;  %v11717_v19 = vld [vmem:[%s15200_s2 + $0x12b0] sm:$0xf0]  ;;  %v11464_v15 = vor.u32 %v14171_v55, %v11461_v35  ;;  %v7168_v21 = vpop.f32.mrf.mxu3 }
 0x1d9   : > { %7451 = vmatpush.bf16.msra.mxu0 %v11496_v53  ;;  %v14235_v54 = vld [vmem:[%s15200_s2 + $0x12a4] sm:$0xf]  ;;  %7417 = vmatmul.bf16.vlgmr.msrb.gmra.mxu1 %v15568_v42  ;;  %v11845_v59 = vld [vmem:[%s15200_s2 + $0x13b0] sm:$0xf0]  ;;  %v11592_v51 = vor.u32 %v14203_v10, %v11589_v28  ;;  %v7180_v53 = vpop.f32.mrf.mxu0  ;;  %v7155_v34 = vadd.f32 %v7154_v26, %v7141_v46 }
 0x1da   : > { %7465 = vmatpush.bf16.msra.mxu1 %v11624_v4  ;;  %7431 = vmatmul.bf16.vlgmr.msrb.gmra.mxu2 %v15566_v39  ;;  %v14267_v16 = vld [vmem:[%s15200_s2 + $0x13a4] sm:$0xf]  ;;  %v11720_v14 = vor.u32 %v14235_v54, %v11717_v19  ;;  %v11445_v18 = vld [vmem:[%s15200_s2 + $0x1090] sm:$0xf0]  ;;  %v7181_v13 = vadd.f32 %v7180_v53, %v7167_v25 }
 0x1db   : > { %7479 = vmatpush.bf16.msra.mxu2 %v11752_v23  ;;  %7445 = vmatmul.bf16.vlgmr.msrb.gmra.mxu3 %v15572_v47  ;;  %v14167_v63 = vld [vmem:[%s15200_s2 + $0x1084] sm:$0xf]  ;;  %v11573_v38 = vld [vmem:[%s15200_s2 + $0x1190] sm:$0xf0]  ;;  %v11848_v2 = vor.u32 %v14267_v16, %v11845_v59  ;;  %v7169_v16 = vadd.f32 %v7168_v21, %v7155_v34 }
 0x1dc   : > { %7493 = vmatpush.bf16.msra.mxu3 %v11880_v7  ;;  %v14199_v6 = vld [vmem:[%s15200_s2 + $0x1184] sm:$0xf]  ;;  %v11701_v5 = vld [vmem:[%s15200_s2 + $0x1290] sm:$0xf0]  ;;  %v11448_v4 = vor.u32 %v14167_v63, %v11445_v18 }
 0x1dd   : > { %7452 = vmatpush.bf16.msra.mxu0 %v11480_v62  ;;  %v14231_v8 = vld [vmem:[%s15200_s2 + $0x1284] sm:$0xf]  ;;  %v11829_v27 = vld [vmem:[%s15200_s2 + $0x1390] sm:$0xf0]  ;;  %v11576_v23 = vor.u32 %v14199_v6, %v11573_v38 }
 0x1de   : > { %7466 = vmatpush.bf16.msra.mxu1 %v11608_v0  ;;  %v14263_v22 = vld [vmem:[%s15200_s2 + $0x1384] sm:$0xf]  ;;  %v11704_v12 = vor.u32 %v14231_v8, %v11701_v5  ;;  %v11429_v50 = vld [vmem:[%s15200_s2 + $0x1070] sm:$0xf0]  ;;  %v7208_v19 = vpop.f32.mrf.mxu2  ;;  %v7196_v53 = vpop.f32.mrf.mxu1 }
 0x1df   : > { %7480 = vmatpush.bf16.msra.mxu2 %v11736_v58  ;;  %v14163_v7 = vld [vmem:[%s15200_s2 + $0x1064] sm:$0xf]  ;;  %v11832_v29 = vor.u32 %v14263_v22, %v11829_v27  ;;  %v11557_v31 = vld [vmem:[%s15200_s2 + $0x1170] sm:$0xf0]  ;;  %v7195_v58 = vadd.f32 %v7194_v49, %v7181_v13 }
 0x1e0   : > { %7494 = vmatpush.bf16.msra.mxu3 %v11864_v1  ;;  %v14195_v24 = vld [vmem:[%s15200_s2 + $0x1164] sm:$0xf]  ;;  %v11685_v11 = vld [vmem:[%s15200_s2 + $0x1270] sm:$0xf0]  ;;  %v11432_v61 = vor.u32 %v14163_v7, %v11429_v50  ;;  %v7222_v63 = vpop.f32.mrf.mxu3 }
 0x1e1   : > { %7453 = vmatpush.bf16.msra.mxu0 %v11464_v15  ;;  %v14227_v17 = vld [vmem:[%s15200_s2 + $0x1264] sm:$0xf]  ;;  %v11813_v20 = vld [vmem:[%s15200_s2 + $0x1370] sm:$0xf0]  ;;  %v11560_v55 = vor.u32 %v14195_v24, %v11557_v31  ;;  %v7209_v59 = vadd.f32 %v7208_v19, %v7195_v58  ;;  %v7182_v15 = vpop.f32.mrf.mxu0 }
 0x1e2   : > { %7467 = vmatpush.bf16.msra.mxu1 %v11592_v51  ;;  %v14259_v62 = vld [vmem:[%s15200_s2 + $0x1364] sm:$0xf]  ;;  %v11688_v35 = vor.u32 %v14227_v17, %v11685_v11  ;;  %v11413_v10 = vld [vmem:[%s15200_s2 + $0x1050] sm:$0xf0]  ;;  %v7183_v38 = vadd.f32 %v7182_v15, %v7169_v16 }
 0x1e3   : > { %7481 = vmatpush.bf16.msra.mxu2 %v11720_v14  ;;  %v14159_v0 = vld [vmem:[%s15200_s2 + $0x1044] sm:$0xf]  ;;  %v11541_v28 = vld [vmem:[%s15200_s2 + $0x1150] sm:$0xf0]  ;;  %v11816_v54 = vor.u32 %v14259_v62, %v11813_v20  ;;  %v7223_v26 = vadd.f32 %v7222_v63, %v7209_v59  ;;  %v471_v20 = vld [vmem:[#allocation2 + $0x8] sm:$0xff] }
 0x1e4   : > { %7495 = vmatpush.bf16.msra.mxu3 %v11848_v2  ;;  %v14191_v1 = vld [vmem:[%s15200_s2 + $0x1144] sm:$0xf]  ;;  %v11669_v3 = vld [vmem:[%s15200_s2 + $0x1250] sm:$0xf0]  ;;  %v11416_v18 = vor.u32 %v14159_v0, %v11413_v10  ;;  %v7197_v24 = vadd.f32 %v7196_v53, %v7183_v38 }
 0x1e5   : > { %7454 = vmatpush.bf16.msra.mxu0 %v11448_v4  ;;  %v14223_v30 = vld [vmem:[%s15200_s2 + $0x1244] sm:$0xf]  ;;  %v11797_v51 = vld [vmem:[%s15200_s2 + $0x1350] sm:$0xf0]  ;;  %v11544_v6 = vor.u32 %v14191_v1, %v11541_v28 }
 0x1e6   : > { %7468 = vmatpush.bf16.msra.mxu1 %v11576_v23  ;;  %v14255_v43 = vld [vmem:[%s15200_s2 + $0x1344] sm:$0xf]  ;;  %v467_v14 = vld [vmem:[#allocation2 + $0x30] sm:$0xff]  ;;  %v11672_v2 = vor.u32 %v14223_v30, %v11669_v3  ;;  %v7210_v62 = vpop.f32.mrf.mxu2 }
 0x1e7   : > { %7482 = vmatpush.bf16.msra.mxu2 %v11704_v12  ;;  %v14155_v8 = vld [vmem:[%s15200_s2 + $0x1024] sm:$0xf]  ;;  %v11397_v5 = vld [vmem:[%s15200_s2 + $0x1030] sm:$0xf0]  ;;  %v11800_v21 = vor.u32 %v14255_v43, %v11797_v51  ;;  %v8571_v23 = vadd.f32 %v7223_v26, %v467_v14 }
 0x1e8   : > { %7496 = vmatpush.bf16.msra.mxu3 %v11832_v29  ;;  %v14187_v25 = vld [vmem:[%s15200_s2 + $0x1124] sm:$0xf]  ;;  %v11525_v22 = vld [vmem:[%s15200_s2 + $0x1130] sm:$0xf0]  ;;  %v11400_v13 = vor.u32 %v14155_v8, %v11397_v5 }
 0x1e9   : > { %7455 = vmatpush.bf16.msra.mxu0 %v11432_v61  ;;  %v14219_v27 = vld [vmem:[%s15200_s2 + $0x1224] sm:$0xf]  ;;  %v11653_v4 = vld [vmem:[%s15200_s2 + $0x1230] sm:$0xf0]  ;;  %8579 = vst [vmem:[#allocation2 + $0x30] sm:$0xff] %v8571_v23  ;;  %v11528_v29 = vor.u32 %v14187_v25, %v11525_v22 }
 0x1ea   : > { %7469 = vmatpush.bf16.msra.mxu1 %v11560_v55  ;;  %v14251_v49 = vld [vmem:[%s15200_s2 + $0x1324] sm:$0xf]  ;;  %v11781_v46 = vld [vmem:[%s15200_s2 + $0x1330] sm:$0xf0]  ;;  %v11656_v31 = vor.u32 %v14219_v27, %v11653_v4  ;;  %v7211_v55 = vadd.f32 %v7210_v62, %v7197_v24 }
 0x1eb   : > { %7483 = vmatpush.bf16.msra.mxu2 %v11688_v35  ;;  %v14151_v12 = vld [vmem:[%s15200_s2 + $0x1004] sm:$0xf]  ;;  %v11381_v7 = vld [vmem:[%s15200_s2 + $0x1010] sm:$0xf0]  ;;  %v11784_v34 = vor.u32 %v14251_v49, %v11781_v46  ;;  %v7224_v35 = vpop.f32.mrf.mxu3 }
 0x1ec   : > { %7497 = vmatpush.bf16.msra.mxu3 %v11816_v54  ;;  %v14183_v50 = vld [vmem:[%s15200_s2 + $0x1104] sm:$0xf]  ;;  %v11509_v17 = vld [vmem:[%s15200_s2 + $0x1110] sm:$0xf0]  ;;  %v11384_v54 = vor.u32 %v14151_v12, %v11381_v7  ;;  %v7225_v16 = vadd.f32 %v7224_v35, %v7211_v55 }
 0x1ed   : > { %7456 = vmatpush.bf16.msra.mxu0 %v11416_v18  ;;  %v14215_v11 = vld [vmem:[%s15200_s2 + $0x1204] sm:$0xf]  ;;  %v11637_v61 = vld [vmem:[%s15200_s2 + $0x1210] sm:$0xf0]  ;;  %v11512_v59 = vor.u32 %v14183_v50, %v11509_v17 }
 0x1ee   : > { %7470 = vmatpush.bf16.msra.mxu1 %v11544_v6  ;;  %v14247_v0 = vld [vmem:[%s15200_s2 + $0x1304] sm:$0xf]  ;;  %v11765_v58 = vld [vmem:[%s15200_s2 + $0x1310] sm:$0xf0]  ;;  %v11640_v15 = vor.u32 %v14215_v11, %v11637_v61  ;;  %v8575_v18 = vadd.f32 %v7225_v16, %v471_v20 }
 0x1ef   : > { %7484 = vmatpush.bf16.msra.mxu2 %v11672_v2  ;;  %v14307_v10 = vld [vmem:[%s15200_s2 + $0x14e4] sm:$0xf]  ;;  %v12005_v1 = vld [vmem:[%s15200_s2 + $0x14f0] sm:$0xf0]  ;;  %v11768_v51 = vor.u32 %v14247_v0, %v11765_v58 }
 0x1f0   : > { %7498 = vmatpush.bf16.msra.mxu3 %v11800_v21  ;;  %v14339_v28 = vld [vmem:[%s15200_s2 + $0x15e4] sm:$0xf]  ;;  %v12133_v19 = vld [vmem:[%s15200_s2 + $0x15f0] sm:$0xf0]  ;;  %v12008_v14 = vor.u32 %v14307_v10, %v12005_v1  ;;  %8583 = vst [vmem:[#allocation2 + $0x8] sm:$0xff] %v8575_v18 }
 0x1f1   : > { %7457 = vmatpush.bf16.msra.mxu0 %v11400_v13  ;;  %v14371_v30 = vld [vmem:[%s15200_s2 + $0x16e4] sm:$0xf]  ;;  %v12261_v3 = vld [vmem:[%s15200_s2 + $0x16f0] sm:$0xf0]  ;;  %v12136_v6 = vor.u32 %v14339_v28, %v12133_v19 }
 0x1f2   : > { %7471 = vmatpush.bf16.msra.mxu1 %v11528_v29  ;;  %v14403_v63 = vld [vmem:[%s15200_s2 + $0x17e4] sm:$0xf]  ;;  %v12389_v43 = vld [vmem:[%s15200_s2 + $0x17f0] sm:$0xf0]  ;;  %v12264_v38 = vor.u32 %v14371_v30, %v12261_v3 }
 0x1f3   : > { %7485 = vmatpush.bf16.msra.mxu2 %v11656_v31  ;;  %v14303_v26 = vld [vmem:[%s15200_s2 + $0x14c4] sm:$0xf]  ;;  %v11989_v2 = vld [vmem:[%s15200_s2 + $0x14d0] sm:$0xf0]  ;;  %v12392_v5 = vor.u32 %v14403_v63, %v12389_v43 }
 0x1f4   : > { %7499 = vmatpush.bf16.msra.mxu3 %v11784_v34  ;;  %v14335_v8 = vld [vmem:[%s15200_s2 + $0x15c4] sm:$0xf]  ;;  %v12117_v25 = vld [vmem:[%s15200_s2 + $0x15d0] sm:$0xf0]  ;;  %v11992_v4 = vor.u32 %v14303_v26, %v11989_v2 }
 0x1f5   : > { %7458 = vmatpush.bf16.msra.mxu0 %v11384_v54  ;;  %v14367_v21 = vld [vmem:[%s15200_s2 + $0x16c4] sm:$0xf]  ;;  %v12245_v53 = vld [vmem:[%s15200_s2 + $0x16d0] sm:$0xf0]  ;;  %v12120_v23 = vor.u32 %v14335_v8, %v12117_v25 }
 0x1f6   : > { %7472 = vmatpush.bf16.msra.mxu1 %v11512_v59  ;;  %v14399_v22 = vld [vmem:[%s15200_s2 + $0x17c4] sm:$0xf]  ;;  %v12373_v27 = vld [vmem:[%s15200_s2 + $0x17d0] sm:$0xf0]  ;;  %v12248_v49 = vor.u32 %v14367_v21, %v12245_v53 }
 0x1f7   : > { %7486 = vmatpush.bf16.msra.mxu2 %v11640_v15  ;;  %v14299_v46 = vld [vmem:[%s15200_s2 + $0x14a4] sm:$0xf]  ;;  %v11973_v13 = vld [vmem:[%s15200_s2 + $0x14b0] sm:$0xf0]  ;;  %v12376_v7 = vor.u32 %v14399_v22, %v12373_v27 }
 0x1f8   : > { %7500 = vmatpush.bf16.msra.mxu3 %v11768_v51  ;;  %v14331_v12 = vld [vmem:[%s15200_s2 + $0x15a4] sm:$0xf]  ;;  %7459 = vmatmul.bf16.vlgmr.msra.gmra.mxu0 %v15645_v52  ;;  %v12101_v50 = vld [vmem:[%s15200_s2 + $0x15b0] sm:$0xf0]  ;;  %v11976_v11 = vor.u32 %v14299_v46, %v11973_v13 }
 0x1f9   : > { %7507 = vmatpush.bf16.msrb.mxu0 %v12008_v14  ;;  %v14363_v24 = vld [vmem:[%s15200_s2 + $0x16a4] sm:$0xf]  ;;  %v12229_v29 = vld [vmem:[%s15200_s2 + $0x16b0] sm:$0xf0]  ;;  %7473 = vmatmul.bf16.vlgmr.msra.gmra.mxu1 %v15652_v57  ;;  %v12104_v34 = vor.u32 %v14331_v12, %v12101_v50 }
 0x1fa   : > { %7521 = vmatpush.bf16.msrb.mxu1 %v12136_v6  ;;  %7487 = vmatmul.bf16.vlgmr.msra.gmra.mxu2 %v15650_v56  ;;  %v14395_v31 = vld [vmem:[%s15200_s2 + $0x17a4] sm:$0xf]  ;;  %v12357_v17 = vld [vmem:[%s15200_s2 + $0x17b0] sm:$0xf0]  ;;  %v12232_v62 = vor.u32 %v14363_v24, %v12229_v29 }
 0x1fb   : > { %7535 = vmatpush.bf16.msrb.mxu2 %v12264_v38  ;;  %7501 = vmatmul.bf16.vlgmr.msra.gmra.mxu3 %v15656_v60  ;;  %v14295_v20 = vld [vmem:[%s15200_s2 + $0x1484] sm:$0xf]  ;;  %v11957_v61 = vld [vmem:[%s15200_s2 + $0x1490] sm:$0xf0]  ;;  %v12360_v58 = vor.u32 %v14395_v31, %v12357_v17 }
 0x1fc   : > { %7549 = vmatpush.bf16.msrb.mxu3 %v12392_v5  ;;  %v14327_v0 = vld [vmem:[%s15200_s2 + $0x1584] sm:$0xf]  ;;  %v12085_v55 = vld [vmem:[%s15200_s2 + $0x1590] sm:$0xf0]  ;;  %v11960_v54 = vor.u32 %v14295_v20, %v11957_v61 }
 0x1fd   : > { %7508 = vmatpush.bf16.msrb.mxu0 %v11992_v4  ;;  %v14359_v35 = vld [vmem:[%s15200_s2 + $0x1684] sm:$0xf]  ;;  %v12213_v10 = vld [vmem:[%s15200_s2 + $0x1690] sm:$0xf0]  ;;  %v12088_v19 = vor.u32 %v14327_v0, %v12085_v55 }
 0x1fe   : > { %7522 = vmatpush.bf16.msrb.mxu1 %v12120_v23  ;;  %v14391_v1 = vld [vmem:[%s15200_s2 + $0x1784] sm:$0xf]  ;;  %v12341_v28 = vld [vmem:[%s15200_s2 + $0x1790] sm:$0xf0]  ;;  %v12216_v30 = vor.u32 %v14359_v35, %v12213_v10 }
 0x1ff   : > { %7536 = vmatpush.bf16.msrb.mxu2 %v12248_v49  ;;  %v14291_v3 = vld [vmem:[%s15200_s2 + $0x1464] sm:$0xf]  ;;  %v11941_v16 = vld [vmem:[%s15200_s2 + $0x1470] sm:$0xf0]  ;;  %v12344_v15 = vor.u32 %v14391_v1, %v12341_v28 }
 0x200   : > { %7550 = vmatpush.bf16.msrb.mxu3 %v12376_v7  ;;  %v14323_v59 = vld [vmem:[%s15200_s2 + $0x1564] sm:$0xf]  ;;  %v12069_v63 = vld [vmem:[%s15200_s2 + $0x1570] sm:$0xf0]  ;;  %v11944_v6 = vor.u32 %v14291_v3, %v11941_v16 }
 0x201   : > { %7509 = vmatpush.bf16.msrb.mxu0 %v11976_v11  ;;  %v14355_v43 = vld [vmem:[%s15200_s2 + $0x1664] sm:$0xf]  ;;  %v12197_v51 = vld [vmem:[%s15200_s2 + $0x1670] sm:$0xf0]  ;;  %v12072_v38 = vor.u32 %v14323_v59, %v12069_v63 }
 0x202   : > { %7523 = vmatpush.bf16.msrb.mxu1 %v12104_v34  ;;  %v14387_v14 = vld [vmem:[%s15200_s2 + $0x1764] sm:$0xf]  ;;  %v12325_v18 = vld [vmem:[%s15200_s2 + $0x1770] sm:$0xf0]  ;;  %v12200_v26 = vor.u32 %v14355_v43, %v12197_v51 }
 0x203   : > { %7537 = vmatpush.bf16.msrb.mxu2 %v12232_v62  ;;  %v14287_v2 = vld [vmem:[%s15200_s2 + $0x1444] sm:$0xf]  ;;  %v11925_v8 = vld [vmem:[%s15200_s2 + $0x1450] sm:$0xf0]  ;;  %v12328_v25 = vor.u32 %v14387_v14, %v12325_v18 }
 0x204   : > { %7551 = vmatpush.bf16.msrb.mxu3 %v12360_v58  ;;  %v14319_v5 = vld [vmem:[%s15200_s2 + $0x1544] sm:$0xf]  ;;  %v12053_v21 = vld [vmem:[%s15200_s2 + $0x1550] sm:$0xf0]  ;;  %v11928_v23 = vor.u32 %v14287_v2, %v11925_v8 }
 0x205   : > { %7510 = vmatpush.bf16.msrb.mxu0 %v11960_v54  ;;  %v14351_v53 = vld [vmem:[%s15200_s2 + $0x1644] sm:$0xf]  ;;  %v12181_v22 = vld [vmem:[%s15200_s2 + $0x1650] sm:$0xf0]  ;;  %v12056_v49 = vor.u32 %v14319_v5, %v12053_v21 }
 0x206   : > { %7524 = vmatpush.bf16.msrb.mxu1 %v12088_v19  ;;  %v14383_v27 = vld [vmem:[%s15200_s2 + $0x1744] sm:$0xf]  ;;  %v12309_v4 = vld [vmem:[%s15200_s2 + $0x1750] sm:$0xf0]  ;;  %v12184_v46 = vor.u32 %v14351_v53, %v12181_v22 }
 0x207   : > { %7538 = vmatpush.bf16.msrb.mxu2 %v12216_v30  ;;  %v14283_v13 = vld [vmem:[%s15200_s2 + $0x1424] sm:$0xf]  ;;  %v11909_v12 = vld [vmem:[%s15200_s2 + $0x1430] sm:$0xf0]  ;;  %v12312_v50 = vor.u32 %v14383_v27, %v12309_v4 }
 0x208   : > { %7552 = vmatpush.bf16.msrb.mxu3 %v12344_v15  ;;  %v14315_v7 = vld [vmem:[%s15200_s2 + $0x1524] sm:$0xf]  ;;  %v12037_v24 = vld [vmem:[%s15200_s2 + $0x1530] sm:$0xf0]  ;;  %v11912_v34 = vor.u32 %v14283_v13, %v11909_v12 }
 0x209   : > { %7511 = vmatpush.bf16.msrb.mxu0 %v11944_v6  ;;  %v14347_v29 = vld [vmem:[%s15200_s2 + $0x1624] sm:$0xf]  ;;  %v12165_v31 = vld [vmem:[%s15200_s2 + $0x1630] sm:$0xf0]  ;;  %v12040_v61 = vor.u32 %v14315_v7, %v12037_v24 }
 0x20a   : > { %7525 = vmatpush.bf16.msrb.mxu1 %v12072_v38  ;;  %v14379_v17 = vld [vmem:[%s15200_s2 + $0x1724] sm:$0xf]  ;;  %v12293_v11 = vld [vmem:[%s15200_s2 + $0x1730] sm:$0xf0]  ;;  %v12168_v0 = vor.u32 %v14347_v29, %v12165_v31 }
 0x20b   : > { %7539 = vmatpush.bf16.msrb.mxu2 %v12200_v26  ;;  %v14279_v62 = vld [vmem:[%s15200_s2 + $0x1404] sm:$0xf]  ;;  %v11893_v20 = vld [vmem:[%s15200_s2 + $0x1410] sm:$0xf0]  ;;  %v12296_v10 = vor.u32 %v14379_v17, %v12293_v11  ;;  %v18079_v11 = vld [vmem:[#allocation21_spill] sm:$0xff] }
 0x20c   : > { %7553 = vmatpush.bf16.msrb.mxu3 %v12328_v25  ;;  %v14311_v58 = vld [vmem:[%s15200_s2 + $0x1504] sm:$0xf]  ;;  %v12021_v55 = vld [vmem:[%s15200_s2 + $0x1510] sm:$0xf0]  ;;  %v11896_v16 = vor.u32 %v14279_v62, %v11893_v20 }
 0x20d   : > { %7512 = vmatpush.bf16.msrb.mxu0 %v11928_v23  ;;  %v14343_v35 = vld [vmem:[%s15200_s2 + $0x1604] sm:$0xf]  ;;  %v12149_v1 = vld [vmem:[%s15200_s2 + $0x1610] sm:$0xf0]  ;;  %v12024_v43 = vor.u32 %v14311_v58, %v12021_v55 }
 0x20e   : > { %7526 = vmatpush.bf16.msrb.mxu1 %v12056_v49  ;;  %v14375_v28 = vld [vmem:[%s15200_s2 + $0x1704] sm:$0xf]  ;;  %v12277_v54 = vld [vmem:[%s15200_s2 + $0x1710] sm:$0xf0]  ;;  %v12152_v51 = vor.u32 %v14343_v35, %v12149_v1 }
 0x20f   : > { %7540 = vmatpush.bf16.msrb.mxu2 %v12184_v46  ;;  %v14435_v19 = vld [vmem:[%s15200_s2 + $0x18e4] sm:$0xf]  ;;  %v12517_v30 = vld [vmem:[%s15200_s2 + $0x18f0] sm:$0xf0]  ;;  %v12280_v6 = vor.u32 %v14375_v28, %v12277_v54 }
 0x210   : > { %7554 = vmatpush.bf16.msrb.mxu3 %v12312_v50  ;;  %v14467_v3 = vld [vmem:[%s15200_s2 + $0x19e4] sm:$0xf]  ;;  %v12645_v59 = vld [vmem:[%s15200_s2 + $0x19f0] sm:$0xf0]  ;;  %v12520_v38 = vor.u32 %v14435_v19, %v12517_v30 }
 0x211   : > { %7513 = vmatpush.bf16.msrb.mxu0 %v11912_v34  ;;  %v14499_v15 = vld [vmem:[%s15200_s2 + $0x1ae4] sm:$0xf]  ;;  %v12773_v63 = vld [vmem:[%s15200_s2 + $0x1af0] sm:$0xf0]  ;;  %v12648_v26 = vor.u32 %v14467_v3, %v12645_v59 }
 0x212   : > { %7527 = vmatpush.bf16.msrb.mxu1 %v12040_v61  ;;  %v14531_v14 = vld [vmem:[%s15200_s2 + $0x1be4] sm:$0xf]  ;;  %v12901_v18 = vld [vmem:[%s15200_s2 + $0x1bf0] sm:$0xf0]  ;;  %v12776_v2 = vor.u32 %v14499_v15, %v12773_v63  ;;  %v18081_v61 = vld [vmem:[#allocation23_spill] sm:$0xff] }
 0x213   : > { %7541 = vmatpush.bf16.msrb.mxu2 %v12168_v0  ;;  %v14431_v8 = vld [vmem:[%s15200_s2 + $0x18c4] sm:$0xf]  ;;  %v12501_v5 = vld [vmem:[%s15200_s2 + $0x18d0] sm:$0xf0]  ;;  %v12904_v21 = vor.u32 %v14531_v14, %v12901_v18 }
 0x214   : > { %7555 = vmatpush.bf16.msrb.mxu3 %v12296_v10  ;;  %v14463_v25 = vld [vmem:[%s15200_s2 + $0x19c4] sm:$0xf]  ;;  %v12629_v53 = vld [vmem:[%s15200_s2 + $0x19d0] sm:$0xf0]  ;;  %v12504_v49 = vor.u32 %v14431_v8, %v12501_v5 }
 0x215   : > { %7514 = vmatpush.bf16.msrb.mxu0 %v11896_v16  ;;  %v14495_v22 = vld [vmem:[%s15200_s2 + $0x1ac4] sm:$0xf]  ;;  %v12757_v27 = vld [vmem:[%s15200_s2 + $0x1ad0] sm:$0xf0]  ;;  %v12632_v46 = vor.u32 %v14463_v25, %v12629_v53 }
 0x216   : > { %7528 = vmatpush.bf16.msrb.mxu1 %v12024_v43  ;;  %v14527_v4 = vld [vmem:[%s15200_s2 + $0x1bc4] sm:$0xf]  ;;  %v12885_v23 = vld [vmem:[%s15200_s2 + $0x1bd0] sm:$0xf0]  ;;  %v12760_v13 = vor.u32 %v14495_v22, %v12757_v27 }
 0x217   : > { %7542 = vmatpush.bf16.msrb.mxu2 %v12152_v51  ;;  %v14427_v12 = vld [vmem:[%s15200_s2 + $0x18a4] sm:$0xf]  ;;  %v12485_v7 = vld [vmem:[%s15200_s2 + $0x18b0] sm:$0xf0]  ;;  %v12888_v24 = vor.u32 %v14527_v4, %v12885_v23 }
 0x218   : > { %7556 = vmatpush.bf16.msrb.mxu3 %v12280_v6  ;;  %v14459_v50 = vld [vmem:[%s15200_s2 + $0x19a4] sm:$0xf]  ;;  %7515 = vmatmul.bf16.vlgmr.msrb.gmra.mxu0 %v15729_v9  ;;  %v12613_v29 = vld [vmem:[%s15200_s2 + $0x19b0] sm:$0xf0]  ;;  %v12488_v0 = vor.u32 %v14427_v12, %v12485_v7 }
 0x219   : > { %7563 = vmatpush.bf16.msra.mxu0 %v12520_v38  ;;  %v14491_v31 = vld [vmem:[%s15200_s2 + $0x1aa4] sm:$0xf]  ;;  %v12741_v17 = vld [vmem:[%s15200_s2 + $0x1ab0] sm:$0xf0]  ;;  %v12616_v58 = vor.u32 %v14459_v50, %v12613_v29 }
 0x21a   : > { %7577 = vmatpush.bf16.msra.mxu1 %v12648_v26  ;;  %7543 = vmatmul.bf16.vlgmr.msrb.gmra.mxu2 %v18079_v11  ;;  %v18080_v34 = vld [vmem:[#allocation22_spill] sm:$0xff]  ;;  %v14523_v62 = vld [vmem:[%s15200_s2 + $0x1ba4] sm:$0xf]  ;;  %v12744_v55 = vor.u32 %v14491_v31, %v12741_v17 }
 0x21b   : > { %7591 = vmatpush.bf16.msra.mxu2 %v12776_v2  ;;  %7529 = vmatmul.bf16.vlgmr.msrb.gmra.mxu1 %v18080_v34  ;;  %v12869_v20 = vld [vmem:[%s15200_s2 + $0x1bb0] sm:$0xf0]  ;;  %v14423_v35 = vld [vmem:[%s15200_s2 + $0x1884] sm:$0xf]  ;;  %v10459_v34 = vld [vmem:[%s15200_s2 + $0x8c8] sm:$0xf] }
 0x21c   : > { %7605 = vmatpush.bf16.msra.mxu3 %v12904_v21  ;;  %v12469_v10 = vld [vmem:[%s15200_s2 + $0x1890] sm:$0xf0]  ;;  %v14455_v1 = vld [vmem:[%s15200_s2 + $0x1984] sm:$0xf]  ;;  %v12872_v28 = vor.u32 %v14523_v62, %v12869_v20  ;;  %v13922_v11 = vld [vmem:[%s15200_s2 + $0x8d4] sm:$0xf0] }
 0x21d   : > { %7557 = vmatmul.bf16.vlgmr.msrb.gmra.mxu3 %v18081_v61  ;;  %7564 = vmatpush.bf16.msra.mxu0 %v12504_v49  ;;  %v12597_v54 = vld [vmem:[%s15200_s2 + $0x1990] sm:$0xf0]  ;;  %v14487_v19 = vld [vmem:[%s15200_s2 + $0x1a84] sm:$0xf]  ;;  %v12472_v59 = vor.u32 %v14423_v35, %v12469_v10  ;;  %v10603_v61 = vld [vmem:[%s15200_s2 + $0x9e8] sm:$0xf] }
 0x21e   : > { %7578 = vmatpush.bf16.msra.mxu1 %v12632_v46  ;;  %v12725_v30 = vld [vmem:[%s15200_s2 + $0x1a90] sm:$0xf0]  ;;  %v14519_v3 = vld [vmem:[%s15200_s2 + $0x1b84] sm:$0xf]  ;;  %v12600_v15 = vor.u32 %v14455_v1, %v12597_v54 }
 0x21f   : > { %7592 = vmatpush.bf16.msra.mxu2 %v12760_v13  ;;  %v12853_v16 = vld [vmem:[%s15200_s2 + $0x1b90] sm:$0xf0]  ;;  %v12728_v63 = vor.u32 %v14487_v19, %v12725_v30  ;;  %v14419_v43 = vld [vmem:[%s15200_s2 + $0x1864] sm:$0xf] }
 0x220   : > { %7606 = vmatpush.bf16.msra.mxu3 %v12888_v24  ;;  %v12453_v51 = vld [vmem:[%s15200_s2 + $0x1870] sm:$0xf0]  ;;  %v14451_v14 = vld [vmem:[%s15200_s2 + $0x1964] sm:$0xf]  ;;  %v12856_v18 = vor.u32 %v14519_v3, %v12853_v16 }
 0x221   : > { %7565 = vmatpush.bf16.msra.mxu0 %v12488_v0  ;;  %v12581_v6 = vld [vmem:[%s15200_s2 + $0x1970] sm:$0xf0]  ;;  %v14483_v38 = vld [vmem:[%s15200_s2 + $0x1a64] sm:$0xf]  ;;  %v12456_v5 = vor.u32 %v14419_v43, %v12453_v51 }
 0x222   : > { %7579 = vmatpush.bf16.msra.mxu1 %v12616_v58  ;;  %v12709_v26 = vld [vmem:[%s15200_s2 + $0x1a70] sm:$0xf0]  ;;  %v14515_v2 = vld [vmem:[%s15200_s2 + $0x1b64] sm:$0xf]  ;;  %v12584_v25 = vor.u32 %v14451_v14, %v12581_v6 }
 0x223   : > { %7593 = vmatpush.bf16.msra.mxu2 %v12744_v55  ;;  %v12837_v8 = vld [vmem:[%s15200_s2 + $0x1b70] sm:$0xf0]  ;;  %v12712_v21 = vor.u32 %v14483_v38, %v12709_v26  ;;  %v14415_v53 = vld [vmem:[%s15200_s2 + $0x1844] sm:$0xf] }
 0x224   : > { %7607 = vmatpush.bf16.msra.mxu3 %v12872_v28  ;;  %v12437_v22 = vld [vmem:[%s15200_s2 + $0x1850] sm:$0xf0]  ;;  %v14447_v27 = vld [vmem:[%s15200_s2 + $0x1944] sm:$0xf]  ;;  %v12840_v4 = vor.u32 %v14515_v2, %v12837_v8 }
 0x225   : > { %7566 = vmatpush.bf16.msra.mxu0 %v12472_v59  ;;  %v12565_v23 = vld [vmem:[%s15200_s2 + $0x1950] sm:$0xf0]  ;;  %v14479_v49 = vld [vmem:[%s15200_s2 + $0x1a44] sm:$0xf]  ;;  %v12440_v7 = vor.u32 %v14415_v53, %v12437_v22 }
 0x226   : > { %7580 = vmatpush.bf16.msra.mxu1 %v12600_v15  ;;  %v12693_v46 = vld [vmem:[%s15200_s2 + $0x1a50] sm:$0xf0]  ;;  %v14511_v13 = vld [vmem:[%s15200_s2 + $0x1b44] sm:$0xf]  ;;  %v12568_v50 = vor.u32 %v14447_v27, %v12565_v23 }
 0x227   : > { %7594 = vmatpush.bf16.msra.mxu2 %v12728_v63  ;;  %v12821_v12 = vld [vmem:[%s15200_s2 + $0x1b50] sm:$0xf0]  ;;  %v12696_v24 = vor.u32 %v14479_v49, %v12693_v46  ;;  %v14411_v29 = vld [vmem:[%s15200_s2 + $0x1824] sm:$0xf] }
 0x228   : > { %7608 = vmatpush.bf16.msra.mxu3 %v12856_v18  ;;  %v12421_v31 = vld [vmem:[%s15200_s2 + $0x1830] sm:$0xf0]  ;;  %v14443_v17 = vld [vmem:[%s15200_s2 + $0x1924] sm:$0xf]  ;;  %v12824_v62 = vor.u32 %v14511_v13, %v12821_v12 }
 0x229   : > { %7567 = vmatpush.bf16.msra.mxu0 %v12456_v5  ;;  %v12549_v20 = vld [vmem:[%s15200_s2 + $0x1930] sm:$0xf0]  ;;  %v14475_v0 = vld [vmem:[%s15200_s2 + $0x1a24] sm:$0xf]  ;;  %v12424_v10 = vor.u32 %v14411_v29, %v12421_v31 }
 0x22a   : > { %7581 = vmatpush.bf16.msra.mxu1 %v12584_v25  ;;  %v12677_v58 = vld [vmem:[%s15200_s2 + $0x1a30] sm:$0xf0]  ;;  %v14507_v55 = vld [vmem:[%s15200_s2 + $0x1b24] sm:$0xf]  ;;  %v12552_v54 = vor.u32 %v14443_v17, %v12549_v20 }
 0x22b   : > { %7595 = vmatpush.bf16.msra.mxu2 %v12712_v21  ;;  %v12805_v35 = vld [vmem:[%s15200_s2 + $0x1b30] sm:$0xf0]  ;;  %v14407_v1 = vld [vmem:[%s15200_s2 + $0x1804] sm:$0xf]  ;;  %v12680_v19 = vor.u32 %v14475_v0, %v12677_v58 }
 0x22c   : > { %7609 = vmatpush.bf16.msra.mxu3 %v12840_v4  ;;  %v12405_v28 = vld [vmem:[%s15200_s2 + $0x1810] sm:$0xf0]  ;;  %v14439_v30 = vld [vmem:[%s15200_s2 + $0x1904] sm:$0xf]  ;;  %v12808_v59 = vor.u32 %v14507_v55, %v12805_v35 }
 0x22d   : > { %7568 = vmatpush.bf16.msra.mxu0 %v12440_v7  ;;  %v12533_v3 = vld [vmem:[%s15200_s2 + $0x1910] sm:$0xf0]  ;;  %v14471_v16 = vld [vmem:[%s15200_s2 + $0x1a04] sm:$0xf]  ;;  %v12408_v6 = vor.u32 %v14407_v1, %v12405_v28 }
 0x22e   : > { %7582 = vmatpush.bf16.msra.mxu1 %v12568_v50  ;;  %v12661_v15 = vld [vmem:[%s15200_s2 + $0x1a10] sm:$0xf0]  ;;  %v14503_v63 = vld [vmem:[%s15200_s2 + $0x1b04] sm:$0xf]  ;;  %v12536_v8 = vor.u32 %v14439_v30, %v12533_v3 }
 0x22f   : > { %7596 = vmatpush.bf16.msra.mxu2 %v12696_v24  ;;  %v12789_v43 = vld [vmem:[%s15200_s2 + $0x1b10] sm:$0xf0]  ;;  %v14563_v51 = vld [vmem:[%s15200_s2 + $0x1ce4] sm:$0xf]  ;;  %v12664_v5 = vor.u32 %v14471_v16, %v12661_v15  ;;  %v18085_v16 = vld [vmem:[#allocation27_spill] sm:$0xff] }
 0x230   : > { %7610 = vmatpush.bf16.msra.mxu3 %v12824_v62  ;;  %v13029_v14 = vld [vmem:[%s15200_s2 + $0x1cf0] sm:$0xf0]  ;;  %v14595_v18 = vld [vmem:[%s15200_s2 + $0x1de4] sm:$0xf]  ;;  %v12792_v53 = vor.u32 %v14503_v63, %v12789_v43 }
 0x231   : > { %7569 = vmatpush.bf16.msra.mxu0 %v12424_v10  ;;  %v13157_v38 = vld [vmem:[%s15200_s2 + $0x1df0] sm:$0xf0]  ;;  %v14627_v26 = vld [vmem:[%s15200_s2 + $0x1ee4] sm:$0xf]  ;;  %v13032_v22 = vor.u32 %v14563_v51, %v13029_v14 }
 0x232   : > { %v13285_v2 = vld [vmem:[%s15200_s2 + $0x1ef0] sm:$0xf0]  ;;  %7583 = vmatpush.bf16.msra.mxu1 %v12552_v54  ;;  %v14659_v25 = vld [vmem:[%s15200_s2 + $0x1fe4] sm:$0xf]  ;;  %v13160_v27 = vor.u32 %v14595_v18, %v13157_v38  ;;  %v18083_v54 = vld [vmem:[#allocation25_spill] sm:$0xff] }
 0x233   : > { %7597 = vmatpush.bf16.msra.mxu2 %v12680_v19  ;;  %v13413_v21 = vld [vmem:[%s15200_s2 + $0x1ff0] sm:$0xf0]  ;;  %v13288_v4 = vor.u32 %v14627_v26, %v13285_v2  ;;  %v14559_v23 = vld [vmem:[%s15200_s2 + $0x1cc4] sm:$0xf] }
 0x234   : > { %7611 = vmatpush.bf16.msra.mxu3 %v12808_v59  ;;  %v13013_v49 = vld [vmem:[%s15200_s2 + $0x1cd0] sm:$0xf0]  ;;  %v14591_v46 = vld [vmem:[%s15200_s2 + $0x1dc4] sm:$0xf]  ;;  %v13416_v13 = vor.u32 %v14659_v25, %v13413_v21 }
 0x235   : > { %7570 = vmatpush.bf16.msra.mxu0 %v12408_v6  ;;  %v13141_v12 = vld [vmem:[%s15200_s2 + $0x1dd0] sm:$0xf0]  ;;  %v14623_v7 = vld [vmem:[%s15200_s2 + $0x1ec4] sm:$0xf]  ;;  %v13016_v31 = vor.u32 %v14559_v23, %v13013_v49 }
 0x236   : > { %v13269_v50 = vld [vmem:[%s15200_s2 + $0x1ed0] sm:$0xf0]  ;;  %7584 = vmatpush.bf16.msra.mxu1 %v12536_v8  ;;  %v14655_v24 = vld [vmem:[%s15200_s2 + $0x1fc4] sm:$0xf]  ;;  %v13144_v17 = vor.u32 %v14591_v46, %v13141_v12 }
 0x237   : > { %7598 = vmatpush.bf16.msra.mxu2 %v12664_v5  ;;  %v13397_v29 = vld [vmem:[%s15200_s2 + $0x1fd0] sm:$0xf0]  ;;  %v13272_v62 = vor.u32 %v14623_v7, %v13269_v50  ;;  %v14555_v20 = vld [vmem:[%s15200_s2 + $0x1ca4] sm:$0xf] }
 0x238   : > { %7612 = vmatpush.bf16.msra.mxu3 %v12792_v53  ;;  %v12997_v0 = vld [vmem:[%s15200_s2 + $0x1cb0] sm:$0xf0]  ;;  %v14587_v58 = vld [vmem:[%s15200_s2 + $0x1da4] sm:$0xf]  ;;  %v13400_v35 = vor.u32 %v14655_v24, %v13397_v29 }
 0x239   : > { %7619 = vmatpush.bf16.msrb.mxu0 %v13032_v22  ;;  %v18082_v55 = vld [vmem:[#allocation24_spill] sm:$0xff]  ;;  %v13125_v10 = vld [vmem:[%s15200_s2 + $0x1db0] sm:$0xf0]  ;;  %v13000_v59 = vor.u32 %v14555_v20, %v12997_v0 }
 0x23a   : > { %7633 = vmatpush.bf16.msrb.mxu1 %v13160_v27  ;;  %7571 = vmatmul.bf16.vlgmr.msra.gmra.mxu0 %v18082_v55  ;;  %v14619_v1 = vld [vmem:[%s15200_s2 + $0x1ea4] sm:$0xf]  ;;  %v13253_v28 = vld [vmem:[%s15200_s2 + $0x1eb0] sm:$0xf0]  ;;  %v13128_v15 = vor.u32 %v14587_v58, %v13125_v10  ;;  %v13926_v55 = vld [vmem:[%s15200_s2 + $0x8f4] sm:$0xf0] }
 0x23b   : > { %7647 = vmatpush.bf16.msrb.mxu2 %v13288_v4  ;;  %v18084_v19 = vld [vmem:[#allocation26_spill] sm:$0xff]  ;;  %v14651_v30 = vld [vmem:[%s15200_s2 + $0x1fa4] sm:$0xf]  ;;  %7613 = vmatmul.bf16.vlgmr.msra.gmra.mxu3 %v18085_v16  ;;  %v13256_v63 = vor.u32 %v14619_v1, %v13253_v28  ;;  %v10283_v16 = vld [vmem:[%s15200_s2 + $0x768] sm:$0xf] }
 0x23c   : > { %7661 = vmatpush.bf16.msrb.mxu3 %v13416_v13  ;;  %7599 = vmatmul.bf16.vlgmr.msra.gmra.mxu2 %v18083_v54  ;;  %v13381_v3 = vld [vmem:[%s15200_s2 + $0x1fb0] sm:$0xf0]  ;;  %v14551_v43 = vld [vmem:[%s15200_s2 + $0x1c84] sm:$0xf]  ;;  %v10475_v54 = vld [vmem:[%s15200_s2 + $0x8e8] sm:$0xf] }
 0x23d   : > { %7585 = vmatmul.bf16.vlgmr.msra.gmra.mxu1 %v18084_v19  ;;  %7620 = vmatpush.bf16.msrb.mxu0 %v13016_v31  ;;  %v12981_v51 = vld [vmem:[%s15200_s2 + $0x1c90] sm:$0xf0]  ;;  %v14583_v14 = vld [vmem:[%s15200_s2 + $0x1d84] sm:$0xf]  ;;  %v13384_v18 = vor.u32 %v14651_v30, %v13381_v3  ;;  %v13866_v19 = vld [vmem:[%s15200_s2 + $0x714] sm:$0xf0] }
 0x23e   : > { %7634 = vmatpush.bf16.msrb.mxu1 %v13144_v17  ;;  %v13109_v6 = vld [vmem:[%s15200_s2 + $0x1d90] sm:$0xf0]  ;;  %v14615_v38 = vld [vmem:[%s15200_s2 + $0x1e84] sm:$0xf]  ;;  %v12984_v5 = vor.u32 %v14551_v43, %v12981_v51 }
 0x23f   : > { %7648 = vmatpush.bf16.msrb.mxu2 %v13272_v62  ;;  %v13237_v26 = vld [vmem:[%s15200_s2 + $0x1e90] sm:$0xf0]  ;;  %v14647_v2 = vld [vmem:[%s15200_s2 + $0x1f84] sm:$0xf]  ;;  %v13112_v25 = vor.u32 %v14583_v14, %v13109_v6 }
 0x240   : > { %7662 = vmatpush.bf16.msrb.mxu3 %v13400_v35  ;;  %v13365_v8 = vld [vmem:[%s15200_s2 + $0x1f90] sm:$0xf0]  ;;  %v13240_v21 = vor.u32 %v14615_v38, %v13237_v26  ;;  %v14547_v53 = vld [vmem:[%s15200_s2 + $0x1c64] sm:$0xf] }
 0x241   : > { %7621 = vmatpush.bf16.msrb.mxu0 %v13000_v59  ;;  %v12965_v22 = vld [vmem:[%s15200_s2 + $0x1c70] sm:$0xf0]  ;;  %v14579_v27 = vld [vmem:[%s15200_s2 + $0x1d64] sm:$0xf]  ;;  %v13368_v4 = vor.u32 %v14647_v2, %v13365_v8 }
 0x242   : > { %7635 = vmatpush.bf16.msrb.mxu1 %v13128_v15  ;;  %v13093_v23 = vld [vmem:[%s15200_s2 + $0x1d70] sm:$0xf0]  ;;  %v14611_v49 = vld [vmem:[%s15200_s2 + $0x1e64] sm:$0xf]  ;;  %v12968_v7 = vor.u32 %v14547_v53, %v12965_v22 }
 0x243   : > { %7649 = vmatpush.bf16.msrb.mxu2 %v13256_v63  ;;  %v13221_v46 = vld [vmem:[%s15200_s2 + $0x1e70] sm:$0xf0]  ;;  %v14643_v13 = vld [vmem:[%s15200_s2 + $0x1f64] sm:$0xf]  ;;  %v13096_v50 = vor.u32 %v14579_v27, %v13093_v23 }
 0x244   : > { %7663 = vmatpush.bf16.msrb.mxu3 %v13384_v18  ;;  %v13349_v12 = vld [vmem:[%s15200_s2 + $0x1f70] sm:$0xf0]  ;;  %v13224_v24 = vor.u32 %v14611_v49, %v13221_v46  ;;  %v14543_v29 = vld [vmem:[%s15200_s2 + $0x1c44] sm:$0xf]  ;;  %v9451_v49 = vld [vmem:[%s15200_s2 + $0xe8] sm:$0xf] }
 0x245   : > { %7622 = vmatpush.bf16.msrb.mxu0 %v12984_v5  ;;  %v12949_v31 = vld [vmem:[%s15200_s2 + $0x1c50] sm:$0xf0]  ;;  %v14575_v17 = vld [vmem:[%s15200_s2 + $0x1d44] sm:$0xf]  ;;  %v13352_v62 = vor.u32 %v14643_v13, %v13349_v12  ;;  %v13670_v46 = vld [vmem:[%s15200_s2 + $0xf4] sm:$0xf0] }
 0x246   : > { %7636 = vmatpush.bf16.msrb.mxu1 %v13112_v25  ;;  %v13077_v20 = vld [vmem:[%s15200_s2 + $0x1d50] sm:$0xf0]  ;;  %v14607_v0 = vld [vmem:[%s15200_s2 + $0x1e44] sm:$0xf]  ;;  %v12952_v1 = vor.u32 %v14543_v29, %v12949_v31  ;;  %v9579_v13 = vld [vmem:[%s15200_s2 + $0x1e8] sm:$0xf] }
 0x247   : > { %7650 = vmatpush.bf16.msrb.mxu2 %v13240_v21  ;;  %v13205_v58 = vld [vmem:[%s15200_s2 + $0x1e50] sm:$0xf0]  ;;  %v14639_v35 = vld [vmem:[%s15200_s2 + $0x1f44] sm:$0xf]  ;;  %v13080_v28 = vor.u32 %v14575_v17, %v13077_v20  ;;  %v9835_v17 = vld [vmem:[%s15200_s2 + $0x3e8] sm:$0xf] }
 0x248   : > { %7664 = vmatpush.bf16.msrb.mxu3 %v13368_v4  ;;  %v13333_v10 = vld [vmem:[%s15200_s2 + $0x1f50] sm:$0xf0]  ;;  %v13208_v30 = vor.u32 %v14607_v0, %v13205_v58  ;;  %v14539_v3 = vld [vmem:[%s15200_s2 + $0x1c24] sm:$0xf]  ;;  %v9452_v0 = vor.u32 %v13670_v46, %v9451_v49  ;;  %v13758_v49 = vld [vmem:[%s15200_s2 + $0x3b4] sm:$0xf0] }
 0x249   : > { %7623 = vmatpush.bf16.msrb.mxu0 %v12968_v7  ;;  %v12933_v59 = vld [vmem:[%s15200_s2 + $0x1c30] sm:$0xf0]  ;;  %v14571_v15 = vld [vmem:[%s15200_s2 + $0x1d24] sm:$0xf]  ;;  %v13336_v63 = vor.u32 %v14639_v35, %v13333_v10  ;;  %v13702_v7 = vld [vmem:[%s15200_s2 + $0x1f4] sm:$0xf0] }
 0x24a   : > { %7637 = vmatpush.bf16.msrb.mxu1 %v13096_v50  ;;  %v13061_v43 = vld [vmem:[%s15200_s2 + $0x1d30] sm:$0xf0]  ;;  %v14603_v51 = vld [vmem:[%s15200_s2 + $0x1e24] sm:$0xf]  ;;  %v12936_v38 = vor.u32 %v14539_v3, %v12933_v59  ;;  %v9707_v50 = vld [vmem:[%s15200_s2 + $0x2e8] sm:$0xf]  ;;  %v9580_v58 = vor.u32 %v13702_v7, %v9579_v13 }
 0x24b   : > { %7651 = vmatpush.bf16.msrb.mxu2 %v13224_v24  ;;  %v13189_v14 = vld [vmem:[%s15200_s2 + $0x1e30] sm:$0xf0]  ;;  %v14635_v18 = vld [vmem:[%s15200_s2 + $0x1f24] sm:$0xf]  ;;  %v13064_v8 = vor.u32 %v14571_v15, %v13061_v43  ;;  %v13734_v24 = vld [vmem:[%s15200_s2 + $0x2f4] sm:$0xf0] }
 0x24c   : > { %7665 = vmatpush.bf16.msrb.mxu3 %v13352_v62  ;;  %v13317_v6 = vld [vmem:[%s15200_s2 + $0x1f30] sm:$0xf0]  ;;  %v14535_v26 = vld [vmem:[%s15200_s2 + $0x1c04] sm:$0xf]  ;;  %v13192_v5 = vor.u32 %v14603_v51, %v13189_v14  ;;  %v13766_v62 = vld [vmem:[%s15200_s2 + $0x3f4] sm:$0xf0]  ;;  %v9708_v35 = vor.u32 %v13734_v24, %v9707_v50  ;;  %v16600_v14 = vpop.f32.mrf.mxu1 }
 0x24d   : > { %7624 = vmatpush.bf16.msrb.mxu0 %v12952_v1  ;;  %v12917_v2 = vld [vmem:[%s15200_s2 + $0x1c10] sm:$0xf0]  ;;  %v14567_v25 = vld [vmem:[%s15200_s2 + $0x1d04] sm:$0xf]  ;;  %v13320_v22 = vor.u32 %v14635_v18, %v13317_v6  ;;  %v9435_v10 = vld [vmem:[%s15200_s2 + $0xc8] sm:$0xf] }
 0x24e   : > { %7638 = vmatpush.bf16.msrb.mxu1 %v13080_v28  ;;  %v13045_v21 = vld [vmem:[%s15200_s2 + $0x1d10] sm:$0xf0]  ;;  %v14599_v53 = vld [vmem:[%s15200_s2 + $0x1e04] sm:$0xf]  ;;  %v12920_v12 = vor.u32 %v14535_v26, %v12917_v2  ;;  %v13666_v1 = vld [vmem:[%s15200_s2 + $0xd4] sm:$0xf0] }
 0x24f   : > { %7652 = vmatpush.bf16.msrb.mxu2 %v13208_v30  ;;  %v13173_v27 = vld [vmem:[%s15200_s2 + $0x1e10] sm:$0xf0]  ;;  %v14631_v4 = vld [vmem:[%s15200_s2 + $0x1f04] sm:$0xf]  ;;  %v13048_v29 = vor.u32 %v14567_v25, %v13045_v21  ;;  %v9563_v28 = vld [vmem:[%s15200_s2 + $0x1c8] sm:$0xf]  ;;  %v9836_v30 = vor.u32 %v13766_v62, %v9835_v17  ;;  %v9436_v18 = vor.u32 %v13666_v1, %v9435_v10 }
 0x250   : > { %7666 = vmatpush.bf16.msrb.mxu3 %v13336_v63  ;;  %v13301_v23 = vld [vmem:[%s15200_s2 + $0x1f10] sm:$0xf0]  ;;  %v13176_v31 = vor.u32 %v14599_v53, %v13173_v27  ;;  %v13698_v3 = vld [vmem:[%s15200_s2 + $0x1d4] sm:$0xf0]  ;;  %v9691_v59 = vld [vmem:[%s15200_s2 + $0x2c8] sm:$0xf]  ;;  %v16596_v63 = vpop.f32.mrf.mxu0 }
 0x251   : > { %7625 = vmatpush.bf16.msrb.mxu0 %v12936_v38  ;;  %v13304_v20 = vor.u32 %v14631_v4, %v13301_v23  ;;  %v13730_v15 = vld [vmem:[%s15200_s2 + $0x2d4] sm:$0xf0]  ;;  %v9819_v43 = vld [vmem:[%s15200_s2 + $0x3c8] sm:$0xf]  ;;  %v9564_v6 = vor.u32 %v13698_v3, %v9563_v28 }
 0x252   : > { %7639 = vmatpush.bf16.msrb.mxu1 %v13064_v8  ;;  %v13762_v51 = vld [vmem:[%s15200_s2 + $0x3d4] sm:$0xf0]  ;;  %v9692_v38 = vor.u32 %v13730_v15, %v9691_v59  ;;  %v9419_v26 = vld [vmem:[%s15200_s2 + $0xa8] sm:$0xf] }
 0x253   : > { %7653 = vmatpush.bf16.msrb.mxu2 %v13192_v5  ;;  %v13662_v2 = vld [vmem:[%s15200_s2 + $0xb4] sm:$0xf0]  ;;  %v9547_v8 = vld [vmem:[%s15200_s2 + $0x1a8] sm:$0xf]  ;;  %v9820_v25 = vor.u32 %v13762_v51, %v9819_v43 }
 0x254   : > { %7667 = vmatpush.bf16.msrb.mxu3 %v13320_v22  ;;  %v18086_v5 = vld [vmem:[#allocation28_spill] sm:$0xff]  ;;  %v13694_v21 = vld [vmem:[%s15200_s2 + $0x1b4] sm:$0xf0]  ;;  %v18087_v27 = vld [vmem:[#allocation29_spill] sm:$0xff]  ;;  %v9420_v13 = vor.u32 %v13662_v2, %v9419_v26  ;;  %v16631_v51 = vpop.f32.mrf.mxu1 }
 0x255   : > { %7626 = vmatpush.bf16.msrb.mxu0 %v12920_v12  ;;  %v9675_v53 = vld [vmem:[%s15200_s2 + $0x2a8] sm:$0xf]  ;;  %v13726_v22 = vld [vmem:[%s15200_s2 + $0x2b4] sm:$0xf0]  ;;  %v9548_v12 = vor.u32 %v13694_v21, %v9547_v8 }
 0x256   : > { %7640 = vmatpush.bf16.msrb.mxu1 %v13048_v29  ;;  %v18088_v4 = vld [vmem:[#allocation30_spill] sm:$0xff]  ;;  %v9803_v23 = vld [vmem:[%s15200_s2 + $0x3a8] sm:$0xf]  ;;  %v18089_v46 = vld [vmem:[#allocation31_spill] sm:$0xff]  ;;  %v9676_v7 = vor.u32 %v13726_v22, %v9675_v53 }
 0x257   : > { %7654 = vmatpush.bf16.msrb.mxu2 %v13176_v31  ;;  %v9403_v50 = vld [vmem:[%s15200_s2 + $0x88] sm:$0xf]  ;;  %v13658_v24 = vld [vmem:[%s15200_s2 + $0x94] sm:$0xf0]  ;;  %v16617_v31 = vpop.f32.mrf.mxu2  ;;  %v9804_v17 = vor.u32 %v13758_v49, %v9803_v23 }
 0x258   : > { %7668 = vmatpush.bf16.msrb.mxu3 %v13304_v20  ;;  %7627 = vmatmul.bf16.vlgmr.msrb.gmra.mxu0 %v18086_v5  ;;  %v9531_v29 = vld [vmem:[%s15200_s2 + $0x188] sm:$0xf]  ;;  %v13690_v62 = vld [vmem:[%s15200_s2 + $0x194] sm:$0xf0]  ;;  %v9404_v1 = vor.u32 %v13658_v24, %v9403_v50  ;;  %v16626_v28 = vpop.f32.mrf.mxu0 }
 0x259   : > { %7675 = vmatpush.bf16.msra.mxu0 %v9452_v0  ;;  %7641 = vmatmul.bf16.vlgmr.msrb.gmra.mxu1 %v18088_v4  ;;  %v9659_v20 = vld [vmem:[%s15200_s2 + $0x288] sm:$0xf]  ;;  %v13722_v0 = vld [vmem:[%s15200_s2 + $0x294] sm:$0xf0] }
 0x25a   : > { %7689 = vmatpush.bf16.msra.mxu1 %v9580_v58  ;;  %7655 = vmatmul.bf16.vlgmr.msrb.gmra.mxu2 %v18087_v27  ;;  %v16622_v58 = vpop.f32.mrf.mxu3  ;;  %v13754_v10 = vld [vmem:[%s15200_s2 + $0x394] sm:$0xf0]  ;;  %v9660_v3 = vor.u32 %v13722_v0, %v9659_v20  ;;  %v9387_v59 = vld [vmem:[%s15200_s2 + $0x68] sm:$0xf] }
 0x25b   : > { %7703 = vmatpush.bf16.msra.mxu2 %v9708_v35  ;;  %7669 = vmatmul.bf16.vlgmr.msrb.gmra.mxu3 %v18089_v46  ;;  %v9787_v35 = vld [vmem:[%s15200_s2 + $0x388] sm:$0xf]  ;;  %v13654_v15 = vld [vmem:[%s15200_s2 + $0x74] sm:$0xf0] }
 0x25c   : > { %7717 = vmatpush.bf16.msra.mxu3 %v9836_v30  ;;  %v9532_v30 = vor.u32 %v13690_v62, %v9531_v29  ;;  %v9515_v43 = vld [vmem:[%s15200_s2 + $0x168] sm:$0xf]  ;;  %v13718_v26 = vld [vmem:[%s15200_s2 + $0x274] sm:$0xf0] }
 0x25d   : > { %7676 = vmatpush.bf16.msra.mxu0 %v9436_v18  ;;  %v9788_v18 = vor.u32 %v13754_v10, %v9787_v35  ;;  %v9771_v2 = vld [vmem:[%s15200_s2 + $0x368] sm:$0xf]  ;;  %v13750_v8 = vld [vmem:[%s15200_s2 + $0x374] sm:$0xf0] }
 0x25e   : > { %7690 = vmatpush.bf16.msra.mxu1 %v9564_v6  ;;  %v13686_v6 = vld [vmem:[%s15200_s2 + $0x174] sm:$0xf0]  ;;  %v9371_v22 = vld [vmem:[%s15200_s2 + $0x48] sm:$0xf] }
 0x25f   : > { %7704 = vmatpush.bf16.msra.mxu2 %v9692_v38  ;;  %v9643_v38 = vld [vmem:[%s15200_s2 + $0x268] sm:$0xf]  ;;  %v9516_v21 = vor.u32 %v13686_v6, %v9515_v43  ;;  %v13650_v23 = vld [vmem:[%s15200_s2 + $0x54] sm:$0xf0] }
 0x260   : > { %7718 = vmatpush.bf16.msra.mxu3 %v9820_v25  ;;  %v9388_v25 = vor.u32 %v13654_v15, %v9387_v59  ;;  %v9644_v53 = vor.u32 %v13718_v26, %v9643_v38  ;;  %v9499_v49 = vld [vmem:[%s15200_s2 + $0x148] sm:$0xf]  ;;  %v13714_v50 = vld [vmem:[%s15200_s2 + $0x254] sm:$0xf0]  ;;  %v9372_v62 = vor.u32 %v13650_v23, %v9371_v22  ;;  %v16660_v26 = vpop.f32.mrf.mxu1 }
 0x261   : > { %7677 = vmatpush.bf16.msra.mxu0 %v9420_v13  ;;  %v9772_v13 = vor.u32 %v13750_v8, %v9771_v2  ;;  %v9755_v24 = vld [vmem:[%s15200_s2 + $0x348] sm:$0xf]  ;;  %v13746_v29 = vld [vmem:[%s15200_s2 + $0x354] sm:$0xf0] }
 0x262   : > { %7691 = vmatpush.bf16.msra.mxu1 %v9548_v12  ;;  %v13682_v12 = vld [vmem:[%s15200_s2 + $0x154] sm:$0xf0]  ;;  %v16648_v20 = vpop.f32.mrf.mxu3  ;;  %v9355_v10 = vld [vmem:[%s15200_s2 + $0x28] sm:$0xf] }
 0x263   : > { %7705 = vmatpush.bf16.msra.mxu2 %v9676_v7  ;;  %v9627_v7 = vld [vmem:[%s15200_s2 + $0x248] sm:$0xf]  ;;  %v9500_v0 = vor.u32 %v13682_v12, %v9499_v49  ;;  %v13678_v59 = vld [vmem:[%s15200_s2 + $0x134] sm:$0xf0] }
 0x264   : > { %7719 = vmatpush.bf16.msra.mxu3 %v9804_v17  ;;  %v16646_v17 = vpop.f32.mrf.mxu2  ;;  %v9628_v35 = vor.u32 %v13714_v50, %v9627_v7  ;;  %v9611_v15 = vld [vmem:[%s15200_s2 + $0x228] sm:$0xf]  ;;  %v13710_v43 = vld [vmem:[%s15200_s2 + $0x234] sm:$0xf0] }
 0x265   : > { %7678 = vmatpush.bf16.msra.mxu0 %v9404_v1  ;;  %v13646_v1 = vld [vmem:[%s15200_s2 + $0x34] sm:$0xf0]  ;;  %v9739_v6 = vld [vmem:[%s15200_s2 + $0x328] sm:$0xf] }
 0x266   : > { %7692 = vmatpush.bf16.msra.mxu1 %v9532_v30  ;;  %v9483_v30 = vld [vmem:[%s15200_s2 + $0x128] sm:$0xf]  ;;  %v13742_v38 = vld [vmem:[%s15200_s2 + $0x334] sm:$0xf0]  ;;  %v9356_v2 = vor.u32 %v13646_v1, %v9355_v10 }
 0x267   : > { %7706 = vmatpush.bf16.msra.mxu2 %v9660_v3  ;;  %v9756_v3 = vor.u32 %v13746_v29, %v9755_v24  ;;  %v9339_v8 = vld [vmem:[%s15200_s2 + $0x8] sm:$0xf]  ;;  %v13674_v23 = vld [vmem:[%s15200_s2 + $0x114] sm:$0xf0] }
 0x268   : > { %7720 = vmatpush.bf16.msra.mxu3 %v9788_v18  ;;  %v16656_v18 = vpop.f32.mrf.mxu0  ;;  %v9467_v22 = vld [vmem:[%s15200_s2 + $0x108] sm:$0xf]  ;;  %v13706_v12 = vld [vmem:[%s15200_s2 + $0x214] sm:$0xf0] }
 0x269   : > { %7679 = vmatpush.bf16.msra.mxu0 %v9388_v25  ;;  %v13642_v25 = vld [vmem:[%s15200_s2 + $0x14] sm:$0xf0]  ;;  %v9595_v49 = vld [vmem:[%s15200_s2 + $0x208] sm:$0xf] }
 0x26a   : > { %7693 = vmatpush.bf16.msra.mxu1 %v9516_v21  ;;  %v9484_v21 = vor.u32 %v13678_v59, %v9483_v30  ;;  %v9723_v7 = vld [vmem:[%s15200_s2 + $0x308] sm:$0xf]  ;;  %v13738_v50 = vld [vmem:[%s15200_s2 + $0x314] sm:$0xf0]  ;;  %v9468_v30 = vor.u32 %v13674_v23, %v9467_v22 }
 0x26b   : > { %7707 = vmatpush.bf16.msra.mxu2 %v9644_v53  ;;  %v9612_v53 = vor.u32 %v13710_v43, %v9611_v15  ;;  %v9963_v24 = vld [vmem:[%s15200_s2 + $0x4e8] sm:$0xf]  ;;  %v13798_v29 = vld [vmem:[%s15200_s2 + $0x4f4] sm:$0xf0] }
 0x26c   : > { %7721 = vmatpush.bf16.msra.mxu3 %v9772_v13  ;;  %v9740_v13 = vor.u32 %v13742_v38, %v9739_v6  ;;  %v10219_v10 = vld [vmem:[%s15200_s2 + $0x6e8] sm:$0xf]  ;;  %v13862_v1 = vld [vmem:[%s15200_s2 + $0x6f4] sm:$0xf0]  ;;  %v16678_v43 = vpop.f32.mrf.mxu2  ;;  %v9724_v6 = vor.u32 %v13738_v50, %v9723_v7  ;;  %v9964_v38 = vor.u32 %v13798_v29, %v9963_v24  ;;  %v16692_v24 = vpop.f32.mrf.mxu1 }
 0x26d   : > { %7680 = vmatpush.bf16.msra.mxu0 %v9372_v62  ;;  %v10091_v62 = vld [vmem:[%s15200_s2 + $0x5e8] sm:$0xf]  ;;  %v13894_v15 = vld [vmem:[%s15200_s2 + $0x7f4] sm:$0xf0] }
 0x26e   : > { %7694 = vmatpush.bf16.msra.mxu1 %v9500_v0  ;;  %v9340_v0 = vor.u32 %v13642_v25, %v9339_v8  ;;  %v10347_v59 = vld [vmem:[%s15200_s2 + $0x7e8] sm:$0xf]  ;;  %v10220_v25 = vor.u32 %v13862_v1, %v10219_v10  ;;  %v13858_v46 = vld [vmem:[%s15200_s2 + $0x6d4] sm:$0xf0] }
 0x26f   : > { %7708 = vmatpush.bf16.msra.mxu2 %v9628_v35  ;;  %v13830_v35 = vld [vmem:[%s15200_s2 + $0x5f4] sm:$0xf0]  ;;  %v10075_v22 = vld [vmem:[%s15200_s2 + $0x5c8] sm:$0xf]  ;;  %v10348_v23 = vor.u32 %v13894_v15, %v10347_v59 }
 0x270   : > { %7722 = vmatpush.bf16.msra.mxu3 %v9756_v3  ;;  %v9596_v3 = vor.u32 %v13706_v12, %v9595_v49  ;;  %v10092_v8 = vor.u32 %v13830_v35, %v10091_v62  ;;  %v13826_v49 = vld [vmem:[%s15200_s2 + $0x5d4] sm:$0xf0]  ;;  %v10203_v12 = vld [vmem:[%s15200_s2 + $0x6c8] sm:$0xf] }
 0x271   : > { %7681 = vmatpush.bf16.msra.mxu0 %v9356_v2  ;;  %v16680_v2 = vpop.f32.mrf.mxu3  ;;  %v10331_v7 = vld [vmem:[%s15200_s2 + $0x7c8] sm:$0xf]  ;;  %v13890_v50 = vld [vmem:[%s15200_s2 + $0x7d4] sm:$0xf0]  ;;  %v10076_v62 = vor.u32 %v13826_v49, %v10075_v22 }
 0x272   : > { %7695 = vmatpush.bf16.msra.mxu1 %v9484_v21  ;;  %v9947_v21 = vld [vmem:[%s15200_s2 + $0x4c8] sm:$0xf]  ;;  %v13790_v10 = vld [vmem:[%s15200_s2 + $0x4b4] sm:$0xf0] }
 0x273   : > { %7709 = vmatpush.bf16.msra.mxu2 %v9612_v53  ;;  %v13794_v53 = vld [vmem:[%s15200_s2 + $0x4d4] sm:$0xf0]  ;;  %v9931_v35 = vld [vmem:[%s15200_s2 + $0x4a8] sm:$0xf] }
 0x274   : > { %7723 = vmatpush.bf16.msra.mxu3 %v9740_v13  ;;  %v16688_v13 = vpop.f32.mrf.mxu0  ;;  %v9948_v29 = vor.u32 %v13794_v53, %v9947_v21  ;;  %v10059_v1 = vld [vmem:[%s15200_s2 + $0x5a8] sm:$0xf]  ;;  %v13854_v15 = vld [vmem:[%s15200_s2 + $0x6b4] sm:$0xf0] }
 0x275   : > { %7682 = vmatpush.bf16.msra.mxu0 %v9340_v0  ;;  %v10204_v0 = vor.u32 %v13858_v46, %v10203_v12  ;;  %v10187_v59 = vld [vmem:[%s15200_s2 + $0x6a8] sm:$0xf]  ;;  %v13886_v4 = vld [vmem:[%s15200_s2 + $0x7b4] sm:$0xf0]  ;;  %v9932_v46 = vor.u32 %v13790_v10, %v9931_v35 }
 0x276   : > { %7696 = vmatpush.bf16.msra.mxu1 %v9468_v30  ;;  %v10332_v30 = vor.u32 %v13890_v50, %v10331_v7  ;;  %v18091_v21 = vld [vmem:[#allocation18_spill] sm:$0xff]  ;;  %v10188_v22 = vor.u32 %v13854_v15, %v10187_v59  ;;  %v10043_v12 = vld [vmem:[%s15200_s2 + $0x588] sm:$0xf]  ;;  %v16709_v7 = vpop.f32.mrf.mxu2 }
 0x277   : > { %7710 = vmatpush.bf16.msra.mxu2 %v9596_v3  ;;  %v13822_v3 = vld [vmem:[%s15200_s2 + $0x5b4] sm:$0xf0]  ;;  %v9899_v15 = vld [vmem:[%s15200_s2 + $0x468] sm:$0xf] }
 0x278   : > { %7724 = vmatpush.bf16.msra.mxu3 %v9724_v6  ;;  %v18090_v6 = vld [vmem:[#allocation17_spill] sm:$0xff]  ;;  %v10060_v53 = vor.u32 %v13822_v3, %v10059_v1  ;;  %v13786_v49 = vld [vmem:[%s15200_s2 + $0x494] sm:$0xf0]  ;;  %v16720_v3 = vpop.f32.mrf.mxu1 }
 0x279   : > { %7731 = vmatpush.bf16.msrb.mxu0 %v9964_v38  ;;  %v10315_v38 = vld [vmem:[%s15200_s2 + $0x7a8] sm:$0xf]  ;;  %v13850_v35 = vld [vmem:[%s15200_s2 + $0x694] sm:$0xf0]  ;;  %v16714_v10 = vpop.f32.mrf.mxu3 }
 0x27a   : > { %7745 = vmatpush.bf16.msrb.mxu1 %v10092_v8  ;;  %7683 = vmatmul.bf16.vlgmr.msra.gmra.mxu0 %v18090_v6  ;;  %v18092_v8 = vld [vmem:[#allocation19_spill] sm:$0xff]  ;;  %v10316_v50 = vor.u32 %v13886_v4, %v10315_v38  ;;  %v10155_v27 = vld [vmem:[%s15200_s2 + $0x668] sm:$0xf] }
 0x27b   : > { %7759 = vmatpush.bf16.msrb.mxu2 %v10220_v25  ;;  %7697 = vmatmul.bf16.vlgmr.msra.gmra.mxu1 %v18092_v8  ;;  %v18093_v25 = vld [vmem:[#allocation20_spill] sm:$0xff]  ;;  %v13818_v8 = vld [vmem:[%s15200_s2 + $0x594] sm:$0xf0] }
 0x27c   : > { %7773 = vmatpush.bf16.msrb.mxu3 %v10348_v23  ;;  %7711 = vmatmul.bf16.vlgmr.msra.gmra.mxu2 %v18091_v21  ;;  %v9915_v23 = vld [vmem:[%s15200_s2 + $0x488] sm:$0xf]  ;;  %v13882_v1 = vld [vmem:[%s15200_s2 + $0x794] sm:$0xf0] }
 0x27d   : > { %7732 = vmatpush.bf16.msrb.mxu0 %v9948_v29  ;;  %7725 = vmatmul.bf16.vlgmr.msra.gmra.mxu3 %v18093_v25  ;;  %v10171_v29 = vld [vmem:[%s15200_s2 + $0x688] sm:$0xf]  ;;  %v9916_v4 = vor.u32 %v13786_v49, %v9915_v23  ;;  %v13782_v38 = vld [vmem:[%s15200_s2 + $0x474] sm:$0xf0] }
 0x27e   : > { %7746 = vmatpush.bf16.msrb.mxu1 %v10076_v62  ;;  %v16716_v62 = vpop.f32.mrf.mxu0  ;;  %v10172_v59 = vor.u32 %v13850_v35, %v10171_v29  ;;  %v10027_v25 = vld [vmem:[%s15200_s2 + $0x568] sm:$0xf]  ;;  %v13814_v6 = vld [vmem:[%s15200_s2 + $0x574] sm:$0xf0]  ;;  %v16735_v29 = vpop.f32.mrf.mxu2 }
 0x27f   : > { %7760 = vmatpush.bf16.msrb.mxu2 %v10204_v0  ;;  %v10299_v0 = vld [vmem:[%s15200_s2 + $0x788] sm:$0xf]  ;;  %v13846_v5 = vld [vmem:[%s15200_s2 + $0x674] sm:$0xf0] }
 0x280   : > { %7774 = vmatpush.bf16.msrb.mxu3 %v10332_v30  ;;  %v10044_v30 = vor.u32 %v13818_v8, %v10043_v12  ;;  %v10300_v21 = vor.u32 %v13882_v1, %v10299_v0  ;;  %v7251_v8 = vadd.f32 %v16600_v14, %v16596_v63  ;;  %v10156_v23 = vor.u32 %v13846_v5, %v10155_v27  ;;  %v9883_v49 = vld [vmem:[%s15200_s2 + $0x448] sm:$0xf]  ;;  %v13778_v12 = vld [vmem:[%s15200_s2 + $0x454] sm:$0xf0] }
 0x281   : > { %7733 = vmatpush.bf16.msrb.mxu0 %v9932_v46  ;;  %v13878_v46 = vld [vmem:[%s15200_s2 + $0x774] sm:$0xf0]  ;;  %v10139_v1 = vld [vmem:[%s15200_s2 + $0x648] sm:$0xf]  ;;  %v9884_v5 = vor.u32 %v13778_v12, %v9883_v49 }
 0x282   : > { %7747 = vmatpush.bf16.msrb.mxu1 %v10060_v53  ;;  %v9900_v53 = vor.u32 %v13782_v38, %v9899_v15  ;;  %v10284_v35 = vor.u32 %v13878_v46, %v10283_v16  ;;  %v13810_v0 = vld [vmem:[%s15200_s2 + $0x554] sm:$0xf0]  ;;  %v16740_v15 = vpop.f32.mrf.mxu3  ;;  %v10267_v63 = vld [vmem:[%s15200_s2 + $0x748] sm:$0xf]  ;;  %v7265_v27 = vadd.f32 %v16617_v31, %v7251_v8  ;;  %v16750_v38 = vpop.f32.mrf.mxu1 }
 0x283   : > { %7761 = vmatpush.bf16.msrb.mxu2 %v10188_v22  ;;  %v10028_v22 = vor.u32 %v13814_v6, %v10027_v25  ;;  %v13874_v14 = vld [vmem:[%s15200_s2 + $0x754] sm:$0xf0]  ;;  %v9867_v25 = vld [vmem:[%s15200_s2 + $0x428] sm:$0xf] }
 0x284   : > { %7775 = vmatpush.bf16.msrb.mxu3 %v10316_v50  ;;  %v10011_v50 = vld [vmem:[%s15200_s2 + $0x548] sm:$0xf]  ;;  %v10268_v46 = vor.u32 %v13874_v14, %v10267_v63  ;;  %v13838_v8 = vld [vmem:[%s15200_s2 + $0x634] sm:$0xf0] }
 0x285   : > { %7734 = vmatpush.bf16.msrb.mxu0 %v9916_v4  ;;  %v13842_v4 = vld [vmem:[%s15200_s2 + $0x654] sm:$0xf0]  ;;  %v10012_v16 = vor.u32 %v13810_v0, %v10011_v50  ;;  %v10123_v31 = vld [vmem:[%s15200_s2 + $0x628] sm:$0xf] }
 0x286   : > { %7748 = vmatpush.bf16.msrb.mxu1 %v10044_v30  ;;  %v16745_v6 = vpop.f32.mrf.mxu0  ;;  %v13774_v30 = vld [vmem:[%s15200_s2 + $0x434] sm:$0xf0]  ;;  %v10251_v49 = vld [vmem:[%s15200_s2 + $0x728] sm:$0xf] }
 0x287   : > { %7762 = vmatpush.bf16.msrb.mxu2 %v10172_v59  ;;  %v9995_v59 = vld [vmem:[%s15200_s2 + $0x528] sm:$0xf]  ;;  %v13770_v50 = vld [vmem:[%s15200_s2 + $0x414] sm:$0xf0] }
 0x288   : > { %7776 = vmatpush.bf16.msrb.mxu3 %v10300_v21  ;;  %v10140_v21 = vor.u32 %v13842_v4, %v10139_v1  ;;  %v9851_v12 = vld [vmem:[%s15200_s2 + $0x408] sm:$0xf]  ;;  %v10124_v1 = vor.u32 %v13838_v8, %v10123_v31  ;;  %v13802_v63 = vld [vmem:[%s15200_s2 + $0x514] sm:$0xf0] }
 0x289   : > { %7735 = vmatpush.bf16.msrb.mxu0 %v9900_v53  ;;  %v13806_v53 = vld [vmem:[%s15200_s2 + $0x534] sm:$0xf0]  ;;  %v9979_v4 = vld [vmem:[%s15200_s2 + $0x508] sm:$0xf] }
 0x28a   : > { %7749 = vmatpush.bf16.msrb.mxu1 %v10028_v22  ;;  %v13870_v22 = vld [vmem:[%s15200_s2 + $0x734] sm:$0xf0]  ;;  %v9996_v0 = vor.u32 %v13806_v53, %v9995_v59  ;;  %v10107_v14 = vld [vmem:[%s15200_s2 + $0x608] sm:$0xf]  ;;  %v16777_v31 = vpop.f32.mrf.mxu3 }
 0x28b   : > { %7763 = vmatpush.bf16.msrb.mxu2 %v10156_v23  ;;  %v9868_v23 = vor.u32 %v13774_v30, %v9867_v25  ;;  %v13834_v25 = vld [vmem:[%s15200_s2 + $0x614] sm:$0xf0]  ;;  %v10235_v30 = vld [vmem:[%s15200_s2 + $0x708] sm:$0xf] }
 0x28c   : > { %7777 = vmatpush.bf16.msrb.mxu3 %v10284_v35  ;;  %v7279_v35 = vadd.f32 %v16622_v58, %v7265_v27  ;;  %v7253_v58 = vadd.f32 %v16631_v51, %v16626_v28  ;;  %v16771_v27 = vpop.f32.mrf.mxu2  ;;  %v10731_v59 = vld [vmem:[%s15200_s2 + $0xae8] sm:$0xf]  ;;  %v13990_v53 = vld [vmem:[%s15200_s2 + $0xaf4] sm:$0xf0]  ;;  %v10108_v28 = vor.u32 %v13834_v25, %v10107_v14 }
 0x28d   : > { %7736 = vmatpush.bf16.msrb.mxu0 %v9884_v5  ;;  %v10252_v5 = vor.u32 %v13870_v22, %v10251_v49  ;;  %v9980_v49 = vor.u32 %v13802_v63, %v9979_v4  ;;  %v10859_v51 = vld [vmem:[%s15200_s2 + $0xbe8] sm:$0xf]  ;;  %v14022_v22 = vld [vmem:[%s15200_s2 + $0xbf4] sm:$0xf0] }
 0x28e   : > { %7750 = vmatpush.bf16.msrb.mxu1 %v10012_v16  ;;  %v9852_v16 = vor.u32 %v13770_v50, %v9851_v12  ;;  %v16779_v8 = vpop.f32.mrf.mxu0  ;;  %v10236_v12 = vor.u32 %v13866_v19, %v10235_v30  ;;  %v10860_v4 = vor.u32 %v14022_v22, %v10859_v51  ;;  %v13954_v63 = vld [vmem:[%s15200_s2 + $0x9d4] sm:$0xf0]  ;;  %v10715_v14 = vld [vmem:[%s15200_s2 + $0xac8] sm:$0xf] }
 0x28f   : > { %7764 = vmatpush.bf16.msrb.mxu2 %v10140_v21  ;;  %v13958_v21 = vld [vmem:[%s15200_s2 + $0x9f4] sm:$0xf0]  ;;  %v10443_v30 = vld [vmem:[%s15200_s2 + $0x8a8] sm:$0xf] }
 0x290   : > { %7778 = vmatpush.bf16.msrb.mxu3 %v10268_v46  ;;  %v7293_v46 = vadd.f32 %v16656_v18, %v7279_v35  ;;  %v10476_v18 = vor.u32 %v13926_v55, %v10475_v54  ;;  %v10604_v50 = vor.u32 %v13958_v21, %v10603_v61  ;;  %v10732_v35 = vor.u32 %v13990_v53, %v10731_v59  ;;  %v13986_v25 = vld [vmem:[%s15200_s2 + $0xad4] sm:$0xf0]  ;;  %v10843_v55 = vld [vmem:[%s15200_s2 + $0xbc8] sm:$0xf] }
 0x291   : > { %7737 = vmatpush.bf16.msrb.mxu0 %v9868_v23  ;;  %v16783_v23 = vpop.f32.mrf.mxu1  ;;  %v14018_v61 = vld [vmem:[%s15200_s2 + $0xbd4] sm:$0xf0]  ;;  %v10460_v54 = vor.u32 %v13922_v11, %v10459_v34 }
 0x292   : > { %7751 = vmatpush.bf16.msrb.mxu1 %v9996_v0  ;;  %v10587_v0 = vld [vmem:[%s15200_s2 + $0x9c8] sm:$0xf]  ;;  %v7307_v19 = vadd.f32 %v16660_v26, %v7293_v46  ;;  %v10844_v59 = vor.u32 %v14018_v61, %v10843_v55  ;;  %v13950_v53 = vld [vmem:[%s15200_s2 + $0x9b4] sm:$0xf0] }
 0x293   : > { %7765 = vmatpush.bf16.msrb.mxu2 %v10124_v1  ;;  %v7267_v1 = vadd.f32 %v16646_v17, %v7253_v58  ;;  %v10588_v17 = vor.u32 %v13954_v63, %v10587_v0  ;;  %v13918_v58 = vld [vmem:[%s15200_s2 + $0x8b4] sm:$0xf0]  ;;  %v10699_v46 = vld [vmem:[%s15200_s2 + $0xaa8] sm:$0xf] }
 0x294   : > { %7779 = vmatpush.bf16.msrb.mxu3 %v10252_v5  ;;  %v10716_v5 = vor.u32 %v13986_v25, %v10715_v14  ;;  %v16799_v21 = vpop.f32.mrf.mxu2  ;;  %v13982_v11 = vld [vmem:[%s15200_s2 + $0xab4] sm:$0xf0]  ;;  %v7321_v34 = vadd.f32 %v16678_v43, %v7307_v19  ;;  %v10444_v22 = vor.u32 %v13918_v58, %v10443_v30  ;;  %v10555_v0 = vld [vmem:[%s15200_s2 + $0x988] sm:$0xf] }
 0x295   : > { %7738 = vmatpush.bf16.msrb.mxu0 %v9852_v16  ;;  %v10571_v16 = vld [vmem:[%s15200_s2 + $0x9a8] sm:$0xf]  ;;  %v7281_v26 = vadd.f32 %v16648_v20, %v7267_v1  ;;  %v13978_v14 = vld [vmem:[%s15200_s2 + $0xa94] sm:$0xf0] }
 0x296   : > { %7752 = vmatpush.bf16.msrb.mxu1 %v9980_v49  ;;  %v16806_v49 = vpop.f32.mrf.mxu3  ;;  %v10827_v20 = vld [vmem:[%s15200_s2 + $0xba8] sm:$0xf]  ;;  %v16814_v43 = vpop.f32.mrf.mxu0  ;;  %v7335_v25 = vadd.f32 %v16680_v2, %v7321_v34  ;;  %v14010_v55 = vld [vmem:[%s15200_s2 + $0xb94] sm:$0xf0] }
 0x297   : > { %7766 = vmatpush.bf16.msrb.mxu2 %v10108_v28  ;;  %v14014_v28 = vld [vmem:[%s15200_s2 + $0xbb4] sm:$0xf0]  ;;  %v7295_v51 = vadd.f32 %v16688_v13, %v7281_v26  ;;  %v10683_v63 = vld [vmem:[%s15200_s2 + $0xa88] sm:$0xf] }
 0x298   : > { %7780 = vmatpush.bf16.msrb.mxu3 %v10236_v12  ;;  %7739 = vmatmul.bf16.vlgmr.msrb.gmra.mxu0 %v15393_v40  ;;  %v10572_v12 = vor.u32 %v13950_v53, %v10571_v16  ;;  %v10828_v13 = vor.u32 %v14014_v28, %v10827_v20  ;;  %v10811_v19 = vld [vmem:[%s15200_s2 + $0xb88] sm:$0xf]  ;;  %v10684_v30 = vor.u32 %v13978_v14, %v10683_v63  ;;  %v13910_v16 = vld [vmem:[%s15200_s2 + $0x874] sm:$0xf0] }
 0x299   : > { %7787 = vmatpush.bf16.msra.mxu0 %v10476_v18  ;;  %7753 = vmatmul.bf16.vlgmr.msrb.gmra.mxu1 %v15400_v45  ;;  %v10700_v18 = vor.u32 %v13982_v11, %v10699_v46  ;;  %v16819_v1 = vpop.f32.mrf.mxu1  ;;  %v7309_v61 = vadd.f32 %v16692_v24, %v7295_v51  ;;  %v10411_v58 = vld [vmem:[%s15200_s2 + $0x868] sm:$0xf]  ;;  %v13942_v24 = vld [vmem:[%s15200_s2 + $0x974] sm:$0xf0] }
 0x29a   : > { %7801 = vmatpush.bf16.msra.mxu1 %v10604_v50  ;;  %7767 = vmatmul.bf16.vlgmr.msrb.gmra.mxu2 %v15398_v44  ;;  %v10427_v50 = vld [vmem:[%s15200_s2 + $0x888] sm:$0xf]  ;;  %v13974_v46 = vld [vmem:[%s15200_s2 + $0xa74] sm:$0xf0]  ;;  %v10412_v20 = vor.u32 %v13910_v16, %v10411_v58 }
 0x29b   : > { %7815 = vmatpush.bf16.msra.mxu2 %v10732_v35  ;;  %7781 = vmatmul.bf16.vlgmr.msrb.gmra.mxu3 %v15404_v48  ;;  %v13914_v35 = vld [vmem:[%s15200_s2 + $0x894] sm:$0xf0]  ;;  %v10539_v2 = vld [vmem:[%s15200_s2 + $0x968] sm:$0xf]  ;;  %v7323_v26 = vadd.f32 %v16709_v7, %v7309_v61 }
 0x29c   : > { %7829 = vmatpush.bf16.msra.mxu3 %v10860_v4  ;;  %v13946_v4 = vld [vmem:[%s15200_s2 + $0x994] sm:$0xf0]  ;;  %v10667_v53 = vld [vmem:[%s15200_s2 + $0xa68] sm:$0xf] }
 0x29d   : > { %7788 = vmatpush.bf16.msra.mxu0 %v10460_v54  ;;  %v10428_v54 = vor.u32 %v13914_v35, %v10427_v50  ;;  %v10795_v11 = vld [vmem:[%s15200_s2 + $0xb68] sm:$0xf]  ;;  %v14006_v34 = vld [vmem:[%s15200_s2 + $0xb74] sm:$0xf0] }
 0x29e   : > { %7802 = vmatpush.bf16.msra.mxu1 %v10588_v17  ;;  %v7349_v17 = vadd.f32 %v16716_v62, %v7335_v25  ;;  %v16838_v62 = vpop.f32.mrf.mxu2  ;;  %v16841_v7 = vpop.f32.mrf.mxu3  ;;  %v13906_v50 = vld [vmem:[%s15200_s2 + $0x854] sm:$0xf0]  ;;  %v10523_v35 = vld [vmem:[%s15200_s2 + $0x948] sm:$0xf] }
 0x29f   : > { %7816 = vmatpush.bf16.msra.mxu2 %v10716_v5  ;;  %v10556_v5 = vor.u32 %v13946_v4, %v10555_v0  ;;  %v16843_v51 = vpop.f32.mrf.mxu0  ;;  %v7337_v0 = vadd.f32 %v16714_v10, %v7323_v26  ;;  %v13938_v4 = vld [vmem:[%s15200_s2 + $0x954] sm:$0xf0]  ;;  %v10651_v63 = vld [vmem:[%s15200_s2 + $0xa48] sm:$0xf] }
 0x2a0   : > { %7830 = vmatpush.bf16.msra.mxu3 %v10844_v59  ;;  %v10812_v59 = vor.u32 %v14010_v55, %v10811_v19  ;;  %v7363_v28 = vadd.f32 %v16720_v3, %v7349_v17  ;;  %v10796_v3 = vor.u32 %v14006_v34, %v10795_v11  ;;  %v13970_v14 = vld [vmem:[%s15200_s2 + $0xa54] sm:$0xf0]  ;;  %v10779_v19 = vld [vmem:[%s15200_s2 + $0xb48] sm:$0xf] }
 0x2a1   : > { %7789 = vmatpush.bf16.msra.mxu0 %v10444_v22  ;;  %v10540_v22 = vor.u32 %v13942_v24, %v10539_v2  ;;  %v14002_v55 = vld [vmem:[%s15200_s2 + $0xb54] sm:$0xf0]  ;;  %v7351_v61 = vadd.f32 %v16745_v6, %v7337_v0  ;;  %v10652_v17 = vor.u32 %v13970_v14, %v10651_v63  ;;  %v10507_v58 = vld [vmem:[%s15200_s2 + $0x928] sm:$0xf] }
 0x2a2   : > { %7803 = vmatpush.bf16.msra.mxu1 %v10572_v12  ;;  %v10668_v12 = vor.u32 %v13974_v46, %v10667_v53  ;;  %v7377_v25 = vadd.f32 %v16735_v29, %v7363_v28  ;;  %v10780_v29 = vor.u32 %v14002_v55, %v10779_v19  ;;  %v13934_v16 = vld [vmem:[%s15200_s2 + $0x934] sm:$0xf0]  ;;  %v10635_v2 = vld [vmem:[%s15200_s2 + $0xa28] sm:$0xf] }
 0x2a3   : > { %7817 = vmatpush.bf16.msra.mxu2 %v10700_v18  ;;  %v10395_v18 = vld [vmem:[%s15200_s2 + $0x848] sm:$0xf]  ;;  %v13966_v26 = vld [vmem:[%s15200_s2 + $0xa34] sm:$0xf0]  ;;  %v7365_v53 = vadd.f32 %v16750_v38, %v7351_v61 }
 0x2a4   : > { %7831 = vmatpush.bf16.msra.mxu3 %v10828_v13  ;;  %v16849_v13 = vpop.f32.mrf.mxu1  ;;  %v10396_v10 = vor.u32 %v13906_v50, %v10395_v18  ;;  %v7391_v6 = vadd.f32 %v16740_v15, %v7377_v25  ;;  %v13998_v24 = vld [vmem:[%s15200_s2 + $0xb34] sm:$0xf0]  ;;  %v10363_v34 = vld [vmem:[%s15200_s2 + $0x808] sm:$0xf]  ;;  %v10508_v15 = vor.u32 %v13934_v16, %v10507_v58  ;;  %v10636_v38 = vor.u32 %v13966_v26, %v10635_v2 }
 0x2a5   : > { %7790 = vmatpush.bf16.msra.mxu0 %v10428_v54  ;;  %v10524_v54 = vor.u32 %v13938_v4, %v10523_v35  ;;  %v13930_v18 = vld [vmem:[%s15200_s2 + $0x914] sm:$0xf0]  ;;  %v10619_v50 = vld [vmem:[%s15200_s2 + $0xa08] sm:$0xf]  ;;  %v7379_v35 = vadd.f32 %v16771_v27, %v7365_v53 }
 0x2a6   : > { %7804 = vmatpush.bf16.msra.mxu1 %v10556_v5  ;;  %v10379_v5 = vld [vmem:[%s15200_s2 + $0x828] sm:$0xf]  ;;  %v16868_v46 = vpop.f32.mrf.mxu2  ;;  %v7405_v28 = vadd.f32 %v16779_v8, %v7391_v6  ;;  %v13962_v8 = vld [vmem:[%s15200_s2 + $0xa14] sm:$0xf0] }
 0x2a7   : > { %7818 = vmatpush.bf16.msra.mxu2 %v10684_v30  ;;  %v13902_v30 = vld [vmem:[%s15200_s2 + $0x834] sm:$0xf0]  ;;  %v16882_v63 = vpop.f32.mrf.mxu0  ;;  %v10987_v14 = vld [vmem:[%s15200_s2 + $0xce8] sm:$0xf]  ;;  %v7393_v16 = vadd.f32 %v16777_v31, %v7379_v35 }
 0x2a8   : > { %7832 = vmatpush.bf16.msra.mxu3 %v10812_v59  ;;  %v10763_v59 = vld [vmem:[%s15200_s2 + $0xb28] sm:$0xf]  ;;  %v10380_v11 = vor.u32 %v13902_v30, %v10379_v5  ;;  %v13994_v4 = vld [vmem:[%s15200_s2 + $0xb14] sm:$0xf0]  ;;  %v10620_v30 = vor.u32 %v13962_v8, %v10619_v50 }
 0x2a9   : > { %7791 = vmatpush.bf16.msra.mxu0 %v10412_v20  ;;  %v13898_v20 = vld [vmem:[%s15200_s2 + $0x814] sm:$0xf0]  ;;  %v10764_v0 = vor.u32 %v13998_v24, %v10763_v59  ;;  %v11115_v19 = vld [vmem:[%s15200_s2 + $0xde8] sm:$0xf] }
 0x2aa   : > { %7805 = vmatpush.bf16.msra.mxu1 %v10540_v22  ;;  %v16873_v22 = vpop.f32.mrf.mxu3  ;;  %v14054_v25 = vld [vmem:[%s15200_s2 + $0xcf4] sm:$0xf0]  ;;  %v10364_v61 = vor.u32 %v13898_v20, %v10363_v34  ;;  %v11371_v58 = vld [vmem:[%s15200_s2 + $0xfe8] sm:$0xf]  ;;  %v7407_v34 = vadd.f32 %v16814_v43, %v7393_v16 }
 0x2ab   : > { %7819 = vmatpush.bf16.msra.mxu2 %v10668_v12  ;;  %v10491_v12 = vld [vmem:[%s15200_s2 + $0x908] sm:$0xf]  ;;  %v14118_v27 = vld [vmem:[%s15200_s2 + $0xef4] sm:$0xf0]  ;;  %v10988_v26 = vor.u32 %v14054_v25, %v10987_v14 }
 0x2ac   : > { %7833 = vmatpush.bf16.msra.mxu3 %v10796_v3  ;;  %v10747_v3 = vld [vmem:[%s15200_s2 + $0xb08] sm:$0xf]  ;;  %v16887_v55 = vpop.f32.mrf.mxu1  ;;  %v10492_v5 = vor.u32 %v13930_v18, %v10491_v12  ;;  %v14050_v53 = vld [vmem:[%s15200_s2 + $0xcd4] sm:$0xf0]  ;;  %v7421_v25 = vadd.f32 %v16819_v1, %v7407_v34 }
 0x2ad   : > { %7792 = vmatpush.bf16.msra.mxu0 %v10396_v10  ;;  %v14086_v10 = vld [vmem:[%s15200_s2 + $0xdf4] sm:$0xf0]  ;;  %v10748_v2 = vor.u32 %v13994_v4, %v10747_v3  ;;  %v10971_v24 = vld [vmem:[%s15200_s2 + $0xcc8] sm:$0xf] }
 0x2ae   : > { %7806 = vmatpush.bf16.msra.mxu1 %v10524_v54  ;;  %v11243_v54 = vld [vmem:[%s15200_s2 + $0xee8] sm:$0xf]  ;;  %v14146_v12 = vld [vmem:[%s15200_s2 + $0xfd4] sm:$0xf0]  ;;  %v10972_v18 = vor.u32 %v14050_v53, %v10971_v24 }
 0x2af   : > { %7820 = vmatpush.bf16.msra.mxu2 %v10652_v17  ;;  %v7419_v17 = vadd.f32 %v16783_v23, %v7405_v28  ;;  %v11116_v23 = vor.u32 %v14086_v10, %v11115_v19  ;;  %v11244_v59 = vor.u32 %v14118_v27, %v11243_v54  ;;  %v14082_v28 = vld [vmem:[%s15200_s2 + $0xdd4] sm:$0xf0]  ;;  %v11355_v31 = vld [vmem:[%s15200_s2 + $0xfc8] sm:$0xf]  ;;  %v16911_v35 = vpop.f32.mrf.mxu0 }
 0x2b0   : > { %7834 = vmatpush.bf16.msra.mxu3 %v10780_v29  ;;  %v14150_v29 = vld [vmem:[%s15200_s2 + $0xff4] sm:$0xf0]  ;;  %v10955_v3 = vld [vmem:[%s15200_s2 + $0xca8] sm:$0xf] }
 0x2b1   : > { %7793 = vmatpush.bf16.msra.mxu0 %v10380_v11  ;;  %v7433_v6 = vadd.f32 %v16799_v21, %v7419_v17  ;;  %v11099_v11 = vld [vmem:[%s15200_s2 + $0xdc8] sm:$0xf]  ;;  %v11372_v20 = vor.u32 %v14150_v29, %v11371_v58  ;;  %v16906_v21 = vpop.f32.mrf.mxu2  ;;  %v14046_v4 = vld [vmem:[%s15200_s2 + $0xcb4] sm:$0xf0] }
 0x2b2   : > { %7807 = vmatpush.bf16.msra.mxu1 %v10508_v15  ;;  %v11227_v15 = vld [vmem:[%s15200_s2 + $0xec8] sm:$0xf]  ;;  %v16909_v50 = vpop.f32.mrf.mxu3  ;;  %v14110_v54 = vld [vmem:[%s15200_s2 + $0xeb4] sm:$0xf0] }
 0x2b3   : > { %7821 = vmatpush.bf16.msra.mxu2 %v10636_v38  ;;  %v14114_v38 = vld [vmem:[%s15200_s2 + $0xed4] sm:$0xf0]  ;;  %v7447_v43 = vadd.f32 %v16806_v49, %v7433_v6  ;;  %v11083_v14 = vld [vmem:[%s15200_s2 + $0xda8] sm:$0xf]  ;;  %v11356_v49 = vor.u32 %v14146_v12, %v11355_v31 }
 0x2b4   : > { %7835 = vmatpush.bf16.msra.mxu3 %v10764_v0  ;;  %v11100_v0 = vor.u32 %v14082_v28, %v11099_v11  ;;  %v11228_v8 = vor.u32 %v14114_v38, %v11227_v15  ;;  %v16917_v19 = vpop.f32.mrf.mxu1  ;;  %v11211_v10 = vld [vmem:[%s15200_s2 + $0xea8] sm:$0xf]  ;;  %v14142_v17 = vld [vmem:[%s15200_s2 + $0xfb4] sm:$0xf0] }
 0x2b5   : > { %7794 = vmatpush.bf16.msra.mxu0 %v10364_v61  ;;  %v14078_v61 = vld [vmem:[%s15200_s2 + $0xdb4] sm:$0xf0]  ;;  %v7461_v27 = vadd.f32 %v16843_v51, %v7447_v43  ;;  %v11339_v1 = vld [vmem:[%s15200_s2 + $0xfa8] sm:$0xf]  ;;  %v11212_v58 = vor.u32 %v14110_v54, %v11211_v10 }
 0x2b6   : > { %7808 = vmatpush.bf16.msra.mxu1 %v10492_v5  ;;  %v7435_v5 = vadd.f32 %v16838_v62, %v7421_v25  ;;  %v11084_v51 = vor.u32 %v14078_v61, %v11083_v14  ;;  %v10939_v29 = vld [vmem:[%s15200_s2 + $0xc88] sm:$0xf]  ;;  %v14042_v16 = vld [vmem:[%s15200_s2 + $0xc94] sm:$0xf0] }
 0x2b7   : > { %7822 = vmatpush.bf16.msra.mxu2 %v10620_v30  ;;  %v10956_v30 = vor.u32 %v14046_v4, %v10955_v3  ;;  %v14074_v6 = vld [vmem:[%s15200_s2 + $0xd94] sm:$0xf0]  ;;  %v11323_v24 = vld [vmem:[%s15200_s2 + $0xf88] sm:$0xf]  ;;  %v16952_v3 = vpop.f32.mrf.mxu0 }
 0x2b8   : > { %7836 = vmatpush.bf16.msra.mxu3 %v10748_v2  ;;  %7795 = vmatmul.bf16.vlgmr.msra.gmra.mxu0 %v15477_v32  ;;  %v11067_v2 = vld [vmem:[%s15200_s2 + $0xd88] sm:$0xf]  ;;  %v14106_v62 = vld [vmem:[%s15200_s2 + $0xe94] sm:$0xf0]  ;;  %v7449_v11 = vadd.f32 %v16841_v7, %v7435_v5 }
 0x2b9   : > { %7843 = vmatpush.bf16.msrb.mxu0 %v10988_v26  ;;  %7809 = vmatmul.bf16.vlgmr.msra.gmra.mxu1 %v15484_v37  ;;  %v11340_v26 = vor.u32 %v14142_v17, %v11339_v1  ;;  %v14138_v53 = vld [vmem:[%s15200_s2 + $0xf94] sm:$0xf0]  ;;  %v16940_v34 = vpop.f32.mrf.mxu2  ;;  %v10923_v31 = vld [vmem:[%s15200_s2 + $0xc68] sm:$0xf] }
 0x2ba   : > { %7857 = vmatpush.bf16.msrb.mxu1 %v11116_v23  ;;  %7823 = vmatmul.bf16.vlgmr.msra.gmra.mxu2 %v15482_v36  ;;  %v11195_v23 = vld [vmem:[%s15200_s2 + $0xe88] sm:$0xf]  ;;  %v16943_v15 = vpop.f32.mrf.mxu3  ;;  %v14038_v12 = vld [vmem:[%s15200_s2 + $0xc74] sm:$0xf0]  ;;  %v11324_v43 = vor.u32 %v14138_v53, %v11323_v24 }
 0x2bb   : > { %7871 = vmatpush.bf16.msrb.mxu2 %v11244_v59  ;;  %7837 = vmatmul.bf16.vlgmr.msra.gmra.mxu3 %v15488_v41  ;;  %v7475_v59 = vadd.f32 %v16849_v13, %v7461_v27  ;;  %v11068_v13 = vor.u32 %v14074_v6, %v11067_v2  ;;  %v11196_v38 = vor.u32 %v14106_v62, %v11195_v23  ;;  %v11051_v7 = vld [vmem:[%s15200_s2 + $0xd68] sm:$0xf]  ;;  %v14134_v14 = vld [vmem:[%s15200_s2 + $0xf74] sm:$0xf0] }
 0x2bc   : > { %7885 = vmatpush.bf16.msrb.mxu3 %v11372_v20  ;;  %v10940_v20 = vor.u32 %v14042_v16, %v10939_v29  ;;  %v11307_v4 = vld [vmem:[%s15200_s2 + $0xf68] sm:$0xf]  ;;  %v16956_v25 = vpop.f32.mrf.mxu1  ;;  %v14034_v27 = vld [vmem:[%s15200_s2 + $0xc54] sm:$0xf0] }
 0x2bd   : > { %7844 = vmatpush.bf16.msrb.mxu0 %v10972_v18  ;;  %v7489_v28 = vadd.f32 %v16868_v46, %v7475_v59  ;;  %v7463_v18 = vadd.f32 %v16882_v63, %v7449_v11  ;;  %v11179_v46 = vld [vmem:[%s15200_s2 + $0xe68] sm:$0xf]  ;;  %v11308_v5 = vor.u32 %v14134_v14, %v11307_v4  ;;  %v14130_v16 = vld [vmem:[%s15200_s2 + $0xf54] sm:$0xf0] }
 0x2be   : > { %7858 = vmatpush.bf16.msrb.mxu1 %v11100_v0  ;;  %v14070_v0 = vld [vmem:[%s15200_s2 + $0xd74] sm:$0xf0]  ;;  %v10907_v54 = vld [vmem:[%s15200_s2 + $0xc48] sm:$0xf] }
 0x2bf   : > { %7872 = vmatpush.bf16.msrb.mxu2 %v11228_v8  ;;  %v14102_v8 = vld [vmem:[%s15200_s2 + $0xe74] sm:$0xf0]  ;;  %v7503_v63 = vadd.f32 %v16873_v22, %v7489_v28  ;;  %v11052_v61 = vor.u32 %v14070_v0, %v11051_v7  ;;  %v11035_v1 = vld [vmem:[%s15200_s2 + $0xd48] sm:$0xf]  ;;  %v7477_v17 = vadd.f32 %v16887_v55, %v7463_v18 }
 0x2c0   : > { %7886 = vmatpush.bf16.msrb.mxu3 %v11356_v49  ;;  %v10924_v49 = vor.u32 %v14038_v12, %v10923_v31  ;;  %v11180_v10 = vor.u32 %v14102_v8, %v11179_v46  ;;  %v11291_v29 = vld [vmem:[%s15200_s2 + $0xf48] sm:$0xf]  ;;  %v14030_v62 = vld [vmem:[%s15200_s2 + $0xc34] sm:$0xf0] }
 0x2c1   : > { %7845 = vmatpush.bf16.msrb.mxu0 %v10956_v30  ;;  %v14066_v30 = vld [vmem:[%s15200_s2 + $0xd54] sm:$0xf0]  ;;  %v7517_v22 = vadd.f32 %v16911_v35, %v7503_v63  ;;  %v7491_v2 = vadd.f32 %v16906_v21, %v7477_v17  ;;  %v10891_v23 = vld [vmem:[%s15200_s2 + $0xc28] sm:$0xf]  ;;  %v16973_v35 = vpop.f32.mrf.mxu2  ;;  %v11292_v24 = vor.u32 %v14130_v16, %v11291_v29 }
 0x2c2   : > { %7859 = vmatpush.bf16.msrb.mxu1 %v11084_v51  ;;  %v11163_v51 = vld [vmem:[%s15200_s2 + $0xe48] sm:$0xf]  ;;  %v11036_v55 = vor.u32 %v14066_v30, %v11035_v1  ;;  %v14062_v53 = vld [vmem:[%s15200_s2 + $0xd34] sm:$0xf0]  ;;  %v16979_v28 = vpop.f32.mrf.mxu3  ;;  %v10892_v18 = vor.u32 %v14030_v62, %v10891_v23 }
 0x2c3   : > { %7873 = vmatpush.bf16.msrb.mxu2 %v11212_v58  ;;  %v14098_v58 = vld [vmem:[%s15200_s2 + $0xe54] sm:$0xf0]  ;;  %v11019_v59 = vld [vmem:[%s15200_s2 + $0xd28] sm:$0xf]  ;;  %v7505_v12 = vadd.f32 %v16909_v50, %v7491_v2 }
 0x2c4   : > { %7887 = vmatpush.bf16.msrb.mxu3 %v11340_v26  ;;  %v10908_v26 = vor.u32 %v14034_v27, %v10907_v54  ;;  %v11164_v6 = vor.u32 %v14098_v58, %v11163_v51  ;;  %v11147_v11 = vld [vmem:[%s15200_s2 + $0xe28] sm:$0xf]  ;;  %v14094_v21 = vld [vmem:[%s15200_s2 + $0xe34] sm:$0xf0]  ;;  %v7586_v7 = vpop.f32.mrf.mxu1  ;;  %v11020_v46 = vor.u32 %v14062_v53, %v11019_v59 }
 0x2c5   : > { %7846 = vmatpush.bf16.msrb.mxu0 %v10940_v20  ;;  %v7531_v20 = vadd.f32 %v16917_v19, %v7517_v22  ;;  %v14126_v31 = vld [vmem:[%s15200_s2 + $0xf34] sm:$0xf0]  ;;  %v11148_v8 = vor.u32 %v14094_v21, %v11147_v11  ;;  %v11003_v50 = vld [vmem:[%s15200_s2 + $0xd08] sm:$0xf] }
 0x2c6   : > { %7860 = vmatpush.bf16.msrb.mxu1 %v11068_v13  ;;  %v7572_v13 = vpop.f32.mrf.mxu0  ;;  %v14026_v0 = vld [vmem:[%s15200_s2 + $0xc14] sm:$0xf0]  ;;  %v11131_v14 = vld [vmem:[%s15200_s2 + $0xe08] sm:$0xf] }
 0x2c7   : > { %7874 = vmatpush.bf16.msrb.mxu2 %v11196_v38  ;;  %v11275_v38 = vld [vmem:[%s15200_s2 + $0xf28] sm:$0xf]  ;;  %v7545_v19 = vadd.f32 %v16940_v34, %v7531_v20  ;;  %v14058_v4 = vld [vmem:[%s15200_s2 + $0xd14] sm:$0xf0]  ;;  %v7519_v34 = vadd.f32 %v16952_v3, %v7505_v12 }
 0x2c8   : > { %7888 = vmatpush.bf16.msrb.mxu3 %v11324_v43  ;;  %v10875_v43 = vld [vmem:[%s15200_s2 + $0xc08] sm:$0xf]  ;;  %v14090_v63 = vld [vmem:[%s15200_s2 + $0xe14] sm:$0xf0]  ;;  %v11004_v22 = vor.u32 %v14058_v4, %v11003_v50 }
 0x2c9   : > { %7847 = vmatpush.bf16.msrb.mxu0 %v10924_v49  ;;  %v11276_v49 = vor.u32 %v14126_v31, %v11275_v38  ;;  %v11499_v54 = vld [vmem:[%s15200_s2 + $0x10e8] sm:$0xf]  ;;  %v14182_v27 = vld [vmem:[%s15200_s2 + $0x10f4] sm:$0xf0]  ;;  %v10876_v17 = vor.u32 %v14026_v0, %v10875_v43  ;;  %v7559_v58 = vadd.f32 %v16943_v15, %v7545_v19  ;;  %v11132_v29 = vor.u32 %v14090_v63, %v11131_v14  ;;  %v7600_v2 = vpop.f32.mrf.mxu2 }
 0x2ca   : > { %7861 = vmatpush.bf16.msrb.mxu1 %v11052_v61  ;;  %v11259_v61 = vld [vmem:[%s15200_s2 + $0xf08] sm:$0xf]  ;;  %v14246_v51 = vld [vmem:[%s15200_s2 + $0x12f4] sm:$0xf0]  ;;  %v7614_v15 = vpop.f32.mrf.mxu3 }
 0x2cb   : > { %7875 = vmatpush.bf16.msrb.mxu2 %v11180_v10  ;;  %v14122_v10 = vld [vmem:[%s15200_s2 + $0xf14] sm:$0xf0]  ;;  %v11627_v1 = vld [vmem:[%s15200_s2 + $0x11e8] sm:$0xf]  ;;  %v7573_v23 = vadd.f32 %v7572_v13, %v7559_v58 }
 0x2cc   : > { %7889 = vmatpush.bf16.msrb.mxu3 %v11308_v5  ;;  %v14214_v5 = vld [vmem:[%s15200_s2 + $0x11f4] sm:$0xf0]  ;;  %v11755_v30 = vld [vmem:[%s15200_s2 + $0x12e8] sm:$0xf]  ;;  %v7588_v43 = vpop.f32.mrf.mxu1 }
 0x2cd   : > { %7848 = vmatpush.bf16.msrb.mxu0 %v10908_v26  ;;  %v11883_v16 = vld [vmem:[%s15200_s2 + $0x13e8] sm:$0xf]  ;;  %v14278_v3 = vld [vmem:[%s15200_s2 + $0x13f4] sm:$0xf0]  ;;  %v11260_v26 = vor.u32 %v14122_v10, %v11259_v61  ;;  %v11628_v62 = vor.u32 %v14214_v5, %v11627_v1  ;;  %v11756_v59 = vor.u32 %v14246_v51, %v11755_v30  ;;  %v7587_v19 = vadd.f32 %v7586_v7, %v7573_v23 }
 0x2ce   : > { %7862 = vmatpush.bf16.msrb.mxu1 %v11036_v55  ;;  %v11500_v55 = vor.u32 %v14182_v27, %v11499_v54  ;;  %v14178_v53 = vld [vmem:[%s15200_s2 + $0x10d4] sm:$0xf0]  ;;  %v11611_v11 = vld [vmem:[%s15200_s2 + $0x11c8] sm:$0xf]  ;;  %v11884_v21 = vor.u32 %v14278_v3, %v11883_v16 }
 0x2cf   : > { %7876 = vmatpush.bf16.msrb.mxu2 %v11164_v6  ;;  %v7533_v6 = vadd.f32 %v16956_v25, %v7519_v34  ;;  %v14210_v20 = vld [vmem:[%s15200_s2 + $0x11d4] sm:$0xf0]  ;;  %v11739_v38 = vld [vmem:[%s15200_s2 + $0x12c8] sm:$0xf]  ;;  %v7601_v10 = vadd.f32 %v7600_v2, %v7587_v19 }
 0x2d0   : > { %7890 = vmatpush.bf16.msrb.mxu3 %v11292_v24  ;;  %v11483_v24 = vld [vmem:[%s15200_s2 + $0x10c8] sm:$0xf]  ;;  %v14242_v31 = vld [vmem:[%s15200_s2 + $0x12d4] sm:$0xf0] }
 0x2d1   : > { %7849 = vmatpush.bf16.msrb.mxu0 %v10892_v18  ;;  %v7547_v12 = vadd.f32 %v16973_v35, %v7533_v6  ;;  %v7574_v18 = vpop.f32.mrf.mxu0  ;;  %v11867_v25 = vld [vmem:[%s15200_s2 + $0x13c8] sm:$0xf]  ;;  %v14274_v13 = vld [vmem:[%s15200_s2 + $0x13d4] sm:$0xf0]  ;;  %v11484_v0 = vor.u32 %v14178_v53, %v11483_v24  ;;  %v11740_v35 = vor.u32 %v14242_v31, %v11739_v38  ;;  %v7615_v2 = vadd.f32 %v7614_v15, %v7601_v10 }
 0x2d2   : > { %7863 = vmatpush.bf16.msrb.mxu1 %v11020_v46  ;;  %v11612_v46 = vor.u32 %v14210_v20, %v11611_v11  ;;  %v14174_v50 = vld [vmem:[%s15200_s2 + $0x10b4] sm:$0xf0]  ;;  %v11595_v4 = vld [vmem:[%s15200_s2 + $0x11a8] sm:$0xf]  ;;  %v11868_v14 = vor.u32 %v14274_v13, %v11867_v25 }
 0x2d3   : > { %7877 = vmatpush.bf16.msrb.mxu2 %v11148_v8  ;;  %v11467_v8 = vld [vmem:[%s15200_s2 + $0x10a8] sm:$0xf]  ;;  %v14238_v61 = vld [vmem:[%s15200_s2 + $0x12b4] sm:$0xf0]  ;;  %v7561_v7 = vadd.f32 %v16979_v28, %v7547_v12 }
 0x2d4   : > { %7891 = vmatpush.bf16.msrb.mxu3 %v11276_v49  ;;  %v14206_v49 = vld [vmem:[%s15200_s2 + $0x11b4] sm:$0xf0]  ;;  %v11723_v63 = vld [vmem:[%s15200_s2 + $0x12a8] sm:$0xf]  ;;  %v11468_v27 = vor.u32 %v14174_v50, %v11467_v8 }
 0x2d5   : > { %7850 = vmatpush.bf16.msrb.mxu0 %v10876_v17  ;;  %v11851_v34 = vld [vmem:[%s15200_s2 + $0x13a8] sm:$0xf]  ;;  %v14270_v54 = vld [vmem:[%s15200_s2 + $0x13b4] sm:$0xf0]  ;;  %v7575_v17 = vadd.f32 %v7574_v18, %v7561_v7  ;;  %v11596_v28 = vor.u32 %v14206_v49, %v11595_v4  ;;  %v11724_v5 = vor.u32 %v14238_v61, %v11723_v63 }
 0x2d6   : > { %7864 = vmatpush.bf16.msrb.mxu1 %v11004_v22  ;;  %v11451_v1 = vld [vmem:[%s15200_s2 + $0x1088] sm:$0xf]  ;;  %v14170_v30 = vld [vmem:[%s15200_s2 + $0x1094] sm:$0xf0]  ;;  %v7602_v22 = vpop.f32.mrf.mxu2  ;;  %v7642_v24 = vpop.f32.mrf.mxu1 }
 0x2d7   : > { %7878 = vmatpush.bf16.msrb.mxu2 %v11132_v29  ;;  %v11579_v51 = vld [vmem:[%s15200_s2 + $0x1188] sm:$0xf]  ;;  %v14202_v58 = vld [vmem:[%s15200_s2 + $0x1194] sm:$0xf0]  ;;  %v11852_v29 = vor.u32 %v14270_v54, %v11851_v34  ;;  %v7589_v53 = vadd.f32 %v7588_v43, %v7575_v17 }
 0x2d8   : > { %7892 = vmatpush.bf16.msrb.mxu3 %v11260_v26  ;;  %7851 = vmatmul.bf16.vlgmr.msrb.gmra.mxu0 %v15561_v33  ;;  %v11707_v16 = vld [vmem:[%s15200_s2 + $0x1288] sm:$0xf]  ;;  %v14234_v3 = vld [vmem:[%s15200_s2 + $0x1294] sm:$0xf0]  ;;  %v7616_v26 = vpop.f32.mrf.mxu3 }
 0x2d9   : > { %7899 = vmatpush.bf16.msra.mxu0 %v11500_v55  ;;  %7865 = vmatmul.bf16.vlgmr.msrb.gmra.mxu1 %v15568_v42  ;;  %v7628_v55 = vpop.f32.mrf.mxu0  ;;  %v11835_v6 = vld [vmem:[%s15200_s2 + $0x1388] sm:$0xf]  ;;  %v14266_v23 = vld [vmem:[%s15200_s2 + $0x1394] sm:$0xf0]  ;;  %v11708_v15 = vor.u32 %v14234_v3, %v11707_v16  ;;  %v7603_v13 = vadd.f32 %v7602_v22, %v7589_v53 }
 0x2da   : > { %7913 = vmatpush.bf16.msra.mxu1 %v11628_v62  ;;  %7879 = vmatmul.bf16.vlgmr.msrb.gmra.mxu2 %v15566_v39  ;;  %v11452_v62 = vor.u32 %v14170_v30, %v11451_v1  ;;  %v7629_v11 = vadd.f32 %v7628_v55, %v7615_v2  ;;  %v14166_v20 = vld [vmem:[%s15200_s2 + $0x1074] sm:$0xf0]  ;;  %v11563_v38 = vld [vmem:[%s15200_s2 + $0x1168] sm:$0xf]  ;;  %v11836_v31 = vor.u32 %v14266_v23, %v11835_v6 }
 0x2db   : > { %7927 = vmatpush.bf16.msra.mxu2 %v11756_v59  ;;  %7893 = vmatmul.bf16.vlgmr.msrb.gmra.mxu3 %v15572_v47  ;;  %v11580_v59 = vor.u32 %v14202_v58, %v11579_v51  ;;  %v14198_v12 = vld [vmem:[%s15200_s2 + $0x1174] sm:$0xf0]  ;;  %v11691_v18 = vld [vmem:[%s15200_s2 + $0x1268] sm:$0xf]  ;;  %v7617_v34 = vadd.f32 %v7616_v26, %v7603_v13 }
 0x2dc   : > { %7941 = vmatpush.bf16.msra.mxu3 %v11884_v21  ;;  %v11435_v21 = vld [vmem:[%s15200_s2 + $0x1068] sm:$0xf]  ;;  %v14230_v25 = vld [vmem:[%s15200_s2 + $0x1274] sm:$0xf0]  ;;  %v11564_v8 = vor.u32 %v14198_v12, %v11563_v38 }
 0x2dd   : > { %7900 = vmatpush.bf16.msra.mxu0 %v11484_v0  ;;  %v11819_v0 = vld [vmem:[%s15200_s2 + $0x1368] sm:$0xf]  ;;  %v14262_v43 = vld [vmem:[%s15200_s2 + $0x1374] sm:$0xf0]  ;;  %v11436_v19 = vor.u32 %v14166_v20, %v11435_v21  ;;  %v11692_v50 = vor.u32 %v14230_v25, %v11691_v18 }
 0x2de   : > { %7914 = vmatpush.bf16.msra.mxu1 %v11612_v46  ;;  %v11419_v46 = vld [vmem:[%s15200_s2 + $0x1048] sm:$0xf]  ;;  %v14162_v4 = vld [vmem:[%s15200_s2 + $0x1054] sm:$0xf0]  ;;  %v11820_v63 = vor.u32 %v14262_v43, %v11819_v0  ;;  %v7656_v61 = vpop.f32.mrf.mxu2  ;;  %v7644_v55 = vpop.f32.mrf.mxu1  ;;  %v472_v43 = vld [vmem:[#allocation2 + $0x20] sm:$0xff] }
 0x2df   : > { %7928 = vmatpush.bf16.msra.mxu2 %v11740_v35  ;;  %v7643_v35 = vadd.f32 %v7642_v24, %v7629_v11  ;;  %v14194_v49 = vld [vmem:[%s15200_s2 + $0x1154] sm:$0xf0]  ;;  %v11675_v7 = vld [vmem:[%s15200_s2 + $0x1248] sm:$0xf]  ;;  %v11420_v30 = vor.u32 %v14162_v4, %v11419_v46 }
 0x2e0   : > { %7942 = vmatpush.bf16.msra.mxu3 %v11868_v14  ;;  %v11547_v14 = vld [vmem:[%s15200_s2 + $0x1148] sm:$0xf]  ;;  %v14226_v10 = vld [vmem:[%s15200_s2 + $0x1254] sm:$0xf0]  ;;  %v7670_v1 = vpop.f32.mrf.mxu3 }
 0x2e1   : > { %7901 = vmatpush.bf16.msra.mxu0 %v11468_v27  ;;  %v7657_v54 = vadd.f32 %v7656_v61, %v7643_v35  ;;  %v7630_v27 = vpop.f32.mrf.mxu0  ;;  %v11803_v17 = vld [vmem:[%s15200_s2 + $0x1348] sm:$0xf]  ;;  %v11548_v51 = vor.u32 %v14194_v49, %v11547_v14  ;;  %v14158_v3 = vld [vmem:[%s15200_s2 + $0x1034] sm:$0xf0] }
 0x2e2   : > { %7915 = vmatpush.bf16.msra.mxu1 %v11596_v28  ;;  %v14258_v28 = vld [vmem:[%s15200_s2 + $0x1354] sm:$0xf0]  ;;  %v7631_v58 = vadd.f32 %v7630_v27, %v7617_v34  ;;  %v11403_v16 = vld [vmem:[%s15200_s2 + $0x1028] sm:$0xf] }
 0x2e3   : > { %7929 = vmatpush.bf16.msra.mxu2 %v11724_v5  ;;  %v468_v5 = vld [vmem:[#allocation2] sm:$0xff]  ;;  %v7671_v22 = vadd.f32 %v7670_v1, %v7657_v54  ;;  %v11531_v2 = vld [vmem:[%s15200_s2 + $0x1128] sm:$0xf]  ;;  %v11804_v26 = vor.u32 %v14258_v28, %v11803_v17  ;;  %v14190_v6 = vld [vmem:[%s15200_s2 + $0x1134] sm:$0xf0]  ;;  %v11404_v11 = vor.u32 %v14158_v3, %v11403_v16 }
 0x2e4   : > { %7943 = vmatpush.bf16.msra.mxu3 %v11852_v29  ;;  %v11676_v29 = vor.u32 %v14226_v10, %v11675_v7  ;;  %v11659_v23 = vld [vmem:[%s15200_s2 + $0x1228] sm:$0xf]  ;;  %v14254_v53 = vld [vmem:[%s15200_s2 + $0x1334] sm:$0xf0]  ;;  %v7645_v38 = vadd.f32 %v7644_v55, %v7631_v58 }
 0x2e5   : > { %7902 = vmatpush.bf16.msra.mxu0 %v11452_v62  ;;  %v14222_v62 = vld [vmem:[%s15200_s2 + $0x1234] sm:$0xf0]  ;;  %v11787_v24 = vld [vmem:[%s15200_s2 + $0x1328] sm:$0xf] }
 0x2e6   : > { %7916 = vmatpush.bf16.msra.mxu1 %v11580_v59  ;;  %v8572_v59 = vadd.f32 %v7671_v22, %v468_v5  ;;  %v14154_v21 = vld [vmem:[%s15200_s2 + $0x1014] sm:$0xf0]  ;;  %v11515_v20 = vld [vmem:[%s15200_s2 + $0x1108] sm:$0xf]  ;;  %v11660_v12 = vor.u32 %v14222_v62, %v11659_v23  ;;  %v11788_v13 = vor.u32 %v14254_v53, %v11787_v24  ;;  %v7658_v0 = vpop.f32.mrf.mxu2 }
 0x2e7   : > { %7930 = vmatpush.bf16.msra.mxu2 %v11708_v15  ;;  %v11387_v15 = vld [vmem:[%s15200_s2 + $0x1008] sm:$0xf]  ;;  %v14186_v18 = vld [vmem:[%s15200_s2 + $0x1114] sm:$0xf0] }
 0x2e8   : > { %7944 = vmatpush.bf16.msra.mxu3 %v11836_v31  ;;  %8580 = vst [vmem:[#allocation2] sm:$0xff] %v8572_v59  ;;  %v11532_v31 = vor.u32 %v14190_v6, %v11531_v2  ;;  %v11643_v25 = vld [vmem:[%s15200_s2 + $0x1208] sm:$0xf]  ;;  %v14250_v35 = vld [vmem:[%s15200_s2 + $0x1314] sm:$0xf0]  ;;  %v11516_v54 = vor.u32 %v14186_v18, %v11515_v20 }
 0x2e9   : > { %7903 = vmatpush.bf16.msra.mxu0 %v11436_v19  ;;  %v14218_v19 = vld [vmem:[%s15200_s2 + $0x1214] sm:$0xf0]  ;;  %v11771_v46 = vld [vmem:[%s15200_s2 + $0x1308] sm:$0xf] }
 0x2ea   : > { %7917 = vmatpush.bf16.msra.mxu1 %v11564_v8  ;;  %v7659_v8 = vadd.f32 %v7658_v0, %v7645_v38  ;;  %v12011_v4 = vld [vmem:[%s15200_s2 + $0x14e8] sm:$0xf]  ;;  %v14310_v14 = vld [vmem:[%s15200_s2 + $0x14f4] sm:$0xf0]  ;;  %v11644_v27 = vor.u32 %v14218_v19, %v11643_v25  ;;  %v11772_v28 = vor.u32 %v14250_v35, %v11771_v46 }
 0x2eb   : > { %7931 = vmatpush.bf16.msra.mxu2 %v11692_v50  ;;  %v7672_v50 = vpop.f32.mrf.mxu3  ;;  %v12139_v49 = vld [vmem:[%s15200_s2 + $0x15e8] sm:$0xf]  ;;  %v14342_v61 = vld [vmem:[%s15200_s2 + $0x15f4] sm:$0xf0]  ;;  %v12012_v5 = vor.u32 %v14310_v14, %v12011_v4 }
 0x2ec   : > { %7945 = vmatpush.bf16.msra.mxu3 %v11820_v63  ;;  %v11388_v63 = vor.u32 %v14154_v21, %v11387_v15  ;;  %v12267_v7 = vld [vmem:[%s15200_s2 + $0x16e8] sm:$0xf]  ;;  %v14374_v10 = vld [vmem:[%s15200_s2 + $0x16f4] sm:$0xf0]  ;;  %v7673_v34 = vadd.f32 %v7672_v50, %v7659_v8 }
 0x2ed   : > { %7904 = vmatpush.bf16.msra.mxu0 %v11420_v30  ;;  %v12395_v1 = vld [vmem:[%s15200_s2 + $0x17e8] sm:$0xf]  ;;  %v14406_v17 = vld [vmem:[%s15200_s2 + $0x17f4] sm:$0xf0]  ;;  %v12268_v58 = vor.u32 %v14374_v10, %v12267_v7 }
 0x2ee   : > { %7918 = vmatpush.bf16.msra.mxu1 %v11548_v51  ;;  %v8576_v30 = vadd.f32 %v7673_v34, %v472_v43  ;;  %v12140_v51 = vor.u32 %v14342_v61, %v12139_v49  ;;  %v11995_v22 = vld [vmem:[%s15200_s2 + $0x14c8] sm:$0xf]  ;;  %v12396_v3 = vor.u32 %v14406_v17, %v12395_v1  ;;  %v14338_v2 = vld [vmem:[%s15200_s2 + $0x15d4] sm:$0xf0] }
 0x2ef   : > { %7932 = vmatpush.bf16.msra.mxu2 %v11676_v29  ;;  %v14306_v29 = vld [vmem:[%s15200_s2 + $0x14d4] sm:$0xf0]  ;;  %v12123_v16 = vld [vmem:[%s15200_s2 + $0x15c8] sm:$0xf] }
 0x2f0   : > { %7946 = vmatpush.bf16.msra.mxu3 %v11804_v26  ;;  %v12251_v26 = vld [vmem:[%s15200_s2 + $0x16c8] sm:$0xf]  ;;  %v14370_v55 = vld [vmem:[%s15200_s2 + $0x16d4] sm:$0xf0]  ;;  %8584 = vst [vmem:[#allocation2 + $0x20] sm:$0xff] %v8576_v30  ;;  %v11996_v62 = vor.u32 %v14306_v29, %v11995_v22  ;;  %v12124_v59 = vor.u32 %v14338_v2, %v12123_v16 }
 0x2f1   : > { %7905 = vmatpush.bf16.msra.mxu0 %v11404_v11  ;;  %v12379_v6 = vld [vmem:[%s15200_s2 + $0x17c8] sm:$0xf]  ;;  %v14402_v23 = vld [vmem:[%s15200_s2 + $0x17d4] sm:$0xf0]  ;;  %v12252_v24 = vor.u32 %v14370_v55, %v12251_v26 }
 0x2f2   : > { %7919 = vmatpush.bf16.msra.mxu1 %v11532_v31  ;;  %v11979_v53 = vld [vmem:[%s15200_s2 + $0x14a8] sm:$0xf]  ;;  %v14302_v11 = vld [vmem:[%s15200_s2 + $0x14b4] sm:$0xf0]  ;;  %v12380_v21 = vor.u32 %v14402_v23, %v12379_v6 }
 0x2f3   : > { %7933 = vmatpush.bf16.msra.mxu2 %v11660_v12  ;;  %v12107_v15 = vld [vmem:[%s15200_s2 + $0x15a8] sm:$0xf]  ;;  %v14334_v20 = vld [vmem:[%s15200_s2 + $0x15b4] sm:$0xf0]  ;;  %v11980_v25 = vor.u32 %v14302_v11, %v11979_v53 }
 0x2f4   : > { %7947 = vmatpush.bf16.msra.mxu3 %v11788_v13  ;;  %v12235_v38 = vld [vmem:[%s15200_s2 + $0x16a8] sm:$0xf]  ;;  %v14366_v31 = vld [vmem:[%s15200_s2 + $0x16b4] sm:$0xf0]  ;;  %v12108_v13 = vor.u32 %v14334_v20, %v12107_v15 }
 0x2f5   : > { %7906 = vmatpush.bf16.msra.mxu0 %v11388_v63  ;;  %v12363_v12 = vld [vmem:[%s15200_s2 + $0x17a8] sm:$0xf]  ;;  %v14398_v18 = vld [vmem:[%s15200_s2 + $0x17b4] sm:$0xf0]  ;;  %v12236_v0 = vor.u32 %v14366_v31, %v12235_v38 }
 0x2f6   : > { %7920 = vmatpush.bf16.msra.mxu1 %v11516_v54  ;;  %v11963_v43 = vld [vmem:[%s15200_s2 + $0x1488] sm:$0xf]  ;;  %v14298_v19 = vld [vmem:[%s15200_s2 + $0x1494] sm:$0xf0]  ;;  %v12364_v35 = vor.u32 %v14398_v18, %v12363_v12 }
 0x2f7   : > { %7934 = vmatpush.bf16.msra.mxu2 %v11644_v27  ;;  %v12091_v46 = vld [vmem:[%s15200_s2 + $0x1588] sm:$0xf]  ;;  %v14330_v8 = vld [vmem:[%s15200_s2 + $0x1594] sm:$0xf0]  ;;  %v11964_v63 = vor.u32 %v14298_v19, %v11963_v43 }
 0x2f8   : > { %7948 = vmatpush.bf16.msra.mxu3 %v11772_v28  ;;  %7907 = vmatmul.bf16.vlgmr.msra.gmra.mxu0 %v15645_v52  ;;  %v12219_v50 = vld [vmem:[%s15200_s2 + $0x1688] sm:$0xf]  ;;  %v14362_v4 = vld [vmem:[%s15200_s2 + $0x1694] sm:$0xf0]  ;;  %v12092_v61 = vor.u32 %v14330_v8, %v12091_v46 }
 0x2f9   : > { %7955 = vmatpush.bf16.msrb.mxu0 %v12012_v5  ;;  %7921 = vmatmul.bf16.vlgmr.msra.gmra.mxu1 %v15652_v57  ;;  %v12347_v14 = vld [vmem:[%s15200_s2 + $0x1788] sm:$0xf]  ;;  %v14394_v49 = vld [vmem:[%s15200_s2 + $0x1794] sm:$0xf0]  ;;  %v12220_v7 = vor.u32 %v14362_v4, %v12219_v50 }
 0x2fa   : > { %7969 = vmatpush.bf16.msrb.mxu1 %v12140_v51  ;;  %7935 = vmatmul.bf16.vlgmr.msra.gmra.mxu2 %v15650_v56  ;;  %v11947_v10 = vld [vmem:[%s15200_s2 + $0x1468] sm:$0xf]  ;;  %v14294_v34 = vld [vmem:[%s15200_s2 + $0x1474] sm:$0xf0]  ;;  %v12348_v27 = vor.u32 %v14394_v49, %v12347_v14 }
 0x2fb   : > { %7983 = vmatpush.bf16.msrb.mxu2 %v12268_v58  ;;  %7949 = vmatmul.bf16.vlgmr.msra.gmra.mxu3 %v15656_v60  ;;  %v12075_v54 = vld [vmem:[%s15200_s2 + $0x1568] sm:$0xf]  ;;  %v14326_v1 = vld [vmem:[%s15200_s2 + $0x1574] sm:$0xf0]  ;;  %v11948_v51 = vor.u32 %v14294_v34, %v11947_v10 }
 0x2fc   : > { %7997 = vmatpush.bf16.msrb.mxu3 %v12396_v3  ;;  %v12203_v17 = vld [vmem:[%s15200_s2 + $0x1668] sm:$0xf]  ;;  %v14358_v28 = vld [vmem:[%s15200_s2 + $0x1674] sm:$0xf0]  ;;  %v12076_v58 = vor.u32 %v14326_v1, %v12075_v54 }
 0x2fd   : > { %7956 = vmatpush.bf16.msrb.mxu0 %v11996_v62  ;;  %v12331_v5 = vld [vmem:[%s15200_s2 + $0x1768] sm:$0xf]  ;;  %v14390_v30 = vld [vmem:[%s15200_s2 + $0x1774] sm:$0xf0]  ;;  %v12204_v22 = vor.u32 %v14358_v28, %v12203_v17 }
 0x2fe   : > { %7970 = vmatpush.bf16.msrb.mxu1 %v12124_v59  ;;  %v11931_v29 = vld [vmem:[%s15200_s2 + $0x1448] sm:$0xf]  ;;  %v14290_v16 = vld [vmem:[%s15200_s2 + $0x1454] sm:$0xf0]  ;;  %v12332_v2 = vor.u32 %v14390_v30, %v12331_v5 }
 0x2ff   : > { %7984 = vmatpush.bf16.msrb.mxu2 %v12252_v24  ;;  %v12059_v3 = vld [vmem:[%s15200_s2 + $0x1548] sm:$0xf]  ;;  %v14322_v26 = vld [vmem:[%s15200_s2 + $0x1554] sm:$0xf0]  ;;  %v11932_v59 = vor.u32 %v14290_v16, %v11931_v29 }
 0x300   : > { %7998 = vmatpush.bf16.msrb.mxu3 %v12380_v21  ;;  %v12187_v55 = vld [vmem:[%s15200_s2 + $0x1648] sm:$0xf]  ;;  %v14354_v6 = vld [vmem:[%s15200_s2 + $0x1654] sm:$0xf0]  ;;  %v12060_v24 = vor.u32 %v14322_v26, %v12059_v3 }
 0x301   : > { %7957 = vmatpush.bf16.msrb.mxu0 %v11980_v25  ;;  %v12315_v23 = vld [vmem:[%s15200_s2 + $0x1748] sm:$0xf]  ;;  %v14386_v62 = vld [vmem:[%s15200_s2 + $0x1754] sm:$0xf0]  ;;  %v12188_v53 = vor.u32 %v14354_v6, %v12187_v55 }
 0x302   : > { %7971 = vmatpush.bf16.msrb.mxu1 %v12108_v13  ;;  %v11915_v11 = vld [vmem:[%s15200_s2 + $0x1428] sm:$0xf]  ;;  %v14286_v15 = vld [vmem:[%s15200_s2 + $0x1434] sm:$0xf0]  ;;  %v12316_v20 = vor.u32 %v14386_v62, %v12315_v23 }
 0x303   : > { %7985 = vmatpush.bf16.msrb.mxu2 %v12236_v0  ;;  %v12043_v21 = vld [vmem:[%s15200_s2 + $0x1528] sm:$0xf]  ;;  %v14318_v38 = vld [vmem:[%s15200_s2 + $0x1534] sm:$0xf0]  ;;  %v11916_v13 = vor.u32 %v14286_v15, %v11915_v11 }
 0x304   : > { %7999 = vmatpush.bf16.msrb.mxu3 %v12364_v35  ;;  %v12171_v31 = vld [vmem:[%s15200_s2 + $0x1628] sm:$0xf]  ;;  %v14350_v12 = vld [vmem:[%s15200_s2 + $0x1634] sm:$0xf0]  ;;  %v12044_v19 = vor.u32 %v14318_v38, %v12043_v21 }
 0x305   : > { %7958 = vmatpush.bf16.msrb.mxu0 %v11964_v63  ;;  %v12299_v18 = vld [vmem:[%s15200_s2 + $0x1728] sm:$0xf]  ;;  %v14382_v25 = vld [vmem:[%s15200_s2 + $0x1734] sm:$0xf0]  ;;  %v12172_v46 = vor.u32 %v14350_v12, %v12171_v31 }
 0x306   : > { %7972 = vmatpush.bf16.msrb.mxu1 %v12092_v61  ;;  %v11899_v0 = vld [vmem:[%s15200_s2 + $0x1408] sm:$0xf]  ;;  %v14282_v43 = vld [vmem:[%s15200_s2 + $0x1414] sm:$0xf0]  ;;  %v12300_v4 = vor.u32 %v14382_v25, %v12299_v18 }
 0x307   : > { %7986 = vmatpush.bf16.msrb.mxu2 %v12220_v7  ;;  %v12027_v35 = vld [vmem:[%s15200_s2 + $0x1508] sm:$0xf]  ;;  %v14314_v8 = vld [vmem:[%s15200_s2 + $0x1514] sm:$0xf0]  ;;  %v11900_v34 = vor.u32 %v14282_v43, %v11899_v0 }
 0x308   : > { %8000 = vmatpush.bf16.msrb.mxu3 %v12348_v27  ;;  %v12155_v50 = vld [vmem:[%s15200_s2 + $0x1608] sm:$0xf]  ;;  %v14346_v14 = vld [vmem:[%s15200_s2 + $0x1614] sm:$0xf0]  ;;  %v12028_v17 = vor.u32 %v14314_v8, %v12027_v35 }
 0x309   : > { %7959 = vmatpush.bf16.msrb.mxu0 %v11948_v51  ;;  %v12283_v49 = vld [vmem:[%s15200_s2 + $0x1708] sm:$0xf]  ;;  %v14378_v63 = vld [vmem:[%s15200_s2 + $0x1714] sm:$0xf0]  ;;  %v12156_v28 = vor.u32 %v14346_v14, %v12155_v50 }
 0x30a   : > { %7973 = vmatpush.bf16.msrb.mxu1 %v12076_v58  ;;  %v12523_v61 = vld [vmem:[%s15200_s2 + $0x18e8] sm:$0xf]  ;;  %v14438_v7 = vld [vmem:[%s15200_s2 + $0x18f4] sm:$0xf0]  ;;  %v12284_v51 = vor.u32 %v14378_v63, %v12283_v49 }
 0x30b   : > { %7987 = vmatpush.bf16.msrb.mxu2 %v12204_v22  ;;  %v12651_v10 = vld [vmem:[%s15200_s2 + $0x19e8] sm:$0xf]  ;;  %v14470_v54 = vld [vmem:[%s15200_s2 + $0x19f4] sm:$0xf0]  ;;  %v12524_v58 = vor.u32 %v14438_v7, %v12523_v61 }
 0x30c   : > { %8001 = vmatpush.bf16.msrb.mxu3 %v12332_v2  ;;  %v12779_v27 = vld [vmem:[%s15200_s2 + $0x1ae8] sm:$0xf]  ;;  %v14502_v1 = vld [vmem:[%s15200_s2 + $0x1af4] sm:$0xf0]  ;;  %v12652_v22 = vor.u32 %v14470_v54, %v12651_v10 }
 0x30d   : > { %7960 = vmatpush.bf16.msrb.mxu0 %v11932_v59  ;;  %v12907_v5 = vld [vmem:[%s15200_s2 + $0x1be8] sm:$0xf]  ;;  %v14534_v30 = vld [vmem:[%s15200_s2 + $0x1bf4] sm:$0xf0]  ;;  %v12780_v29 = vor.u32 %v14502_v1, %v12779_v27 }
 0x30e   : > { %7974 = vmatpush.bf16.msrb.mxu1 %v12060_v24  ;;  %v12507_v16 = vld [vmem:[%s15200_s2 + $0x18c8] sm:$0xf]  ;;  %v14434_v3 = vld [vmem:[%s15200_s2 + $0x18d4] sm:$0xf0]  ;;  %v12908_v26 = vor.u32 %v14534_v30, %v12907_v5 }
 0x30f   : > { %7988 = vmatpush.bf16.msrb.mxu2 %v12188_v53  ;;  %v12635_v2 = vld [vmem:[%s15200_s2 + $0x19c8] sm:$0xf]  ;;  %v14466_v55 = vld [vmem:[%s15200_s2 + $0x19d4] sm:$0xf0]  ;;  %v12508_v24 = vor.u32 %v14434_v3, %v12507_v16 }
 0x310   : > { %8002 = vmatpush.bf16.msrb.mxu3 %v12316_v20  ;;  %v12763_v6 = vld [vmem:[%s15200_s2 + $0x1ac8] sm:$0xf]  ;;  %v14498_v23 = vld [vmem:[%s15200_s2 + $0x1ad4] sm:$0xf0]  ;;  %v12636_v53 = vor.u32 %v14466_v55, %v12635_v2 }
 0x311   : > { %7961 = vmatpush.bf16.msrb.mxu0 %v11916_v13  ;;  %v12891_v62 = vld [vmem:[%s15200_s2 + $0x1bc8] sm:$0xf]  ;;  %v14530_v59 = vld [vmem:[%s15200_s2 + $0x1bd4] sm:$0xf0]  ;;  %v12764_v11 = vor.u32 %v14498_v23, %v12763_v6 }
 0x312   : > { %7975 = vmatpush.bf16.msrb.mxu1 %v12044_v19  ;;  %v12491_v15 = vld [vmem:[%s15200_s2 + $0x18a8] sm:$0xf]  ;;  %v14430_v21 = vld [vmem:[%s15200_s2 + $0x18b4] sm:$0xf0]  ;;  %v12892_v38 = vor.u32 %v14530_v59, %v12891_v62 }
 0x313   : > { %7989 = vmatpush.bf16.msrb.mxu2 %v12172_v46  ;;  %v12619_v20 = vld [vmem:[%s15200_s2 + $0x19a8] sm:$0xf]  ;;  %v14462_v31 = vld [vmem:[%s15200_s2 + $0x19b4] sm:$0xf0]  ;;  %v12492_v46 = vor.u32 %v14430_v21, %v12491_v15 }
 0x314   : > { %8003 = vmatpush.bf16.msrb.mxu3 %v12300_v4  ;;  %v12747_v12 = vld [vmem:[%s15200_s2 + $0x1aa8] sm:$0xf]  ;;  %v14494_v18 = vld [vmem:[%s15200_s2 + $0x1ab4] sm:$0xf0]  ;;  %v12620_v35 = vor.u32 %v14462_v31, %v12619_v20 }
 0x315   : > { %7962 = vmatpush.bf16.msrb.mxu0 %v11900_v34  ;;  %v18094_v25 = vld [vmem:[#allocation21_spill] sm:$0xff]  ;;  %v18095_v13 = vld [vmem:[#allocation22_spill] sm:$0xff]  ;;  %v18096_v19 = vld [vmem:[#allocation23_spill] sm:$0xff]  ;;  %v12748_v8 = vor.u32 %v14494_v18, %v12747_v12 }
 0x316   : > { %7976 = vmatpush.bf16.msrb.mxu1 %v12028_v17  ;;  %v12875_v0 = vld [vmem:[%s15200_s2 + $0x1ba8] sm:$0xf]  ;;  %v14526_v43 = vld [vmem:[%s15200_s2 + $0x1bb4] sm:$0xf0] }
 0x317   : > { %7990 = vmatpush.bf16.msrb.mxu2 %v12156_v28  ;;  %v12475_v50 = vld [vmem:[%s15200_s2 + $0x1888] sm:$0xf]  ;;  %v14426_v4 = vld [vmem:[%s15200_s2 + $0x1894] sm:$0xf0]  ;;  %v12876_v49 = vor.u32 %v14526_v43, %v12875_v0 }
 0x318   : > { %8004 = vmatpush.bf16.msrb.mxu3 %v12284_v51  ;;  %7963 = vmatmul.bf16.vlgmr.msrb.gmra.mxu0 %v15729_v9  ;;  %v12603_v14 = vld [vmem:[%s15200_s2 + $0x1988] sm:$0xf]  ;;  %v14458_v63 = vld [vmem:[%s15200_s2 + $0x1994] sm:$0xf0]  ;;  %v12476_v54 = vor.u32 %v14426_v4, %v12475_v50 }
 0x319   : > { %8011 = vmatpush.bf16.msra.mxu0 %v12524_v58  ;;  %7977 = vmatmul.bf16.vlgmr.msrb.gmra.mxu1 %v18095_v13  ;;  %v12731_v61 = vld [vmem:[%s15200_s2 + $0x1a88] sm:$0xf]  ;;  %v14490_v7 = vld [vmem:[%s15200_s2 + $0x1a94] sm:$0xf0]  ;;  %v12604_v27 = vor.u32 %v14458_v63, %v12603_v14  ;;  %v13920_v13 = vld [vmem:[%s15200_s2 + $0x8cc] sm:$0xf] }
 0x31a   : > { %8025 = vmatpush.bf16.msra.mxu1 %v12652_v22  ;;  %7991 = vmatmul.bf16.vlgmr.msrb.gmra.mxu2 %v18094_v25  ;;  %v12859_v10 = vld [vmem:[%s15200_s2 + $0x1b88] sm:$0xf]  ;;  %v14522_v34 = vld [vmem:[%s15200_s2 + $0x1b94] sm:$0xf0]  ;;  %v12732_v1 = vor.u32 %v14490_v7, %v12731_v61  ;;  %v10461_v25 = vld [vmem:[%s15200_s2 + $0x8d8] sm:$0xf0] }
 0x31b   : > { %8039 = vmatpush.bf16.msra.mxu2 %v12780_v29  ;;  %8005 = vmatmul.bf16.vlgmr.msrb.gmra.mxu3 %v18096_v19  ;;  %v12459_v17 = vld [vmem:[%s15200_s2 + $0x1868] sm:$0xf]  ;;  %v14422_v28 = vld [vmem:[%s15200_s2 + $0x1874] sm:$0xf0]  ;;  %v12860_v30 = vor.u32 %v14522_v34, %v12859_v10  ;;  %v13956_v19 = vld [vmem:[%s15200_s2 + $0x9ec] sm:$0xf] }
 0x31c   : > { %8053 = vmatpush.bf16.msra.mxu3 %v12908_v26  ;;  %v12587_v5 = vld [vmem:[%s15200_s2 + $0x1968] sm:$0xf]  ;;  %v14454_v51 = vld [vmem:[%s15200_s2 + $0x1974] sm:$0xf0]  ;;  %v12460_v3 = vor.u32 %v14422_v28, %v12459_v17 }
 0x31d   : > { %8012 = vmatpush.bf16.msra.mxu0 %v12508_v24  ;;  %v12715_v58 = vld [vmem:[%s15200_s2 + $0x1a68] sm:$0xf]  ;;  %v14486_v22 = vld [vmem:[%s15200_s2 + $0x1a74] sm:$0xf0]  ;;  %v12588_v2 = vor.u32 %v14454_v51, %v12587_v5 }
 0x31e   : > { %8026 = vmatpush.bf16.msra.mxu1 %v12636_v53  ;;  %v12843_v29 = vld [vmem:[%s15200_s2 + $0x1b68] sm:$0xf]  ;;  %v14518_v16 = vld [vmem:[%s15200_s2 + $0x1b74] sm:$0xf0]  ;;  %v12716_v26 = vor.u32 %v14486_v22, %v12715_v58 }
 0x31f   : > { %8040 = vmatpush.bf16.msra.mxu2 %v12764_v11  ;;  %v12443_v55 = vld [vmem:[%s15200_s2 + $0x1848] sm:$0xf]  ;;  %v14418_v6 = vld [vmem:[%s15200_s2 + $0x1854] sm:$0xf0]  ;;  %v12844_v62 = vor.u32 %v14518_v16, %v12843_v29 }
 0x320   : > { %8054 = vmatpush.bf16.msra.mxu3 %v12892_v38  ;;  %v12571_v23 = vld [vmem:[%s15200_s2 + $0x1948] sm:$0xf]  ;;  %v14450_v59 = vld [vmem:[%s15200_s2 + $0x1954] sm:$0xf0]  ;;  %v12444_v21 = vor.u32 %v14418_v6, %v12443_v55 }
 0x321   : > { %8013 = vmatpush.bf16.msra.mxu0 %v12492_v46  ;;  %v12699_v24 = vld [vmem:[%s15200_s2 + $0x1a48] sm:$0xf]  ;;  %v14482_v53 = vld [vmem:[%s15200_s2 + $0x1a54] sm:$0xf0]  ;;  %v12572_v20 = vor.u32 %v14450_v59, %v12571_v23 }
 0x322   : > { %8027 = vmatpush.bf16.msra.mxu1 %v12620_v35  ;;  %v12827_v11 = vld [vmem:[%s15200_s2 + $0x1b48] sm:$0xf]  ;;  %v14514_v15 = vld [vmem:[%s15200_s2 + $0x1b54] sm:$0xf0]  ;;  %v12700_v38 = vor.u32 %v14482_v53, %v12699_v24 }
 0x323   : > { %8041 = vmatpush.bf16.msra.mxu2 %v12748_v8  ;;  %v12427_v31 = vld [vmem:[%s15200_s2 + $0x1828] sm:$0xf]  ;;  %v14414_v12 = vld [vmem:[%s15200_s2 + $0x1834] sm:$0xf0]  ;;  %v12828_v0 = vor.u32 %v14514_v15, %v12827_v11 }
 0x324   : > { %8055 = vmatpush.bf16.msra.mxu3 %v12876_v49  ;;  %v12555_v18 = vld [vmem:[%s15200_s2 + $0x1928] sm:$0xf]  ;;  %v14446_v43 = vld [vmem:[%s15200_s2 + $0x1934] sm:$0xf0]  ;;  %v12428_v4 = vor.u32 %v14414_v12, %v12427_v31 }
 0x325   : > { %8014 = vmatpush.bf16.msra.mxu0 %v12476_v54  ;;  %v12683_v46 = vld [vmem:[%s15200_s2 + $0x1a28] sm:$0xf]  ;;  %v14478_v35 = vld [vmem:[%s15200_s2 + $0x1a34] sm:$0xf0]  ;;  %v12556_v63 = vor.u32 %v14446_v43, %v12555_v18 }
 0x326   : > { %8028 = vmatpush.bf16.msra.mxu1 %v12604_v27  ;;  %v12811_v8 = vld [vmem:[%s15200_s2 + $0x1b28] sm:$0xf]  ;;  %v14510_v50 = vld [vmem:[%s15200_s2 + $0x1b34] sm:$0xf0]  ;;  %v12684_v61 = vor.u32 %v14478_v35, %v12683_v46 }
 0x327   : > { %8042 = vmatpush.bf16.msra.mxu2 %v12732_v1  ;;  %v12411_v14 = vld [vmem:[%s15200_s2 + $0x1808] sm:$0xf]  ;;  %v14410_v49 = vld [vmem:[%s15200_s2 + $0x1814] sm:$0xf0]  ;;  %v12812_v54 = vor.u32 %v14510_v50, %v12811_v8 }
 0x328   : > { %8056 = vmatpush.bf16.msra.mxu3 %v12860_v30  ;;  %v12539_v7 = vld [vmem:[%s15200_s2 + $0x1908] sm:$0xf]  ;;  %v14442_v10 = vld [vmem:[%s15200_s2 + $0x1914] sm:$0xf0]  ;;  %v12412_v51 = vor.u32 %v14410_v49, %v12411_v14 }
 0x329   : > { %8015 = vmatpush.bf16.msra.mxu0 %v12460_v3  ;;  %v12667_v34 = vld [vmem:[%s15200_s2 + $0x1a08] sm:$0xf]  ;;  %v14474_v27 = vld [vmem:[%s15200_s2 + $0x1a14] sm:$0xf0]  ;;  %v12540_v16 = vor.u32 %v14442_v10, %v12539_v7 }
 0x32a   : > { %8029 = vmatpush.bf16.msra.mxu1 %v12588_v2  ;;  %v12795_v1 = vld [vmem:[%s15200_s2 + $0x1b08] sm:$0xf]  ;;  %v14506_v17 = vld [vmem:[%s15200_s2 + $0x1b14] sm:$0xf0]  ;;  %v12668_v3 = vor.u32 %v14474_v27, %v12667_v34 }
 0x32b   : > { %8043 = vmatpush.bf16.msra.mxu2 %v12716_v26  ;;  %v13035_v28 = vld [vmem:[%s15200_s2 + $0x1ce8] sm:$0xf]  ;;  %v14566_v5 = vld [vmem:[%s15200_s2 + $0x1cf4] sm:$0xf0]  ;;  %v12796_v55 = vor.u32 %v14506_v17, %v12795_v1 }
 0x32c   : > { %8057 = vmatpush.bf16.msra.mxu3 %v12844_v62  ;;  %v13163_v30 = vld [vmem:[%s15200_s2 + $0x1de8] sm:$0xf]  ;;  %v14598_v58 = vld [vmem:[%s15200_s2 + $0x1df4] sm:$0xf0]  ;;  %v13036_v6 = vor.u32 %v14566_v5, %v13035_v28 }
 0x32d   : > { %8016 = vmatpush.bf16.msra.mxu0 %v12444_v21  ;;  %v13291_v22 = vld [vmem:[%s15200_s2 + $0x1ee8] sm:$0xf]  ;;  %v14630_v29 = vld [vmem:[%s15200_s2 + $0x1ef4] sm:$0xf0]  ;;  %v13164_v23 = vor.u32 %v14598_v58, %v13163_v30 }
 0x32e   : > { %8030 = vmatpush.bf16.msra.mxu1 %v12572_v20  ;;  %v13419_v2 = vld [vmem:[%s15200_s2 + $0x1fe8] sm:$0xf]  ;;  %v14662_v26 = vld [vmem:[%s15200_s2 + $0x1ff4] sm:$0xf0]  ;;  %v13292_v62 = vor.u32 %v14630_v29, %v13291_v22 }
 0x32f   : > { %8044 = vmatpush.bf16.msra.mxu2 %v12700_v38  ;;  %v13019_v59 = vld [vmem:[%s15200_s2 + $0x1cc8] sm:$0xf]  ;;  %v14562_v24 = vld [vmem:[%s15200_s2 + $0x1cd4] sm:$0xf0]  ;;  %v13420_v11 = vor.u32 %v14662_v26, %v13419_v2 }
 0x330   : > { %8058 = vmatpush.bf16.msra.mxu3 %v12828_v0  ;;  %v13147_v53 = vld [vmem:[%s15200_s2 + $0x1dc8] sm:$0xf]  ;;  %v14594_v15 = vld [vmem:[%s15200_s2 + $0x1dd4] sm:$0xf0]  ;;  %v13020_v12 = vor.u32 %v14562_v24, %v13019_v59 }
 0x331   : > { %8017 = vmatpush.bf16.msra.mxu0 %v12428_v4  ;;  %v13275_v21 = vld [vmem:[%s15200_s2 + $0x1ec8] sm:$0xf]  ;;  %v14626_v20 = vld [vmem:[%s15200_s2 + $0x1ed4] sm:$0xf0]  ;;  %v13148_v18 = vor.u32 %v14594_v15, %v13147_v53 }
 0x332   : > { %8031 = vmatpush.bf16.msra.mxu1 %v12556_v63  ;;  %v13403_v38 = vld [vmem:[%s15200_s2 + $0x1fc8] sm:$0xf]  ;;  %v14658_v31 = vld [vmem:[%s15200_s2 + $0x1fd4] sm:$0xf0]  ;;  %v13276_v0 = vor.u32 %v14626_v20, %v13275_v21 }
 0x333   : > { %8045 = vmatpush.bf16.msra.mxu2 %v12684_v61  ;;  %v13003_v43 = vld [vmem:[%s15200_s2 + $0x1ca8] sm:$0xf]  ;;  %v14558_v46 = vld [vmem:[%s15200_s2 + $0x1cb4] sm:$0xf0]  ;;  %v13404_v50 = vor.u32 %v14658_v31, %v13403_v38 }
 0x334   : > { %8059 = vmatpush.bf16.msra.mxu3 %v12812_v54  ;;  %v13131_v35 = vld [vmem:[%s15200_s2 + $0x1da8] sm:$0xf]  ;;  %v14590_v4 = vld [vmem:[%s15200_s2 + $0x1db4] sm:$0xf0]  ;;  %v13004_v54 = vor.u32 %v14558_v46, %v13003_v43 }
 0x335   : > { %8018 = vmatpush.bf16.msra.mxu0 %v12412_v51  ;;  %v18097_v8 = vld [vmem:[#allocation24_spill] sm:$0xff]  ;;  %v14622_v49 = vld [vmem:[%s15200_s2 + $0x1eb4] sm:$0xf0]  ;;  %v18098_v63 = vld [vmem:[#allocation25_spill] sm:$0xff]  ;;  %v13132_v27 = vor.u32 %v14590_v4, %v13131_v35 }
 0x336   : > { %8032 = vmatpush.bf16.msra.mxu1 %v12540_v16  ;;  %v13259_v14 = vld [vmem:[%s15200_s2 + $0x1ea8] sm:$0xf]  ;;  %v18099_v61 = vld [vmem:[#allocation26_spill] sm:$0xff]  ;;  %v18100_v34 = vld [vmem:[#allocation27_spill] sm:$0xff] }
 0x337   : > { %8046 = vmatpush.bf16.msra.mxu2 %v12668_v3  ;;  %v13387_v7 = vld [vmem:[%s15200_s2 + $0x1fa8] sm:$0xf]  ;;  %v14654_v10 = vld [vmem:[%s15200_s2 + $0x1fb4] sm:$0xf0]  ;;  %v13260_v1 = vor.u32 %v14622_v49, %v13259_v14 }
 0x338   : > { %8060 = vmatpush.bf16.msra.mxu3 %v12796_v55  ;;  %8019 = vmatmul.bf16.vlgmr.msra.gmra.mxu0 %v18097_v8  ;;  %v12987_v17 = vld [vmem:[%s15200_s2 + $0x1c88] sm:$0xf]  ;;  %v14554_v28 = vld [vmem:[%s15200_s2 + $0x1c94] sm:$0xf0]  ;;  %v13388_v30 = vor.u32 %v14654_v10, %v13387_v7  ;;  %v10477_v8 = vld [vmem:[%s15200_s2 + $0x8f8] sm:$0xf0] }
 0x339   : > { %8067 = vmatpush.bf16.msrb.mxu0 %v13036_v6  ;;  %8033 = vmatmul.bf16.vlgmr.msra.gmra.mxu1 %v18099_v61  ;;  %v13115_v5 = vld [vmem:[%s15200_s2 + $0x1d88] sm:$0xf]  ;;  %v14586_v51 = vld [vmem:[%s15200_s2 + $0x1d94] sm:$0xf0]  ;;  %v12988_v3 = vor.u32 %v14554_v28, %v12987_v17  ;;  %v10237_v61 = vld [vmem:[%s15200_s2 + $0x718] sm:$0xf0] }
 0x33a   : > { %8081 = vmatpush.bf16.msrb.mxu1 %v13164_v23  ;;  %8047 = vmatmul.bf16.vlgmr.msra.gmra.mxu2 %v18098_v63  ;;  %v13243_v58 = vld [vmem:[%s15200_s2 + $0x1e88] sm:$0xf]  ;;  %v14618_v22 = vld [vmem:[%s15200_s2 + $0x1e94] sm:$0xf0]  ;;  %v13116_v2 = vor.u32 %v14586_v51, %v13115_v5  ;;  %v13924_v63 = vld [vmem:[%s15200_s2 + $0x8ec] sm:$0xf] }
 0x33b   : > { %8095 = vmatpush.bf16.msrb.mxu2 %v13292_v62  ;;  %8061 = vmatmul.bf16.vlgmr.msra.gmra.mxu3 %v18100_v34  ;;  %v13371_v29 = vld [vmem:[%s15200_s2 + $0x1f88] sm:$0xf]  ;;  %v14650_v16 = vld [vmem:[%s15200_s2 + $0x1f94] sm:$0xf0]  ;;  %v13244_v26 = vor.u32 %v14618_v22, %v13243_v58  ;;  %v13876_v34 = vld [vmem:[%s15200_s2 + $0x76c] sm:$0xf] }
 0x33c   : > { %8109 = vmatpush.bf16.msrb.mxu3 %v13420_v11  ;;  %v12971_v55 = vld [vmem:[%s15200_s2 + $0x1c68] sm:$0xf]  ;;  %v14550_v6 = vld [vmem:[%s15200_s2 + $0x1c74] sm:$0xf0]  ;;  %v13372_v62 = vor.u32 %v14650_v16, %v13371_v29 }
 0x33d   : > { %8068 = vmatpush.bf16.msrb.mxu0 %v13020_v12  ;;  %v13099_v23 = vld [vmem:[%s15200_s2 + $0x1d68] sm:$0xf]  ;;  %v14582_v59 = vld [vmem:[%s15200_s2 + $0x1d74] sm:$0xf0]  ;;  %v12972_v21 = vor.u32 %v14550_v6, %v12971_v55 }
 0x33e   : > { %8082 = vmatpush.bf16.msrb.mxu1 %v13148_v18  ;;  %v13227_v24 = vld [vmem:[%s15200_s2 + $0x1e68] sm:$0xf]  ;;  %v14614_v53 = vld [vmem:[%s15200_s2 + $0x1e74] sm:$0xf0]  ;;  %v13100_v20 = vor.u32 %v14582_v59, %v13099_v23 }
 0x33f   : > { %8096 = vmatpush.bf16.msrb.mxu2 %v13276_v0  ;;  %v13355_v11 = vld [vmem:[%s15200_s2 + $0x1f68] sm:$0xf]  ;;  %v14646_v15 = vld [vmem:[%s15200_s2 + $0x1f74] sm:$0xf0]  ;;  %v13228_v38 = vor.u32 %v14614_v53, %v13227_v24  ;;  %v13668_v24 = vld [vmem:[%s15200_s2 + $0xec] sm:$0xf] }
 0x340   : > { %8110 = vmatpush.bf16.msrb.mxu3 %v13404_v50  ;;  %v12955_v31 = vld [vmem:[%s15200_s2 + $0x1c48] sm:$0xf]  ;;  %v14546_v12 = vld [vmem:[%s15200_s2 + $0x1c54] sm:$0xf0]  ;;  %v13356_v0 = vor.u32 %v14646_v15, %v13355_v11  ;;  %v9453_v53 = vld [vmem:[%s15200_s2 + $0xf8] sm:$0xf0] }
 0x341   : > { %8069 = vmatpush.bf16.msrb.mxu0 %v13004_v54  ;;  %v13083_v18 = vld [vmem:[%s15200_s2 + $0x1d48] sm:$0xf]  ;;  %v14578_v43 = vld [vmem:[%s15200_s2 + $0x1d54] sm:$0xf0]  ;;  %v12956_v14 = vor.u32 %v14546_v12, %v12955_v31  ;;  %v13700_v11 = vld [vmem:[%s15200_s2 + $0x1ec] sm:$0xf] }
 0x342   : > { %8083 = vmatpush.bf16.msrb.mxu1 %v13132_v27  ;;  %v13211_v46 = vld [vmem:[%s15200_s2 + $0x1e48] sm:$0xf]  ;;  %v14610_v35 = vld [vmem:[%s15200_s2 + $0x1e54] sm:$0xf0]  ;;  %v13084_v49 = vor.u32 %v14578_v43, %v13083_v18  ;;  %v13764_v18 = vld [vmem:[%s15200_s2 + $0x3ec] sm:$0xf] }
 0x343   : > { %8097 = vmatpush.bf16.msrb.mxu2 %v13260_v1  ;;  %v13339_v50 = vld [vmem:[%s15200_s2 + $0x1f48] sm:$0xf]  ;;  %v14642_v4 = vld [vmem:[%s15200_s2 + $0x1f54] sm:$0xf0]  ;;  %v13212_v7 = vor.u32 %v14610_v35, %v13211_v46  ;;  %v9456_v46 = vor.u32 %v13668_v24, %v9453_v53  ;;  %v9805_v24 = vld [vmem:[%s15200_s2 + $0x3b8] sm:$0xf0] }
 0x344   : > { %8111 = vmatpush.bf16.msrb.mxu3 %v13388_v30  ;;  %v12939_v10 = vld [vmem:[%s15200_s2 + $0x1c28] sm:$0xf]  ;;  %v14542_v54 = vld [vmem:[%s15200_s2 + $0x1c34] sm:$0xf0]  ;;  %v13340_v1 = vor.u32 %v14642_v4, %v13339_v50  ;;  %v13664_v4 = vld [vmem:[%s15200_s2 + $0xcc] sm:$0xf] }
 0x345   : > { %8070 = vmatpush.bf16.msrb.mxu0 %v12988_v3  ;;  %v13067_v27 = vld [vmem:[%s15200_s2 + $0x1d28] sm:$0xf]  ;;  %v14574_v17 = vld [vmem:[%s15200_s2 + $0x1d34] sm:$0xf0]  ;;  %v12940_v58 = vor.u32 %v14542_v54, %v12939_v10  ;;  %v9565_v10 = vld [vmem:[%s15200_s2 + $0x1d8] sm:$0xf0] }
 0x346   : > { %8084 = vmatpush.bf16.msrb.mxu1 %v13116_v2  ;;  %v13195_v28 = vld [vmem:[%s15200_s2 + $0x1e28] sm:$0xf]  ;;  %v14606_v5 = vld [vmem:[%s15200_s2 + $0x1e34] sm:$0xf0]  ;;  %v13068_v16 = vor.u32 %v14574_v17, %v13067_v27  ;;  %v13728_v54 = vld [vmem:[%s15200_s2 + $0x2cc] sm:$0xf] }
 0x347   : > { %8098 = vmatpush.bf16.msrb.mxu2 %v13244_v26  ;;  %v13323_v30 = vld [vmem:[%s15200_s2 + $0x1f28] sm:$0xf]  ;;  %v14638_v51 = vld [vmem:[%s15200_s2 + $0x1f34] sm:$0xf0]  ;;  %v13196_v3 = vor.u32 %v14606_v5, %v13195_v28  ;;  %v9693_v27 = vld [vmem:[%s15200_s2 + $0x2d8] sm:$0xf0]  ;;  %v17288_v5 = vpop.f32.mrf.mxu1 }
 0x348   : > { %8112 = vmatpush.bf16.msrb.mxu3 %v13372_v62  ;;  %v12923_v22 = vld [vmem:[%s15200_s2 + $0x1c08] sm:$0xf]  ;;  %v14538_v29 = vld [vmem:[%s15200_s2 + $0x1c14] sm:$0xf0]  ;;  %v13324_v6 = vor.u32 %v14638_v51, %v13323_v30  ;;  %v13760_v17 = vld [vmem:[%s15200_s2 + $0x3cc] sm:$0xf] }
 0x349   : > { %8071 = vmatpush.bf16.msrb.mxu0 %v12972_v21  ;;  %v13051_v2 = vld [vmem:[%s15200_s2 + $0x1d08] sm:$0xf]  ;;  %v14570_v26 = vld [vmem:[%s15200_s2 + $0x1d14] sm:$0xf0]  ;;  %v12924_v15 = vor.u32 %v14538_v29, %v12923_v22  ;;  %v9581_v21 = vld [vmem:[%s15200_s2 + $0x1f8] sm:$0xf0] }
 0x34a   : > { %8085 = vmatpush.bf16.msrb.mxu1 %v13100_v20  ;;  %v13179_v55 = vld [vmem:[%s15200_s2 + $0x1e08] sm:$0xf]  ;;  %v14602_v23 = vld [vmem:[%s15200_s2 + $0x1e14] sm:$0xf0]  ;;  %v13732_v20 = vld [vmem:[%s15200_s2 + $0x2ec] sm:$0xf]  ;;  %v13052_v31 = vor.u32 %v14570_v26, %v13051_v2  ;;  %v9584_v35 = vor.u32 %v13700_v11, %v9581_v21 }
 0x34b   : > { %8099 = vmatpush.bf16.msrb.mxu2 %v13228_v38  ;;  %v13307_v62 = vld [vmem:[%s15200_s2 + $0x1f08] sm:$0xf]  ;;  %v14634_v59 = vld [vmem:[%s15200_s2 + $0x1f14] sm:$0xf0]  ;;  %v9709_v38 = vld [vmem:[%s15200_s2 + $0x2f8] sm:$0xf0]  ;;  %v13180_v12 = vor.u32 %v14602_v23, %v13179_v55 }
 0x34c   : > { %8113 = vmatpush.bf16.msrb.mxu3 %v13356_v0  ;;  %v9837_v0 = vld [vmem:[%s15200_s2 + $0x3f8] sm:$0xf0]  ;;  %v13308_v43 = vor.u32 %v14634_v59, %v13307_v62  ;;  %v9712_v50 = vor.u32 %v13732_v20, %v9709_v38  ;;  %v13660_v22 = vld [vmem:[%s15200_s2 + $0xac] sm:$0xf]  ;;  %v18103_v62 = vld [vmem:[#allocation30_spill] sm:$0xff] }
 0x34d   : > { %8072 = vmatpush.bf16.msrb.mxu0 %v12956_v14  ;;  %v9437_v14 = vld [vmem:[%s15200_s2 + $0xd8] sm:$0xf0]  ;;  %v13724_v55 = vld [vmem:[%s15200_s2 + $0x2ac] sm:$0xf] }
 0x34e   : > { %8086 = vmatpush.bf16.msrb.mxu1 %v13084_v49  ;;  %v13696_v49 = vld [vmem:[%s15200_s2 + $0x1cc] sm:$0xf]  ;;  %v9821_v28 = vld [vmem:[%s15200_s2 + $0x3d8] sm:$0xf0]  ;;  %v9440_v30 = vor.u32 %v13664_v4, %v9437_v14 }
 0x34f   : > { %8100 = vmatpush.bf16.msrb.mxu2 %v13212_v7  ;;  %v9840_v7 = vor.u32 %v13764_v18, %v9837_v0  ;;  %v9568_v51 = vor.u32 %v13696_v49, %v9565_v10  ;;  %v9421_v29 = vld [vmem:[%s15200_s2 + $0xb8] sm:$0xf0]  ;;  %v9824_v2 = vor.u32 %v13760_v17, %v9821_v28  ;;  %v18102_v23 = vld [vmem:[#allocation29_spill] sm:$0xff]  ;;  %v17319_v28 = vpop.f32.mrf.mxu1 }
 0x350   : > { %8114 = vmatpush.bf16.msrb.mxu3 %v13340_v1  ;;  %v17284_v1 = vpop.f32.mrf.mxu0  ;;  %v9549_v26 = vld [vmem:[%s15200_s2 + $0x1b8] sm:$0xf0]  ;;  %v13756_v59 = vld [vmem:[%s15200_s2 + $0x3ac] sm:$0xf]  ;;  %v9424_v11 = vor.u32 %v13660_v22, %v9421_v29 }
 0x351   : > { %8073 = vmatpush.bf16.msrb.mxu0 %v12940_v58  ;;  %v9696_v58 = vor.u32 %v13728_v54, %v9693_v27  ;;  %v18104_v53 = vld [vmem:[#allocation31_spill] sm:$0xff]  ;;  %v13656_v20 = vld [vmem:[%s15200_s2 + $0x8c] sm:$0xf]  ;;  %v9808_v18 = vor.u32 %v13756_v59, %v9805_v24 }
 0x352   : > { %8087 = vmatpush.bf16.msrb.mxu1 %v13068_v16  ;;  %v13692_v16 = vld [vmem:[%s15200_s2 + $0x1ac] sm:$0xf]  ;;  %v9405_v38 = vld [vmem:[%s15200_s2 + $0x98] sm:$0xf0] }
 0x353   : > { %8101 = vmatpush.bf16.msrb.mxu2 %v13196_v3  ;;  %v18101_v3 = vld [vmem:[#allocation28_spill] sm:$0xff]  ;;  %v9533_v0 = vld [vmem:[%s15200_s2 + $0x198] sm:$0xf0]  ;;  %v9408_v14 = vor.u32 %v13656_v20, %v9405_v38  ;;  %v13652_v54 = vld [vmem:[%s15200_s2 + $0x6c] sm:$0xf] }
 0x354   : > { %8115 = vmatpush.bf16.msrb.mxu3 %v13324_v6  ;;  %v9677_v6 = vld [vmem:[%s15200_s2 + $0x2b8] sm:$0xf0]  ;;  %v13684_v17 = vld [vmem:[%s15200_s2 + $0x16c] sm:$0xf] }
 0x355   : > { %8074 = vmatpush.bf16.msrb.mxu0 %v12924_v15  ;;  %v9552_v15 = vor.u32 %v13692_v16, %v9549_v26  ;;  %v9680_v21 = vor.u32 %v13724_v55, %v9677_v6  ;;  %v9789_v4 = vld [vmem:[%s15200_s2 + $0x398] sm:$0xf0]  ;;  %v13748_v29 = vld [vmem:[%s15200_s2 + $0x36c] sm:$0xf] }
 0x356   : > { %8088 = vmatpush.bf16.msrb.mxu1 %v13052_v31  ;;  %v13688_v31 = vld [vmem:[%s15200_s2 + $0x18c] sm:$0xf]  ;;  %v9389_v27 = vld [vmem:[%s15200_s2 + $0x78] sm:$0xf0] }
 0x357   : > { %8102 = vmatpush.bf16.msrb.mxu2 %v13180_v12  ;;  %v17305_v12 = vpop.f32.mrf.mxu2  ;;  %v9645_v22 = vld [vmem:[%s15200_s2 + $0x278] sm:$0xf0]  ;;  %v13648_v6 = vld [vmem:[%s15200_s2 + $0x4c] sm:$0xf] }
 0x358   : > { %8116 = vmatpush.bf16.msrb.mxu3 %v13308_v43  ;;  %8075 = vmatmul.bf16.vlgmr.msrb.gmra.mxu0 %v18101_v3  ;;  %v13720_v43 = vld [vmem:[%s15200_s2 + $0x28c] sm:$0xf]  ;;  %v17314_v49 = vpop.f32.mrf.mxu0  ;;  %v9773_v16 = vld [vmem:[%s15200_s2 + $0x378] sm:$0xf0] }
 0x359   : > { %8123 = vmatpush.bf16.msra.mxu0 %v9456_v46  ;;  %8089 = vmatmul.bf16.vlgmr.msrb.gmra.mxu1 %v18103_v62  ;;  %v9661_v46 = vld [vmem:[%s15200_s2 + $0x298] sm:$0xf0]  ;;  %v13680_v24 = vld [vmem:[%s15200_s2 + $0x14c] sm:$0xf] }
 0x35a   : > { %8137 = vmatpush.bf16.msra.mxu1 %v9584_v35  ;;  %8103 = vmatmul.bf16.vlgmr.msrb.gmra.mxu2 %v18102_v23  ;;  %v17310_v35 = vpop.f32.mrf.mxu3  ;;  %v9664_v10 = vor.u32 %v13720_v43, %v9661_v46  ;;  %v9373_v59 = vld [vmem:[%s15200_s2 + $0x58] sm:$0xf0]  ;;  %v13744_v38 = vld [vmem:[%s15200_s2 + $0x34c] sm:$0xf] }
 0x35b   : > { %8151 = vmatpush.bf16.msra.mxu2 %v9712_v50  ;;  %8117 = vmatmul.bf16.vlgmr.msrb.gmra.mxu3 %v18104_v53  ;;  %v13752_v50 = vld [vmem:[%s15200_s2 + $0x38c] sm:$0xf]  ;;  %v9629_v20 = vld [vmem:[%s15200_s2 + $0x258] sm:$0xf0] }
 0x35c   : > { %8165 = vmatpush.bf16.msra.mxu3 %v9840_v7  ;;  %v9536_v7 = vor.u32 %v13688_v31, %v9533_v0  ;;  %v9757_v31 = vld [vmem:[%s15200_s2 + $0x358] sm:$0xf0]  ;;  %v9376_v0 = vor.u32 %v13648_v6, %v9373_v59  ;;  %v13672_v6 = vld [vmem:[%s15200_s2 + $0x10c] sm:$0xf] }
 0x35d   : > { %8124 = vmatpush.bf16.msra.mxu0 %v9440_v30  ;;  %v9792_v30 = vor.u32 %v13752_v50, %v9789_v4  ;;  %v13644_v4 = vld [vmem:[%s15200_s2 + $0x2c] sm:$0xf]  ;;  %v9469_v59 = vld [vmem:[%s15200_s2 + $0x118] sm:$0xf0] }
 0x35e   : > { %8138 = vmatpush.bf16.msra.mxu1 %v9568_v51  ;;  %v9517_v51 = vld [vmem:[%s15200_s2 + $0x178] sm:$0xf0]  ;;  %v13844_v62 = vld [vmem:[%s15200_s2 + $0x66c] sm:$0xf] }
 0x35f   : > { %8152 = vmatpush.bf16.msra.mxu2 %v9696_v58  ;;  %v13716_v58 = vld [vmem:[%s15200_s2 + $0x26c] sm:$0xf]  ;;  %v9520_v26 = vor.u32 %v13684_v17, %v9517_v51  ;;  %v9613_v17 = vld [vmem:[%s15200_s2 + $0x238] sm:$0xf0] }
 0x360   : > { %8166 = vmatpush.bf16.msra.mxu3 %v9824_v2  ;;  %v9392_v2 = vor.u32 %v13652_v54, %v9389_v27  ;;  %v9648_v55 = vor.u32 %v13716_v58, %v9645_v22  ;;  %v9485_v54 = vld [vmem:[%s15200_s2 + $0x138] sm:$0xf0]  ;;  %v13708_v27 = vld [vmem:[%s15200_s2 + $0x22c] sm:$0xf]  ;;  %v17348_v22 = vpop.f32.mrf.mxu1 }
 0x361   : > { %8125 = vmatpush.bf16.msra.mxu0 %v9424_v11  ;;  %v9776_v11 = vor.u32 %v13748_v29, %v9773_v16  ;;  %v13740_v51 = vld [vmem:[%s15200_s2 + $0x32c] sm:$0xf]  ;;  %v9741_v58 = vld [vmem:[%s15200_s2 + $0x338] sm:$0xf0] }
 0x362   : > { %8139 = vmatpush.bf16.msra.mxu1 %v9552_v15  ;;  %v9501_v15 = vld [vmem:[%s15200_s2 + $0x158] sm:$0xf0]  ;;  %v17336_v43 = vpop.f32.mrf.mxu3  ;;  %v13640_v16 = vld [vmem:[%s15200_s2 + $0xc] sm:$0xf] }
 0x363   : > { %8153 = vmatpush.bf16.msra.mxu2 %v9680_v21  ;;  %v13712_v21 = vld [vmem:[%s15200_s2 + $0x24c] sm:$0xf]  ;;  %v9504_v46 = vor.u32 %v13680_v24, %v9501_v15  ;;  %v9597_v15 = vld [vmem:[%s15200_s2 + $0x218] sm:$0xf0] }
 0x364   : > { %8167 = vmatpush.bf16.msra.mxu3 %v9808_v18  ;;  %v17334_v18 = vpop.f32.mrf.mxu2  ;;  %v9632_v50 = vor.u32 %v13712_v21, %v9629_v20  ;;  %v13704_v24 = vld [vmem:[%s15200_s2 + $0x20c] sm:$0xf]  ;;  %v9725_v20 = vld [vmem:[%s15200_s2 + $0x318] sm:$0xf0] }
 0x365   : > { %8126 = vmatpush.bf16.msra.mxu0 %v9408_v14  ;;  %v9357_v14 = vld [vmem:[%s15200_s2 + $0x38] sm:$0xf0]  ;;  %v13736_v21 = vld [vmem:[%s15200_s2 + $0x30c] sm:$0xf] }
 0x366   : > { %8140 = vmatpush.bf16.msra.mxu1 %v9536_v7  ;;  %v13676_v7 = vld [vmem:[%s15200_s2 + $0x12c] sm:$0xf]  ;;  %v9360_v29 = vor.u32 %v13644_v4, %v9357_v14  ;;  %v10221_v14 = vld [vmem:[%s15200_s2 + $0x6f8] sm:$0xf0] }
 0x367   : > { %8154 = vmatpush.bf16.msra.mxu2 %v9664_v10  ;;  %v9760_v10 = vor.u32 %v13744_v38, %v9757_v31  ;;  %v13796_v38 = vld [vmem:[%s15200_s2 + $0x4ec] sm:$0xf]  ;;  %v9965_v31 = vld [vmem:[%s15200_s2 + $0x4f8] sm:$0xf0] }
 0x368   : > { %8168 = vmatpush.bf16.msra.mxu3 %v9792_v30  ;;  %v17344_v30 = vpop.f32.mrf.mxu0  ;;  %v13860_v4 = vld [vmem:[%s15200_s2 + $0x6ec] sm:$0xf]  ;;  %v10205_v53 = vld [vmem:[%s15200_s2 + $0x6d8] sm:$0xf0] }
 0x369   : > { %8127 = vmatpush.bf16.msra.mxu0 %v9392_v2  ;;  %v9341_v2 = vld [vmem:[%s15200_s2 + $0x18] sm:$0xf0] }
 0x36a   : > { %8141 = vmatpush.bf16.msra.mxu1 %v9520_v26  ;;  %v9488_v26 = vor.u32 %v13676_v7, %v9485_v54  ;;  %v9472_v7 = vor.u32 %v13672_v6, %v9469_v59  ;;  %v13892_v54 = vld [vmem:[%s15200_s2 + $0x7ec] sm:$0xf]  ;;  %v10317_v23 = vld [vmem:[%s15200_s2 + $0x7b8] sm:$0xf0] }
 0x36b   : > { %8155 = vmatpush.bf16.msra.mxu2 %v9648_v55  ;;  %v9616_v55 = vor.u32 %v13708_v27, %v9613_v17  ;;  %v10349_v27 = vld [vmem:[%s15200_s2 + $0x7f8] sm:$0xf0]  ;;  %v13824_v6 = vld [vmem:[%s15200_s2 + $0x5cc] sm:$0xf] }
 0x36c   : > { %8169 = vmatpush.bf16.msra.mxu3 %v9776_v11  ;;  %v9744_v11 = vor.u32 %v13740_v51, %v9741_v58  ;;  %v17366_v17 = vpop.f32.mrf.mxu2  ;;  %v9728_v51 = vor.u32 %v13736_v21, %v9725_v20  ;;  %v9968_v58 = vor.u32 %v13796_v38, %v9965_v31  ;;  %v10352_v59 = vor.u32 %v13892_v54, %v10349_v27  ;;  %v13888_v21 = vld [vmem:[%s15200_s2 + $0x7cc] sm:$0xf]  ;;  %v10333_v20 = vld [vmem:[%s15200_s2 + $0x7d8] sm:$0xf0]  ;;  %v17380_v38 = vpop.f32.mrf.mxu1 }
 0x36d   : > { %8128 = vmatpush.bf16.msra.mxu0 %v9376_v0  ;;  %v13828_v0 = vld [vmem:[%s15200_s2 + $0x5ec] sm:$0xf]  ;;  %v10189_v27 = vld [vmem:[%s15200_s2 + $0x6b8] sm:$0xf0] }
 0x36e   : > { %8142 = vmatpush.bf16.msra.mxu1 %v9504_v46  ;;  %v9344_v46 = vor.u32 %v13640_v16, %v9341_v2  ;;  %v10224_v2 = vor.u32 %v13860_v4, %v10221_v14  ;;  %v9933_v4 = vld [vmem:[%s15200_s2 + $0x4b8] sm:$0xf0]  ;;  %v13820_v14 = vld [vmem:[%s15200_s2 + $0x5ac] sm:$0xf] }
 0x36f   : > { %8156 = vmatpush.bf16.msra.mxu2 %v9632_v50  ;;  %v10093_v50 = vld [vmem:[%s15200_s2 + $0x5f8] sm:$0xf0]  ;;  %v13852_v54 = vld [vmem:[%s15200_s2 + $0x6ac] sm:$0xf] }
 0x370   : > { %8170 = vmatpush.bf16.msra.mxu3 %v9760_v10  ;;  %v9600_v10 = vor.u32 %v13704_v24, %v9597_v15  ;;  %v10096_v16 = vor.u32 %v13828_v0, %v10093_v50  ;;  %v10077_v24 = vld [vmem:[%s15200_s2 + $0x5d8] sm:$0xf0]  ;;  %v13856_v15 = vld [vmem:[%s15200_s2 + $0x6cc] sm:$0xf] }
 0x371   : > { %8129 = vmatpush.bf16.msra.mxu0 %v9360_v29  ;;  %v17368_v29 = vpop.f32.mrf.mxu3  ;;  %v10080_v0 = vor.u32 %v13824_v6, %v10077_v24  ;;  %v13788_v50 = vld [vmem:[%s15200_s2 + $0x4ac] sm:$0xf]  ;;  %v10192_v6 = vor.u32 %v13852_v54, %v10189_v27  ;;  %v9917_v24 = vld [vmem:[%s15200_s2 + $0x498] sm:$0xf0] }
 0x372   : > { %8143 = vmatpush.bf16.msra.mxu1 %v9488_v26  ;;  %v13792_v26 = vld [vmem:[%s15200_s2 + $0x4cc] sm:$0xf]  ;;  %v10157_v3 = vld [vmem:[%s15200_s2 + $0x678] sm:$0xf0] }
 0x373   : > { %8157 = vmatpush.bf16.msra.mxu2 %v9616_v55  ;;  %v9949_v55 = vld [vmem:[%s15200_s2 + $0x4d8] sm:$0xf0]  ;;  %v13780_v27 = vld [vmem:[%s15200_s2 + $0x46c] sm:$0xf] }
 0x374   : > { %8171 = vmatpush.bf16.msra.mxu3 %v9744_v11  ;;  %v17376_v11 = vpop.f32.mrf.mxu0  ;;  %v9952_v31 = vor.u32 %v13792_v26, %v9949_v55  ;;  %v18106_v26 = vld [vmem:[#allocation18_spill] sm:$0xff] }
 0x375   : > { %8130 = vmatpush.bf16.msra.mxu0 %v9344_v46  ;;  %v10208_v46 = vor.u32 %v13856_v15, %v10205_v53  ;;  %v9936_v53 = vor.u32 %v13788_v50, %v9933_v4  ;;  %v13816_v15 = vld [vmem:[%s15200_s2 + $0x58c] sm:$0xf]  ;;  %v10173_v50 = vld [vmem:[%s15200_s2 + $0x698] sm:$0xf0] }
 0x376   : > { %8144 = vmatpush.bf16.msra.mxu1 %v9472_v7  ;;  %v10336_v7 = vor.u32 %v13888_v21, %v10333_v20  ;;  %v17397_v21 = vpop.f32.mrf.mxu2 }
 0x377   : > { %8158 = vmatpush.bf16.msra.mxu2 %v9600_v10  ;;  %v10061_v10 = vld [vmem:[%s15200_s2 + $0x5b8] sm:$0xf0] }
 0x378   : > { %8172 = vmatpush.bf16.msra.mxu3 %v9728_v51  ;;  %v18105_v51 = vld [vmem:[#allocation17_spill] sm:$0xff]  ;;  %v10064_v55 = vor.u32 %v13820_v14, %v10061_v10  ;;  %v10301_v14 = vld [vmem:[%s15200_s2 + $0x798] sm:$0xf0]  ;;  %v17408_v10 = vpop.f32.mrf.mxu1 }
 0x379   : > { %8179 = vmatpush.bf16.msrb.mxu0 %v9968_v58  ;;  %v13884_v58 = vld [vmem:[%s15200_s2 + $0x7ac] sm:$0xf]  ;;  %v17402_v4 = vpop.f32.mrf.mxu3 }
 0x37a   : > { %8193 = vmatpush.bf16.msrb.mxu1 %v10096_v16  ;;  %8131 = vmatmul.bf16.vlgmr.msra.gmra.mxu0 %v18105_v51  ;;  %v18107_v16 = vld [vmem:[#allocation19_spill] sm:$0xff]  ;;  %v10320_v20 = vor.u32 %v13884_v58, %v10317_v23 }
 0x37b   : > { %8207 = vmatpush.bf16.msrb.mxu2 %v10224_v2  ;;  %8145 = vmatmul.bf16.vlgmr.msra.gmra.mxu1 %v18107_v16  ;;  %v18108_v2 = vld [vmem:[#allocation20_spill] sm:$0xff]  ;;  %v10045_v51 = vld [vmem:[%s15200_s2 + $0x598] sm:$0xf0] }
 0x37c   : > { %8221 = vmatpush.bf16.msrb.mxu3 %v10352_v59  ;;  %8159 = vmatmul.bf16.vlgmr.msra.gmra.mxu2 %v18106_v26  ;;  %v13784_v59 = vld [vmem:[%s15200_s2 + $0x48c] sm:$0xf]  ;;  %v9901_v58 = vld [vmem:[%s15200_s2 + $0x478] sm:$0xf0] }
 0x37d   : > { %8180 = vmatpush.bf16.msrb.mxu0 %v9952_v31  ;;  %8173 = vmatmul.bf16.vlgmr.msra.gmra.mxu3 %v18108_v2  ;;  %v13848_v31 = vld [vmem:[%s15200_s2 + $0x68c] sm:$0xf]  ;;  %v9920_v23 = vor.u32 %v13784_v59, %v9917_v24  ;;  %v10029_v2 = vld [vmem:[%s15200_s2 + $0x578] sm:$0xf0]  ;;  %v10160_v24 = vor.u32 %v13844_v62, %v10157_v3 }
 0x37e   : > { %8194 = vmatpush.bf16.msrb.mxu1 %v10080_v0  ;;  %v17404_v0 = vpop.f32.mrf.mxu0  ;;  %v10176_v54 = vor.u32 %v13848_v31, %v10173_v50  ;;  %v13812_v26 = vld [vmem:[%s15200_s2 + $0x56c] sm:$0xf]  ;;  %v17423_v31 = vpop.f32.mrf.mxu2 }
 0x37f   : > { %8208 = vmatpush.bf16.msrb.mxu2 %v10208_v46  ;;  %v13880_v46 = vld [vmem:[%s15200_s2 + $0x78c] sm:$0xf]  ;;  %v10032_v59 = vor.u32 %v13812_v26, %v10029_v2  ;;  %v9869_v26 = vld [vmem:[%s15200_s2 + $0x438] sm:$0xf0] }
 0x380   : > { %8222 = vmatpush.bf16.msrb.mxu3 %v10336_v7  ;;  %v10048_v7 = vor.u32 %v13816_v15, %v10045_v51  ;;  %v10304_v16 = vor.u32 %v13880_v46, %v10301_v14  ;;  %v13776_v15 = vld [vmem:[%s15200_s2 + $0x44c] sm:$0xf]  ;;  %v10013_v46 = vld [vmem:[%s15200_s2 + $0x558] sm:$0xf0]  ;;  %v17438_v2 = vpop.f32.mrf.mxu1 }
 0x381   : > { %8181 = vmatpush.bf16.msrb.mxu0 %v9936_v53  ;;  %v10285_v53 = vld [vmem:[%s15200_s2 + $0x778] sm:$0xf0]  ;;  %v13808_v51 = vld [vmem:[%s15200_s2 + $0x54c] sm:$0xf] }
 0x382   : > { %8195 = vmatpush.bf16.msrb.mxu1 %v10064_v55  ;;  %v9904_v55 = vor.u32 %v13780_v27, %v9901_v58  ;;  %v10288_v50 = vor.u32 %v13876_v34, %v10285_v53  ;;  %v13840_v14 = vld [vmem:[%s15200_s2 + $0x64c] sm:$0xf]  ;;  %v17428_v27 = vpop.f32.mrf.mxu3  ;;  %v10016_v34 = vor.u32 %v13808_v51, %v10013_v46  ;;  %v9853_v51 = vld [vmem:[%s15200_s2 + $0x418] sm:$0xf0] }
 0x383   : > { %8209 = vmatpush.bf16.msrb.mxu2 %v10192_v6  ;;  %v7699_v6 = vadd.f32 %v17288_v5, %v17284_v1  ;;  %v13872_v1 = vld [vmem:[%s15200_s2 + $0x74c] sm:$0xf]  ;;  %v10269_v5 = vld [vmem:[%s15200_s2 + $0x758] sm:$0xf0] }
 0x384   : > { %8223 = vmatpush.bf16.msrb.mxu3 %v10320_v20  ;;  %v9885_v20 = vld [vmem:[%s15200_s2 + $0x458] sm:$0xf0]  ;;  %v13772_v58 = vld [vmem:[%s15200_s2 + $0x42c] sm:$0xf]  ;;  %v10272_v53 = vor.u32 %v13872_v1, %v10269_v5 }
 0x385   : > { %8182 = vmatpush.bf16.msrb.mxu0 %v9920_v23  ;;  %v10141_v23 = vld [vmem:[%s15200_s2 + $0x658] sm:$0xf0]  ;;  %v9888_v3 = vor.u32 %v13776_v15, %v9885_v20  ;;  %v7713_v62 = vadd.f32 %v17305_v12, %v7699_v6  ;;  %v13836_v12 = vld [vmem:[%s15200_s2 + $0x62c] sm:$0xf] }
 0x386   : > { %8196 = vmatpush.bf16.msrb.mxu1 %v10048_v7  ;;  %v17433_v7 = vpop.f32.mrf.mxu0  ;;  %v10125_v6 = vld [vmem:[%s15200_s2 + $0x638] sm:$0xf0]  ;;  %v13868_v15 = vld [vmem:[%s15200_s2 + $0x72c] sm:$0xf] }
 0x387   : > { %8210 = vmatpush.bf16.msrb.mxu2 %v10176_v54  ;;  %v10144_v54 = vor.u32 %v13840_v14, %v10141_v23  ;;  %v13768_v20 = vld [vmem:[%s15200_s2 + $0x40c] sm:$0xf]  ;;  %v10128_v14 = vor.u32 %v13836_v12, %v10125_v6  ;;  %v9981_v1 = vld [vmem:[%s15200_s2 + $0x518] sm:$0xf0] }
 0x388   : > { %8224 = vmatpush.bf16.msrb.mxu3 %v10304_v16  ;;  %v13804_v16 = vld [vmem:[%s15200_s2 + $0x52c] sm:$0xf] }
 0x389   : > { %8183 = vmatpush.bf16.msrb.mxu0 %v9904_v55  ;;  %v9997_v55 = vld [vmem:[%s15200_s2 + $0x538] sm:$0xf0]  ;;  %v13800_v23 = vld [vmem:[%s15200_s2 + $0x50c] sm:$0xf] }
 0x38a   : > { %8197 = vmatpush.bf16.msrb.mxu1 %v10032_v59  ;;  %v10253_v59 = vld [vmem:[%s15200_s2 + $0x738] sm:$0xf0]  ;;  %v10000_v46 = vor.u32 %v13804_v16, %v9997_v55  ;;  %v13832_v5 = vld [vmem:[%s15200_s2 + $0x60c] sm:$0xf]  ;;  %v17465_v12 = vpop.f32.mrf.mxu3 }
 0x38b   : > { %8211 = vmatpush.bf16.msrb.mxu2 %v10160_v24  ;;  %v9872_v24 = vor.u32 %v13772_v58, %v9869_v26  ;;  %v10109_v58 = vld [vmem:[%s15200_s2 + $0x618] sm:$0xf0]  ;;  %v13864_v26 = vld [vmem:[%s15200_s2 + $0x70c] sm:$0xf] }
 0x38c   : > { %8225 = vmatpush.bf16.msrb.mxu3 %v10288_v50  ;;  %v7727_v50 = vadd.f32 %v17310_v35, %v7713_v62  ;;  %v7701_v35 = vadd.f32 %v17319_v28, %v17314_v49  ;;  %v17459_v62 = vpop.f32.mrf.mxu2  ;;  %v13988_v16 = vld [vmem:[%s15200_s2 + $0xaec] sm:$0xf]  ;;  %v10733_v55 = vld [vmem:[%s15200_s2 + $0xaf8] sm:$0xf0]  ;;  %v10112_v49 = vor.u32 %v13832_v5, %v10109_v58 }
 0x38d   : > { %8184 = vmatpush.bf16.msrb.mxu0 %v9888_v3  ;;  %v10256_v3 = vor.u32 %v13868_v15, %v10253_v59  ;;  %v9984_v15 = vor.u32 %v13800_v23, %v9981_v1  ;;  %v14020_v28 = vld [vmem:[%s15200_s2 + $0xbec] sm:$0xf]  ;;  %v10861_v59 = vld [vmem:[%s15200_s2 + $0xbf8] sm:$0xf0] }
 0x38e   : > { %8198 = vmatpush.bf16.msrb.mxu1 %v10016_v34  ;;  %v9856_v34 = vor.u32 %v13768_v20, %v9853_v51  ;;  %v17467_v6 = vpop.f32.mrf.mxu0  ;;  %v10240_v20 = vor.u32 %v13864_v26, %v10237_v61  ;;  %v10864_v23 = vor.u32 %v14020_v28, %v10861_v59  ;;  %v10589_v1 = vld [vmem:[%s15200_s2 + $0x9d8] sm:$0xf0]  ;;  %v13984_v5 = vld [vmem:[%s15200_s2 + $0xacc] sm:$0xf] }
 0x38f   : > { %8212 = vmatpush.bf16.msrb.mxu2 %v10144_v54  ;;  %v10605_v54 = vld [vmem:[%s15200_s2 + $0x9f8] sm:$0xf0]  ;;  %v13916_v26 = vld [vmem:[%s15200_s2 + $0x8ac] sm:$0xf] }
 0x390   : > { %8226 = vmatpush.bf16.msrb.mxu3 %v10272_v53  ;;  %v7741_v53 = vadd.f32 %v17344_v30, %v7727_v50  ;;  %v10480_v30 = vor.u32 %v13924_v63, %v10477_v8  ;;  %v10608_v51 = vor.u32 %v13956_v19, %v10605_v54  ;;  %v10736_v50 = vor.u32 %v13988_v16, %v10733_v55  ;;  %v10717_v58 = vld [vmem:[%s15200_s2 + $0xad8] sm:$0xf0]  ;;  %v14016_v8 = vld [vmem:[%s15200_s2 + $0xbcc] sm:$0xf] }
 0x391   : > { %8185 = vmatpush.bf16.msrb.mxu0 %v9872_v24  ;;  %v17471_v24 = vpop.f32.mrf.mxu1  ;;  %v10845_v19 = vld [vmem:[%s15200_s2 + $0xbd8] sm:$0xf0]  ;;  %v10464_v63 = vor.u32 %v13920_v13, %v10461_v25 }
 0x392   : > { %8199 = vmatpush.bf16.msrb.mxu1 %v10000_v46  ;;  %v13952_v46 = vld [vmem:[%s15200_s2 + $0x9cc] sm:$0xf]  ;;  %v7755_v61 = vadd.f32 %v17348_v22, %v7741_v53  ;;  %v10848_v16 = vor.u32 %v14016_v8, %v10845_v19  ;;  %v10573_v55 = vld [vmem:[%s15200_s2 + $0x9b8] sm:$0xf0] }
 0x393   : > { %8213 = vmatpush.bf16.msrb.mxu2 %v10128_v14  ;;  %v7715_v14 = vadd.f32 %v17334_v18, %v7701_v35  ;;  %v10592_v18 = vor.u32 %v13952_v46, %v10589_v1  ;;  %v10445_v35 = vld [vmem:[%s15200_s2 + $0x8b8] sm:$0xf0]  ;;  %v13980_v53 = vld [vmem:[%s15200_s2 + $0xaac] sm:$0xf] }
 0x394   : > { %8227 = vmatpush.bf16.msrb.mxu3 %v10256_v3  ;;  %v10720_v3 = vor.u32 %v13984_v5, %v10717_v58  ;;  %v17487_v54 = vpop.f32.mrf.mxu2  ;;  %v10701_v25 = vld [vmem:[%s15200_s2 + $0xab8] sm:$0xf0]  ;;  %v7769_v13 = vadd.f32 %v17366_v17, %v7755_v61  ;;  %v10448_v28 = vor.u32 %v13916_v26, %v10445_v35  ;;  %v13972_v35 = vld [vmem:[%s15200_s2 + $0xa6c] sm:$0xf] }
 0x395   : > { %8186 = vmatpush.bf16.msrb.mxu0 %v9856_v34  ;;  %v13948_v34 = vld [vmem:[%s15200_s2 + $0x9ac] sm:$0xf]  ;;  %v7729_v22 = vadd.f32 %v17336_v43, %v7715_v14  ;;  %v10704_v59 = vor.u32 %v13980_v53, %v10701_v25  ;;  %v10685_v46 = vld [vmem:[%s15200_s2 + $0xa98] sm:$0xf0] }
 0x396   : > { %8200 = vmatpush.bf16.msrb.mxu1 %v9984_v15  ;;  %v17494_v15 = vpop.f32.mrf.mxu3  ;;  %v14012_v43 = vld [vmem:[%s15200_s2 + $0xbac] sm:$0xf]  ;;  %v17502_v17 = vpop.f32.mrf.mxu0  ;;  %v7783_v14 = vadd.f32 %v17368_v29, %v7769_v13  ;;  %v10813_v1 = vld [vmem:[%s15200_s2 + $0xb98] sm:$0xf0] }
 0x397   : > { %8214 = vmatpush.bf16.msrb.mxu2 %v10112_v49  ;;  %v10829_v49 = vld [vmem:[%s15200_s2 + $0xbb8] sm:$0xf0]  ;;  %v13940_v29 = vld [vmem:[%s15200_s2 + $0x96c] sm:$0xf] }
 0x398   : > { %8228 = vmatpush.bf16.msrb.mxu3 %v10240_v20  ;;  %8187 = vmatmul.bf16.vlgmr.msrb.gmra.mxu0 %v15393_v40  ;;  %v7743_v40 = vadd.f32 %v17376_v11, %v7729_v22  ;;  %v10429_v20 = vld [vmem:[%s15200_s2 + $0x898] sm:$0xf0]  ;;  %v10832_v11 = vor.u32 %v14012_v43, %v10829_v49  ;;  %v7797_v61 = vadd.f32 %v17404_v0, %v7783_v14  ;;  %v14004_v22 = vld [vmem:[%s15200_s2 + $0xb6c] sm:$0xf] }
 0x399   : > { %8235 = vmatpush.bf16.msra.mxu0 %v10480_v30  ;;  %8201 = vmatmul.bf16.vlgmr.msrb.gmra.mxu1 %v15400_v45  ;;  %v13912_v45 = vld [vmem:[%s15200_s2 + $0x88c] sm:$0xf] }
 0x39a   : > { %8249 = vmatpush.bf16.msra.mxu1 %v10608_v51  ;;  %8215 = vmatmul.bf16.vlgmr.msrb.gmra.mxu2 %v15398_v44  ;;  %v10576_v44 = vor.u32 %v13948_v34, %v10573_v55  ;;  %v13944_v30 = vld [vmem:[%s15200_s2 + $0x98c] sm:$0xf]  ;;  %v17507_v51 = vpop.f32.mrf.mxu1  ;;  %v7757_v5 = vadd.f32 %v17380_v38, %v7743_v40  ;;  %v10432_v58 = vor.u32 %v13912_v45, %v10429_v20  ;;  %v10541_v38 = vld [vmem:[%s15200_s2 + $0x978] sm:$0xf0] }
 0x39b   : > { %8263 = vmatpush.bf16.msra.mxu2 %v10736_v50  ;;  %8229 = vmatmul.bf16.vlgmr.msrb.gmra.mxu3 %v15404_v48  ;;  %v10557_v48 = vld [vmem:[%s15200_s2 + $0x998] sm:$0xf0]  ;;  %v13976_v50 = vld [vmem:[%s15200_s2 + $0xa8c] sm:$0xf]  ;;  %v7811_v53 = vadd.f32 %v17408_v10, %v7797_v61  ;;  %v10544_v13 = vor.u32 %v13940_v29, %v10541_v38 }
 0x39c   : > { %8277 = vmatpush.bf16.msra.mxu3 %v10864_v23  ;;  %v14008_v23 = vld [vmem:[%s15200_s2 + $0xb8c] sm:$0xf]  ;;  %v10560_v8 = vor.u32 %v13944_v30, %v10557_v48  ;;  %v10688_v19 = vor.u32 %v13976_v50, %v10685_v46  ;;  %v10669_v34 = vld [vmem:[%s15200_s2 + $0xa78] sm:$0xf0]  ;;  %v17526_v0 = vpop.f32.mrf.mxu2 }
 0x39d   : > { %8236 = vmatpush.bf16.msra.mxu0 %v10464_v63  ;;  %v13908_v63 = vld [vmem:[%s15200_s2 + $0x86c] sm:$0xf]  ;;  %v10816_v26 = vor.u32 %v14008_v23, %v10813_v1  ;;  %v10672_v43 = vor.u32 %v13972_v35, %v10669_v34  ;;  %v10397_v40 = vld [vmem:[%s15200_s2 + $0x858] sm:$0xf0] }
 0x39e   : > { %8250 = vmatpush.bf16.msra.mxu1 %v10592_v18  ;;  %v10413_v18 = vld [vmem:[%s15200_s2 + $0x878] sm:$0xf0]  ;;  %v17531_v25 = vpop.f32.mrf.mxu0  ;;  %v13904_v49 = vld [vmem:[%s15200_s2 + $0x84c] sm:$0xf] }
 0x39f   : > { %8264 = vmatpush.bf16.msra.mxu2 %v10720_v3  ;;  %v7771_v3 = vadd.f32 %v17397_v21, %v7757_v5  ;;  %v10416_v55 = vor.u32 %v13908_v63, %v10413_v18  ;;  %v17529_v21 = vpop.f32.mrf.mxu3  ;;  %v10525_v45 = vld [vmem:[%s15200_s2 + $0x958] sm:$0xf0]  ;;  %v13968_v20 = vld [vmem:[%s15200_s2 + $0xa4c] sm:$0xf] }
 0x3a0   : > { %8278 = vmatpush.bf16.msra.mxu3 %v10848_v16  ;;  %v10797_v16 = vld [vmem:[%s15200_s2 + $0xb78] sm:$0xf0]  ;;  %v14000_v48 = vld [vmem:[%s15200_s2 + $0xb4c] sm:$0xf] }
 0x3a1   : > { %8237 = vmatpush.bf16.msra.mxu0 %v10448_v28  ;;  %v13936_v28 = vld [vmem:[%s15200_s2 + $0x94c] sm:$0xf]  ;;  %v10800_v10 = vor.u32 %v14004_v22, %v10797_v16  ;;  %v10653_v30 = vld [vmem:[%s15200_s2 + $0xa58] sm:$0xf0] }
 0x3a2   : > { %8251 = vmatpush.bf16.msra.mxu1 %v10576_v44  ;;  %v7785_v44 = vadd.f32 %v17402_v4, %v7771_v3  ;;  %v10781_v50 = vld [vmem:[%s15200_s2 + $0xb58] sm:$0xf0]  ;;  %v10400_v4 = vor.u32 %v13904_v49, %v10397_v40  ;;  %v10528_v14 = vor.u32 %v13936_v28, %v10525_v45  ;;  %v10656_v23 = vor.u32 %v13968_v20, %v10653_v30  ;;  %v13900_v1 = vld [vmem:[%s15200_s2 + $0x82c] sm:$0xf] }
 0x3a3   : > { %8265 = vmatpush.bf16.msra.mxu2 %v10704_v59  ;;  %v17537_v59 = vpop.f32.mrf.mxu1  ;;  %v10381_v5 = vld [vmem:[%s15200_s2 + $0x838] sm:$0xf0]  ;;  %v13996_v63 = vld [vmem:[%s15200_s2 + $0xb2c] sm:$0xf] }
 0x3a4   : > { %8279 = vmatpush.bf16.msra.mxu3 %v10832_v11  ;;  %v7825_v11 = vadd.f32 %v17423_v31, %v7811_v53  ;;  %v7799_v46 = vadd.f32 %v17433_v7, %v7785_v44  ;;  %v10784_v31 = vor.u32 %v14000_v48, %v10781_v50  ;;  %v10509_v61 = vld [vmem:[%s15200_s2 + $0x938] sm:$0xf0]  ;;  %v17556_v3 = vpop.f32.mrf.mxu2  ;;  %v13896_v38 = vld [vmem:[%s15200_s2 + $0x80c] sm:$0xf] }
 0x3a5   : > { %8238 = vmatpush.bf16.msra.mxu0 %v10432_v58  ;;  %v13932_v58 = vld [vmem:[%s15200_s2 + $0x92c] sm:$0xf]  ;;  %v10765_v18 = vld [vmem:[%s15200_s2 + $0xb38] sm:$0xf0] }
 0x3a6   : > { %8252 = vmatpush.bf16.msra.mxu1 %v10560_v8  ;;  %v13964_v8 = vld [vmem:[%s15200_s2 + $0xa2c] sm:$0xf]  ;;  %v7839_v7 = vadd.f32 %v17428_v27, %v7825_v11  ;;  %v7813_v29 = vadd.f32 %v17438_v2, %v7799_v46  ;;  %v10365_v35 = vld [vmem:[%s15200_s2 + $0x818] sm:$0xf0]  ;;  %v10512_v27 = vor.u32 %v13932_v58, %v10509_v61  ;;  %v17570_v28 = vpop.f32.mrf.mxu0 }
 0x3a7   : > { %8266 = vmatpush.bf16.msra.mxu2 %v10688_v19  ;;  %v10637_v19 = vld [vmem:[%s15200_s2 + $0xa38] sm:$0xf0]  ;;  %v17561_v22 = vpop.f32.mrf.mxu3  ;;  %v13928_v16 = vld [vmem:[%s15200_s2 + $0x90c] sm:$0xf]  ;;  %v10368_v30 = vor.u32 %v13896_v38, %v10365_v35 }
 0x3a8   : > { %8280 = vmatpush.bf16.msra.mxu3 %v10816_v26  ;;  %v10384_v26 = vor.u32 %v13900_v1, %v10381_v5  ;;  %v7853_v34 = vadd.f32 %v17467_v6, %v7839_v7  ;;  %v10640_v2 = vor.u32 %v13964_v8, %v10637_v19  ;;  %v13960_v53 = vld [vmem:[%s15200_s2 + $0xa0c] sm:$0xf]  ;;  %v10621_v6 = vld [vmem:[%s15200_s2 + $0xa18] sm:$0xf0] }
 0x3a9   : > { %8239 = vmatpush.bf16.msra.mxu0 %v10416_v55  ;;  %v10493_v55 = vld [vmem:[%s15200_s2 + $0x918] sm:$0xf0]  ;;  %v13992_v49 = vld [vmem:[%s15200_s2 + $0xb0c] sm:$0xf] }
 0x3aa   : > { %8253 = vmatpush.bf16.msra.mxu1 %v10544_v13  ;;  %v7827_v13 = vadd.f32 %v17459_v62, %v7813_v29  ;;  %v10749_v40 = vld [vmem:[%s15200_s2 + $0xb18] sm:$0xf0]  ;;  %v14052_v44 = vld [vmem:[%s15200_s2 + $0xcec] sm:$0xf]  ;;  %v7867_v50 = vadd.f32 %v17471_v24, %v7853_v34  ;;  %v10496_v46 = vor.u32 %v13928_v16, %v10493_v55 }
 0x3ab   : > { %8267 = vmatpush.bf16.msra.mxu2 %v10672_v43  ;;  %v10768_v43 = vor.u32 %v13996_v63, %v10765_v18  ;;  %v14084_v45 = vld [vmem:[%s15200_s2 + $0xdec] sm:$0xf]  ;;  %v17575_v20 = vpop.f32.mrf.mxu1  ;;  %v11117_v11 = vld [vmem:[%s15200_s2 + $0xdf8] sm:$0xf0]  ;;  %v10752_v5 = vor.u32 %v13992_v49, %v10749_v40 }
 0x3ac   : > { %8281 = vmatpush.bf16.msra.mxu3 %v10800_v10  ;;  %v10989_v10 = vld [vmem:[%s15200_s2 + $0xcf8] sm:$0xf0]  ;;  %v14116_v48 = vld [vmem:[%s15200_s2 + $0xeec] sm:$0xf]  ;;  %v7841_v1 = vadd.f32 %v17465_v12, %v7827_v13  ;;  %v11120_v24 = vor.u32 %v14084_v45, %v11117_v11 }
 0x3ad   : > { %8240 = vmatpush.bf16.msra.mxu0 %v10400_v4  ;;  %v11245_v62 = vld [vmem:[%s15200_s2 + $0xef8] sm:$0xf0]  ;;  %v10624_v4 = vor.u32 %v13960_v53, %v10621_v6  ;;  %v10992_v58 = vor.u32 %v14052_v44, %v10989_v10  ;;  %v14048_v8 = vld [vmem:[%s15200_s2 + $0xccc] sm:$0xf] }
 0x3ae   : > { %8254 = vmatpush.bf16.msra.mxu1 %v10528_v14  ;;  %v14148_v14 = vld [vmem:[%s15200_s2 + $0xfec] sm:$0xf]  ;;  %v11248_v61 = vor.u32 %v14116_v48, %v11245_v62  ;;  %v10973_v19 = vld [vmem:[%s15200_s2 + $0xcd8] sm:$0xf0]  ;;  %v7855_v63 = vadd.f32 %v17502_v17, %v7841_v1 }
 0x3af   : > { %8268 = vmatpush.bf16.msra.mxu2 %v10656_v23  ;;  %v11373_v23 = vld [vmem:[%s15200_s2 + $0xff8] sm:$0xf0]  ;;  %v14080_v7 = vld [vmem:[%s15200_s2 + $0xdcc] sm:$0xf]  ;;  %v10976_v34 = vor.u32 %v14048_v8, %v10973_v19 }
 0x3b0   : > { %8282 = vmatpush.bf16.msra.mxu3 %v10784_v31  ;;  %v7881_v31 = vadd.f32 %v17487_v54, %v7867_v50  ;;  %v11376_v18 = vor.u32 %v14148_v14, %v11373_v23  ;;  %v11101_v29 = vld [vmem:[%s15200_s2 + $0xdd8] sm:$0xf0]  ;;  %v14144_v12 = vld [vmem:[%s15200_s2 + $0xfcc] sm:$0xf]  ;;  %v17594_v54 = vpop.f32.mrf.mxu2  ;;  %v7869_v6 = vadd.f32 %v17507_v51, %v7855_v63 }
 0x3b1   : > { %8241 = vmatpush.bf16.msra.mxu0 %v10384_v26  ;;  %v14112_v26 = vld [vmem:[%s15200_s2 + $0xecc] sm:$0xf]  ;;  %v11229_v38 = vld [vmem:[%s15200_s2 + $0xed8] sm:$0xf0]  ;;  %v11104_v16 = vor.u32 %v14080_v7, %v11101_v29 }
 0x3b2   : > { %8255 = vmatpush.bf16.msra.mxu1 %v10512_v27  ;;  %v11357_v35 = vld [vmem:[%s15200_s2 + $0xfd8] sm:$0xf0]  ;;  %v7895_v17 = vadd.f32 %v17494_v15, %v7881_v31  ;;  %v17597_v27 = vpop.f32.mrf.mxu3  ;;  %v11232_v55 = vor.u32 %v14112_v26, %v11229_v38  ;;  %v14044_v53 = vld [vmem:[%s15200_s2 + $0xcac] sm:$0xf] }
 0x3b3   : > { %8269 = vmatpush.bf16.msra.mxu2 %v10640_v2  ;;  %v17599_v2 = vpop.f32.mrf.mxu0  ;;  %v10957_v13 = vld [vmem:[%s15200_s2 + $0xcb8] sm:$0xf0]  ;;  %v17605_v49 = vpop.f32.mrf.mxu1  ;;  %v11360_v15 = vor.u32 %v14144_v12, %v11357_v35  ;;  %v14108_v44 = vld [vmem:[%s15200_s2 + $0xeac] sm:$0xf] }
 0x3b4   : > { %8283 = vmatpush.bf16.msra.mxu3 %v10768_v43  ;;  %v14076_v43 = vld [vmem:[%s15200_s2 + $0xdac] sm:$0xf]  ;;  %v11085_v40 = vld [vmem:[%s15200_s2 + $0xdb8] sm:$0xf0]  ;;  %v7909_v45 = vadd.f32 %v17531_v25, %v7895_v17  ;;  %v10960_v11 = vor.u32 %v14044_v53, %v10957_v13 }
 0x3b5   : > { %8242 = vmatpush.bf16.msra.mxu0 %v10368_v30  ;;  %v11213_v10 = vld [vmem:[%s15200_s2 + $0xeb8] sm:$0xf0]  ;;  %v14140_v51 = vld [vmem:[%s15200_s2 + $0xfac] sm:$0xf]  ;;  %v11088_v25 = vor.u32 %v14076_v43, %v11085_v40 }
 0x3b6   : > { %8256 = vmatpush.bf16.msra.mxu1 %v10496_v46  ;;  %v11341_v30 = vld [vmem:[%s15200_s2 + $0xfb8] sm:$0xf0]  ;;  %v11216_v48 = vor.u32 %v14108_v44, %v11213_v10  ;;  %v14136_v14 = vld [vmem:[%s15200_s2 + $0xf8c] sm:$0xf] }
 0x3b7   : > { %8270 = vmatpush.bf16.msra.mxu2 %v10624_v4  ;;  %v10941_v62 = vld [vmem:[%s15200_s2 + $0xc98] sm:$0xf0]  ;;  %v11344_v50 = vor.u32 %v14140_v51, %v11341_v30  ;;  %v14104_v4 = vld [vmem:[%s15200_s2 + $0xe8c] sm:$0xf] }
 0x3b8   : > { %8284 = vmatpush.bf16.msra.mxu3 %v10752_v5  ;;  %8243 = vmatmul.bf16.vlgmr.msra.gmra.mxu0 %v15477_v32  ;;  %v7883_v32 = vadd.f32 %v17526_v0, %v7869_v6  ;;  %v11069_v46 = vld [vmem:[%s15200_s2 + $0xd98] sm:$0xf0]  ;;  %v17628_v5 = vpop.f32.mrf.mxu2  ;;  %v14036_v8 = vld [vmem:[%s15200_s2 + $0xc6c] sm:$0xf] }
 0x3b9   : > { %8291 = vmatpush.bf16.msrb.mxu0 %v10992_v58  ;;  %8257 = vmatmul.bf16.vlgmr.msra.gmra.mxu1 %v15484_v37  ;;  %v14072_v37 = vld [vmem:[%s15200_s2 + $0xd8c] sm:$0xf]  ;;  %v11197_v0 = vld [vmem:[%s15200_s2 + $0xe98] sm:$0xf0] }
 0x3ba   : > { %8305 = vmatpush.bf16.msrb.mxu1 %v11120_v24  ;;  %8271 = vmatmul.bf16.vlgmr.msra.gmra.mxu2 %v15482_v36  ;;  %v14040_v36 = vld [vmem:[%s15200_s2 + $0xc8c] sm:$0xf]  ;;  %v11325_v23 = vld [vmem:[%s15200_s2 + $0xf98] sm:$0xf0]  ;;  %v7897_v1 = vadd.f32 %v17529_v21, %v7883_v32  ;;  %v17631_v24 = vpop.f32.mrf.mxu3 }
 0x3bb   : > { %8319 = vmatpush.bf16.msrb.mxu2 %v11248_v61  ;;  %8285 = vmatmul.bf16.vlgmr.msra.gmra.mxu3 %v15488_v41  ;;  %v7923_v41 = vadd.f32 %v17537_v59, %v7909_v45  ;;  %v10944_v58 = vor.u32 %v14040_v36, %v10941_v62  ;;  %v11072_v59 = vor.u32 %v14072_v37, %v11069_v46  ;;  %v10925_v19 = vld [vmem:[%s15200_s2 + $0xc78] sm:$0xf0]  ;;  %v14068_v21 = vld [vmem:[%s15200_s2 + $0xd6c] sm:$0xf]  ;;  %v17640_v26 = vpop.f32.mrf.mxu0  ;;  %v17644_v35 = vpop.f32.mrf.mxu1 }
 0x3bc   : > { %8333 = vmatpush.bf16.msrb.mxu3 %v11376_v18  ;;  %v11200_v61 = vor.u32 %v14104_v4, %v11197_v0  ;;  %v7911_v7 = vadd.f32 %v17570_v28, %v7897_v1  ;;  %v11328_v63 = vor.u32 %v14136_v14, %v11325_v23  ;;  %v11053_v18 = vld [vmem:[%s15200_s2 + $0xd78] sm:$0xf0]  ;;  %v14132_v38 = vld [vmem:[%s15200_s2 + $0xf6c] sm:$0xf] }
 0x3bd   : > { %8292 = vmatpush.bf16.msrb.mxu0 %v10976_v34  ;;  %v7937_v31 = vadd.f32 %v17556_v3, %v7923_v41  ;;  %v14100_v3 = vld [vmem:[%s15200_s2 + $0xe6c] sm:$0xf]  ;;  %v11181_v29 = vld [vmem:[%s15200_s2 + $0xe78] sm:$0xf0]  ;;  %v10928_v34 = vor.u32 %v14036_v8, %v10925_v19  ;;  %v11056_v17 = vor.u32 %v14068_v21, %v11053_v18 }
 0x3be   : > { %8306 = vmatpush.bf16.msrb.mxu1 %v11104_v16  ;;  %v11309_v12 = vld [vmem:[%s15200_s2 + $0xf78] sm:$0xf0]  ;;  %v11184_v16 = vor.u32 %v14100_v3, %v11181_v29  ;;  %v14064_v13 = vld [vmem:[%s15200_s2 + $0xd4c] sm:$0xf]  ;;  %v7925_v43 = vadd.f32 %v17575_v20, %v7911_v7 }
 0x3bf   : > { %8320 = vmatpush.bf16.msrb.mxu2 %v11232_v55  ;;  %v7951_v28 = vadd.f32 %v17561_v22, %v7937_v31  ;;  %v14032_v55 = vld [vmem:[%s15200_s2 + $0xc4c] sm:$0xf]  ;;  %v10909_v53 = vld [vmem:[%s15200_s2 + $0xc58] sm:$0xf0]  ;;  %v11312_v6 = vor.u32 %v14132_v38, %v11309_v12 }
 0x3c0   : > { %8334 = vmatpush.bf16.msrb.mxu3 %v11360_v15  ;;  %v11037_v15 = vld [vmem:[%s15200_s2 + $0xd58] sm:$0xf0]  ;;  %v14096_v40 = vld [vmem:[%s15200_s2 + $0xe4c] sm:$0xf]  ;;  %v7939_v51 = vadd.f32 %v17594_v54, %v7925_v43  ;;  %v10912_v30 = vor.u32 %v14032_v55, %v10909_v53 }
 0x3c1   : > { %8293 = vmatpush.bf16.msrb.mxu0 %v10960_v11  ;;  %v11165_v44 = vld [vmem:[%s15200_s2 + $0xe58] sm:$0xf0]  ;;  %v7965_v22 = vadd.f32 %v17599_v2, %v7951_v28  ;;  %v14128_v10 = vld [vmem:[%s15200_s2 + $0xf4c] sm:$0xf]  ;;  %v11040_v20 = vor.u32 %v14064_v13, %v11037_v15  ;;  %v17661_v2 = vpop.f32.mrf.mxu2 }
 0x3c2   : > { %8307 = vmatpush.bf16.msrb.mxu1 %v11088_v25  ;;  %v11293_v45 = vld [vmem:[%s15200_s2 + $0xf58] sm:$0xf0]  ;;  %v11168_v32 = vor.u32 %v14096_v40, %v11165_v44  ;;  %v14028_v11 = vld [vmem:[%s15200_s2 + $0xc2c] sm:$0xf]  ;;  %v17667_v46 = vpop.f32.mrf.mxu3  ;;  %v7953_v14 = vadd.f32 %v17597_v27, %v7939_v51 }
 0x3c3   : > { %8321 = vmatpush.bf16.msrb.mxu2 %v11216_v48  ;;  %v10893_v25 = vld [vmem:[%s15200_s2 + $0xc38] sm:$0xf0]  ;;  %v14060_v48 = vld [vmem:[%s15200_s2 + $0xd2c] sm:$0xf]  ;;  %v11296_v36 = vor.u32 %v14128_v10, %v11293_v45  ;;  %v8020_v4 = vpop.f32.mrf.mxu0  ;;  %v8034_v23 = vpop.f32.mrf.mxu1 }
 0x3c4   : > { %8335 = vmatpush.bf16.msrb.mxu3 %v11344_v50  ;;  %v11021_v62 = vld [vmem:[%s15200_s2 + $0xd38] sm:$0xf0]  ;;  %v14092_v37 = vld [vmem:[%s15200_s2 + $0xe2c] sm:$0xf]  ;;  %v7979_v50 = vadd.f32 %v17605_v49, %v7965_v22  ;;  %v10896_v1 = vor.u32 %v14028_v11, %v10893_v25 }
 0x3c5   : > { %8294 = vmatpush.bf16.msrb.mxu0 %v10944_v58  ;;  %v11149_v54 = vld [vmem:[%s15200_s2 + $0xe38] sm:$0xf0]  ;;  %v14124_v0 = vld [vmem:[%s15200_s2 + $0xf2c] sm:$0xf] }
 0x3c6   : > { %8308 = vmatpush.bf16.msrb.mxu1 %v11072_v59  ;;  %v11277_v41 = vld [vmem:[%s15200_s2 + $0xf38] sm:$0xf0]  ;;  %v14024_v58 = vld [vmem:[%s15200_s2 + $0xc0c] sm:$0xf]  ;;  %v7993_v49 = vadd.f32 %v17628_v5, %v7979_v50  ;;  %v11024_v59 = vor.u32 %v14060_v48, %v11021_v62  ;;  %v7967_v5 = vadd.f32 %v17640_v26, %v7953_v14 }
 0x3c7   : > { %8322 = vmatpush.bf16.msrb.mxu2 %v11200_v61  ;;  %v10877_v31 = vld [vmem:[%s15200_s2 + $0xc18] sm:$0xf0]  ;;  %v11152_v61 = vor.u32 %v14092_v37, %v11149_v54  ;;  %v14056_v27 = vld [vmem:[%s15200_s2 + $0xd0c] sm:$0xf]  ;;  %v11280_v21 = vor.u32 %v14124_v0, %v11277_v41 }
 0x3c8   : > { %8336 = vmatpush.bf16.msrb.mxu3 %v11328_v63  ;;  %v11005_v8 = vld [vmem:[%s15200_s2 + $0xd18] sm:$0xf0]  ;;  %v14088_v19 = vld [vmem:[%s15200_s2 + $0xe0c] sm:$0xf]  ;;  %v10880_v12 = vor.u32 %v14024_v58, %v10877_v31  ;;  %v7981_v40 = vadd.f32 %v17644_v35, %v7967_v5 }
 0x3c9   : > { %8295 = vmatpush.bf16.msrb.mxu0 %v10928_v34  ;;  %v11133_v7 = vld [vmem:[%s15200_s2 + $0xe18] sm:$0xf0]  ;;  %v14120_v63 = vld [vmem:[%s15200_s2 + $0xf0c] sm:$0xf]  ;;  %v11008_v55 = vor.u32 %v14056_v27, %v11005_v8  ;;  %v8048_v43 = vpop.f32.mrf.mxu2 }
 0x3ca   : > { %8309 = vmatpush.bf16.msrb.mxu1 %v11056_v17  ;;  %v11261_v18 = vld [vmem:[%s15200_s2 + $0xf18] sm:$0xf0]  ;;  %v14180_v3 = vld [vmem:[%s15200_s2 + $0x10ec] sm:$0xf]  ;;  %v11136_v53 = vor.u32 %v14088_v19, %v11133_v7  ;;  %v7995_v48 = vadd.f32 %v17661_v2, %v7981_v40 }
 0x3cb   : > { %8323 = vmatpush.bf16.msrb.mxu2 %v11184_v16  ;;  %v11501_v29 = vld [vmem:[%s15200_s2 + $0x10f8] sm:$0xf0]  ;;  %v14212_v38 = vld [vmem:[%s15200_s2 + $0x11ec] sm:$0xf]  ;;  %v8007_v16 = vadd.f32 %v17631_v24, %v7993_v49  ;;  %v8062_v24 = vpop.f32.mrf.mxu3  ;;  %v8036_v37 = vpop.f32.mrf.mxu1 }
 0x3cc   : > { %8337 = vmatpush.bf16.msrb.mxu3 %v11312_v6  ;;  %v11629_v34 = vld [vmem:[%s15200_s2 + $0x11f8] sm:$0xf0]  ;;  %v14244_v28 = vld [vmem:[%s15200_s2 + $0x12ec] sm:$0xf]  ;;  %v11264_v6 = vor.u32 %v14120_v63, %v11261_v18  ;;  %v11504_v15 = vor.u32 %v14180_v3, %v11501_v29 }
 0x3cd   : > { %8296 = vmatpush.bf16.msrb.mxu0 %v10912_v30  ;;  %v11757_v17 = vld [vmem:[%s15200_s2 + $0x12f8] sm:$0xf0]  ;;  %v14276_v13 = vld [vmem:[%s15200_s2 + $0x13ec] sm:$0xf]  ;;  %v8021_v44 = vadd.f32 %v8020_v4, %v8007_v16  ;;  %v11632_v22 = vor.u32 %v14212_v38, %v11629_v34 }
 0x3ce   : > { %8310 = vmatpush.bf16.msrb.mxu1 %v11040_v20  ;;  %v11885_v26 = vld [vmem:[%s15200_s2 + $0x13f8] sm:$0xf0]  ;;  %v11760_v10 = vor.u32 %v14244_v28, %v11757_v17  ;;  %v14176_v45 = vld [vmem:[%s15200_s2 + $0x10cc] sm:$0xf] }
 0x3cf   : > { %8324 = vmatpush.bf16.msrb.mxu2 %v11168_v32  ;;  %v11485_v51 = vld [vmem:[%s15200_s2 + $0x10d8] sm:$0xf0]  ;;  %v14208_v30 = vld [vmem:[%s15200_s2 + $0x11cc] sm:$0xf]  ;;  %v11888_v20 = vor.u32 %v14276_v13, %v11885_v26  ;;  %v8035_v50 = vadd.f32 %v8034_v23, %v8021_v44  ;;  %v8009_v23 = vadd.f32 %v17667_v46, %v7995_v48 }
 0x3d0   : > { %8338 = vmatpush.bf16.msrb.mxu3 %v11296_v36  ;;  %v11613_v32 = vld [vmem:[%s15200_s2 + $0x11d8] sm:$0xf0]  ;;  %v14240_v11 = vld [vmem:[%s15200_s2 + $0x12cc] sm:$0xf]  ;;  %v8022_v36 = vpop.f32.mrf.mxu0  ;;  %v11488_v54 = vor.u32 %v14176_v45, %v11485_v51 }
 0x3d1   : > { %8297 = vmatpush.bf16.msrb.mxu0 %v10896_v1  ;;  %v11741_v25 = vld [vmem:[%s15200_s2 + $0x12d8] sm:$0xf0]  ;;  %v14272_v35 = vld [vmem:[%s15200_s2 + $0x13cc] sm:$0xf]  ;;  %v11616_v4 = vor.u32 %v14208_v30, %v11613_v32  ;;  %v8023_v19 = vadd.f32 %v8022_v36, %v8009_v23 }
 0x3d2   : > { %8311 = vmatpush.bf16.msrb.mxu1 %v11024_v59  ;;  %v11869_v62 = vld [vmem:[%s15200_s2 + $0x13d8] sm:$0xf0]  ;;  %v11744_v2 = vor.u32 %v14240_v11, %v11741_v25  ;;  %v14172_v0 = vld [vmem:[%s15200_s2 + $0x10ac] sm:$0xf]  ;;  %v8049_v59 = vadd.f32 %v8048_v43, %v8035_v50 }
 0x3d3   : > { %8325 = vmatpush.bf16.msrb.mxu2 %v11152_v61  ;;  %v11469_v41 = vld [vmem:[%s15200_s2 + $0x10b8] sm:$0xf0]  ;;  %v14204_v14 = vld [vmem:[%s15200_s2 + $0x11ac] sm:$0xf]  ;;  %v11872_v1 = vor.u32 %v14272_v35, %v11869_v62  ;;  %v8064_v29 = vpop.f32.mrf.mxu3 }
 0x3d4   : > { %8339 = vmatpush.bf16.msrb.mxu3 %v11280_v21  ;;  %v11597_v58 = vld [vmem:[%s15200_s2 + $0x11b8] sm:$0xf0]  ;;  %v14236_v31 = vld [vmem:[%s15200_s2 + $0x12ac] sm:$0xf]  ;;  %v8063_v3 = vadd.f32 %v8062_v24, %v8049_v59 }
 0x3d5   : > { %8298 = vmatpush.bf16.msrb.mxu0 %v10880_v12  ;;  %v11725_v49 = vld [vmem:[%s15200_s2 + $0x12b8] sm:$0xf0]  ;;  %v14268_v61 = vld [vmem:[%s15200_s2 + $0x13ac] sm:$0xf]  ;;  %v11600_v46 = vor.u32 %v14204_v14, %v11597_v58 }
 0x3d6   : > { %8312 = vmatpush.bf16.msrb.mxu1 %v11008_v55  ;;  %v11853_v27 = vld [vmem:[%s15200_s2 + $0x13b8] sm:$0xf0]  ;;  %v14168_v8 = vld [vmem:[%s15200_s2 + $0x108c] sm:$0xf]  ;;  %v11728_v21 = vor.u32 %v14236_v31, %v11725_v49  ;;  %v8090_v16 = vpop.f32.mrf.mxu1  ;;  %v8037_v55 = vadd.f32 %v8036_v37, %v8023_v19 }
 0x3d7   : > { %8326 = vmatpush.bf16.msrb.mxu2 %v11136_v53  ;;  %v11453_v7 = vld [vmem:[%s15200_s2 + $0x1098] sm:$0xf0]  ;;  %v11856_v18 = vor.u32 %v14268_v61, %v11853_v27  ;;  %v14232_v5 = vld [vmem:[%s15200_s2 + $0x128c] sm:$0xf] }
 0x3d8   : > { %8340 = vmatpush.bf16.msrb.mxu3 %v11264_v6  ;;  %8299 = vmatmul.bf16.vlgmr.msrb.gmra.mxu0 %v15561_v33  ;;  %v11472_v33 = vor.u32 %v14172_v0, %v11469_v41  ;;  %v11581_v63 = vld [vmem:[%s15200_s2 + $0x1198] sm:$0xf0]  ;;  %v8076_v38 = vpop.f32.mrf.mxu0  ;;  %v14264_v12 = vld [vmem:[%s15200_s2 + $0x138c] sm:$0xf]  ;;  %v11456_v28 = vor.u32 %v14168_v8, %v11453_v7 }
 0x3d9   : > { %8347 = vmatpush.bf16.msra.mxu0 %v11504_v15  ;;  %8313 = vmatmul.bf16.vlgmr.msrb.gmra.mxu1 %v15568_v42  ;;  %v8050_v42 = vpop.f32.mrf.mxu2  ;;  %v11837_v34 = vld [vmem:[%s15200_s2 + $0x1398] sm:$0xf0]  ;;  %v8077_v53 = vadd.f32 %v8076_v38, %v8063_v3  ;;  %v14164_v26 = vld [vmem:[%s15200_s2 + $0x106c] sm:$0xf] }
 0x3da   : > { %8361 = vmatpush.bf16.msra.mxu1 %v11632_v22  ;;  %8327 = vmatmul.bf16.vlgmr.msrb.gmra.mxu2 %v15566_v39  ;;  %v14200_v39 = vld [vmem:[%s15200_s2 + $0x118c] sm:$0xf]  ;;  %v11437_v43 = vld [vmem:[%s15200_s2 + $0x1078] sm:$0xf0]  ;;  %v11840_v15 = vor.u32 %v14264_v12, %v11837_v34  ;;  %v8051_v22 = vadd.f32 %v8050_v42, %v8037_v55 }
 0x3db   : > { %8375 = vmatpush.bf16.msra.mxu2 %v11760_v10  ;;  %8341 = vmatmul.bf16.vlgmr.msrb.gmra.mxu3 %v15572_v47  ;;  %v11709_v47 = vld [vmem:[%s15200_s2 + $0x1298] sm:$0xf0]  ;;  %v11584_v17 = vor.u32 %v14200_v39, %v11581_v63  ;;  %v14196_v6 = vld [vmem:[%s15200_s2 + $0x116c] sm:$0xf]  ;;  %v11440_v51 = vor.u32 %v14164_v26, %v11437_v43 }
 0x3dc   : > { %8389 = vmatpush.bf16.msra.mxu3 %v11888_v20  ;;  %v11712_v13 = vor.u32 %v14232_v5, %v11709_v47  ;;  %v11565_v40 = vld [vmem:[%s15200_s2 + $0x1178] sm:$0xf0]  ;;  %v14228_v44 = vld [vmem:[%s15200_s2 + $0x126c] sm:$0xf]  ;;  %v8091_v20 = vadd.f32 %v8090_v16, %v8077_v53  ;;  %v8065_v50 = vadd.f32 %v8064_v29, %v8051_v22 }
 0x3dd   : > { %8348 = vmatpush.bf16.msra.mxu0 %v11488_v54  ;;  %v11693_v24 = vld [vmem:[%s15200_s2 + $0x1278] sm:$0xf0]  ;;  %v14260_v10 = vld [vmem:[%s15200_s2 + $0x136c] sm:$0xf]  ;;  %v11568_v32 = vor.u32 %v14196_v6, %v11565_v40 }
 0x3de   : > { %8362 = vmatpush.bf16.msra.mxu1 %v11616_v4  ;;  %v11821_v45 = vld [vmem:[%s15200_s2 + $0x1378] sm:$0xf0]  ;;  %v14160_v30 = vld [vmem:[%s15200_s2 + $0x104c] sm:$0xf]  ;;  %v11696_v11 = vor.u32 %v14228_v44, %v11693_v24  ;;  %v8118_v0 = vpop.f32.mrf.mxu3  ;;  %v8092_v19 = vpop.f32.mrf.mxu1 }
 0x3df   : > { %8376 = vmatpush.bf16.msra.mxu2 %v11744_v2  ;;  %v11421_v25 = vld [vmem:[%s15200_s2 + $0x1058] sm:$0xf0]  ;;  %v14192_v48 = vld [vmem:[%s15200_s2 + $0x114c] sm:$0xf]  ;;  %v11824_v35 = vor.u32 %v14260_v10, %v11821_v45 }
 0x3e0   : > { %8390 = vmatpush.bf16.msra.mxu3 %v11872_v1  ;;  %v11549_v36 = vld [vmem:[%s15200_s2 + $0x1158] sm:$0xf0]  ;;  %v14224_v37 = vld [vmem:[%s15200_s2 + $0x124c] sm:$0xf]  ;;  %v8078_v2 = vpop.f32.mrf.mxu0  ;;  %v11424_v58 = vor.u32 %v14160_v30, %v11421_v25 }
 0x3e1   : > { %8349 = vmatpush.bf16.msra.mxu0 %v11472_v33  ;;  %v8104_v62 = vpop.f32.mrf.mxu2  ;;  %v11677_v54 = vld [vmem:[%s15200_s2 + $0x1258] sm:$0xf0]  ;;  %v14256_v41 = vld [vmem:[%s15200_s2 + $0x134c] sm:$0xf]  ;;  %v11552_v31 = vor.u32 %v14192_v48, %v11549_v36  ;;  %v8079_v49 = vadd.f32 %v8078_v2, %v8065_v50 }
 0x3e2   : > { %8363 = vmatpush.bf16.msra.mxu1 %v11600_v46  ;;  %v8105_v4 = vadd.f32 %v8104_v62, %v8091_v20  ;;  %v11805_v14 = vld [vmem:[%s15200_s2 + $0x1358] sm:$0xf0]  ;;  %v11680_v59 = vor.u32 %v14224_v37, %v11677_v54  ;;  %v14156_v61 = vld [vmem:[%s15200_s2 + $0x102c] sm:$0xf] }
 0x3e3   : > { %8377 = vmatpush.bf16.msra.mxu2 %v11728_v21  ;;  %v469_v1 = vld [vmem:[#allocation2 + $0x18] sm:$0xff]  ;;  %v14188_v33 = vld [vmem:[%s15200_s2 + $0x112c] sm:$0xf]  ;;  %v11808_v8 = vor.u32 %v14256_v41, %v11805_v14  ;;  %v8093_v29 = vadd.f32 %v8092_v19, %v8079_v49 }
 0x3e4   : > { %8391 = vmatpush.bf16.msra.mxu3 %v11856_v18  ;;  %v8119_v23 = vadd.f32 %v8118_v0, %v8105_v4  ;;  %v11405_v27 = vld [vmem:[%s15200_s2 + $0x1038] sm:$0xf0]  ;;  %v14220_v21 = vld [vmem:[%s15200_s2 + $0x122c] sm:$0xf] }
 0x3e5   : > { %8350 = vmatpush.bf16.msra.mxu0 %v11456_v28  ;;  %v11533_v46 = vld [vmem:[%s15200_s2 + $0x1138] sm:$0xf0]  ;;  %v14252_v63 = vld [vmem:[%s15200_s2 + $0x132c] sm:$0xf]  ;;  %v11408_v18 = vor.u32 %v14156_v61, %v11405_v27 }
 0x3e6   : > { %8364 = vmatpush.bf16.msra.mxu1 %v11584_v17  ;;  %v11661_v7 = vld [vmem:[%s15200_s2 + $0x1238] sm:$0xf0]  ;;  %v8573_v39 = vadd.f32 %v8119_v23, %v469_v1  ;;  %v14152_v5 = vld [vmem:[%s15200_s2 + $0x100c] sm:$0xf]  ;;  %v11536_v38 = vor.u32 %v14188_v33, %v11533_v46  ;;  %v8120_v6 = vpop.f32.mrf.mxu3 }
 0x3e7   : > { %8378 = vmatpush.bf16.msra.mxu2 %v11712_v13  ;;  %v11789_v42 = vld [vmem:[%s15200_s2 + $0x1338] sm:$0xf0]  ;;  %v14184_v3 = vld [vmem:[%s15200_s2 + $0x110c] sm:$0xf]  ;;  %v11664_v12 = vor.u32 %v14220_v21, %v11661_v7 }
 0x3e8   : > { %8392 = vmatpush.bf16.msra.mxu3 %v11840_v15  ;;  %v11389_v47 = vld [vmem:[%s15200_s2 + $0x1018] sm:$0xf0]  ;;  %8581 = vst [vmem:[#allocation2 + $0x18] sm:$0xff] %v8573_v39  ;;  %v14216_v28 = vld [vmem:[%s15200_s2 + $0x120c] sm:$0xf]  ;;  %v11792_v17 = vor.u32 %v14252_v63, %v11789_v42 }
 0x3e9   : > { %8351 = vmatpush.bf16.msra.mxu0 %v11440_v51  ;;  %v11517_v34 = vld [vmem:[%s15200_s2 + $0x1118] sm:$0xf0]  ;;  %v8106_v16 = vpop.f32.mrf.mxu2  ;;  %v473_v55 = vld [vmem:[#allocation2 + $0x28] sm:$0xff]  ;;  %v11392_v24 = vor.u32 %v14152_v5, %v11389_v47 }
 0x3ea   : > { %8365 = vmatpush.bf16.msra.mxu1 %v11568_v32  ;;  %v11645_v53 = vld [vmem:[%s15200_s2 + $0x1218] sm:$0xf0]  ;;  %v14248_v13 = vld [vmem:[%s15200_s2 + $0x130c] sm:$0xf]  ;;  %v8107_v43 = vadd.f32 %v8106_v16, %v8093_v29  ;;  %v11520_v30 = vor.u32 %v14184_v3, %v11517_v34 }
 0x3eb   : > { %8379 = vmatpush.bf16.msra.mxu2 %v11696_v11  ;;  %v11773_v26 = vld [vmem:[%s15200_s2 + $0x1318] sm:$0xf0]  ;;  %v14308_v15 = vld [vmem:[%s15200_s2 + $0x14ec] sm:$0xf]  ;;  %v11648_v20 = vor.u32 %v14216_v28, %v11645_v53 }
 0x3ec   : > { %8393 = vmatpush.bf16.msra.mxu3 %v11824_v35  ;;  %v12013_v40 = vld [vmem:[%s15200_s2 + $0x14f8] sm:$0xf0]  ;;  %v14340_v44 = vld [vmem:[%s15200_s2 + $0x15ec] sm:$0xf]  ;;  %v8121_v51 = vadd.f32 %v8120_v6, %v8107_v43  ;;  %v11776_v25 = vor.u32 %v14248_v13, %v11773_v26 }
 0x3ed   : > { %8352 = vmatpush.bf16.msra.mxu0 %v11424_v58  ;;  %v12141_v22 = vld [vmem:[%s15200_s2 + $0x15f8] sm:$0xf0]  ;;  %v14372_v10 = vld [vmem:[%s15200_s2 + $0x16ec] sm:$0xf]  ;;  %v12016_v48 = vor.u32 %v14308_v15, %v12013_v40 }
 0x3ee   : > { %8366 = vmatpush.bf16.msra.mxu1 %v11552_v31  ;;  %v12269_v45 = vld [vmem:[%s15200_s2 + $0x16f8] sm:$0xf0]  ;;  %v14404_v32 = vld [vmem:[%s15200_s2 + $0x17ec] sm:$0xf]  ;;  %v8577_v36 = vadd.f32 %v8121_v51, %v473_v55  ;;  %v12144_v35 = vor.u32 %v14340_v44, %v12141_v22 }
 0x3ef   : > { %8380 = vmatpush.bf16.msra.mxu2 %v11680_v59  ;;  %v12397_v11 = vld [vmem:[%s15200_s2 + $0x17f8] sm:$0xf0]  ;;  %v12272_v62 = vor.u32 %v14372_v10, %v12269_v45  ;;  %v14304_v37 = vld [vmem:[%s15200_s2 + $0x14cc] sm:$0xf] }
 0x3f0   : > { %8394 = vmatpush.bf16.msra.mxu3 %v11808_v8  ;;  %v11997_v54 = vld [vmem:[%s15200_s2 + $0x14d8] sm:$0xf0]  ;;  %v14336_v50 = vld [vmem:[%s15200_s2 + $0x15cc] sm:$0xf]  ;;  %v12400_v4 = vor.u32 %v14404_v32, %v12397_v11  ;;  %8585 = vst [vmem:[#allocation2 + $0x28] sm:$0xff] %v8577_v36 }
 0x3f1   : > { %8353 = vmatpush.bf16.msra.mxu0 %v11408_v18  ;;  %v12125_v2 = vld [vmem:[%s15200_s2 + $0x15d8] sm:$0xf0]  ;;  %v14368_v0 = vld [vmem:[%s15200_s2 + $0x16cc] sm:$0xf]  ;;  %v12000_v58 = vor.u32 %v14304_v37, %v11997_v54 }
 0x3f2   : > { %8367 = vmatpush.bf16.msra.mxu1 %v11536_v38  ;;  %v12253_v41 = vld [vmem:[%s15200_s2 + $0x16d8] sm:$0xf0]  ;;  %v14400_v14 = vld [vmem:[%s15200_s2 + $0x17cc] sm:$0xf]  ;;  %v12128_v31 = vor.u32 %v14336_v50, %v12125_v2 }
 0x3f3   : > { %8381 = vmatpush.bf16.msra.mxu2 %v11664_v12  ;;  %v12381_v1 = vld [vmem:[%s15200_s2 + $0x17d8] sm:$0xf0]  ;;  %v12256_v49 = vor.u32 %v14368_v0, %v12253_v41  ;;  %v14300_v23 = vld [vmem:[%s15200_s2 + $0x14ac] sm:$0xf] }
 0x3f4   : > { %8395 = vmatpush.bf16.msra.mxu3 %v11792_v17  ;;  %v11981_v59 = vld [vmem:[%s15200_s2 + $0x14b8] sm:$0xf0]  ;;  %v14332_v61 = vld [vmem:[%s15200_s2 + $0x15ac] sm:$0xf]  ;;  %v12384_v27 = vor.u32 %v14400_v14, %v12381_v1 }
 0x3f5   : > { %8354 = vmatpush.bf16.msra.mxu0 %v11392_v24  ;;  %v12109_v33 = vld [vmem:[%s15200_s2 + $0x15b8] sm:$0xf0]  ;;  %v14364_v8 = vld [vmem:[%s15200_s2 + $0x16ac] sm:$0xf] }
 0x3f6   : > { %8368 = vmatpush.bf16.msra.mxu1 %v11520_v30  ;;  %v12237_v19 = vld [vmem:[%s15200_s2 + $0x16b8] sm:$0xf0]  ;;  %v14396_v46 = vld [vmem:[%s15200_s2 + $0x17ac] sm:$0xf]  ;;  %v12112_v7 = vor.u32 %v14332_v61, %v12109_v33 }
 0x3f7   : > { %8382 = vmatpush.bf16.msra.mxu2 %v11648_v20  ;;  %v12365_v21 = vld [vmem:[%s15200_s2 + $0x17b8] sm:$0xf0]  ;;  %v12240_v39 = vor.u32 %v14364_v8, %v12237_v19  ;;  %v14296_v63 = vld [vmem:[%s15200_s2 + $0x148c] sm:$0xf] }
 0x3f8   : > { %8396 = vmatpush.bf16.msra.mxu3 %v11776_v25  ;;  %8355 = vmatmul.bf16.vlgmr.msra.gmra.mxu0 %v15645_v52  ;;  %v11984_v52 = vor.u32 %v14300_v23, %v11981_v59  ;;  %v14328_v42 = vld [vmem:[%s15200_s2 + $0x158c] sm:$0xf]  ;;  %v12093_v18 = vld [vmem:[%s15200_s2 + $0x1598] sm:$0xf0] }
 0x3f9   : > { %8403 = vmatpush.bf16.msrb.mxu0 %v12016_v48  ;;  %8369 = vmatmul.bf16.vlgmr.msra.gmra.mxu1 %v15652_v57  ;;  %v12368_v57 = vor.u32 %v14396_v46, %v12365_v21  ;;  %v14360_v5 = vld [vmem:[%s15200_s2 + $0x168c] sm:$0xf]  ;;  %v12349_v3 = vld [vmem:[%s15200_s2 + $0x1798] sm:$0xf0]  ;;  %v12096_v38 = vor.u32 %v14328_v42, %v12093_v18 }
 0x3fa   : > { %8417 = vmatpush.bf16.msrb.mxu1 %v12144_v35  ;;  %8383 = vmatmul.bf16.vlgmr.msra.gmra.mxu2 %v15650_v56  ;;  %v11965_v56 = vld [vmem:[%s15200_s2 + $0x1498] sm:$0xf0]  ;;  %v14392_v47 = vld [vmem:[%s15200_s2 + $0x178c] sm:$0xf] }
 0x3fb   : > { %8431 = vmatpush.bf16.msrb.mxu2 %v12272_v62  ;;  %8397 = vmatmul.bf16.vlgmr.msra.gmra.mxu3 %v15656_v60  ;;  %v12221_v60 = vld [vmem:[%s15200_s2 + $0x1698] sm:$0xf0]  ;;  %v11968_v29 = vor.u32 %v14296_v63, %v11965_v56  ;;  %v14292_v34 = vld [vmem:[%s15200_s2 + $0x146c] sm:$0xf]  ;;  %v12352_v16 = vor.u32 %v14392_v47, %v12349_v3 }
 0x3fc   : > { %8445 = vmatpush.bf16.msrb.mxu3 %v12400_v4  ;;  %v12224_v12 = vor.u32 %v14360_v5, %v12221_v60  ;;  %v11949_v28 = vld [vmem:[%s15200_s2 + $0x1478] sm:$0xf0]  ;;  %v14324_v17 = vld [vmem:[%s15200_s2 + $0x156c] sm:$0xf] }
 0x3fd   : > { %8404 = vmatpush.bf16.msrb.mxu0 %v12000_v58  ;;  %v12077_v55 = vld [vmem:[%s15200_s2 + $0x1578] sm:$0xf0]  ;;  %v14356_v53 = vld [vmem:[%s15200_s2 + $0x166c] sm:$0xf]  ;;  %v11952_v6 = vor.u32 %v14292_v34, %v11949_v28 }
 0x3fe   : > { %8418 = vmatpush.bf16.msrb.mxu1 %v12128_v31  ;;  %v12205_v13 = vld [vmem:[%s15200_s2 + $0x1678] sm:$0xf0]  ;;  %v14388_v26 = vld [vmem:[%s15200_s2 + $0x176c] sm:$0xf]  ;;  %v12080_v15 = vor.u32 %v14324_v17, %v12077_v55 }
 0x3ff   : > { %8432 = vmatpush.bf16.msrb.mxu2 %v12256_v49  ;;  %v12333_v43 = vld [vmem:[%s15200_s2 + $0x1778] sm:$0xf0]  ;;  %v12208_v40 = vor.u32 %v14356_v53, %v12205_v13  ;;  %v14288_v44 = vld [vmem:[%s15200_s2 + $0x144c] sm:$0xf] }
 0x400   : > { %8446 = vmatpush.bf16.msrb.mxu3 %v12384_v27  ;;  %v11933_v24 = vld [vmem:[%s15200_s2 + $0x1458] sm:$0xf0]  ;;  %v14320_v22 = vld [vmem:[%s15200_s2 + $0x154c] sm:$0xf]  ;;  %v12336_v10 = vor.u32 %v14388_v26, %v12333_v43 }
 0x401   : > { %8405 = vmatpush.bf16.msrb.mxu0 %v11984_v52  ;;  %v12061_v45 = vld [vmem:[%s15200_s2 + $0x1558] sm:$0xf0]  ;;  %v14352_v51 = vld [vmem:[%s15200_s2 + $0x164c] sm:$0xf]  ;;  %v11936_v11 = vor.u32 %v14288_v44, %v11933_v24 }
 0x402   : > { %8419 = vmatpush.bf16.msrb.mxu1 %v12112_v7  ;;  %v12189_v30 = vld [vmem:[%s15200_s2 + $0x1658] sm:$0xf0]  ;;  %v14384_v20 = vld [vmem:[%s15200_s2 + $0x174c] sm:$0xf]  ;;  %v12064_v25 = vor.u32 %v14320_v22, %v12061_v45 }
 0x403   : > { %8433 = vmatpush.bf16.msrb.mxu2 %v12240_v39  ;;  %v12317_v32 = vld [vmem:[%s15200_s2 + $0x1758] sm:$0xf0]  ;;  %v12192_v48 = vor.u32 %v14352_v51, %v12189_v30  ;;  %v14284_v36 = vld [vmem:[%s15200_s2 + $0x142c] sm:$0xf]  ;;  %v18110_v51 = vld [vmem:[#allocation22_spill] sm:$0xff] }
 0x404   : > { %8447 = vmatpush.bf16.msrb.mxu3 %v12368_v57  ;;  %v11917_v35 = vld [vmem:[%s15200_s2 + $0x1438] sm:$0xf0]  ;;  %v14316_v62 = vld [vmem:[%s15200_s2 + $0x152c] sm:$0xf]  ;;  %v12320_v37 = vor.u32 %v14384_v20, %v12317_v32 }
 0x405   : > { %8406 = vmatpush.bf16.msrb.mxu0 %v11968_v29  ;;  %v12045_v54 = vld [vmem:[%s15200_s2 + $0x1538] sm:$0xf0]  ;;  %v14348_v50 = vld [vmem:[%s15200_s2 + $0x162c] sm:$0xf]  ;;  %v11920_v41 = vor.u32 %v14284_v36, %v11917_v35 }
 0x406   : > { %8420 = vmatpush.bf16.msrb.mxu1 %v12096_v38  ;;  %v12173_v4 = vld [vmem:[%s15200_s2 + $0x1638] sm:$0xf0]  ;;  %v14380_v2 = vld [vmem:[%s15200_s2 + $0x172c] sm:$0xf]  ;;  %v12048_v58 = vor.u32 %v14316_v62, %v12045_v54 }
 0x407   : > { %8434 = vmatpush.bf16.msrb.mxu2 %v12224_v12  ;;  %v12301_v0 = vld [vmem:[%s15200_s2 + $0x1738] sm:$0xf0]  ;;  %v14280_v14 = vld [vmem:[%s15200_s2 + $0x140c] sm:$0xf]  ;;  %v12176_v31 = vor.u32 %v14348_v50, %v12173_v4 }
 0x408   : > { %8448 = vmatpush.bf16.msrb.mxu3 %v12352_v16  ;;  %v11901_v1 = vld [vmem:[%s15200_s2 + $0x1418] sm:$0xf0]  ;;  %v14312_v49 = vld [vmem:[%s15200_s2 + $0x150c] sm:$0xf]  ;;  %v12304_v61 = vor.u32 %v14380_v2, %v12301_v0 }
 0x409   : > { %8407 = vmatpush.bf16.msrb.mxu0 %v11952_v6  ;;  %v12029_v23 = vld [vmem:[%s15200_s2 + $0x1518] sm:$0xf0]  ;;  %v14344_v59 = vld [vmem:[%s15200_s2 + $0x160c] sm:$0xf]  ;;  %v11904_v52 = vor.u32 %v14280_v14, %v11901_v1 }
 0x40a   : > { %8421 = vmatpush.bf16.msrb.mxu1 %v12080_v15  ;;  %v12157_v27 = vld [vmem:[%s15200_s2 + $0x1618] sm:$0xf0]  ;;  %v14376_v33 = vld [vmem:[%s15200_s2 + $0x170c] sm:$0xf]  ;;  %v12032_v56 = vor.u32 %v14312_v49, %v12029_v23 }
 0x40b   : > { %8435 = vmatpush.bf16.msrb.mxu2 %v12208_v40  ;;  %v12285_v8 = vld [vmem:[%s15200_s2 + $0x1718] sm:$0xf0]  ;;  %v14436_v19 = vld [vmem:[%s15200_s2 + $0x18ec] sm:$0xf]  ;;  %v12160_v42 = vor.u32 %v14344_v59, %v12157_v27 }
 0x40c   : > { %8449 = vmatpush.bf16.msrb.mxu3 %v12336_v10  ;;  %v12525_v46 = vld [vmem:[%s15200_s2 + $0x18f8] sm:$0xf0]  ;;  %v14468_v21 = vld [vmem:[%s15200_s2 + $0x19ec] sm:$0xf]  ;;  %v12288_v5 = vor.u32 %v14376_v33, %v12285_v8 }
 0x40d   : > { %8408 = vmatpush.bf16.msrb.mxu0 %v11936_v11  ;;  %v12653_v7 = vld [vmem:[%s15200_s2 + $0x19f8] sm:$0xf0]  ;;  %v14500_v39 = vld [vmem:[%s15200_s2 + $0x1aec] sm:$0xf]  ;;  %v12528_v60 = vor.u32 %v14436_v19, %v12525_v46 }
 0x40e   : > { %8422 = vmatpush.bf16.msrb.mxu1 %v12064_v25  ;;  %v12781_v63 = vld [vmem:[%s15200_s2 + $0x1af8] sm:$0xf0]  ;;  %v14532_v57 = vld [vmem:[%s15200_s2 + $0x1bec] sm:$0xf]  ;;  %v12656_v47 = vor.u32 %v14468_v21, %v12653_v7 }
 0x40f   : > { %8436 = vmatpush.bf16.msrb.mxu2 %v12192_v48  ;;  %v12909_v18 = vld [vmem:[%s15200_s2 + $0x1bf8] sm:$0xf0]  ;;  %v12784_v3 = vor.u32 %v14500_v39, %v12781_v63  ;;  %v14432_v29 = vld [vmem:[%s15200_s2 + $0x18cc] sm:$0xf] }
 0x410   : > { %8450 = vmatpush.bf16.msrb.mxu3 %v12320_v37  ;;  %v12509_v38 = vld [vmem:[%s15200_s2 + $0x18d8] sm:$0xf0]  ;;  %v14464_v12 = vld [vmem:[%s15200_s2 + $0x19cc] sm:$0xf]  ;;  %v12912_v34 = vor.u32 %v14532_v57, %v12909_v18 }
 0x411   : > { %8409 = vmatpush.bf16.msrb.mxu0 %v11920_v41  ;;  %v12637_v28 = vld [vmem:[%s15200_s2 + $0x19d8] sm:$0xf0]  ;;  %v14496_v17 = vld [vmem:[%s15200_s2 + $0x1acc] sm:$0xf]  ;;  %v12512_v13 = vor.u32 %v14432_v29, %v12509_v38 }
 0x412   : > { %8423 = vmatpush.bf16.msrb.mxu1 %v12048_v58  ;;  %v12765_v16 = vld [vmem:[%s15200_s2 + $0x1ad8] sm:$0xf0]  ;;  %v14528_v55 = vld [vmem:[%s15200_s2 + $0x1bcc] sm:$0xf]  ;;  %v12640_v26 = vor.u32 %v14464_v12, %v12637_v28 }
 0x413   : > { %8437 = vmatpush.bf16.msrb.mxu2 %v12176_v31  ;;  %v12893_v53 = vld [vmem:[%s15200_s2 + $0x1bd8] sm:$0xf0]  ;;  %v12768_v43 = vor.u32 %v14496_v17, %v12765_v16  ;;  %v14428_v6 = vld [vmem:[%s15200_s2 + $0x18ac] sm:$0xf] }
 0x414   : > { %8451 = vmatpush.bf16.msrb.mxu3 %v12304_v61  ;;  %v12493_v15 = vld [vmem:[%s15200_s2 + $0x18b8] sm:$0xf0]  ;;  %v14460_v40 = vld [vmem:[%s15200_s2 + $0x19ac] sm:$0xf]  ;;  %v12896_v44 = vor.u32 %v14528_v55, %v12893_v53 }
 0x415   : > { %8410 = vmatpush.bf16.msrb.mxu0 %v11904_v52  ;;  %v12621_v24 = vld [vmem:[%s15200_s2 + $0x19b8] sm:$0xf0]  ;;  %v14492_v22 = vld [vmem:[%s15200_s2 + $0x1aac] sm:$0xf] }
 0x416   : > { %8424 = vmatpush.bf16.msrb.mxu1 %v12032_v56  ;;  %v12749_v10 = vld [vmem:[%s15200_s2 + $0x1ab8] sm:$0xf0]  ;;  %v18109_v45 = vld [vmem:[#allocation21_spill] sm:$0xff]  ;;  %v12624_v11 = vor.u32 %v14460_v40, %v12621_v24 }
 0x417   : > { %8438 = vmatpush.bf16.msrb.mxu2 %v12160_v42  ;;  %v14524_v30 = vld [vmem:[%s15200_s2 + $0x1bac] sm:$0xf]  ;;  %v12877_v20 = vld [vmem:[%s15200_s2 + $0x1bb8] sm:$0xf0]  ;;  %v12752_v25 = vor.u32 %v14492_v22, %v12749_v10 }
 0x418   : > { %8452 = vmatpush.bf16.msrb.mxu3 %v12288_v5  ;;  %8411 = vmatmul.bf16.vlgmr.msrb.gmra.mxu0 %v15729_v9  ;;  %v18111_v32 = vld [vmem:[#allocation23_spill] sm:$0xff]  ;;  %v12496_v9 = vor.u32 %v14428_v6, %v12493_v15  ;;  %v14424_v48 = vld [vmem:[%s15200_s2 + $0x188c] sm:$0xf]  ;;  %v12880_v62 = vor.u32 %v14524_v30, %v12877_v20 }
 0x419   : > { %8459 = vmatpush.bf16.msra.mxu0 %v12528_v60  ;;  %8425 = vmatmul.bf16.vlgmr.msrb.gmra.mxu1 %v18110_v51  ;;  %v12477_v36 = vld [vmem:[%s15200_s2 + $0x1898] sm:$0xf0]  ;;  %v14456_v35 = vld [vmem:[%s15200_s2 + $0x198c] sm:$0xf] }
 0x41a   : > { %8473 = vmatpush.bf16.msra.mxu1 %v12656_v47  ;;  %8439 = vmatmul.bf16.vlgmr.msrb.gmra.mxu2 %v18109_v45  ;;  %v12605_v37 = vld [vmem:[%s15200_s2 + $0x1998] sm:$0xf0]  ;;  %v14488_v54 = vld [vmem:[%s15200_s2 + $0x1a8c] sm:$0xf]  ;;  %v12480_v0 = vor.u32 %v14424_v48, %v12477_v36 }
 0x41b   : > { %8487 = vmatpush.bf16.msra.mxu2 %v12784_v3  ;;  %8453 = vmatmul.bf16.vlgmr.msrb.gmra.mxu3 %v18111_v32  ;;  %v12733_v50 = vld [vmem:[%s15200_s2 + $0x1a98] sm:$0xf0]  ;;  %v14520_v4 = vld [vmem:[%s15200_s2 + $0x1b8c] sm:$0xf]  ;;  %v12608_v41 = vor.u32 %v14456_v35, %v12605_v37 }
 0x41c   : > { %8501 = vmatpush.bf16.msra.mxu3 %v12912_v34  ;;  %v12861_v2 = vld [vmem:[%s15200_s2 + $0x1b98] sm:$0xf0]  ;;  %v12736_v14 = vor.u32 %v14488_v54, %v12733_v50  ;;  %v14420_v1 = vld [vmem:[%s15200_s2 + $0x186c] sm:$0xf] }
 0x41d   : > { %8460 = vmatpush.bf16.msra.mxu0 %v12512_v13  ;;  %v12461_v58 = vld [vmem:[%s15200_s2 + $0x1878] sm:$0xf0]  ;;  %v14452_v31 = vld [vmem:[%s15200_s2 + $0x196c] sm:$0xf]  ;;  %v12864_v49 = vor.u32 %v14520_v4, %v12861_v2 }
 0x41e   : > { %8474 = vmatpush.bf16.msra.mxu1 %v12640_v26  ;;  %v12589_v23 = vld [vmem:[%s15200_s2 + $0x1978] sm:$0xf0]  ;;  %v14484_v59 = vld [vmem:[%s15200_s2 + $0x1a6c] sm:$0xf]  ;;  %v12464_v8 = vor.u32 %v14420_v1, %v12461_v58 }
 0x41f   : > { %8488 = vmatpush.bf16.msra.mxu2 %v12768_v43  ;;  %v12717_v61 = vld [vmem:[%s15200_s2 + $0x1a78] sm:$0xf0]  ;;  %v14516_v27 = vld [vmem:[%s15200_s2 + $0x1b6c] sm:$0xf]  ;;  %v12592_v19 = vor.u32 %v14452_v31, %v12589_v23 }
 0x420   : > { %8502 = vmatpush.bf16.msra.mxu3 %v12896_v44  ;;  %v12845_v33 = vld [vmem:[%s15200_s2 + $0x1b78] sm:$0xf0]  ;;  %v12720_v46 = vor.u32 %v14484_v59, %v12717_v61  ;;  %v14416_v21 = vld [vmem:[%s15200_s2 + $0x184c] sm:$0xf] }
 0x421   : > { %8461 = vmatpush.bf16.msra.mxu0 %v12496_v9  ;;  %v12445_v52 = vld [vmem:[%s15200_s2 + $0x1858] sm:$0xf0]  ;;  %v14448_v7 = vld [vmem:[%s15200_s2 + $0x194c] sm:$0xf]  ;;  %v12848_v39 = vor.u32 %v14516_v27, %v12845_v33 }
 0x422   : > { %8475 = vmatpush.bf16.msra.mxu1 %v12624_v11  ;;  %v12573_v63 = vld [vmem:[%s15200_s2 + $0x1958] sm:$0xf0]  ;;  %v14480_v56 = vld [vmem:[%s15200_s2 + $0x1a4c] sm:$0xf]  ;;  %v12448_v5 = vor.u32 %v14416_v21, %v12445_v52 }
 0x423   : > { %8489 = vmatpush.bf16.msra.mxu2 %v12752_v25  ;;  %v12701_v42 = vld [vmem:[%s15200_s2 + $0x1a58] sm:$0xf0]  ;;  %v14512_v57 = vld [vmem:[%s15200_s2 + $0x1b4c] sm:$0xf]  ;;  %v12576_v60 = vor.u32 %v14448_v7, %v12573_v63 }
 0x424   : > { %8503 = vmatpush.bf16.msra.mxu3 %v12880_v62  ;;  %v12829_v18 = vld [vmem:[%s15200_s2 + $0x1b58] sm:$0xf0]  ;;  %v12704_v47 = vor.u32 %v14480_v56, %v12701_v42  ;;  %v14412_v3 = vld [vmem:[%s15200_s2 + $0x182c] sm:$0xf]  ;;  %v18114_v56 = vld [vmem:[#allocation26_spill] sm:$0xff] }
 0x425   : > { %8462 = vmatpush.bf16.msra.mxu0 %v12480_v0  ;;  %v12429_v29 = vld [vmem:[%s15200_s2 + $0x1838] sm:$0xf0]  ;;  %v14444_v38 = vld [vmem:[%s15200_s2 + $0x192c] sm:$0xf]  ;;  %v12832_v12 = vor.u32 %v14512_v57, %v12829_v18 }
 0x426   : > { %8476 = vmatpush.bf16.msra.mxu1 %v12608_v41  ;;  %v12557_v34 = vld [vmem:[%s15200_s2 + $0x1938] sm:$0xf0]  ;;  %v14476_v28 = vld [vmem:[%s15200_s2 + $0x1a2c] sm:$0xf]  ;;  %v12432_v53 = vor.u32 %v14412_v3, %v12429_v29 }
 0x427   : > { %8490 = vmatpush.bf16.msra.mxu2 %v12736_v14  ;;  %v12685_v17 = vld [vmem:[%s15200_s2 + $0x1a38] sm:$0xf0]  ;;  %v14508_v16 = vld [vmem:[%s15200_s2 + $0x1b2c] sm:$0xf]  ;;  %v12560_v43 = vor.u32 %v14444_v38, %v12557_v34 }
 0x428   : > { %8504 = vmatpush.bf16.msra.mxu3 %v12864_v49  ;;  %v12813_v55 = vld [vmem:[%s15200_s2 + $0x1b38] sm:$0xf0]  ;;  %v14408_v13 = vld [vmem:[%s15200_s2 + $0x180c] sm:$0xf]  ;;  %v12688_v6 = vor.u32 %v14476_v28, %v12685_v17 }
 0x429   : > { %8463 = vmatpush.bf16.msra.mxu0 %v12464_v8  ;;  %v12413_v26 = vld [vmem:[%s15200_s2 + $0x1818] sm:$0xf0]  ;;  %v14440_v15 = vld [vmem:[%s15200_s2 + $0x190c] sm:$0xf]  ;;  %v12816_v24 = vor.u32 %v14508_v16, %v12813_v55 }
 0x42a   : > { %8477 = vmatpush.bf16.msra.mxu1 %v12592_v19  ;;  %v12541_v40 = vld [vmem:[%s15200_s2 + $0x1918] sm:$0xf0]  ;;  %v14472_v44 = vld [vmem:[%s15200_s2 + $0x1a0c] sm:$0xf]  ;;  %v12416_v32 = vor.u32 %v14408_v13, %v12413_v26 }
 0x42b   : > { %8491 = vmatpush.bf16.msra.mxu2 %v12720_v46  ;;  %v12669_v22 = vld [vmem:[%s15200_s2 + $0x1a18] sm:$0xf0]  ;;  %v14504_v10 = vld [vmem:[%s15200_s2 + $0x1b0c] sm:$0xf]  ;;  %v12544_v48 = vor.u32 %v14440_v15, %v12541_v40  ;;  %v18112_v46 = vld [vmem:[#allocation24_spill] sm:$0xff] }
 0x42c   : > { %8505 = vmatpush.bf16.msra.mxu3 %v12848_v39  ;;  %v12797_v45 = vld [vmem:[%s15200_s2 + $0x1b18] sm:$0xf0]  ;;  %v14564_v51 = vld [vmem:[%s15200_s2 + $0x1cec] sm:$0xf]  ;;  %v12672_v36 = vor.u32 %v14472_v44, %v12669_v22 }
 0x42d   : > { %8464 = vmatpush.bf16.msra.mxu0 %v12448_v5  ;;  %v13037_v30 = vld [vmem:[%s15200_s2 + $0x1cf8] sm:$0xf0]  ;;  %v14596_v20 = vld [vmem:[%s15200_s2 + $0x1dec] sm:$0xf]  ;;  %v12800_v37 = vor.u32 %v14504_v10, %v12797_v45 }
 0x42e   : > { %8478 = vmatpush.bf16.msra.mxu1 %v12576_v60  ;;  %v13165_v9 = vld [vmem:[%s15200_s2 + $0x1df8] sm:$0xf0]  ;;  %v14628_v11 = vld [vmem:[%s15200_s2 + $0x1eec] sm:$0xf]  ;;  %v13040_v54 = vor.u32 %v14564_v51, %v13037_v30 }
 0x42f   : > { %8492 = vmatpush.bf16.msra.mxu2 %v12704_v47  ;;  %v13293_v25 = vld [vmem:[%s15200_s2 + $0x1ef8] sm:$0xf0]  ;;  %v14660_v35 = vld [vmem:[%s15200_s2 + $0x1fec] sm:$0xf]  ;;  %v13168_v50 = vor.u32 %v14596_v20, %v13165_v9 }
 0x430   : > { %8506 = vmatpush.bf16.msra.mxu3 %v12832_v12  ;;  %v13421_v62 = vld [vmem:[%s15200_s2 + $0x1ff8] sm:$0xf0]  ;;  %v13296_v4 = vor.u32 %v14628_v11, %v13293_v25  ;;  %v14560_v2 = vld [vmem:[%s15200_s2 + $0x1ccc] sm:$0xf] }
 0x431   : > { %8465 = vmatpush.bf16.msra.mxu0 %v12432_v53  ;;  %v13021_v0 = vld [vmem:[%s15200_s2 + $0x1cd8] sm:$0xf0]  ;;  %v14592_v41 = vld [vmem:[%s15200_s2 + $0x1dcc] sm:$0xf]  ;;  %v13424_v14 = vor.u32 %v14660_v35, %v13421_v62 }
 0x432   : > { %8479 = vmatpush.bf16.msra.mxu1 %v12560_v43  ;;  %v13149_v1 = vld [vmem:[%s15200_s2 + $0x1dd8] sm:$0xf0]  ;;  %v14624_v58 = vld [vmem:[%s15200_s2 + $0x1ecc] sm:$0xf]  ;;  %v13024_v59 = vor.u32 %v14560_v2, %v13021_v0 }
 0x433   : > { %8493 = vmatpush.bf16.msra.mxu2 %v12688_v6  ;;  %v13277_v31 = vld [vmem:[%s15200_s2 + $0x1ed8] sm:$0xf0]  ;;  %v14656_v49 = vld [vmem:[%s15200_s2 + $0x1fcc] sm:$0xf]  ;;  %v13152_v61 = vor.u32 %v14592_v41, %v13149_v1 }
 0x434   : > { %8507 = vmatpush.bf16.msra.mxu3 %v12816_v24  ;;  %v13405_v23 = vld [vmem:[%s15200_s2 + $0x1fd8] sm:$0xf0]  ;;  %v13280_v27 = vor.u32 %v14624_v58, %v13277_v31  ;;  %v14556_v33 = vld [vmem:[%s15200_s2 + $0x1cac] sm:$0xf] }
 0x435   : > { %8466 = vmatpush.bf16.msra.mxu0 %v12416_v32  ;;  %v13005_v8 = vld [vmem:[%s15200_s2 + $0x1cb8] sm:$0xf0]  ;;  %v14588_v19 = vld [vmem:[%s15200_s2 + $0x1dac] sm:$0xf]  ;;  %v13408_v21 = vor.u32 %v14656_v49, %v13405_v23 }
 0x436   : > { %8480 = vmatpush.bf16.msra.mxu1 %v12544_v48  ;;  %v13133_v52 = vld [vmem:[%s15200_s2 + $0x1db8] sm:$0xf0]  ;;  %v14620_v7 = vld [vmem:[%s15200_s2 + $0x1eac] sm:$0xf]  ;;  %v13008_v5 = vor.u32 %v14556_v33, %v13005_v8 }
 0x437   : > { %8494 = vmatpush.bf16.msra.mxu2 %v12672_v36  ;;  %v13261_v39 = vld [vmem:[%s15200_s2 + $0x1eb8] sm:$0xf0]  ;;  %v18113_v63 = vld [vmem:[#allocation25_spill] sm:$0xff]  ;;  %v13136_v60 = vor.u32 %v14588_v19, %v13133_v52 }
 0x438   : > { %8508 = vmatpush.bf16.msra.mxu3 %v12800_v37  ;;  %8467 = vmatmul.bf16.vlgmr.msra.gmra.mxu0 %v18112_v46  ;;  %v14652_v42 = vld [vmem:[%s15200_s2 + $0x1fac] sm:$0xf]  ;;  %v13389_v57 = vld [vmem:[%s15200_s2 + $0x1fb8] sm:$0xf0]  ;;  %v13264_v47 = vor.u32 %v14620_v7, %v13261_v39 }
 0x439   : > { %8515 = vmatpush.bf16.msrb.mxu0 %v13040_v54  ;;  %8481 = vmatmul.bf16.vlgmr.msra.gmra.mxu1 %v18114_v56  ;;  %v18115_v18 = vld [vmem:[#allocation27_spill] sm:$0xff]  ;;  %v14552_v3 = vld [vmem:[%s15200_s2 + $0x1c8c] sm:$0xf]  ;;  %v13392_v12 = vor.u32 %v14652_v42, %v13389_v57 }
 0x43a   : > { %8529 = vmatpush.bf16.msrb.mxu1 %v13168_v50  ;;  %8495 = vmatmul.bf16.vlgmr.msra.gmra.mxu2 %v18113_v63  ;;  %v12989_v29 = vld [vmem:[%s15200_s2 + $0x1c98] sm:$0xf0]  ;;  %v14584_v38 = vld [vmem:[%s15200_s2 + $0x1d8c] sm:$0xf] }
 0x43b   : > { %8543 = vmatpush.bf16.msrb.mxu2 %v13296_v4  ;;  %8509 = vmatmul.bf16.vlgmr.msra.gmra.mxu3 %v18115_v18  ;;  %v13117_v34 = vld [vmem:[%s15200_s2 + $0x1d98] sm:$0xf0]  ;;  %v14616_v28 = vld [vmem:[%s15200_s2 + $0x1e8c] sm:$0xf]  ;;  %v12992_v53 = vor.u32 %v14552_v3, %v12989_v29  ;;  %v18117_v3 = vld [vmem:[#allocation30_spill] sm:$0xff] }
 0x43c   : > { %8557 = vmatpush.bf16.msrb.mxu3 %v13424_v14  ;;  %v13245_v17 = vld [vmem:[%s15200_s2 + $0x1e98] sm:$0xf0]  ;;  %v14648_v16 = vld [vmem:[%s15200_s2 + $0x1f8c] sm:$0xf]  ;;  %v13120_v13 = vor.u32 %v14584_v38, %v13117_v34  ;;  %v8174_v34 = vpop.f32.mrf.mxu3 }
 0x43d   : > { %8516 = vmatpush.bf16.msrb.mxu0 %v13024_v59  ;;  %v13373_v55 = vld [vmem:[%s15200_s2 + $0x1f98] sm:$0xf0]  ;;  %v13248_v26 = vor.u32 %v14616_v28, %v13245_v17  ;;  %v14548_v43 = vld [vmem:[%s15200_s2 + $0x1c6c] sm:$0xf] }
 0x43e   : > { %8530 = vmatpush.bf16.msrb.mxu1 %v13152_v61  ;;  %v12973_v6 = vld [vmem:[%s15200_s2 + $0x1c78] sm:$0xf0]  ;;  %v14580_v15 = vld [vmem:[%s15200_s2 + $0x1d6c] sm:$0xf]  ;;  %v13376_v40 = vor.u32 %v14648_v16, %v13373_v55 }
 0x43f   : > { %8544 = vmatpush.bf16.msrb.mxu2 %v13280_v27  ;;  %v13101_v44 = vld [vmem:[%s15200_s2 + $0x1d78] sm:$0xf0]  ;;  %v14612_v24 = vld [vmem:[%s15200_s2 + $0x1e6c] sm:$0xf]  ;;  %v12976_v51 = vor.u32 %v14548_v43, %v12973_v6 }
 0x440   : > { %8558 = vmatpush.bf16.msrb.mxu3 %v13408_v21  ;;  %v13229_v22 = vld [vmem:[%s15200_s2 + $0x1e78] sm:$0xf0]  ;;  %v14644_v10 = vld [vmem:[%s15200_s2 + $0x1f6c] sm:$0xf]  ;;  %v13104_v30 = vor.u32 %v14580_v15, %v13101_v44 }
 0x441   : > { %8517 = vmatpush.bf16.msrb.mxu0 %v13008_v5  ;;  %v13357_v45 = vld [vmem:[%s15200_s2 + $0x1f78] sm:$0xf0]  ;;  %v13232_v20 = vor.u32 %v14612_v24, %v13229_v22  ;;  %v14544_v32 = vld [vmem:[%s15200_s2 + $0x1c4c] sm:$0xf]  ;;  %v8132_v5 = vpop.f32.mrf.mxu0 }
 0x442   : > { %8531 = vmatpush.bf16.msrb.mxu1 %v13136_v60  ;;  %v12957_v9 = vld [vmem:[%s15200_s2 + $0x1c58] sm:$0xf0]  ;;  %v14576_v11 = vld [vmem:[%s15200_s2 + $0x1d4c] sm:$0xf]  ;;  %v13360_v25 = vor.u32 %v14644_v10, %v13357_v45  ;;  %v8146_v60 = vpop.f32.mrf.mxu1 }
 0x443   : > { %8545 = vmatpush.bf16.msrb.mxu2 %v13264_v47  ;;  %v13085_v48 = vld [vmem:[%s15200_s2 + $0x1d58] sm:$0xf0]  ;;  %v14608_v36 = vld [vmem:[%s15200_s2 + $0x1e4c] sm:$0xf]  ;;  %v12960_v54 = vor.u32 %v14544_v32, %v12957_v9  ;;  %v18116_v47 = vld [vmem:[#allocation28_spill] sm:$0xff]  ;;  %v8147_v10 = vadd.f32 %v8146_v60, %v8132_v5 }
 0x444   : > { %8559 = vmatpush.bf16.msrb.mxu3 %v13392_v12  ;;  %v13213_v35 = vld [vmem:[%s15200_s2 + $0x1e58] sm:$0xf0]  ;;  %v14640_v62 = vld [vmem:[%s15200_s2 + $0x1f4c] sm:$0xf]  ;;  %v13088_v50 = vor.u32 %v14576_v11, %v13085_v48  ;;  %v8160_v12 = vpop.f32.mrf.mxu2  ;;  %v8176_v55 = vpop.f32.mrf.mxu3 }
 0x445   : > { %8518 = vmatpush.bf16.msrb.mxu0 %v12992_v53  ;;  %v13341_v37 = vld [vmem:[%s15200_s2 + $0x1f58] sm:$0xf0]  ;;  %v13216_v4 = vor.u32 %v14608_v36, %v13213_v35  ;;  %v14540_v2 = vld [vmem:[%s15200_s2 + $0x1c2c] sm:$0xf] }
 0x446   : > { %8532 = vmatpush.bf16.msrb.mxu1 %v13120_v13  ;;  %v12941_v0 = vld [vmem:[%s15200_s2 + $0x1c38] sm:$0xf0]  ;;  %v14572_v41 = vld [vmem:[%s15200_s2 + $0x1d2c] sm:$0xf]  ;;  %v13344_v14 = vor.u32 %v14640_v62, %v13341_v37 }
 0x447   : > { %8546 = vmatpush.bf16.msrb.mxu2 %v13248_v26  ;;  %v13069_v1 = vld [vmem:[%s15200_s2 + $0x1d38] sm:$0xf0]  ;;  %v14604_v58 = vld [vmem:[%s15200_s2 + $0x1e2c] sm:$0xf]  ;;  %v12944_v59 = vor.u32 %v14540_v2, %v12941_v0 }
 0x448   : > { %8560 = vmatpush.bf16.msrb.mxu3 %v13376_v40  ;;  %v13197_v31 = vld [vmem:[%s15200_s2 + $0x1e38] sm:$0xf0]  ;;  %v14636_v49 = vld [vmem:[%s15200_s2 + $0x1f2c] sm:$0xf]  ;;  %v13072_v61 = vor.u32 %v14572_v41, %v13069_v1 }
 0x449   : > { %8519 = vmatpush.bf16.msrb.mxu0 %v12976_v51  ;;  %v13325_v23 = vld [vmem:[%s15200_s2 + $0x1f38] sm:$0xf0]  ;;  %v13200_v27 = vor.u32 %v14604_v58, %v13197_v31  ;;  %v14536_v33 = vld [vmem:[%s15200_s2 + $0x1c0c] sm:$0xf]  ;;  %v8134_v28 = vpop.f32.mrf.mxu0 }
 0x44a   : > { %8533 = vmatpush.bf16.msrb.mxu1 %v13104_v30  ;;  %v12925_v8 = vld [vmem:[%s15200_s2 + $0x1c18] sm:$0xf0]  ;;  %v14568_v19 = vld [vmem:[%s15200_s2 + $0x1d0c] sm:$0xf]  ;;  %v13328_v46 = vor.u32 %v14636_v49, %v13325_v23  ;;  %v8148_v17 = vpop.f32.mrf.mxu1  ;;  %v8161_v30 = vadd.f32 %v8160_v12, %v8147_v10 }
 0x44b   : > { %8547 = vmatpush.bf16.msrb.mxu2 %v13232_v20  ;;  %v13053_v21 = vld [vmem:[%s15200_s2 + $0x1d18] sm:$0xf0]  ;;  %v14600_v52 = vld [vmem:[%s15200_s2 + $0x1e0c] sm:$0xf]  ;;  %v12928_v56 = vor.u32 %v14536_v33, %v12925_v8 }
 0x44c   : > { %8561 = vmatpush.bf16.msrb.mxu3 %v13360_v25  ;;  %v13181_v7 = vld [vmem:[%s15200_s2 + $0x1e18] sm:$0xf0]  ;;  %v14632_v39 = vld [vmem:[%s15200_s2 + $0x1f0c] sm:$0xf]  ;;  %v13056_v42 = vor.u32 %v14568_v19, %v13053_v21  ;;  %v8162_v16 = vpop.f32.mrf.mxu2  ;;  %v8230_v43 = vpop.f32.mrf.mxu3  ;;  %v8175_v9 = vadd.f32 %v8174_v34, %v8161_v30  ;;  %v8149_v25 = vadd.f32 %v8148_v17, %v8134_v28 }
 0x44d   : > { %8520 = vmatpush.bf16.msrb.mxu0 %v12960_v54  ;;  %v13309_v63 = vld [vmem:[%s15200_s2 + $0x1f18] sm:$0xf0]  ;;  %v13184_v57 = vor.u32 %v14600_v52, %v13181_v7  ;;  %v18118_v29 = vld [vmem:[#allocation29_spill] sm:$0xff] }
 0x44e   : > { %8534 = vmatpush.bf16.msrb.mxu1 %v13088_v50  ;;  %v13312_v18 = vor.u32 %v14632_v39, %v13309_v63  ;;  %v18119_v38 = vld [vmem:[#allocation31_spill] sm:$0xff]  ;;  %v8163_v37 = vadd.f32 %v8162_v16, %v8149_v25 }
 0x44f   : > { %8548 = vmatpush.bf16.msrb.mxu2 %v13216_v4 }
 0x450   : > { %8562 = vmatpush.bf16.msrb.mxu3 %v13344_v14  ;;  %v8177_v4 = vadd.f32 %v8176_v55, %v8163_v37 }
 0x451   : > { %8521 = vmatpush.bf16.msrb.mxu0 %v12944_v59  ;;  %v8188_v53 = vpop.f32.mrf.mxu0 }
 0x452   : > { %8535 = vmatpush.bf16.msrb.mxu1 %v13072_v61  ;;  %v8202_v13 = vpop.f32.mrf.mxu1  ;;  %v8189_v48 = vadd.f32 %v8188_v53, %v8175_v9 }
 0x453   : > { %8549 = vmatpush.bf16.msrb.mxu2 %v13200_v27 }
 0x454   : > { %8563 = vmatpush.bf16.msrb.mxu3 %v13328_v46  ;;  %v8216_v26 = vpop.f32.mrf.mxu2  ;;  %v8232_v44 = vpop.f32.mrf.mxu3  ;;  %v8203_v54 = vadd.f32 %v8202_v13, %v8189_v48 }
 0x455   : > { %8522 = vmatpush.bf16.msrb.mxu0 %v12928_v56 }
 0x456   : > { %8536 = vmatpush.bf16.msrb.mxu1 %v13056_v42  ;;  %v8217_v2 = vadd.f32 %v8216_v26, %v8203_v54 }
 0x457   : > { %8550 = vmatpush.bf16.msrb.mxu2 %v13184_v57 }
 0x458   : > { %8564 = vmatpush.bf16.msrb.mxu3 %v13312_v18  ;;  %8523 = vmatmul.bf16.vlgmr.msrb.gmra.mxu0 %v18116_v47  ;;  %v8231_v1 = vadd.f32 %v8230_v43, %v8217_v2 }
 0x459   : > { %8537 = vmatmul.bf16.vlgmr.msrb.gmra.mxu1 %v18117_v3  ;;  %v8190_v6 = vpop.f32.mrf.mxu0 }
 0x45a   : > { %8551 = vmatmul.bf16.vlgmr.msrb.gmra.mxu2 %v18118_v29  ;;  %v8204_v15 = vpop.f32.mrf.mxu1  ;;  %v8191_v41 = vadd.f32 %v8190_v6, %v8177_v4 }
 0x45b   : > { %8565 = vmatmul.bf16.vlgmr.msrb.gmra.mxu3 %v18119_v38 }
 0x45c   : > { %v8218_v40 = vpop.f32.mrf.mxu2  ;;  %v8286_v51 = vpop.f32.mrf.mxu3  ;;  %v8205_v31 = vadd.f32 %v8204_v15, %v8191_v41 }
 0x45e   : > { %v8219_v23 = vadd.f32 %v8218_v40, %v8205_v31 }
 0x460   : > { %v8233_v8 = vadd.f32 %v8232_v44, %v8219_v23 }
 0x461   : > { %v8244_v24 = vpop.f32.mrf.mxu0 }
 0x462   : > { %v8258_v22 = vpop.f32.mrf.mxu1  ;;  %v8245_v49 = vadd.f32 %v8244_v24, %v8231_v1 }
 0x464   : > { %v8272_v45 = vpop.f32.mrf.mxu2  ;;  %v8288_v36 = vpop.f32.mrf.mxu3  ;;  %v8259_v61 = vadd.f32 %v8258_v22, %v8245_v49 }
 0x466   : > { %v8273_v19 = vadd.f32 %v8272_v45, %v8259_v61 }
 0x468   : > { %v8287_v52 = vadd.f32 %v8286_v51, %v8273_v19 }
 0x469   : > { %v8246_v20 = vpop.f32.mrf.mxu0 }
 0x46a   : > { %v8260_v32 = vpop.f32.mrf.mxu1  ;;  %v8247_v21 = vadd.f32 %v8246_v20, %v8233_v8 }
 0x46c   : > { %v8274_v11 = vpop.f32.mrf.mxu2  ;;  %v8342_v0 = vpop.f32.mrf.mxu3  ;;  %v8261_v39 = vadd.f32 %v8260_v32, %v8247_v21 }
 0x46e   : > { %v8275_v42 = vadd.f32 %v8274_v11, %v8261_v39  ;;  %v470_v39 = vld [vmem:[#allocation2 + $0x10] sm:$0xff] }
 0x470   : > { %v8289_v60 = vadd.f32 %v8288_v36, %v8275_v42 }
 0x471   : > { %v8300_v35 = vpop.f32.mrf.mxu0 }
 0x472   : > { %v8314_v62 = vpop.f32.mrf.mxu1  ;;  %v8301_v63 = vadd.f32 %v8300_v35, %v8287_v52 }
 0x474   : > { %v8328_v50 = vpop.f32.mrf.mxu2  ;;  %v8344_v27 = vpop.f32.mrf.mxu3  ;;  %v8315_v18 = vadd.f32 %v8314_v62, %v8301_v63 }
 0x476   : > { %v8329_v47 = vadd.f32 %v8328_v50, %v8315_v18 }
 0x478   : > { %v8343_v38 = vadd.f32 %v8342_v0, %v8329_v47  ;;  %v474_v47 = vld [vmem:[#allocation2 + $0x38] sm:$0xff] }
 0x479   : > { %v8302_v14 = vpop.f32.mrf.mxu0 }
 0x47a   : > { %v8316_v58 = vpop.f32.mrf.mxu1  ;;  %v8303_v3 = vadd.f32 %v8302_v14, %v8289_v60 }
 0x47c   : > { %v8330_v59 = vpop.f32.mrf.mxu2  ;;  %v8317_v28 = vadd.f32 %v8316_v58, %v8303_v3 }
 0x47e   : > { %v8398_v56 = vpop.f32.mrf.mxu3  ;;  %v8331_v55 = vadd.f32 %v8330_v59, %v8317_v28 }
 0x480   : > { %v8345_v26 = vadd.f32 %v8344_v27, %v8331_v55 }
 0x481   : > { %v8356_v33 = vpop.f32.mrf.mxu0 }
 0x482   : > { %v8370_v46 = vpop.f32.mrf.mxu1  ;;  %v8357_v17 = vadd.f32 %v8356_v33, %v8343_v38 }
 0x484   : > { %v8384_v7 = vpop.f32.mrf.mxu2  ;;  %v8371_v53 = vadd.f32 %v8370_v46, %v8357_v17 }
 0x486   : > { %v8400_v12 = vpop.f32.mrf.mxu3  ;;  %v8385_v43 = vadd.f32 %v8384_v7, %v8371_v53 }
 0x488   : > { %v8399_v44 = vadd.f32 %v8398_v56, %v8385_v43 }
 0x489   : > { %v8358_v57 = vpop.f32.mrf.mxu0 }
 0x48a   : > { %v8372_v5 = vpop.f32.mrf.mxu1  ;;  %v8359_v15 = vadd.f32 %v8358_v57, %v8345_v26 }
 0x48c   : > { %v8386_v29 = vpop.f32.mrf.mxu2  ;;  %v8373_v22 = vadd.f32 %v8372_v5, %v8359_v15 }
 0x48e   : > { %v8387_v45 = vadd.f32 %v8386_v29, %v8373_v22 }
 0x490   : > { %v8401_v9 = vadd.f32 %v8400_v12, %v8387_v45 }
 0x495   : > { %v8412_v34 = vpop.f32.mrf.mxu0 }
 0x496   : > { %v8426_v16 = vpop.f32.mrf.mxu1  ;;  %v8413_v10 = vadd.f32 %v8412_v34, %v8399_v44 }
 0x498   : > { %v8427_v30 = vadd.f32 %v8426_v16, %v8413_v10 }
 0x49d   : > { %v8440_v13 = vpop.f32.mrf.mxu2  ;;  %v8414_v40 = vpop.f32.mrf.mxu0 }
 0x49e   : > { %v8454_v6 = vpop.f32.mrf.mxu3  ;;  %v8428_v24 = vpop.f32.mrf.mxu1  ;;  %v8441_v11 = vadd.f32 %v8440_v13, %v8427_v30  ;;  %v8415_v48 = vadd.f32 %v8414_v40, %v8401_v9 }
 0x4a0   : > { %v8455_v36 = vadd.f32 %v8454_v6, %v8441_v11  ;;  %v8429_v62 = vadd.f32 %v8428_v24, %v8415_v48 }
 0x4a5   : > { %v8442_v51 = vpop.f32.mrf.mxu2 }
 0x4a6   : > { %v8456_v20 = vpop.f32.mrf.mxu3  ;;  %v8443_v50 = vadd.f32 %v8442_v51, %v8429_v62 }
 0x4a8   : > { %v8457_v41 = vadd.f32 %v8456_v20, %v8443_v50 }
 0x4b5   : > { %v8468_v32 = vpop.f32.mrf.mxu0 }
 0x4b6   : > { %v8482_v25 = vpop.f32.mrf.mxu1  ;;  %v8469_v37 = vadd.f32 %v8468_v32, %v8455_v36 }
 0x4b8   : > { %v8483_v2 = vadd.f32 %v8482_v25, %v8469_v37 }
 0x4bd   : > { %v8496_v35 = vpop.f32.mrf.mxu2  ;;  %v8470_v4 = vpop.f32.mrf.mxu0 }
 0x4be   : > { %v8510_v54 = vpop.f32.mrf.mxu3  ;;  %v8484_v0 = vpop.f32.mrf.mxu1  ;;  %v8497_v14 = vadd.f32 %v8496_v35, %v8483_v2  ;;  %v8471_v1 = vadd.f32 %v8470_v4, %v8457_v41 }
 0x4c0   : > { %v8511_v31 = vadd.f32 %v8510_v54, %v8497_v14  ;;  %v8485_v59 = vadd.f32 %v8484_v0, %v8471_v1 }
 0x4c5   : > { %v8498_v58 = vpop.f32.mrf.mxu2 }
 0x4c6   : > { %v8512_v49 = vpop.f32.mrf.mxu3  ;;  %v8499_v33 = vadd.f32 %v8498_v58, %v8485_v59 }
 0x4c8   : > { %v8513_v46 = vadd.f32 %v8512_v49, %v8499_v33 }
 0x4d5   : > { %v8524_v23 = vpop.f32.mrf.mxu0 }
 0x4d6   : > { %v8525_v61 = vadd.f32 %v8524_v23, %v8511_v31  ;;  %v8538_v27 = vpop.f32.mrf.mxu1 }
 0x4d8   : > { %v8539_v8 = vadd.f32 %v8538_v27, %v8525_v61 }
 0x4dd   : > { %v8552_v19 = vpop.f32.mrf.mxu2  ;;  %v8526_v7 = vpop.f32.mrf.mxu0 }
 0x4de   : > { %v8553_v21 = vadd.f32 %v8552_v19, %v8539_v8  ;;  %v8566_v52 = vpop.f32.mrf.mxu3  ;;  %v8527_v56 = vadd.f32 %v8526_v7, %v8513_v46  ;;  %v8540_v57 = vpop.f32.mrf.mxu1 }
 0x4e0   : > { %v8567_v63 = vadd.f32 %v8566_v52, %v8553_v21  ;;  %v8541_v18 = vadd.f32 %v8540_v57, %v8527_v56 }
 0x4e2   : > { %v8574_v42 = vadd.f32 %v8567_v63, %v470_v39 }
 0x4e4   : > { %8582 = vst [vmem:[#allocation2 + $0x10] sm:$0xff] %v8574_v42 }
 0x4e5   : > { %v8554_v5 = vpop.f32.mrf.mxu2 }
 0x4e6   : > { %v8555_v60 = vadd.f32 %v8554_v5, %v8541_v18  ;;  %v8568_v3 = vpop.f32.mrf.mxu3 }
 0x4e8   : > { %v8569_v29 = vadd.f32 %v8568_v3, %v8555_v60  ;;  %8590 = sbr.rel (%p13425_p1) target bundleno = 1720 (0x6b8), region = 88 }
 0x4ea   : > { %v8578_v38 = vadd.f32 %v8569_v29, %v474_v47 }
 0x4ec   : > { %8586 = vst [vmem:[#allocation2 + $0x38] sm:$0xff] %v8578_v38 }
 0x4ed   : > { %v14670_v12 = vld [vmem:[#allocation7 + $0x38] sm:$0xff]  ;;  %v14669_v16 = vld [vmem:[#allocation7 + $0x30] sm:$0xff]  ;;  %v14668_v26 = vld [vmem:[#allocation7 + $0x28] sm:$0xff]  ;;  %vm9069_vm0 = vcmask 523264   ;;  %vm9087_vm1 = vcmask 64512  }
 0x4ee   : > { %v14678_v34 = vld [vmem:[#allocation7 + $0x78] sm:$0xff]  ;;  %8889 = vmatpush.bf16.msra.mxu0 %v14670_v12  ;;  %v14677_v55 = vld [vmem:[#allocation7 + $0x70] sm:$0xff]  ;;  %v14676_v43 = vld [vmem:[#allocation7 + $0x68] sm:$0xff] }
 0x4ef   : > { %v14686_v28 = vld [vmem:[#allocation7 + $0xb8] sm:$0xff]  ;;  %8903 = vmatpush.bf16.msra.mxu1 %v14678_v34  ;;  %v14685_v53 = vld [vmem:[#allocation7 + $0xb0] sm:$0xff]  ;;  %v14684_v6 = vld [vmem:[#allocation7 + $0xa8] sm:$0xff] }
 0x4f0   : > { %v14694_v17 = vld [vmem:[#allocation7 + $0xf8] sm:$0xff]  ;;  %8917 = vmatpush.bf16.msra.mxu2 %v14686_v28  ;;  %v14693_v13 = vld [vmem:[#allocation7 + $0xf0] sm:$0xff]  ;;  %v14692_v15 = vld [vmem:[#allocation7 + $0xe8] sm:$0xff] }
 0x4f1   : > { %8931 = vmatpush.bf16.msra.mxu3 %v14694_v17  ;;  %v14667_v40 = vld [vmem:[#allocation7 + $0x20] sm:$0xff]  ;;  %v14666_v10 = vld [vmem:[#allocation7 + $0x18] sm:$0xff]  ;;  %v14665_v32 = vld [vmem:[#allocation7 + $0x10] sm:$0xff] }
 0x4f2   : > { %8890 = vmatpush.bf16.msra.mxu0 %v14669_v16  ;;  %v14675_v44 = vld [vmem:[#allocation7 + $0x60] sm:$0xff]  ;;  %v8599_v45 = vld [vmem:[#allocation5] sm:$0xf]  ;;  %v14673_v9 = vld [vmem:[#allocation7 + $0x50] sm:$0xff] }
 0x4f3   : > { %8904 = vmatpush.bf16.msra.mxu1 %v14677_v55  ;;  %v14683_v24 = vld [vmem:[#allocation7 + $0xa0] sm:$0xff]  ;;  %v14674_v51 = vld [vmem:[#allocation7 + $0x58] sm:$0xff]  ;;  %v8601_v11 = vperm.slane %v8599_v45, 0  ;;  %v14681_v25 = vld [vmem:[#allocation7 + $0x90] sm:$0xff]  ;;  %v8602_v62 = vperm.slane %v8599_v45, 1  ;;  %v8603_v37 = vperm.slane %v8599_v45, 2 }
 0x4f4   : > { %8918 = vmatpush.bf16.msra.mxu2 %v14685_v53  ;;  %v14691_v22 = vld [vmem:[#allocation7 + $0xe0] sm:$0xff]  ;;  %v14682_v30 = vld [vmem:[#allocation7 + $0x98] sm:$0xff]  ;;  %v14689_v48 = vld [vmem:[#allocation7 + $0xd0] sm:$0xff]  ;;  %v8604_v2 = vperm.slane %v8599_v45, 3 }
 0x4f5   : > { %8932 = vmatpush.bf16.msra.mxu3 %v14693_v13  ;;  %v14690_v20 = vld [vmem:[#allocation7 + $0xd8] sm:$0xff]  ;;  %v8591_v36 = vld [vmem:[#allocation2 + $0x30] sm:$0xff]  ;;  %v8595_v35 = vld [vmem:[#allocation2 + $0x8] sm:$0xff] }
 0x4f6   : > { %8891 = vmatpush.bf16.msra.mxu0 %v14668_v26  ;;  %v8592_v54 = vld [vmem:[#allocation2] sm:$0xff]  ;;  %v8593_v4 = vld [vmem:[#allocation2 + $0x18] sm:$0xff]  ;;  %v8597_v0 = vld [vmem:[#allocation2 + $0x28] sm:$0xff]  ;;  %v8609_v1 = vadd.f32 %v8601_v11, %v8591_v36  ;;  %v8613_v58 = vadd.f32 %v8601_v11, %v8595_v35 }
 0x4f7   : > { %8905 = vmatpush.bf16.msra.mxu1 %v14676_v43  ;;  %v8596_v50 = vld [vmem:[#allocation2 + $0x20] sm:$0xff]  ;;  %v8594_v41 = vld [vmem:[#allocation2 + $0x10] sm:$0xff]  ;;  %v8598_v14 = vld [vmem:[#allocation2 + $0x38] sm:$0xff]  ;;  %v8610_v31 = vadd.f32 %v8602_v62, %v8592_v54  ;;  %v8611_v23 = vadd.f32 %v8603_v37, %v8593_v4  ;;  %v8615_v27 = vadd.f32 %v8603_v37, %v8597_v0 }
 0x4f8   : > { %8919 = vmatpush.bf16.msra.mxu2 %v14684_v6  ;;  %v8614_v49 = vadd.f32 %v8602_v62, %v8596_v50  ;;  %v14664_v59 = vld [vmem:[#allocation7 + $0x8] sm:$0xff]  ;;  %v8612_v33 = vadd.f32 %v8604_v2, %v8594_v41  ;;  %v8616_v8 = vadd.f32 %v8604_v2, %v8598_v14  ;;  %v8617_v21 = vmax.f32 %v8609_v1, 0.0  ;;  %v14663_v63 = vld [vmem:[#allocation7] sm:$0xff]  ;;  %v14702_v3 = vld [vmem:[%s18023_s5 + $0x38] sm:$0xff] }
 0x4f9   : > { %8933 = vmatpush.bf16.msra.mxu3 %v14692_v15  ;;  %v14672_v61 = vld [vmem:[#allocation7 + $0x48] sm:$0xff]  ;;  %v8621_v52 = vmax.f32 %v8613_v58, 0.0  ;;  %v8618_v7 = vmax.f32 %v8610_v31, 0.0  ;;  %v14671_v56 = vld [vmem:[#allocation7 + $0x40] sm:$0xff]  ;;  %v8619_v42 = vmax.f32 %v8611_v23, 0.0  ;;  %v8623_v57 = vmax.f32 %v8615_v27, 0.0 }
 0x4fa   : > { %8892 = vmatpush.bf16.msra.mxu0 %v14667_v40  ;;  %v14680_v19 = vld [vmem:[#allocation7 + $0x88] sm:$0xff]  ;;  %v8622_v39 = vmax.f32 %v8614_v49, 0.0  ;;  %v8620_v18 = vmax.f32 %v8612_v33, 0.0  ;;  %v8624_v5 = vmax.f32 %v8616_v8, 0.0  ;;  %v14679_v60 = vld [vmem:[#allocation7 + $0x80] sm:$0xff]  ;;  %v14698_v55 = vld [vmem:[%s18023_s5 + $0x18] sm:$0xff] }
 0x4fb   : > { %8906 = vmatpush.bf16.msra.mxu1 %v14675_v44  ;;  %v14688_v46 = vld [vmem:[#allocation7 + $0xc8] sm:$0xff]  ;;  %v14687_v47 = vld [vmem:[#allocation7 + $0xc0] sm:$0xff]  ;;  %v8625_v29 = vpack.c.bf16 %v8621_v52, %v8617_v21  ;;  %v8627_v12 = vpack.c.bf16 %v8623_v57, %v8619_v42  ;;  %v14706_v43 = vld [vmem:[%s18025_s7 + $0x18] sm:$0xff] }
 0x4fc   : > { %8920 = vmatpush.bf16.msra.mxu2 %v14683_v24  ;;  %v8626_v38 = vpack.c.bf16 %v8622_v39, %v8618_v7  ;;  %v8628_v34 = vpack.c.bf16 %v8624_v5, %v8620_v18  ;;  %v14701_v28 = vld [vmem:[%s18023_s5 + $0x30] sm:$0xff]  ;;  %v14700_v17 = vld [vmem:[%s18023_s5 + $0x28] sm:$0xff]  ;;  %v14699_v16 = vld [vmem:[%s18023_s5 + $0x20] sm:$0xff] }
 0x4fd   : > { %8934 = vmatpush.bf16.msra.mxu3 %v14691_v22  ;;  %v14697_v53 = vld [vmem:[%s18023_s5 + $0x10] sm:$0xff]  ;;  %v14696_v13 = vld [vmem:[%s18023_s5 + $0x8] sm:$0xff]  ;;  %v14695_v26 = vld [vmem:[%s18023_s5] sm:$0xff] }
 0x4fe   : > { %8893 = vmatpush.bf16.msra.mxu0 %v14666_v10  ;;  %v14802_v6 = vld [vmem:[#allocation8] ss:$0 sm:$0xff]  ;;  %v14705_v54 = vld [vmem:[%s18025_s7 + $0x10] sm:$0xff]  ;;  %v14704_v50 = vld [vmem:[%s18025_s7 + $0x8] sm:$0xff] }
 0x4ff   : > { %8907 = vmatpush.bf16.msra.mxu1 %v14674_v51  ;;  %v14703_v4 = vld [vmem:[%s18025_s7] sm:$0xff]  ;;  %v14804_v23 = vld [vmem:[#allocation11] ss:$0 sm:$0xff] }
 0x500   : > { %8921 = vmatpush.bf16.msra.mxu2 %v14682_v30  ;;  %v14803_v0 = vld [vmem:[#allocation10] ss:$0 sm:$0xff] }
 0x501   : > { %8935 = vmatpush.bf16.msra.mxu3 %v14690_v20 }
 0x502   : > { %8894 = vmatpush.bf16.msra.mxu0 %v14665_v32 }
 0x503   : > { %8908 = vmatpush.bf16.msra.mxu1 %v14673_v9 }
 0x504   : > { %8922 = vmatpush.bf16.msra.mxu2 %v14681_v25 }
 0x505   : > { %8936 = vmatpush.bf16.msra.mxu3 %v14689_v48 }
 0x506   : > { %8895 = vmatpush.bf16.msra.mxu0 %v14664_v59 }
 0x507   : > { %8909 = vmatpush.bf16.msra.mxu1 %v14672_v61 }
 0x508   : > { %8923 = vmatpush.bf16.msra.mxu2 %v14680_v19 }
 0x509   : > { %8937 = vmatpush.bf16.msra.mxu3 %v14688_v46 }
 0x50a   : > { %8896 = vmatpush.bf16.msra.mxu0 %v14663_v63 }
 0x50b   : > { %8910 = vmatpush.bf16.msra.mxu1 %v14671_v56 }
 0x50c   : > { %8924 = vmatpush.bf16.msra.mxu2 %v14679_v60 }
 0x50d   : > { %8938 = vmatpush.bf16.msra.mxu3 %v14687_v47  ;;  %8897 = vmatmul.bf16.vlgmr.msra.gmra.mxu0 %v8625_v29 }
 0x50e   : > { %9016 = vmatpush.bf16.msrb.mxu0 %v14702_v3  ;;  %8911 = vmatmul.bf16.vlgmr.msra.gmra.mxu1 %v8626_v38 }
 0x50f   : > { %8925 = vmatmul.bf16.vlgmr.msra.gmra.mxu2 %v8627_v12  ;;  %9077 = vmatpush.bf16.msrb.mxu1 %v14706_v43 }
 0x510   : > { %8939 = vmatmul.bf16.vlgmr.msra.gmra.mxu3 %v8628_v34 }
 0x512   : > { %9017 = vmatpush.bf16.msrb.mxu0 %v14701_v28 }
 0x513   : > { %9078 = vmatpush.bf16.msrb.mxu1 %v14705_v54 }
 0x516   : > { %9018 = vmatpush.bf16.msrb.mxu0 %v14700_v17 }
 0x517   : > { %9079 = vmatpush.bf16.msrb.mxu1 %v14704_v50 }
 0x51a   : > { %9019 = vmatpush.bf16.msrb.mxu0 %v14699_v16 }
 0x51b   : > { %9080 = vmatpush.bf16.msrb.mxu1 %v14703_v4 }
 0x51e   : > { %9020 = vmatpush.bf16.msrb.mxu0 %v14698_v55 }
 0x522   : > { %9021 = vmatpush.bf16.msrb.mxu0 %v14697_v53 }
 0x526   : > { %9022 = vmatpush.bf16.msrb.mxu0 %v14696_v13 }
 0x52a   : > { %9023 = vmatpush.bf16.msrb.mxu0 %v14695_v26 }
 0x58a   : > { %v8898_v15 = vpop.f32.mrf.mxu0 }
 0x58b   : > { %v8912_v40 = vpop.f32.mrf.mxu1  ;;  %v8899_v44 = vadd.f32 %v14802_v6, %v8898_v15 }
 0x58d   : > { %v8913_v10 = vadd.f32 %v8912_v40, %v8899_v44 }
 0x592   : > { %v8926_v24 = vpop.f32.mrf.mxu2  ;;  %v8900_v45 = vpop.f32.mrf.mxu0 }
 0x593   : > { %v8940_v22 = vpop.f32.mrf.mxu3  ;;  %v8901_v51 = vadd.f32 %v14802_v6, %v8900_v45  ;;  %v8927_v30 = vadd.f32 %v8926_v24, %v8913_v10  ;;  %v8914_v20 = vpop.f32.mrf.mxu1 }
 0x595   : > { %v8915_v32 = vadd.f32 %v8914_v20, %v8901_v51  ;;  %v8941_v11 = vadd.f32 %v8940_v22, %v8927_v30 }
 0x597   : > { %v8945_v35 = vmax.f32 %v8941_v11, 0.0 }
 0x59a   : > { %v8928_v9 = vpop.f32.mrf.mxu2 }
 0x59b   : > { %v8929_v25 = vadd.f32 %v8928_v9, %v8915_v32  ;;  %v8942_v48 = vpop.f32.mrf.mxu3 }
 0x59d   : > { %v8943_v36 = vadd.f32 %v8942_v48, %v8929_v25 }
 0x59f   : > { %v8946_v62 = vmax.f32 %v8943_v36, 0.0 }
 0x5a1   : > { %v8947_v37 = vpack.c.bf16 %v8946_v62, %v8945_v35 }
 0x5a3   : > { %9024 = vmatmul.bf16.vlgmr.msrb.gmra.mxu0 %v8947_v37 }
 0x620   : > { %v9025_v2 = vpop.f32.mrf.mxu0 }
 0x621   : > { %v9026_v41 = vadd.f32 %v14803_v0, %v9025_v2 }
 0x623   : > { %v9030_v58 = vmax.f32 %v9026_v41, 0.0 }
 0x628   : > { %v9027_v14 = vpop.f32.mrf.mxu0 }
 0x629   : > { %v9028_v1 = vadd.f32 %v14803_v0, %v9027_v14 }
 0x62b   : > { %v9031_v31 = vmax.f32 %v9028_v1, 0.0 }
 0x62d   : > { %v9032_v49 = vpack.c.bf16 %v9031_v31, %v9030_v58 }
 0x62f   : > { %13602 = vmatmul.msk.bf16.vlgmr.msrb.gmra.mxu1 %vm9069_vm0, %v9032_v49 }
 0x6ac   : > { %v9082_v59 = vpop.f32.mrf.mxu1 }
 0x6ad   : > { %v9083_v61 = vadd.f32 %v14804_v23, %v9082_v59 }
 0x6af   : > { %9088 = vst.msk [vmem:[%s18027_s9] sm:$0xff] %vm9087_vm1, %v9083_v61 }
 0x6b4   : > { %v9084_v27 = vpop.f32.mrf.mxu1 }
 0x6b5   : > { %v9085_v33 = vadd.f32 %v14804_v23, %v9084_v27 }
 0x6b7   : > { %9089 = vst.msk [vmem:[%s18027_s9 + $0x8] sm:$0xff] %vm9087_vm1, %v9085_v33 }
 0x6b8 PF: > { %p22_p3 = scmp.ge.s32.totalorder %s15158_s29, 4   ;;  %s18120_s30 = smov %s15023_s10 }
 0x6b9   : > { %s18121_s10 = smov %s15027_s11  ;;  %s18122_s11 = smov %s15169_s18 }
 0x6ba   : > { %s18123_s12 = smov %s15158_s29  ;;  %24 = sbr.rel (!%p22_p3) target bundleno = 8 (0x8), region = 121 }
 0x6bf   :  { %9101 = vsyncpa [#allocation4], 1 }
 0x6c0   :  { %9103 = vsyncpa [#allocation4 + $0x1], 1 }
 0x6c1   :  { %9104 = vsyncpa [#allocation6], 1 }
 0x6c2   :  { %9105 = vsyncpa [#allocation9], 1 }
 0x6c3   :  { %9106 = vsyncpa [#allocation12], 1 }

</bundles_post_ra>
